<compile_context>
chip_gen: v6e
topology: v6e:2x2x1
jax: 0.10.0
libtpu: 0.0.40
codegen_flags: <defaults>
</compile_context>

<pallas_src>
import functools

import jax
import jax.numpy as jnp
from jax import lax
from jax.experimental import pallas as pl
from jax.experimental.pallas import tpu as pltpu


def _round_up(n, m):
    return ((n + m - 1) // m) * m


@functools.lru_cache(maxsize=None)
def _vmem_limit_bytes():
    # Generation-aware VMEM budget: ~75% of physical VMEM (~96 MiB on v5e/v6e,
    # ~48 MiB on v7x), clamped to a safe range.
    try:
        cap = int(pltpu.get_tpu_info().vmem_capacity_bytes)
    except Exception:
        cap = 64 * 1024 * 1024
    return max(32 * 1024 * 1024, min(int(cap * 3 // 4), 100 * 1024 * 1024))


# ----------------------------------------------------------------------------
# 2-layer Linear+ReLU MLP (encoder_z / encoder_inp).
# Batch tiled ("parallel" -> megacore), bf16 resident weights, f32 accumulation.
# ----------------------------------------------------------------------------
def _mlp2_kernel(x_ref, w1_ref, b1_ref, w2_ref, b2_ref, o_ref):
    x = x_ref[...].astype(jnp.bfloat16)
    h = jnp.dot(x, w1_ref[...], preferred_element_type=jnp.float32) + b1_ref[...]
    h = jnp.maximum(h, 0.0)
    o = jnp.dot(h.astype(jnp.bfloat16), w2_ref[...],
                preferred_element_type=jnp.float32) + b2_ref[...]
    o_ref[...] = jnp.maximum(o, 0.0).astype(o_ref.dtype)


def mlp2_forward(x, w1, b1, w2, b2, *, block_b=256, out_dtype=jnp.float32):
    B, D = x.shape
    H = w1.shape[1]
    O = w2.shape[1]

    Dp = _round_up(D, 128)                       # lane-pad contraction dim (300 -> 384)
    if Dp != D:
        x = jnp.pad(x, ((0, 0), (0, Dp - D)))
        w1 = jnp.pad(w1, ((0, Dp - D), (0, 0)))

    TB = min(block_b, _round_up(B, 8))
    Bp = _round_up(B, TB)
    if Bp != B:
        x = jnp.pad(x, ((0, Bp - B), (0, 0)))

    w1b = w1.astype(jnp.bfloat16)                # resident bf16 weights
    w2b = w2.astype(jnp.bfloat16)
    b1r = b1.reshape(1, H).astype(jnp.float32)
    b2r = b2.reshape(1, O).astype(jnp.float32)

    out = pl.pallas_call(
        _mlp2_kernel,
        out_shape=jax.ShapeDtypeStruct((Bp, O), out_dtype),
        grid_spec=pltpu.PrefetchScalarGridSpec(
            num_scalar_prefetch=0,
            grid=(Bp // TB,),
            in_specs=[
                pl.BlockSpec((TB, Dp), lambda i: (i, 0)),
                pl.BlockSpec((Dp, H), lambda i: (0, 0)),   # resident across steps
                pl.BlockSpec((1, H), lambda i: (0, 0)),
                pl.BlockSpec((H, O), lambda i: (0, 0)),    # resident across steps
                pl.BlockSpec((1, O), lambda i: (0, 0)),
            ],
            out_specs=pl.BlockSpec((TB, O), lambda i: (i, 0)),
        ),
        compiler_params=pltpu.CompilerParams(
            dimension_semantics=("parallel",),
            vmem_limit_bytes=_vmem_limit_bytes(),
        ),
    )(x, w1b, b1r, w2b, b2r)

    return out[:B] if Bp != B else out


# ----------------------------------------------------------------------------
# Key-encoder MLP with the momentum (EMA) update fused in.
#   k' = m*k + (1-m)*q  is computed on grid step 0 (f32), written to the
#   resident param outputs, and reused (cast to bf16) for the matmuls.
# ----------------------------------------------------------------------------
def _mlp2_ema_kernel(x_ref, w1q, b1q, w2q, b2q, w1k, b1k, w2k, b2k,
                     o_ref, w1o, b1o, w2o, b2o, *, momentum):
    @pl.when(pl.program_id(0) == 0)
    def _():
        w1o[...] = w1k[...] * momentum + w1q[...] * (1.0 - momentum)
        b1o[...] = b1k[...] * momentum + b1q[...] * (1.0 - momentum)
        w2o[...] = w2k[...] * momentum + w2q[...] * (1.0 - momentum)
        b2o[...] = b2k[...] * momentum + b2q[...] * (1.0 - momentum)

    x = x_ref[...].astype(jnp.bfloat16)
    h = jnp.dot(x, w1o[...].astype(jnp.bfloat16),
                preferred_element_type=jnp.float32) + b1o[...]
    h = jnp.maximum(h, 0.0)
    o = jnp.dot(h.astype(jnp.bfloat16), w2o[...].astype(jnp.bfloat16),
                preferred_element_type=jnp.float32) + b2o[...]
    o_ref[...] = jnp.maximum(o, 0.0).astype(o_ref.dtype)


def mlp2_ema_forward(x, params_q, params_k, momentum, *, block_b=256,
                     out_dtype=jnp.bfloat16):
    """Returns (encoder_k'(x), updated key-encoder params)."""
    w1q, b1q, w2q, b2q = params_q
    w1k, b1k, w2k, b2k = params_k
    B, D = x.shape
    H = w1q.shape[1]
    O = w2q.shape[1]

    Dp = _round_up(D, 128)
    if Dp != D:
        pad = ((0, Dp - D), (0, 0))
        x = jnp.pad(x, ((0, 0), (0, Dp - D)))
        w1q = jnp.pad(w1q, pad)
        w1k = jnp.pad(w1k, pad)

    TB = min(block_b, _round_up(B, 8))
    Bp = _round_up(B, TB)
    if Bp != B:
        x = jnp.pad(x, ((0, Bp - B), (0, 0)))

    b1q_r = b1q.reshape(1, H)
    b2q_r = b2q.reshape(1, O)
    b1k_r = b1k.reshape(1, H)
    b2k_r = b2k.reshape(1, O)

    def const(shape):
        return pl.BlockSpec(shape, lambda i: (0, 0))

    y, w1n, b1n, w2n, b2n = pl.pallas_call(
        functools.partial(_mlp2_ema_kernel, momentum=float(momentum)),
        out_shape=(
            jax.ShapeDtypeStruct((Bp, O), out_dtype),
            jax.ShapeDtypeStruct((Dp, H), jnp.float32),
            jax.ShapeDtypeStruct((1, H), jnp.float32),
            jax.ShapeDtypeStruct((H, O), jnp.float32),
            jax.ShapeDtypeStruct((1, O), jnp.float32),
        ),
        grid_spec=pltpu.PrefetchScalarGridSpec(
            num_scalar_prefetch=0,
            grid=(Bp // TB,),
            in_specs=[
                pl.BlockSpec((TB, Dp), lambda i: (i, 0)),
                const((Dp, H)), const((1, H)), const((H, O)), const((1, O)),
                const((Dp, H)), const((1, H)), const((H, O)), const((1, O)),
            ],
            out_specs=(
                pl.BlockSpec((TB, O), lambda i: (i, 0)),
                const((Dp, H)), const((1, H)), const((H, O)), const((1, O)),
            ),
        ),
        compiler_params=pltpu.CompilerParams(
            # The updated params are written on step 0 and read on later steps,
            # so this axis must run sequentially on one core.
            dimension_semantics=("arbitrary",),
            vmem_limit_bytes=_vmem_limit_bytes(),
        ),
    )(x, w1q, b1q_r, w2q, b2q_r, w1k, b1k_r, w2k, b2k_r)

    y = y[:B] if Bp != B else y
    params_new = (w1n[:D] if Dp != D else w1n,
                  b1n.reshape(H), w2n, b2n.reshape(O))
    return y, params_new


# ----------------------------------------------------------------------------
# Contrastive head: online-logsumexp over negative tiles, CE(label=0) mean
# folded into the kernel.  Output is a single (1,1) scalar.
# ----------------------------------------------------------------------------
def _head_kernel(z_ref, p_ref, n_ref, o_ref, pos_sc, m_sc, l_sc, acc_sc, *,
                 inv_t, n_valid, b_valid, tn, tb):
    bi = pl.program_id(0)
    nj = pl.program_id(1)
    last_n = pl.num_programs(1) - 1

    @pl.when(jnp.logical_and(bi == 0, nj == 0))
    def _():
        acc_sc[...] = jnp.zeros_like(acc_sc)

    @pl.when(nj == 0)
    def _():
        pos = jnp.sum(z_ref[...] * p_ref[...], axis=-1, keepdims=True) * inv_t
        pos_sc[...] = pos
        m_sc[...] = pos                      # positive logit seeds the running max
        l_sc[...] = jnp.ones_like(l_sc)      # exp(pos - pos) = 1

    # (TB, TN) negative logits on the MXU: z @ neg.T (NT dot), bf16 in, f32 acc.
    s = lax.dot_general(z_ref[...].astype(jnp.bfloat16), n_ref[...],
                        (((1,), (1,)), ((), ())),
                        preferred_element_type=jnp.float32) * inv_t
    col = lax.broadcasted_iota(jnp.int32, s.shape, 1) + nj * tn
    s = jnp.where(col < n_valid, s, -1e30)   # mask padded negatives

    m_new = jnp.maximum(m_sc[...], jnp.max(s, axis=-1, keepdims=True))
    l_sc[...] = (l_sc[...] * jnp.exp(m_sc[...] - m_new)
                 + jnp.sum(jnp.exp(s - m_new), axis=-1, keepdims=True))
    m_sc[...] = m_new

    @pl.when(nj == last_n)
    def _():
        row_loss = m_sc[...] + jnp.log(l_sc[...]) - pos_sc[...]
        row = lax.broadcasted_iota(jnp.int32, row_loss.shape, 0) + bi * tb
        row_loss = jnp.where(row < b_valid, row_loss, 0.0)   # mask padded rows
        acc_sc[...] += jnp.sum(row_loss, axis=0, keepdims=True)

    @pl.when(jnp.logical_and(bi == pl.num_programs(0) - 1, nj == last_n))
    def _():
        o_ref[...] = acc_sc[...] * (1.0 / b_valid)


def moco_head_loss(z_p, pos_vec, neg_p, temperature, *, block_b=256, block_n=512):
    B, H = z_p.shape
    N = neg_p.shape[0]

    TB = min(block_b, _round_up(B, 8))
    Bp = _round_up(B, TB)
    if Bp != B:
        z_p = jnp.pad(z_p, ((0, Bp - B), (0, 0)))
        pos_vec = jnp.pad(pos_vec, ((0, Bp - B), (0, 0)))

    TN = min(block_n, _round_up(N, 128))     # negatives map to the lane axis
    Np = _round_up(N, TN)
    if Np != N:
        neg_p = jnp.pad(neg_p, ((0, Np - N), (0, 0)))
    neg_b = neg_p.astype(jnp.bfloat16)        # streamed bf16 negative tiles

    out = pl.pallas_call(
        functools.partial(_head_kernel, inv_t=1.0 / float(temperature),
                          n_valid=N, b_valid=B, tn=TN, tb=TB),
        out_shape=jax.ShapeDtypeStruct((1, 1), jnp.float32),
        grid_spec=pltpu.PrefetchScalarGridSpec(
            num_scalar_prefetch=0,
            grid=(Bp // TB, Np // TN),        # online-LSE reduction axis innermost
            in_specs=[
                pl.BlockSpec((TB, H), lambda i, j: (i, 0)),
                pl.BlockSpec((TB, H), lambda i, j: (i, 0)),
                pl.BlockSpec((TN, H), lambda i, j: (j, 0)),
            ],
            out_specs=pl.BlockSpec((1, 1), lambda i, j: (0, 0)),
            scratch_shapes=[
                pltpu.VMEM((TB, 1), jnp.float32),   # positive logit
                pltpu.VMEM((TB, 1), jnp.float32),   # running max
                pltpu.VMEM((TB, 1), jnp.float32),   # running sum-exp
                pltpu.VMEM((1, 1), jnp.float32),    # loss-sum accumulator
            ],
        ),
        compiler_params=pltpu.CompilerParams(
            dimension_semantics=("arbitrary", "arbitrary"),
            vmem_limit_bytes=_vmem_limit_bytes(),
        ),
    )(z_p, pos_vec, neg_b)

    return out[0, 0]


# ----------------------------------------------------------------------------
# Fully fused single-kernel forward for small problems (launch-overhead bound).
# ----------------------------------------------------------------------------
def _fused_kernel(z_ref, p_ref, n_ref,
                  w1z, b1z, w2z, b2z,
                  w1q, b1q, w2q, b2q,
                  w1k, b1k, w2k, b2k,
                  loss_ref, zp_ref, w1o, b1o, w2o, b2o,
                  *, momentum, inv_t, n_valid, b_valid):
    f32 = jnp.float32
    bf16 = jnp.bfloat16

    # EMA update (f32), written out and reused for the key encoder below.
    w1n = w1k[...] * momentum + w1q[...] * (1.0 - momentum)
    b1n = b1k[...] * momentum + b1q[...] * (1.0 - momentum)
    w2n = w2k[...] * momentum + w2q[...] * (1.0 - momentum)
    b2n = b2k[...] * momentum + b2q[...] * (1.0 - momentum)
    w1o[...] = w1n
    b1o[...] = b1n
    w2o[...] = w2n
    b2o[...] = b2n

    def mlp(x, w1, b1, w2, b2):
        h = jnp.dot(x.astype(bf16), w1.astype(bf16),
                    preferred_element_type=f32) + b1
        h = jnp.maximum(h, 0.0)
        o = jnp.dot(h.astype(bf16), w2.astype(bf16),
                    preferred_element_type=f32) + b2
        return jnp.maximum(o, 0.0)

    z_p = mlp(z_ref[...], w1z[...], b1z[...], w2z[...], b2z[...])
    p_vec = mlp(p_ref[...], w1q[...], b1q[...], w2q[...], b2q[...])
    n_p = mlp(n_ref[...], w1n, b1n, w2n, b2n)

    zp_ref[...] = z_p.astype(zp_ref.dtype)

    pos = jnp.sum(z_p * p_vec, axis=-1, keepdims=True) * inv_t           # (B,1)
    neg = lax.dot_general(z_p.astype(bf16), n_p.astype(bf16),
                          (((1,), (1,)), ((), ())),
                          preferred_element_type=f32) * inv_t             # (B,N)
    col = lax.broadcasted_iota(jnp.int32, neg.shape, 1)
    neg = jnp.where(col < n_valid, neg, -1e30)                            # pad mask

    m = jnp.maximum(pos, jnp.max(neg, axis=-1, keepdims=True))
    lse = m + jnp.log(jnp.exp(pos - m)
                      + jnp.sum(jnp.exp(neg - m), axis=-1, keepdims=True))
    row_loss = lse - pos
    row = lax.broadcasted_iota(jnp.int32, row_loss.shape, 0)
    row_loss = jnp.where(row < b_valid, row_loss, 0.0)
    loss_ref[...] = jnp.sum(row_loss, axis=0, keepdims=True) * (1.0 / b_valid)


def _moco_forward_fused(params_z, params_inp, params_k, z_, pos1, neg_batch,
                        *, m, temperature):
    w1z, b1z, w2z, b2z = params_z
    w1q, b1q, w2q, b2q = params_inp
    w1k, b1k, w2k, b2k = params_k

    B, Dz = z_.shape
    N, D = neg_batch.shape
    H = w1z.shape[1]
    O = w2z.shape[1]

    Dzp = _round_up(Dz, 128)
    Dp = _round_up(D, 128)
    Bp = _round_up(B, 8)
    Np = _round_up(N, 128)     # lane-dense logits; padded columns masked in-kernel

    if Dzp != Dz:
        z_ = jnp.pad(z_, ((0, 0), (0, Dzp - Dz)))
        w1z = jnp.pad(w1z, ((0, Dzp - Dz), (0, 0)))
    if Dp != D:
        pos1 = jnp.pad(pos1, ((0, 0), (0, Dp - D)))
        neg_batch = jnp.pad(neg_batch, ((0, 0), (0, Dp - D)))
        pad = ((0, Dp - D), (0, 0))
        w1q = jnp.pad(w1q, pad)
        w1k = jnp.pad(w1k, pad)
    if Bp != B:
        z_ = jnp.pad(z_, ((0, Bp - B), (0, 0)))
        pos1 = jnp.pad(pos1, ((0, Bp - B), (0, 0)))
    if Np != N:
        neg_batch = jnp.pad(neg_batch, ((0, Np - N), (0, 0)))

    # encoder_z weights only feed matmuls -> bf16 resident; encoder_inp /
    # encoder_k weights are needed in f32 for the EMA update.
    loss, z_p, w1n, b1n, w2n, b2n = pl.pallas_call(
        functools.partial(_fused_kernel, momentum=float(m),
                          inv_t=1.0 / float(temperature),
                          n_valid=N, b_valid=B),
        out_shape=(
            jax.ShapeDtypeStruct((1, 1), jnp.float32),
            jax.ShapeDtypeStruct((Bp, O), jnp.float32),
            jax.ShapeDtypeStruct((Dp, H), jnp.float32),
            jax.ShapeDtypeStruct((1, H), jnp.float32),
            jax.ShapeDtypeStruct((H, O), jnp.float32),
            jax.ShapeDtypeStruct((1, O), jnp.float32),
        ),
        compiler_params=pltpu.CompilerParams(
            vmem_limit_bytes=_vmem_limit_bytes()),
    )(z_, pos1, neg_batch,
      w1z.astype(jnp.bfloat16), b1z.reshape(1, H).astype(jnp.float32),
      w2z.astype(jnp.bfloat16), b2z.reshape(1, O).astype(jnp.float32),
      w1q, b1q.reshape(1, H), w2q, b2q.reshape(1, O),
      w1k, b1k.reshape(1, H), w2k, b2k.reshape(1, O))

    params_k_new = (w1n[:D] if Dp != D else w1n,
                    b1n.reshape(H), w2n, b2n.reshape(O))
    z_p = z_p[:B] if Bp != B else z_p
    return loss[0, 0], z_p, params_k_new


# ----------------------------------------------------------------------------
# Tiled (scalable) forward and the dispatcher
# ----------------------------------------------------------------------------
def _moco_forward_tiled(params_z, params_inp, params_k, z_, pos1, neg_batch,
                        *, m, temperature, block_b=256, block_n=512):
    z_p = mlp2_forward(z_, *params_z, block_b=block_b)
    pos_vec = mlp2_forward(pos1, *params_inp, block_b=block_b)
    # encoder_k forward with the momentum update fused into the same kernel;
    # neg_p comes back bf16 (halves the head's streamed-negative DMA).
    neg_p, params_k_new = mlp2_ema_forward(neg_batch, params_inp, params_k, m,
                                           block_b=block_b)
    loss = moco_head_loss(z_p, pos_vec, neg_p, temperature,
                          block_b=block_b, block_n=block_n)
    return loss, z_p, params_k_new


def moco_forward(params_z, params_inp, params_k, z_, pos1, neg_batch,
                 *, m=0.999, temperature=0.07):
    B = z_.shape[0]
    N = neg_batch.shape[0]
    # Small problems are launch/DMA-overhead bound: run the whole forward as a
    # single fused pallas_call with everything resident in VMEM.
    if B <= 256 and N <= 1024:
        return _moco_forward_fused(params_z, params_inp, params_k,
                                   z_, pos1, neg_batch,
                                   m=m, temperature=temperature)
    return _moco_forward_tiled(params_z, params_inp, params_k,
                               z_, pos1, neg_batch,
                               m=m, temperature=temperature)


# ----------------------------------------------------------------------------
# Parameter init mimicking nn.Linear (weights stored [in, out])
# ----------------------------------------------------------------------------
def init_mlp2(key, d_in, d_hid, d_out):
    k1, k2, k3, k4 = jax.random.split(key, 4)
    s1 = 1.0 / (d_in ** 0.5)
    s2 = 1.0 / (d_hid ** 0.5)
    return (
        jax.random.uniform(k1, (d_in, d_hid), jnp.float32, -s1, s1),
        jax.random.uniform(k2, (d_hid,), jnp.float32, -s1, s1),
        jax.random.uniform(k3, (d_hid, d_out), jnp.float32, -s2, s2),
        jax.random.uniform(k4, (d_out,), jnp.float32, -s2, s2),
    )


# ----------------------------------------------------------------------------
# Pure-JAX reference with matched numerics (bf16 matmul operands, f32 accum)
# ----------------------------------------------------------------------------
def _ref_mlp(x, w1, b1, w2, b2):
    h = jnp.maximum(jnp.dot(x.astype(jnp.bfloat16), w1.astype(jnp.bfloat16),
                            preferred_element_type=jnp.float32) + b1, 0.0)
    return jnp.maximum(jnp.dot(h.astype(jnp.bfloat16), w2.astype(jnp.bfloat16),
                               preferred_element_type=jnp.float32) + b2, 0.0)


def _ref_forward(params_z, params_inp, params_k, z_, pos1, neg_batch, m, T):
    z_p = _ref_mlp(z_, *params_z)
    p_vec = _ref_mlp(pos1, *params_inp)
    k_new = tuple(m * pk + (1.0 - m) * pq
                  for pq, pk in zip(params_inp, params_k))
    n_p = _ref_mlp(neg_batch, *k_new)
    pos = jnp.sum(z_p * p_vec, axis=-1, keepdims=True)
    neg = jnp.dot(z_p.astype(jnp.bfloat16), n_p.astype(jnp.bfloat16).T,
                  preferred_element_type=jnp.float32)
    logits = jnp.concatenate([pos, neg], axis=1) / T
    loss = jnp.mean(jax.nn.logsumexp(logits, axis=1) - logits[:, 0])
    return loss, z_p, k_new


if __name__ == "__main__":
    D_IN, D_Z, H = 300, 512, 512          # feature dims fixed by the module
    M_MOM, TEMP = 0.999, 0.07

    key = jax.random.PRNGKey(0)
    k_data, k_params = jax.random.split(key)
    kz_p, ki_p = jax.random.split(k_params)
    params_z = init_mlp2(kz_p, D_Z, H, H)
    params_inp = init_mlp2(ki_p, D_IN, H, H)
    params_k = tuple(jnp.array(p) for p in params_inp)   # encoder_k <- encoder_inp

    def run_and_check(B, N, path_fn, tag):
        kz, kp, kn = jax.random.split(jax.random.fold_in(k_data, B * 131 + N), 3)
        z_ = jax.random.normal(kz, (B, D_Z), jnp.float32)
        pos1 = jax.random.normal(kp, (B, D_IN), jnp.float32)
        neg_batch = jax.random.normal(kn, (N, D_IN), jnp.float32)

        loss, z_p, params_k_new = path_fn(params_z, params_inp, params_k,
                                          z_, pos1, neg_batch,
                                          m=M_MOM, temperature=TEMP)
        loss, z_p, params_k_new = jax.block_until_ready((loss, z_p, params_k_new))

        loss_ref, z_p_ref, k_new_ref = _ref_forward(
            params_z, params_inp, params_k, z_, pos1, neg_batch, M_MOM, TEMP)

        assert z_p.shape == (B, H), tag
        assert jnp.allclose(z_p, z_p_ref, atol=1e-2, rtol=1e-2), tag
        for got, want in zip(params_k_new, k_new_ref):
            assert got.shape == want.shape, tag
            assert jnp.allclose(got, want, atol=1e-6, rtol=1e-6), tag
        assert bool(jnp.isfinite(loss)), tag
        assert jnp.allclose(loss, loss_ref, atol=5e-2, rtol=2e-2), tag

    # Small shipped sizes -> fully fused single-kernel path.
    run_and_check(8, 64, moco_forward, "fused")
    # Larger sizes -> tiled path (batch-parallel MLPs, EMA fused into the key
    # encoder kernel, online-logsumexp head over negative tiles).
    run_and_check(512, 640, _moco_forward_tiled, "tiled")

    print("KERNEL_OK")
</pallas_src>

<mosaic_0001>
module attributes {stable_mosaic.version = 11 : i64} {
  func.func @_fused_kernel(%arg0: memref<8x512xf32, #tpu.memory_space<vmem>>, %arg1: memref<8x384xf32, #tpu.memory_space<vmem>>, %arg2: memref<128x384xf32, #tpu.memory_space<vmem>>, %arg3: memref<512x512xbf16, #tpu.memory_space<vmem>>, %arg4: memref<1x512xf32, #tpu.memory_space<vmem>>, %arg5: memref<512x512xbf16, #tpu.memory_space<vmem>>, %arg6: memref<1x512xf32, #tpu.memory_space<vmem>>, %arg7: memref<384x512xf32, #tpu.memory_space<vmem>>, %arg8: memref<1x512xf32, #tpu.memory_space<vmem>>, %arg9: memref<512x512xf32, #tpu.memory_space<vmem>>, %arg10: memref<1x512xf32, #tpu.memory_space<vmem>>, %arg11: memref<384x512xf32, #tpu.memory_space<vmem>>, %arg12: memref<1x512xf32, #tpu.memory_space<vmem>>, %arg13: memref<512x512xf32, #tpu.memory_space<vmem>>, %arg14: memref<1x512xf32, #tpu.memory_space<vmem>>, %arg15: memref<1x1xf32, #tpu.memory_space<vmem>>, %arg16: memref<8x512xf32, #tpu.memory_space<vmem>>, %arg17: memref<384x512xf32, #tpu.memory_space<vmem>>, %arg18: memref<1x512xf32, #tpu.memory_space<vmem>>, %arg19: memref<512x512xf32, #tpu.memory_space<vmem>>, %arg20: memref<1x512xf32, #tpu.memory_space<vmem>>) attributes {dimension_semantics = [], scalar_prefetch = 0 : i64, scratch_operands = 0 : i64, tpu.core_type = #tpu.core_type<tc>} {
    %c0 = arith.constant 0 : index
    %c0_0 = arith.constant 0 : index
    %0 = vector.load %arg11[%c0, %c0_0] : memref<384x512xf32, #tpu.memory_space<vmem>>, vector<384x512xf32>
    %cst = arith.constant 9.990000e-01 : f32
    %1 = vector.broadcast %cst : f32 to vector<384x512xf32>
    %2 = arith.mulf %0, %1 : vector<384x512xf32>
    %c0_1 = arith.constant 0 : index
    %c0_2 = arith.constant 0 : index
    %3 = vector.load %arg7[%c0_1, %c0_2] : memref<384x512xf32, #tpu.memory_space<vmem>>, vector<384x512xf32>
    %cst_3 = arith.constant 1.000000e-03 : f32
    %4 = vector.broadcast %cst_3 : f32 to vector<384x512xf32>
    %5 = arith.mulf %3, %4 : vector<384x512xf32>
    %6 = arith.addf %2, %5 : vector<384x512xf32>
    %c0_4 = arith.constant 0 : index
    %c0_5 = arith.constant 0 : index
    %7 = vector.load %arg12[%c0_4, %c0_5] : memref<1x512xf32, #tpu.memory_space<vmem>>, vector<1x512xf32>
    %cst_6 = arith.constant 9.990000e-01 : f32
    %8 = vector.broadcast %cst_6 : f32 to vector<1x512xf32>
    %9 = arith.mulf %7, %8 : vector<1x512xf32>
    %c0_7 = arith.constant 0 : index
    %c0_8 = arith.constant 0 : index
    %10 = vector.load %arg8[%c0_7, %c0_8] : memref<1x512xf32, #tpu.memory_space<vmem>>, vector<1x512xf32>
    %cst_9 = arith.constant 1.000000e-03 : f32
    %11 = vector.broadcast %cst_9 : f32 to vector<1x512xf32>
    %12 = arith.mulf %10, %11 : vector<1x512xf32>
    %13 = arith.addf %9, %12 : vector<1x512xf32>
    %c0_10 = arith.constant 0 : index
    %c0_11 = arith.constant 0 : index
    %14 = vector.load %arg13[%c0_10, %c0_11] : memref<512x512xf32, #tpu.memory_space<vmem>>, vector<512x512xf32>
    %cst_12 = arith.constant 9.990000e-01 : f32
    %15 = vector.broadcast %cst_12 : f32 to vector<512x512xf32>
    %16 = arith.mulf %14, %15 : vector<512x512xf32>
    %c0_13 = arith.constant 0 : index
    %c0_14 = arith.constant 0 : index
    %17 = vector.load %arg9[%c0_13, %c0_14] : memref<512x512xf32, #tpu.memory_space<vmem>>, vector<512x512xf32>
    %cst_15 = arith.constant 1.000000e-03 : f32
    %18 = vector.broadcast %cst_15 : f32 to vector<512x512xf32>
    %19 = arith.mulf %17, %18 : vector<512x512xf32>
    %20 = arith.addf %16, %19 : vector<512x512xf32>
    %c0_16 = arith.constant 0 : index
    %c0_17 = arith.constant 0 : index
    %21 = vector.load %arg14[%c0_16, %c0_17] : memref<1x512xf32, #tpu.memory_space<vmem>>, vector<1x512xf32>
    %cst_18 = arith.constant 9.990000e-01 : f32
    %22 = vector.broadcast %cst_18 : f32 to vector<1x512xf32>
    %23 = arith.mulf %21, %22 : vector<1x512xf32>
    %c0_19 = arith.constant 0 : index
    %c0_20 = arith.constant 0 : index
    %24 = vector.load %arg10[%c0_19, %c0_20] : memref<1x512xf32, #tpu.memory_space<vmem>>, vector<1x512xf32>
    %cst_21 = arith.constant 1.000000e-03 : f32
    %25 = vector.broadcast %cst_21 : f32 to vector<1x512xf32>
    %26 = arith.mulf %24, %25 : vector<1x512xf32>
    %27 = arith.addf %23, %26 : vector<1x512xf32>
    %c0_22 = arith.constant 0 : index
    %c0_23 = arith.constant 0 : index
    %28 = vector.load %arg17[%c0_22, %c0_23] : memref<384x512xf32, #tpu.memory_space<vmem>>, vector<384x512xf32>
    tpu.vector_store %arg17[%c0_22, %c0_23], %6 {strides = array<i32>} : memref<384x512xf32, #tpu.memory_space<vmem>>, vector<384x512xf32>,
    %c0_24 = arith.constant 0 : index
    %c0_25 = arith.constant 0 : index
    %29 = vector.load %arg18[%c0_24, %c0_25] : memref<1x512xf32, #tpu.memory_space<vmem>>, vector<1x512xf32>
    tpu.vector_store %arg18[%c0_24, %c0_25], %13 {strides = array<i32>} : memref<1x512xf32, #tpu.memory_space<vmem>>, vector<1x512xf32>,
    %c0_26 = arith.constant 0 : index
    %c0_27 = arith.constant 0 : index
    %30 = vector.load %arg19[%c0_26, %c0_27] : memref<512x512xf32, #tpu.memory_space<vmem>>, vector<512x512xf32>
    tpu.vector_store %arg19[%c0_26, %c0_27], %20 {strides = array<i32>} : memref<512x512xf32, #tpu.memory_space<vmem>>, vector<512x512xf32>,
    %c0_28 = arith.constant 0 : index
    %c0_29 = arith.constant 0 : index
    %31 = vector.load %arg20[%c0_28, %c0_29] : memref<1x512xf32, #tpu.memory_space<vmem>>, vector<1x512xf32>
    tpu.vector_store %arg20[%c0_28, %c0_29], %27 {strides = array<i32>} : memref<1x512xf32, #tpu.memory_space<vmem>>, vector<1x512xf32>,
    %c0_30 = arith.constant 0 : index
    %c0_31 = arith.constant 0 : index
    %32 = vector.load %arg0[%c0_30, %c0_31] : memref<8x512xf32, #tpu.memory_space<vmem>>, vector<8x512xf32>
    %c0_32 = arith.constant 0 : index
    %c0_33 = arith.constant 0 : index
    %33 = vector.load %arg3[%c0_32, %c0_33] : memref<512x512xbf16, #tpu.memory_space<vmem>>, vector<512x512xbf16>
    %c0_34 = arith.constant 0 : index
    %c0_35 = arith.constant 0 : index
    %34 = vector.load %arg4[%c0_34, %c0_35] : memref<1x512xf32, #tpu.memory_space<vmem>>, vector<1x512xf32>
    %c0_36 = arith.constant 0 : index
    %c0_37 = arith.constant 0 : index
    %35 = vector.load %arg5[%c0_36, %c0_37] : memref<512x512xbf16, #tpu.memory_space<vmem>>, vector<512x512xbf16>
    %c0_38 = arith.constant 0 : index
    %c0_39 = arith.constant 0 : index
    %36 = vector.load %arg6[%c0_38, %c0_39] : memref<1x512xf32, #tpu.memory_space<vmem>>, vector<1x512xf32>
    %37 = arith.truncf %32 : vector<8x512xf32> to vector<8x512xbf16>
    %cst_40 = arith.constant dense<0.000000e+00> : vector<8x512xf32>
    %38 = tpu.matmul %37, %33, %cst_40 {dimension_numbers = #tpu.dot_dimension_numbers<[1], [0], [0], [1], [0, 0, 1, 1], [], []>} : vector<8x512xbf16>, vector<512x512xbf16>, vector<8x512xf32> -> vector<8x512xf32>
    %39 = vector.broadcast %34 : vector<1x512xf32> to vector<8x512xf32>
    %40 = arith.addf %38, %39 : vector<8x512xf32>
    %cst_41 = arith.constant 0.000000e+00 : f32
    %41 = vector.broadcast %cst_41 : f32 to vector<8x512xf32>
    %42 = arith.maximumf %40, %41 : vector<8x512xf32>
    %43 = arith.truncf %42 : vector<8x512xf32> to vector<8x512xbf16>
    %cst_42 = arith.constant dense<0.000000e+00> : vector<8x512xf32>
    %44 = tpu.matmul %43, %35, %cst_42 {dimension_numbers = #tpu.dot_dimension_numbers<[1], [0], [0], [1], [0, 0, 1, 1], [], []>} : vector<8x512xbf16>, vector<512x512xbf16>, vector<8x512xf32> -> vector<8x512xf32>
    %45 = vector.broadcast %36 : vector<1x512xf32> to vector<8x512xf32>
    %46 = arith.addf %44, %45 : vector<8x512xf32>
    %cst_43 = arith.constant 0.000000e+00 : f32
    %47 = vector.broadcast %cst_43 : f32 to vector<8x512xf32>
    %48 = arith.maximumf %46, %47 : vector<8x512xf32>
    %c0_44 = arith.constant 0 : index
    %c0_45 = arith.constant 0 : index
    %49 = vector.load %arg1[%c0_44, %c0_45] : memref<8x384xf32, #tpu.memory_space<vmem>>, vector<8x384xf32>
    %c0_46 = arith.constant 0 : index
    %c0_47 = arith.constant 0 : index
    %50 = vector.load %arg7[%c0_46, %c0_47] : memref<384x512xf32, #tpu.memory_space<vmem>>, vector<384x512xf32>
    %c0_48 = arith.constant 0 : index
    %c0_49 = arith.constant 0 : index
    %51 = vector.load %arg8[%c0_48, %c0_49] : memref<1x512xf32, #tpu.memory_space<vmem>>, vector<1x512xf32>
    %c0_50 = arith.constant 0 : index
    %c0_51 = arith.constant 0 : index
    %52 = vector.load %arg9[%c0_50, %c0_51] : memref<512x512xf32, #tpu.memory_space<vmem>>, vector<512x512xf32>
    %c0_52 = arith.constant 0 : index
    %c0_53 = arith.constant 0 : index
    %53 = vector.load %arg10[%c0_52, %c0_53] : memref<1x512xf32, #tpu.memory_space<vmem>>, vector<1x512xf32>
    %54 = arith.truncf %49 : vector<8x384xf32> to vector<8x384xbf16>
    %55 = arith.truncf %50 : vector<384x512xf32> to vector<384x512xbf16>
    %cst_54 = arith.constant dense<0.000000e+00> : vector<8x512xf32>
    %56 = tpu.matmul %54, %55, %cst_54 {dimension_numbers = #tpu.dot_dimension_numbers<[1], [0], [0], [1], [0, 0, 1, 1], [], []>} : vector<8x384xbf16>, vector<384x512xbf16>, vector<8x512xf32> -> vector<8x512xf32>
    %57 = vector.broadcast %51 : vector<1x512xf32> to vector<8x512xf32>
    %58 = arith.addf %56, %57 : vector<8x512xf32>
    %cst_55 = arith.constant 0.000000e+00 : f32
    %59 = vector.broadcast %cst_55 : f32 to vector<8x512xf32>
    %60 = arith.maximumf %58, %59 : vector<8x512xf32>
    %61 = arith.truncf %60 : vector<8x512xf32> to vector<8x512xbf16>
    %62 = arith.truncf %52 : vector<512x512xf32> to vector<512x512xbf16>
    %cst_56 = arith.constant dense<0.000000e+00> : vector<8x512xf32>
    %63 = tpu.matmul %61, %62, %cst_56 {dimension_numbers = #tpu.dot_dimension_numbers<[1], [0], [0], [1], [0, 0, 1, 1], [], []>} : vector<8x512xbf16>, vector<512x512xbf16>, vector<8x512xf32> -> vector<8x512xf32>
    %64 = vector.broadcast %53 : vector<1x512xf32> to vector<8x512xf32>
    %65 = arith.addf %63, %64 : vector<8x512xf32>
    %cst_57 = arith.constant 0.000000e+00 : f32
    %66 = vector.broadcast %cst_57 : f32 to vector<8x512xf32>
    %67 = arith.maximumf %65, %66 : vector<8x512xf32>
    %c0_58 = arith.constant 0 : index
    %c0_59 = arith.constant 0 : index
    %68 = vector.load %arg2[%c0_58, %c0_59] : memref<128x384xf32, #tpu.memory_space<vmem>>, vector<128x384xf32>
    %69 = arith.truncf %68 : vector<128x384xf32> to vector<128x384xbf16>
    %70 = arith.truncf %6 : vector<384x512xf32> to vector<384x512xbf16>
    %cst_60 = arith.constant dense<0.000000e+00> : vector<128x512xf32>
    %71 = tpu.matmul %69, %70, %cst_60 {dimension_numbers = #tpu.dot_dimension_numbers<[1], [0], [0], [1], [0, 0, 1, 1], [], []>} : vector<128x384xbf16>, vector<384x512xbf16>, vector<128x512xf32> -> vector<128x512xf32>
    %72 = vector.broadcast %13 : vector<1x512xf32> to vector<128x512xf32>
    %73 = arith.addf %71, %72 : vector<128x512xf32>
    %cst_61 = arith.constant 0.000000e+00 : f32
    %74 = vector.broadcast %cst_61 : f32 to vector<128x512xf32>
    %75 = arith.maximumf %73, %74 : vector<128x512xf32>
    %76 = arith.truncf %75 : vector<128x512xf32> to vector<128x512xbf16>
    %77 = arith.truncf %20 : vector<512x512xf32> to vector<512x512xbf16>
    %cst_62 = arith.constant dense<0.000000e+00> : vector<128x512xf32>
    %78 = tpu.matmul %76, %77, %cst_62 {dimension_numbers = #tpu.dot_dimension_numbers<[1], [0], [0], [1], [0, 0, 1, 1], [], []>} : vector<128x512xbf16>, vector<512x512xbf16>, vector<128x512xf32> -> vector<128x512xf32>
    %79 = vector.broadcast %27 : vector<1x512xf32> to vector<128x512xf32>
    %80 = arith.addf %78, %79 : vector<128x512xf32>
    %cst_63 = arith.constant 0.000000e+00 : f32
    %81 = vector.broadcast %cst_63 : f32 to vector<128x512xf32>
    %82 = arith.maximumf %80, %81 : vector<128x512xf32>
    %c0_64 = arith.constant 0 : index
    %c0_65 = arith.constant 0 : index
    %83 = vector.load %arg16[%c0_64, %c0_65] : memref<8x512xf32, #tpu.memory_space<vmem>>, vector<8x512xf32>
    tpu.vector_store %arg16[%c0_64, %c0_65], %48 {strides = array<i32>} : memref<8x512xf32, #tpu.memory_space<vmem>>, vector<8x512xf32>,
    %84 = arith.mulf %48, %67 : vector<8x512xf32>
    %cst_66 = arith.constant dense<0.000000e+00> : vector<8xf32>
    %85 = vector.multi_reduction <add>, %84, %cst_66 [1] : vector<8x512xf32> to vector<8xf32>
    %86 = vector.shape_cast %85 : vector<8xf32> to vector<8x1xf32>
    %cst_67 = arith.constant 14.2857141 : f32
    %87 = vector.broadcast %cst_67 : f32 to vector<8x1xf32>
    %88 = arith.mulf %86, %87 : vector<8x1xf32>
    %89 = arith.truncf %48 : vector<8x512xf32> to vector<8x512xbf16>
    %90 = arith.truncf %82 : vector<128x512xf32> to vector<128x512xbf16>
    %cst_68 = arith.constant dense<0.000000e+00> : vector<8x128xf32>
    %91 = tpu.matmul %89, %90, %cst_68 {dimension_numbers = #tpu.dot_dimension_numbers<[1], [1], [0], [0], [0, 0, 1, 0], [], []>} : vector<8x512xbf16>, vector<128x512xbf16>, vector<8x128xf32> -> vector<8x128xf32>
    %cst_69 = arith.constant 14.2857141 : f32
    %92 = vector.broadcast %cst_69 : f32 to vector<8x128xf32>
    %93 = arith.mulf %91, %92 : vector<8x128xf32>
    %94 = tpu.iota {dimensions = array<i32: 1>} : vector<8x128xi32>
    %c64_i32 = arith.constant 64 : i32
    %95 = vector.broadcast %c64_i32 : i32 to vector<8x128xi32>
    %96 = arith.cmpi slt, %94, %95 : vector<8x128xi32>
    %cst_70 = arith.constant -1.000000e+30 : f32
    %97 = vector.broadcast %cst_70 : f32 to vector<8x128xf32>
    %98 = arith.select %96, %93, %97 : vector<8x128xi1>, vector<8x128xf32>
    %cst_71 = arith.constant dense<0xFF800000> : vector<8xf32>
    %99 = vector.multi_reduction <maximumf>, %98, %cst_71 [1] : vector<8x128xf32> to vector<8xf32>
    %100 = vector.shape_cast %99 : vector<8xf32> to vector<8x1xf32>
    %101 = arith.maximumf %88, %100 : vector<8x1xf32>
    %102 = arith.subf %88, %101 : vector<8x1xf32>
    %103 = math.exp %102 : vector<8x1xf32>
    %104 = vector.broadcast %101 : vector<8x1xf32> to vector<8x128xf32>
    %105 = arith.subf %98, %104 : vector<8x128xf32>
    %106 = math.exp %105 : vector<8x128xf32>
    %cst_72 = arith.constant dense<0.000000e+00> : vector<8xf32>
    %107 = vector.multi_reduction <add>, %106, %cst_72 [1] : vector<8x128xf32> to vector<8xf32>
    %108 = vector.shape_cast %107 : vector<8xf32> to vector<8x1xf32>
    %109 = arith.addf %103, %108 : vector<8x1xf32>
    %110 = math.log %109 : vector<8x1xf32>
    %111 = arith.addf %101, %110 : vector<8x1xf32>
    %112 = arith.subf %111, %88 : vector<8x1xf32>
    %113 = tpu.iota {dimensions = array<i32: 0>} : vector<8x1xi32>
    %c8_i32 = arith.constant 8 : i32
    %114 = vector.broadcast %c8_i32 : i32 to vector<8x1xi32>
    %115 = arith.cmpi slt, %113, %114 : vector<8x1xi32>
    %cst_73 = arith.constant 0.000000e+00 : f32
    %116 = vector.broadcast %cst_73 : f32 to vector<8x1xf32>
    %117 = arith.select %115, %112, %116 : vector<8x1xi1>, vector<8x1xf32>
    %cst_74 = arith.constant dense<0.000000e+00> : vector<1xf32>
    %118 = vector.multi_reduction <add>, %117, %cst_74 [0] : vector<8x1xf32> to vector<1xf32>
    %119 = vector.shape_cast %118 : vector<1xf32> to vector<1x1xf32>
    %cst_75 = arith.constant 1.250000e-01 : f32
    %120 = vector.broadcast %cst_75 : f32 to vector<1x1xf32>
    %121 = arith.mulf %119, %120 : vector<1x1xf32>
    %c0_76 = arith.constant 0 : index
    %c0_77 = arith.constant 0 : index
    %122 = vector.load %arg15[%c0_76, %c0_77] : memref<1x1xf32, #tpu.memory_space<vmem>>, vector<1x1xf32>
    tpu.vector_store %arg15[%c0_76, %c0_77], %121 {strides = array<i32>} : memref<1x1xf32, #tpu.memory_space<vmem>>, vector<1x1xf32>,
    return
  }
}

</mosaic_0001>

<bundles_post_ra>
// kernel: tpu_custom_call.1
= control target key start
LH: loop header
LB: loop body
LE: loop exit
PB: predicated region body
PF: predicated region fallthrough
CT: control target
= control target key end

     0   :  { %s11822_s0 = inlined_call_operand.hbm [shape: f32[8,512], index: 0, kind: input, shape index: {}]   ;;  %s11823_s1 = inlined_call_operand.hbm [shape: f32[8,384], index: 1, kind: input, shape index: {}]   ;;  %s11824_s2 = inlined_call_operand.hbm [shape: f32[128,384], index: 2, kind: input, shape index: {}]   ;;  %s11825_s3 = inlined_call_operand.hbm [shape: bf16[512,512], index: 3, kind: input, shape index: {}]   ;;  %s11826_s4 = inlined_call_operand.vmem [shape: f32[1,512], index: 4, kind: input, shape index: {}]   ;;  %s11827_s5 = inlined_call_operand.hbm [shape: bf16[512,512], index: 5, kind: input, shape index: {}]   ;;  %s11828_s6 = inlined_call_operand.vmem [shape: f32[1,512], index: 6, kind: input, shape index: {}]   ;;  %s11829_s7 = inlined_call_operand.hbm [shape: f32[384,512], index: 7, kind: input, shape index: {}]   ;;  %s11830_s8 = inlined_call_operand.vmem [shape: f32[1,512], index: 8, kind: input, shape index: {}]   ;;  %s11831_s9 = inlined_call_operand.hbm [shape: f32[512,512], index: 9, kind: input, shape index: {}]   ;;  %s11832_s10 = inlined_call_operand.vmem [shape: f32[1,512], index: 10, kind: input, shape index: {}]   ;;  %s11833_s11 = inlined_call_operand.hbm [shape: f32[384,512], index: 11, kind: input, shape index: {}]   ;;  %s11834_s12 = inlined_call_operand.vmem [shape: f32[1,512], index: 12, kind: input, shape index: {}]   ;;  %s11835_s13 = inlined_call_operand.hbm [shape: f32[512,512], index: 13, kind: input, shape index: {}]   ;;  %s11836_s14 = inlined_call_operand.vmem [shape: f32[1,512], index: 14, kind: input, shape index: {}]   ;;  %s11837_s15 = inlined_call_operand.hbm [shape: f32[1,1], index: 15, kind: output, shape index: {0}]   ;;  %s11838_s16 = inlined_call_operand.hbm [shape: f32[8,512], index: 16, kind: output, shape index: {1}]   ;;  %s11839_s17 = inlined_call_operand.hbm [shape: f32[384,512], index: 17, kind: output, shape index: {2}]   ;;  %s11840_s18 = inlined_call_operand.hbm [shape: f32[1,512], index: 18, kind: output, shape index: {3}]   ;;  %s11841_s19 = inlined_call_operand.hbm [shape: f32[512,512], index: 19, kind: output, shape index: {4}]   ;;  %s11842_s20 = inlined_call_operand.hbm [shape: f32[1,512], index: 20, kind: output, shape index: {5}]  }
   0x1   :  { %11986 = sst [smem:[#allocation92_spill]] %s11822_s0 }
   0x2   :  { %11987 = sst [smem:[#allocation93_spill]] %s11823_s1 }
   0x3   :  { %11988 = sst [smem:[#allocation94_spill]] %s11824_s2 }
   0x4   :  { %11989 = sst [smem:[#allocation95_spill]] %s11825_s3 }
   0x5   :  { %11990 = sst [smem:[#allocation96_spill]] %s11826_s4 }
   0x6   :  { %26 = vsyncpa [#allocation3], 0 }
   0x7   :  { %27 = vsyncpa [#allocation6], 0 }
   0x8   :  { %28 = vsyncpa [#allocation9], 0 }
   0x9   :  { %29 = vsyncpa [#allocation12], 0 }
   0xa   :  { %30 = vsyncpa [#allocation15], 0 }
   0xb   :  { %31 = vsyncpa [#allocation4], 0 }
   0xc   :  { %32 = vsyncpa [#allocation19], 0 }
   0xd   :  { %33 = vsyncpa [#allocation22], 0 }
   0xe   :  { %34 = vsyncpa [#allocation25], 0  ;;  %s8526_s1 = smov [#allocation5]   ;;  %s8527_s23 = smov [#allocation8]  }
   0xf   :  { %s51_s22 = sshll.u32 %s8526_s1, 4  ;;  %s72_s24 = sshll.u32 %s8527_s23, 4  ;;  %s52_s22 = int_to_ptr.vmem [resolvable:$true] %s51_s22  ;;  %s73_s24 = int_to_ptr.vmem [resolvable:$true] %s72_s24 }
  0x10   :  { %s8216_s2 = scalar_lea.vmem %s52_s22, 384  ;;  %p8221_p1 = scmp.lt.s32.totalorder %s52_s22, %s52_s22 }
  0x11   :  { %p8217_p0 = scmp.ne.s32.totalorder %s52_s22, %s8216_s2  ;;  %p8222_p2 = scmp.lt.s32.totalorder %s8216_s2, %s8216_s2 }
  0x13   :  { %p8223_p3 = por %p8222_p2, %p8221_p1 }
  0x15   :  { %p8224_p4 = pnand %p8223_p3, %p8217_p0 }
  0x17   :  { %8227 = shalt.err (!%p8224_p4)
}
  0x18   :  { %s11991_s26 = sld [smem:[#allocation93_spill]]  ;;  %s8236_s27 = scalar_lea.vmem %s73_s24, 16384 }
  0x19   :  { %p8237_p5 = scmp.ne.s32.totalorder %s73_s24, %s8236_s27  ;;  %p8241_p6 = scmp.lt.s32.totalorder %s73_s24, %s73_s24 }
  0x1a   :  { %p8242_p7 = scmp.lt.s32.totalorder %s8236_s27, %s8236_s27 }
  0x1c   :  { %p8243_p8 = por %p8242_p7, %p8241_p6 }
  0x1e   :  { %54 = dma.hbm_to_vmem [thread:$0]  %s11991_s26, 384, %s52_s22, [#allocation6]  }
  0x1f   :  { %p8244_p9 = pnand %p8243_p8, %p8237_p5 }
  0x21   :  { %8247 = shalt.err (!%p8244_p9)
}
  0x22   :  { %s8528_s28 = smov 256   ;;  %s8529_s4 = smov 16  }
  0x23   :  { %s11992_s0 = sld [smem:[#allocation95_spill]]  ;;  %s8530_s21 = smov [#allocation11]  }
  0x24   :  { %s100_s1 = sshll.u32 %s8530_s21, 4  ;;  %s101_s1 = int_to_ptr.vmem [resolvable:$true] %s100_s1 }
  0x25   :  { %s8256_s22 = scalar_lea.vmem %s101_s1, 24576  ;;  %p8261_p11 = scmp.lt.s32.totalorder %s101_s1, %s101_s1 }
  0x26   :  { %p8257_p10 = scmp.ne.s32.totalorder %s101_s1, %s8256_s22  ;;  %p8262_p12 = scmp.lt.s32.totalorder %s8256_s22, %s8256_s22 }
  0x28   :  { %p8263_p13 = por %p8262_p12, %p8261_p11 }
  0x29   :  { %78 = dma.hbm_to_vmem [thread:$0]  %s11992_s0, 16384, %s73_s24, [#allocation9], %s8528_s28, %s8528_s28, %s8529_s4  }
  0x2a   :  { %p8264_p0 = pnand %p8263_p13, %p8257_p10 }
  0x2c   :  { %8267 = shalt.err (!%p8264_p0)
}
  0x2d   :  { %s11843_s23 = smov 512   ;;  %s8532_s2 = smov 32  }
  0x2e   :  { %106 = dma.hbm_to_vmem [thread:$0]  %s11829_s7, 24576, %s101_s1, [#allocation12], %s11843_s23, %s11843_s23, %s8532_s2  }
  0x2f   :  { %s8533_s24 = smov [#allocation14]   ;;  %s8534_s27 = smov [#allocation2]  }
  0x30   :  { %s128_s26 = sshll.u32 %s8533_s24, 4  ;;  %s41_s29 = sshll.u32 %s8534_s27, 4  ;;  %s129_s26 = int_to_ptr.vmem [resolvable:$true] %s128_s26  ;;  %s42_s29 = int_to_ptr.vmem [resolvable:$true] %s41_s29 }
  0x31   :  { %s8276_s30 = scalar_lea.vmem %s129_s26, 24576  ;;  %p8281_p2 = scmp.lt.s32.totalorder %s129_s26, %s129_s26 }
  0x32   :  { %p8277_p1 = scmp.ne.s32.totalorder %s129_s26, %s8276_s30  ;;  %p8282_p3 = scmp.lt.s32.totalorder %s8276_s30, %s8276_s30 }
  0x34   :  { %p8283_p4 = por %p8282_p3, %p8281_p2 }
  0x36   :  { %p8284_p5 = pnand %p8283_p4, %p8277_p1 }
  0x38   :  { %8287 = shalt.err (!%p8284_p5)
}
  0x39   :  { %134 = dma.hbm_to_vmem [thread:$0]  %s11833_s11, 24576, %s129_s26, [#allocation15], %s11843_s23, %s11843_s23, %s8532_s2  }
  0x3a   :  { %s8296_s7 = scalar_lea.vmem %s42_s29, 512  ;;  %p8301_p7 = scmp.lt.s32.totalorder %s42_s29, %s42_s29 }
  0x3b   :  { %p8297_p6 = scmp.ne.s32.totalorder %s42_s29, %s8296_s7  ;;  %p8302_p8 = scmp.lt.s32.totalorder %s8296_s7, %s8296_s7 }
  0x3d   :  { %p8303_p9 = por %p8302_p8, %p8301_p7 }
  0x3f   :  { %p8304_p10 = pnand %p8303_p9, %p8297_p6 }
  0x41   :  { %8307 = shalt.err (!%p8304_p10)
}
  0x42   :  { %s11993_s25 = sld [smem:[#allocation92_spill]]  ;;  %s8535_s3 = smov [#allocation7]  }
  0x43   :  { %s60_s24 = sshll.u32 %s8535_s3, 4  ;;  %s61_s24 = int_to_ptr.vmem [resolvable:$true] %s60_s24 }
  0x44   :  { %s8316_s27 = scalar_lea.vmem %s61_s24, 6144  ;;  %p8321_p12 = scmp.lt.s32.totalorder %s61_s24, %s61_s24 }
  0x45   :  { %p8317_p11 = scmp.ne.s32.totalorder %s61_s24, %s8316_s27  ;;  %p8322_p13 = scmp.lt.s32.totalorder %s8316_s27, %s8316_s27 }
  0x47   :  { %p8323_p0 = por %p8322_p13, %p8321_p12 }
  0x48   :  { %44 = dma.hbm_to_vmem [thread:$0]  %s11993_s25, 512, %s42_s29, [#allocation3]  }
  0x49   :  { %p8324_p1 = pnand %p8323_p0, %p8317_p11 }
  0x4b   :  { %8327 = shalt.err (!%p8324_p1)
}
  0x4c   :  { %s8536_s11 = smov 384   ;;  %s8537_s26 = smov 24  }
  0x4d   :  { %s11994_s21 = sld [smem:[#allocation94_spill]]  ;;  %s8538_s7 = smov [#allocation10]  }
  0x4e   :  { %s86_s23 = sshll.u32 %s8538_s7, 4  ;;  %s8539_s1 = smov [#allocation13]   ;;  %s87_s23 = int_to_ptr.vmem [resolvable:$true] %s86_s23 }
  0x4f   :  { %s114_s29 = sshll.u32 %s8539_s1, 4  ;;  %s8336_s22 = scalar_lea.vmem %s87_s23, 16384  ;;  %s115_s29 = int_to_ptr.vmem [resolvable:$true] %s114_s29 }
  0x50   :  { %p8337_p2 = scmp.ne.s32.totalorder %s87_s23, %s8336_s22  ;;  %p8341_p3 = scmp.lt.s32.totalorder %s87_s23, %s87_s23 }
  0x51   :  { %p8342_p4 = scmp.lt.s32.totalorder %s8336_s22, %s8336_s22 }
  0x53   :  { %66 = dma.hbm_to_vmem [thread:$0]  %s11994_s21, 6144, %s61_s24, [#allocation6], %s8536_s11, %s8536_s11, %s8537_s26  }
  0x54   :  { %p8343_p5 = por %p8342_p4, %p8341_p3 }
  0x56   :  { %p8344_p6 = pnand %p8343_p5, %p8337_p2 }
  0x58   :  { %8347 = shalt.err (!%p8344_p6)
}
  0x59   :  { %92 = dma.hbm_to_vmem [thread:$0]  %s11827_s5, 16384, %s87_s23, [#allocation9], %s8528_s28, %s8528_s28, %s8529_s4  }
  0x5a   :  { %s8356_s24 = scalar_lea.vmem %s115_s29, 32768  ;;  %p8361_p8 = scmp.lt.s32.totalorder %s115_s29, %s115_s29 }
  0x5b   :  { %p8357_p7 = scmp.ne.s32.totalorder %s115_s29, %s8356_s24  ;;  %p8362_p9 = scmp.lt.s32.totalorder %s8356_s24, %s8356_s24 }
  0x5d   :  { %p8363_p10 = por %p8362_p9, %p8361_p8 }
  0x5f   :  { %p8364_p11 = pnand %p8363_p10, %p8357_p7 }
  0x61   :  { %8367 = shalt.err (!%p8364_p11)
}
  0x62   :  { %s11995_s27 = smov 512   ;;  %s8540_s30 = smov [#allocation16]  }
  0x63   :  { %120 = dma.hbm_to_vmem [thread:$0]  %s11831_s9, 32768, %s115_s29, [#allocation12], %s11995_s27, %s11995_s27, %s8532_s2  }
  0x64   :  { %s142_s0 = sshll.u32 %s8540_s30, 4  ;;  %s143_s0 = int_to_ptr.vmem [resolvable:$true] %s142_s0 }
  0x65   :  { %s8376_s21 = scalar_lea.vmem %s143_s0, 32768  ;;  %p8381_p13 = scmp.lt.s32.totalorder %s143_s0, %s143_s0 }
  0x66   :  { %p8377_p12 = scmp.ne.s32.totalorder %s143_s0, %s8376_s21  ;;  %p8382_p0 = scmp.lt.s32.totalorder %s8376_s21, %s8376_s21 }
  0x68   :  { %p8383_p1 = por %p8382_p0, %p8381_p13 }
  0x6a   :  { %p8384_p2 = pnand %p8383_p1, %p8377_p12 }
  0x6c   :  { %8387 = shalt.err (!%p8384_p2)
}
  0x6d   :  { %148 = dma.hbm_to_vmem [thread:$0]  %s11835_s13, 32768, %s143_s0, [#allocation15], %s11995_s27, %s11995_s27, %s8532_s2  }
  0x6e   :  { %8508 = dma.done.wait [#allocation3], 512  }
  0x6f   :  { %8509 = vsyncadd [#allocation3], 4294966784 }
  0x70   :  { %8510 = dma.done.wait [#allocation6], 6528  }
  0x71   :  { %8511 = vsyncadd [#allocation6], 4294960768 }
  0x72   :  { %8512 = dma.done.wait [#allocation9], 32768  }
  0x73   :  { %8513 = vsyncadd [#allocation9], 4294934528 }
  0x74   :  { %8514 = dma.done.wait [#allocation12], 57344  }
  0x75   :  { %8515 = vsyncadd [#allocation12], 4294909952 }
  0x76   :  { %8516 = dma.done.wait [#allocation15], 57344  }
  0x77   :  { %8517 = vsyncadd [#allocation15], 4294909952  ;;  %v7808_v0 = vld [vmem:[#allocation8 + $0xe4] ss:$16 sps:$4 sm:$0xff]   ;;  %v7812_v2 = vld [vmem:[#allocation8 + $0xe0] ss:$16 sps:$4 sm:$0xff]  }
  0x78   :  { %v7810_v1 = vld [vmem:[#allocation8 + $0x2e4] ss:$16 sps:$4 sm:$0xff]   ;;  %3810 = vmatprep.subr.bf16.mxu0 %v7808_v0  ;;  %v7813_v3 = vld [vmem:[#allocation8 + $0x2e0] ss:$16 sps:$4 sm:$0xff]   ;;  %s11997_s4 = sld [smem:[#allocation96_spill]]  ;;  %s8543_s9 = smov [#allocation21]  }
  0x79   :  { %3851 = vmatprep.subr.bf16.mxu1 %v7810_v1  ;;  %v7814_v4 = vld [vmem:[#allocation8 + $0xc4] ss:$16 sps:$4 sm:$0xff]   ;;  %3811 = vmatpush1.bf16.msra.mxu0 %v7812_v2  ;;  %v7818_v6 = vld [vmem:[#allocation8 + $0xc0] ss:$16 sps:$4 sm:$0xff]   ;;  %s7477_s13 = sshll.u32 %s8543_s9, 4  ;;  %s7478_s13 = int_to_ptr.vmem [resolvable:$true] %s7477_s13 }
  0x7a   :  { %3852 = vmatpush1.bf16.msra.mxu1 %v7813_v3  ;;  %v7816_v5 = vld [vmem:[#allocation8 + $0x2c4] ss:$16 sps:$4 sm:$0xff]   ;;  %3812 = vmatprep.subr.bf16.mxu0 %v7814_v4  ;;  %v7819_v7 = vld [vmem:[#allocation8 + $0x2c0] ss:$16 sps:$4 sm:$0xff]   ;;  %v2883_v4 = vld [vmem:[#allocation2] sm:$0xff] }
  0x7b   :  { %3853 = vmatprep.subr.bf16.mxu1 %v7816_v5  ;;  %v7820_v8 = vld [vmem:[#allocation8 + $0xa4] ss:$16 sps:$4 sm:$0xff]   ;;  %v7824_v10 = vld [vmem:[#allocation8 + $0xa0] ss:$16 sps:$4 sm:$0xff]   ;;  %v2885_v5 = vld [vmem:[#allocation2 + $0x10] sm:$0xff] }
  0x7c   :  { %v7822_v9 = vld [vmem:[#allocation8 + $0x2a4] ss:$16 sps:$4 sm:$0xff]   ;;  %v7825_v11 = vld [vmem:[#allocation8 + $0x2a0] ss:$16 sps:$4 sm:$0xff]  }
  0x7d   :  { %3813 = vmatpush1.bf16.msra.mxu0 %v7818_v6  ;;  %v7826_v12 = vld [vmem:[#allocation8 + $0x84] ss:$16 sps:$4 sm:$0xff]   ;;  %v7830_v14 = vld [vmem:[#allocation8 + $0x80] ss:$16 sps:$4 sm:$0xff]   ;;  %v7906_v6 = vld [vmem:[#allocation8 + $0xec] ss:$16 sps:$4 sm:$0xff]  }
  0x7e   :  { %3854 = vmatpush1.bf16.msra.mxu1 %v7819_v7  ;;  %3814 = vmatprep.subr.bf16.mxu0 %v7820_v8  ;;  %v7828_v13 = vld [vmem:[#allocation8 + $0x284] ss:$16 sps:$4 sm:$0xff]   ;;  %v7831_v15 = vld [vmem:[#allocation8 + $0x280] ss:$16 sps:$4 sm:$0xff]   ;;  %v7909_v7 = vld [vmem:[#allocation8 + $0x2ec] ss:$16 sps:$4 sm:$0xff]   ;;  %v8701_v8 = vpack.c.bf16 %v2883_v4, %v2883_v4 }
  0x7f   :  { %3855 = vmatprep.subr.bf16.mxu1 %v7822_v9  ;;  %v7832_v16 = vld [vmem:[#allocation8 + $0x64] ss:$16 sps:$4 sm:$0xff]   ;;  %v7836_v18 = vld [vmem:[#allocation8 + $0x60] ss:$16 sps:$4 sm:$0xff]   ;;  %v8703_v9 = vpack.c.bf16 %v2885_v5, %v2885_v5  ;;  %v7996_v4 = vld [vmem:[#allocation8 + $0x10c] ss:$16 sps:$4 sm:$0xff]  }
  0x80   :  { %v7834_v17 = vld [vmem:[#allocation8 + $0x264] ss:$16 sps:$4 sm:$0xff]   ;;  %v7837_v19 = vld [vmem:[#allocation8 + $0x260] ss:$16 sps:$4 sm:$0xff]   ;;  %v7999_v5 = vld [vmem:[#allocation8 + $0x30c] ss:$16 sps:$4 sm:$0xff]  }
  0x81   :  { %3815 = vmatpush1.bf16.msra.mxu0 %v7824_v10  ;;  %v7838_v20 = vld [vmem:[#allocation8 + $0x44] ss:$16 sps:$4 sm:$0xff]   ;;  %v7842_v22 = vld [vmem:[#allocation8 + $0x40] ss:$16 sps:$4 sm:$0xff]   ;;  %v7904_v10 = vld [vmem:[#allocation8 + $0xe8] ss:$16 sps:$4 sm:$0xff]  }
  0x82   :  { %3856 = vmatpush1.bf16.msra.mxu1 %v7825_v11  ;;  %3816 = vmatprep.subr.bf16.mxu0 %v7826_v12  ;;  %v7840_v21 = vld [vmem:[#allocation8 + $0x244] ss:$16 sps:$4 sm:$0xff]   ;;  %v7843_v23 = vld [vmem:[#allocation8 + $0x240] ss:$16 sps:$4 sm:$0xff]   ;;  %v7907_v11 = vld [vmem:[#allocation8 + $0x2e8] ss:$16 sps:$4 sm:$0xff]  }
  0x83   :  { %3857 = vmatprep.subr.bf16.mxu1 %v7828_v13  ;;  %v7844_v24 = vld [vmem:[#allocation8 + $0x24] ss:$16 sps:$4 sm:$0xff]   ;;  %v7848_v26 = vld [vmem:[#allocation8 + $0x20] ss:$16 sps:$4 sm:$0xff]   ;;  %v7912_v12 = vld [vmem:[#allocation8 + $0xcc] ss:$16 sps:$4 sm:$0xff]  }
  0x84   :  { %v7846_v25 = vld [vmem:[#allocation8 + $0x224] ss:$16 sps:$4 sm:$0xff]   ;;  %v7849_v27 = vld [vmem:[#allocation8 + $0x220] ss:$16 sps:$4 sm:$0xff]   ;;  %v7915_v13 = vld [vmem:[#allocation8 + $0x2cc] ss:$16 sps:$4 sm:$0xff]  }
  0x85   :  { %3817 = vmatpush1.bf16.msra.mxu0 %v7830_v14  ;;  %v7850_v28 = vld [vmem:[#allocation8 + $0x4] ss:$16 sps:$4 sm:$0xff]   ;;  %v7854_v30 = vld [vmem:[#allocation8] ss:$16 sps:$4 sm:$0xff]   ;;  %v7910_v14 = vld [vmem:[#allocation8 + $0xc8] ss:$16 sps:$4 sm:$0xff]  }
  0x86   :  { %3858 = vmatpush1.bf16.msra.mxu1 %v7831_v15  ;;  %3818 = vmatprep.subr.bf16.mxu0 %v7832_v16  ;;  %v7852_v29 = vld [vmem:[#allocation8 + $0x204] ss:$16 sps:$4 sm:$0xff]   ;;  %v7855_v31 = vld [vmem:[#allocation8 + $0x200] ss:$16 sps:$4 sm:$0xff]   ;;  %v7913_v15 = vld [vmem:[#allocation8 + $0x2c8] ss:$16 sps:$4 sm:$0xff]  }
  0x87   :  { %3859 = vmatprep.subr.bf16.mxu1 %v7834_v17  ;;  %v7856_v32 = vld [vmem:[#allocation8 + $0x1e4] ss:$16 sps:$4 sm:$0xff]   ;;  %v7860_v34 = vld [vmem:[#allocation8 + $0x1e0] ss:$16 sps:$4 sm:$0xff]   ;;  %v7918_v16 = vld [vmem:[#allocation8 + $0xac] ss:$16 sps:$4 sm:$0xff]  }
  0x88   :  { %v7858_v33 = vld [vmem:[#allocation8 + $0x3e4] ss:$16 sps:$4 sm:$0xff]   ;;  %v7861_v35 = vld [vmem:[#allocation8 + $0x3e0] ss:$16 sps:$4 sm:$0xff]   ;;  %v7921_v17 = vld [vmem:[#allocation8 + $0x2ac] ss:$16 sps:$4 sm:$0xff]  }
  0x89   :  { %3819 = vmatpush1.bf16.msra.mxu0 %v7836_v18  ;;  %v7862_v36 = vld [vmem:[#allocation8 + $0x1c4] ss:$16 sps:$4 sm:$0xff]   ;;  %v7866_v38 = vld [vmem:[#allocation8 + $0x1c0] ss:$16 sps:$4 sm:$0xff]   ;;  %v7916_v18 = vld [vmem:[#allocation8 + $0xa8] ss:$16 sps:$4 sm:$0xff]  }
  0x8a   :  { %3860 = vmatpush1.bf16.msra.mxu1 %v7837_v19  ;;  %3820 = vmatprep.subr.bf16.mxu0 %v7838_v20  ;;  %v7864_v37 = vld [vmem:[#allocation8 + $0x3c4] ss:$16 sps:$4 sm:$0xff]   ;;  %v7867_v39 = vld [vmem:[#allocation8 + $0x3c0] ss:$16 sps:$4 sm:$0xff]   ;;  %v7919_v19 = vld [vmem:[#allocation8 + $0x2a8] ss:$16 sps:$4 sm:$0xff]  }
  0x8b   :  { %3861 = vmatprep.subr.bf16.mxu1 %v7840_v21  ;;  %v7868_v40 = vld [vmem:[#allocation8 + $0x1a4] ss:$16 sps:$4 sm:$0xff]   ;;  %v7872_v42 = vld [vmem:[#allocation8 + $0x1a0] ss:$16 sps:$4 sm:$0xff]   ;;  %v7924_v20 = vld [vmem:[#allocation8 + $0x8c] ss:$16 sps:$4 sm:$0xff]  }
  0x8c   :  { %v7870_v41 = vld [vmem:[#allocation8 + $0x3a4] ss:$16 sps:$4 sm:$0xff]   ;;  %v7873_v43 = vld [vmem:[#allocation8 + $0x3a0] ss:$16 sps:$4 sm:$0xff]   ;;  %v7927_v21 = vld [vmem:[#allocation8 + $0x28c] ss:$16 sps:$4 sm:$0xff]  }
  0x8d   :  { %3821 = vmatpush1.bf16.msra.mxu0 %v7842_v22  ;;  %v7874_v44 = vld [vmem:[#allocation8 + $0x184] ss:$16 sps:$4 sm:$0xff]   ;;  %v7878_v47 = vld [vmem:[#allocation8 + $0x180] ss:$16 sps:$4 sm:$0xff]   ;;  %v7922_v22 = vld [vmem:[#allocation8 + $0x88] ss:$16 sps:$4 sm:$0xff]  }
  0x8e   :  { %3862 = vmatpush1.bf16.msra.mxu1 %v7843_v23  ;;  %3822 = vmatprep.subr.bf16.mxu0 %v7844_v24  ;;  %v7876_v45 = vld [vmem:[#allocation8 + $0x384] ss:$16 sps:$4 sm:$0xff]   ;;  %v7879_v48 = vld [vmem:[#allocation8 + $0x380] ss:$16 sps:$4 sm:$0xff]   ;;  %v7925_v23 = vld [vmem:[#allocation8 + $0x288] ss:$16 sps:$4 sm:$0xff]  }
  0x8f   :  { %3863 = vmatprep.subr.bf16.mxu1 %v7846_v25  ;;  %v2884_v46 = vld [vmem:[#allocation2 + $0x8] sm:$0xff]  ;;  %v2886_v50 = vld [vmem:[#allocation2 + $0x18] sm:$0xff]  ;;  %v7930_v24 = vld [vmem:[#allocation8 + $0x6c] ss:$16 sps:$4 sm:$0xff]  }
  0x90   :  { %v8698_v49 = vpack.c.bf16 %v2884_v46, %v2884_v46  ;;  %v7880_v51 = vld [vmem:[#allocation8 + $0x164] ss:$16 sps:$4 sm:$0xff]   ;;  %v3148_v52 = vpack.c.bf16 %v2886_v50, %v2886_v50  ;;  %v7884_v54 = vld [vmem:[#allocation8 + $0x160] ss:$16 sps:$4 sm:$0xff]   ;;  %v7933_v25 = vld [vmem:[#allocation8 + $0x26c] ss:$16 sps:$4 sm:$0xff]  }
  0x91   :  { %3823 = vmatpush1.bf16.msra.mxu0 %v7848_v26  ;;  %v7882_v53 = vld [vmem:[#allocation8 + $0x364] ss:$16 sps:$4 sm:$0xff]   ;;  %v7885_v55 = vld [vmem:[#allocation8 + $0x360] ss:$16 sps:$4 sm:$0xff]   ;;  %v7928_v26 = vld [vmem:[#allocation8 + $0x68] ss:$16 sps:$4 sm:$0xff]  }
  0x92   :  { %3864 = vmatpush1.bf16.msra.mxu1 %v7849_v27  ;;  %3824 = vmatprep.subr.bf16.mxu0 %v7850_v28  ;;  %v7886_v56 = vld [vmem:[#allocation8 + $0x144] ss:$16 sps:$4 sm:$0xff]   ;;  %v7890_v58 = vld [vmem:[#allocation8 + $0x140] ss:$16 sps:$4 sm:$0xff]   ;;  %v7931_v27 = vld [vmem:[#allocation8 + $0x268] ss:$16 sps:$4 sm:$0xff]  }
  0x93   :  { %3865 = vmatprep.subr.bf16.mxu1 %v7852_v29  ;;  %3842 = vmatprep.mubr.bf16.mxu0 %v8698_v49  ;;  %v7888_v57 = vld [vmem:[#allocation8 + $0x344] ss:$16 sps:$4 sm:$0xff]   ;;  %v7891_v59 = vld [vmem:[#allocation8 + $0x340] ss:$16 sps:$4 sm:$0xff]   ;;  %v7936_v28 = vld [vmem:[#allocation8 + $0x4c] ss:$16 sps:$4 sm:$0xff]  }
  0x94   :  { %3883 = vmatprep.mubr.bf16.mxu1 %v3148_v52  ;;  %v7892_v60 = vld [vmem:[#allocation8 + $0x124] ss:$16 sps:$4 sm:$0xff]   ;;  %v7896_v62 = vld [vmem:[#allocation8 + $0x120] ss:$16 sps:$4 sm:$0xff]   ;;  %v7939_v29 = vld [vmem:[#allocation8 + $0x24c] ss:$16 sps:$4 sm:$0xff]  }
  0x95   :  { %3825 = vmatpush1.bf16.msra.mxu0 %v7854_v30  ;;  %v7894_v61 = vld [vmem:[#allocation8 + $0x324] ss:$16 sps:$4 sm:$0xff]   ;;  %v7897_v63 = vld [vmem:[#allocation8 + $0x320] ss:$16 sps:$4 sm:$0xff]   ;;  %v7934_v30 = vld [vmem:[#allocation8 + $0x48] ss:$16 sps:$4 sm:$0xff]  }
  0x96   :  { %3866 = vmatpush1.bf16.msra.mxu1 %v7855_v31  ;;  %3826 = vmatprep.subr.bf16.mxu0 %v7856_v32  ;;  %v7898_v0 = vld [vmem:[#allocation8 + $0x104] ss:$16 sps:$4 sm:$0xff]   ;;  %v7902_v2 = vld [vmem:[#allocation8 + $0x100] ss:$16 sps:$4 sm:$0xff]   ;;  %v7937_v31 = vld [vmem:[#allocation8 + $0x248] ss:$16 sps:$4 sm:$0xff]  }
  0x97   :  { %3867 = vmatprep.subr.bf16.mxu1 %v7858_v33  ;;  %v7900_v1 = vld [vmem:[#allocation8 + $0x304] ss:$16 sps:$4 sm:$0xff]   ;;  %v7903_v3 = vld [vmem:[#allocation8 + $0x300] ss:$16 sps:$4 sm:$0xff]   ;;  %v7942_v32 = vld [vmem:[#allocation8 + $0x2c] ss:$16 sps:$4 sm:$0xff]  }
  0x98   :  { %v7945_v33 = vld [vmem:[#allocation8 + $0x22c] ss:$16 sps:$4 sm:$0xff]   ;;  %v7958_v46 = vld [vmem:[#allocation8 + $0x1c8] ss:$16 sps:$4 sm:$0xff]  }
  0x99   :  { %3827 = vmatpush2.bf16.msra.mxu0 %v7860_v34  ;;  %v7940_v34 = vld [vmem:[#allocation8 + $0x28] ss:$16 sps:$4 sm:$0xff]  }
  0x9a   :  { %3868 = vmatpush2.bf16.msra.mxu1 %v7861_v35  ;;  %3828 = vmatprep.subr.bf16.mxu0 %v7862_v36  ;;  %v7943_v35 = vld [vmem:[#allocation8 + $0x228] ss:$16 sps:$4 sm:$0xff]   ;;  %v7948_v36 = vld [vmem:[#allocation8 + $0xc] ss:$16 sps:$4 sm:$0xff]  }
  0x9b   :  { %3869 = vmatprep.subr.bf16.mxu1 %v7864_v37  ;;  %v7951_v37 = vld [vmem:[#allocation8 + $0x20c] ss:$16 sps:$4 sm:$0xff]   ;;  %v7964_v50 = vld [vmem:[#allocation8 + $0x1a8] ss:$16 sps:$4 sm:$0xff]  }
  0x9d   :  { %3829 = vmatpush2.bf16.msra.mxu0 %v7866_v38  ;;  %v7946_v38 = vld [vmem:[#allocation8 + $0x8] ss:$16 sps:$4 sm:$0xff]  }
  0x9e   :  { %3870 = vmatpush2.bf16.msra.mxu1 %v7867_v39  ;;  %3830 = vmatprep.subr.bf16.mxu0 %v7868_v40  ;;  %v7949_v39 = vld [vmem:[#allocation8 + $0x208] ss:$16 sps:$4 sm:$0xff]   ;;  %v7954_v40 = vld [vmem:[#allocation8 + $0x1ec] ss:$16 sps:$4 sm:$0xff]  }
  0x9f   :  { %3871 = vmatprep.subr.bf16.mxu1 %v7870_v41  ;;  %v7957_v41 = vld [vmem:[#allocation8 + $0x3ec] ss:$16 sps:$4 sm:$0xff]  }
  0xa1   :  { %3831 = vmatpush2.bf16.msra.mxu0 %v7872_v42  ;;  %v7952_v42 = vld [vmem:[#allocation8 + $0x1e8] ss:$16 sps:$4 sm:$0xff]  }
  0xa2   :  { %3872 = vmatpush2.bf16.msra.mxu1 %v7873_v43  ;;  %3832 = vmatprep.subr.bf16.mxu0 %v7874_v44  ;;  %v7955_v43 = vld [vmem:[#allocation8 + $0x3e8] ss:$16 sps:$4 sm:$0xff]   ;;  %v7960_v44 = vld [vmem:[#allocation8 + $0x1cc] ss:$16 sps:$4 sm:$0xff]  }
  0xa3   :  { %3873 = vmatprep.subr.bf16.mxu1 %v7876_v45  ;;  %v7963_v45 = vld [vmem:[#allocation8 + $0x3cc] ss:$16 sps:$4 sm:$0xff]  }
  0xa5   :  { %3833 = vmatpush2.bf16.msra.mxu0 %v7878_v47  ;;  %v7961_v47 = vld [vmem:[#allocation8 + $0x3c8] ss:$16 sps:$4 sm:$0xff]  }
  0xa6   :  { %3874 = vmatpush2.bf16.msra.mxu1 %v7879_v48  ;;  %3834 = vmatprep.subr.bf16.mxu0 %v7880_v51  ;;  %v7966_v48 = vld [vmem:[#allocation8 + $0x1ac] ss:$16 sps:$4 sm:$0xff]   ;;  %v7967_v51 = vld [vmem:[#allocation8 + $0x3a8] ss:$16 sps:$4 sm:$0xff]  }
  0xa7   :  { %3875 = vmatprep.subr.bf16.mxu1 %v7882_v53  ;;  %v7975_v53 = vld [vmem:[#allocation8 + $0x38c] ss:$16 sps:$4 sm:$0xff]  }
  0xa9   :  { %3835 = vmatpush2.bf16.msra.mxu0 %v7884_v54  ;;  %v7970_v54 = vld [vmem:[#allocation8 + $0x188] ss:$16 sps:$4 sm:$0xff]  }
  0xaa   :  { %3876 = vmatpush2.bf16.msra.mxu1 %v7885_v55  ;;  %3836 = vmatprep.subr.bf16.mxu0 %v7886_v56  ;;  %v7973_v55 = vld [vmem:[#allocation8 + $0x388] ss:$16 sps:$4 sm:$0xff]   ;;  %v7978_v56 = vld [vmem:[#allocation8 + $0x16c] ss:$16 sps:$4 sm:$0xff]  }
  0xab   :  { %3877 = vmatprep.subr.bf16.mxu1 %v7888_v57  ;;  %v7981_v57 = vld [vmem:[#allocation8 + $0x36c] ss:$16 sps:$4 sm:$0xff]  }
  0xad   :  { %3837 = vmatpush2.bf16.msra.mxu0 %v7890_v58  ;;  %v7976_v58 = vld [vmem:[#allocation8 + $0x168] ss:$16 sps:$4 sm:$0xff]  }
  0xae   :  { %3878 = vmatpush2.bf16.msra.mxu1 %v7891_v59  ;;  %3838 = vmatprep.subr.bf16.mxu0 %v7892_v60  ;;  %v7979_v59 = vld [vmem:[#allocation8 + $0x368] ss:$16 sps:$4 sm:$0xff]   ;;  %v7984_v60 = vld [vmem:[#allocation8 + $0x14c] ss:$16 sps:$4 sm:$0xff]  }
  0xaf   :  { %3879 = vmatprep.subr.bf16.mxu1 %v7894_v61  ;;  %v7987_v61 = vld [vmem:[#allocation8 + $0x34c] ss:$16 sps:$4 sm:$0xff]  }
  0xb1   :  { %3839 = vmatpush2.bf16.msra.mxu0 %v7896_v62  ;;  %v7982_v62 = vld [vmem:[#allocation8 + $0x148] ss:$16 sps:$4 sm:$0xff]  }
  0xb2   :  { %3880 = vmatpush2.bf16.msra.mxu1 %v7897_v63  ;;  %3840 = vmatprep.subr.bf16.mxu0 %v7898_v0  ;;  %v7985_v63 = vld [vmem:[#allocation8 + $0x348] ss:$16 sps:$4 sm:$0xff]   ;;  %v7990_v0 = vld [vmem:[#allocation8 + $0x12c] ss:$16 sps:$4 sm:$0xff]  }
  0xb3   :  { %3881 = vmatprep.subr.bf16.mxu1 %v7900_v1  ;;  %v7993_v1 = vld [vmem:[#allocation8 + $0x32c] ss:$16 sps:$4 sm:$0xff]  }
  0xb5   :  { %3841 = vmatpush2.bf16.msra.mxu0 %v7902_v2  ;;  %v7988_v2 = vld [vmem:[#allocation8 + $0x128] ss:$16 sps:$4 sm:$0xff]  }
  0xb6   :  { %3882 = vmatpush2.bf16.msra.mxu1 %v7903_v3  ;;  %3892 = vmatprep.subr.bf16.mxu0 %v7906_v6  ;;  %v7991_v3 = vld [vmem:[#allocation8 + $0x328] ss:$16 sps:$4 sm:$0xff]  }
  0xb7   :  { %3933 = vmatprep.subr.bf16.mxu1 %v7909_v7  ;;  %v7994_v6 = vld [vmem:[#allocation8 + $0x108] ss:$16 sps:$4 sm:$0xff]  }
  0xb8   :  { %3843 = vmatmul.mubr.bf16.vlgmr.msra.gmra.mxu0 %v8701_v8  ;;  %v7997_v7 = vld [vmem:[#allocation8 + $0x308] ss:$16 sps:$4 sm:$0xff]  }
  0xb9   :  { %3884 = vmatmul.mubr.bf16.vlgmr.msra.gmra.mxu1 %v8703_v9  ;;  %3893 = vmatpush1.bf16.msra.mxu0 %v7904_v10  ;;  %v8002_v10 = vld [vmem:[#allocation10 + $0xe4] ss:$16 sps:$4 sm:$0xff]  }
  0xba   :  { %3934 = vmatpush1.bf16.msra.mxu1 %v7907_v11  ;;  %3894 = vmatprep.subr.bf16.mxu0 %v7912_v12  ;;  %v8000_v11 = vld [vmem:[#allocation10 + $0xe0] ss:$16 sps:$4 sm:$0xff]   ;;  %v8005_v12 = vld [vmem:[#allocation10 + $0xc4] ss:$16 sps:$4 sm:$0xff]  }
  0xbb   :  { %3935 = vmatprep.subr.bf16.mxu1 %v7915_v13  ;;  %3924 = vmatprep.mubr.bf16.mxu0 %v8698_v49  ;;  %v7969_v49 = vld [vmem:[#allocation8 + $0x3ac] ss:$16 sps:$4 sm:$0xff]   ;;  %v8003_v13 = vld [vmem:[#allocation10 + $0xc0] ss:$16 sps:$4 sm:$0xff]  }
  0xbc   :  { %3965 = vmatprep.mubr.bf16.mxu1 %v3148_v52  ;;  %v7972_v52 = vld [vmem:[#allocation8 + $0x18c] ss:$16 sps:$4 sm:$0xff]  }
  0xbd   :  { %3895 = vmatpush1.bf16.msra.mxu0 %v7910_v14  ;;  %v8008_v14 = vld [vmem:[#allocation10 + $0xa4] ss:$16 sps:$4 sm:$0xff]  }
  0xbe   :  { %3936 = vmatpush1.bf16.msra.mxu1 %v7913_v15  ;;  %3896 = vmatprep.subr.bf16.mxu0 %v7918_v16  ;;  %v8006_v15 = vld [vmem:[#allocation10 + $0xa0] ss:$16 sps:$4 sm:$0xff]   ;;  %v8011_v16 = vld [vmem:[#allocation10 + $0x84] ss:$16 sps:$4 sm:$0xff]  }
  0xbf   :  { %3937 = vmatprep.subr.bf16.mxu1 %v7921_v17  ;;  %v8009_v17 = vld [vmem:[#allocation10 + $0x80] ss:$16 sps:$4 sm:$0xff]  }
  0xc1   :  { %3897 = vmatpush1.bf16.msra.mxu0 %v7916_v18  ;;  %v8050_v18 = vld [vmem:[#allocation10 + $0x2e4] ss:$16 sps:$4 sm:$0xff]  }
  0xc2   :  { %3938 = vmatpush1.bf16.msra.mxu1 %v7919_v19  ;;  %3898 = vmatprep.subr.bf16.mxu0 %v7924_v20  ;;  %v8014_v19 = vld [vmem:[#allocation10 + $0x64] ss:$16 sps:$4 sm:$0xff]   ;;  %v8048_v20 = vld [vmem:[#allocation10 + $0x2e0] ss:$16 sps:$4 sm:$0xff]  }
  0xc3   :  { %3939 = vmatprep.subr.bf16.mxu1 %v7927_v21  ;;  %v8054_v21 = vld [vmem:[#allocation10 + $0x2c0] ss:$16 sps:$4 sm:$0xff]  }
  0xc5   :  { %3899 = vmatpush1.bf16.msra.mxu0 %v7922_v22  ;;  %v8017_v22 = vld [vmem:[#allocation10 + $0x44] ss:$16 sps:$4 sm:$0xff]  }
  0xc6   :  { %3940 = vmatpush1.bf16.msra.mxu1 %v7925_v23  ;;  %3900 = vmatprep.subr.bf16.mxu0 %v7930_v24  ;;  %v8015_v23 = vld [vmem:[#allocation10 + $0x40] ss:$16 sps:$4 sm:$0xff]  }
  0xc7   :  { %3941 = vmatprep.subr.bf16.mxu1 %v7933_v25  ;;  %v8060_v24 = vld [vmem:[#allocation10 + $0x2a0] ss:$16 sps:$4 sm:$0xff]   ;;  %v8062_v25 = vld [vmem:[#allocation10 + $0x2a4] ss:$16 sps:$4 sm:$0xff]  }
  0xc9   :  { %3901 = vmatpush1.bf16.msra.mxu0 %v7928_v26  ;;  %v8020_v26 = vld [vmem:[#allocation10 + $0x24] ss:$16 sps:$4 sm:$0xff]  }
  0xca   :  { %3942 = vmatpush1.bf16.msra.mxu1 %v7931_v27  ;;  %3902 = vmatprep.subr.bf16.mxu0 %v7936_v28  ;;  %v8018_v27 = vld [vmem:[#allocation10 + $0x20] ss:$16 sps:$4 sm:$0xff]  }
  0xcb   :  { %3943 = vmatprep.subr.bf16.mxu1 %v7939_v29  ;;  %v8066_v28 = vld [vmem:[#allocation10 + $0x280] ss:$16 sps:$4 sm:$0xff]   ;;  %v8068_v29 = vld [vmem:[#allocation10 + $0x284] ss:$16 sps:$4 sm:$0xff]  }
  0xcd   :  { %3903 = vmatpush1.bf16.msra.mxu0 %v7934_v30  ;;  %v8023_v30 = vld [vmem:[#allocation10 + $0x4] ss:$16 sps:$4 sm:$0xff]  }
  0xce   :  { %3944 = vmatpush1.bf16.msra.mxu1 %v7937_v31  ;;  %3904 = vmatprep.subr.bf16.mxu0 %v7942_v32  ;;  %v8021_v31 = vld [vmem:[#allocation10] ss:$16 sps:$4 sm:$0xff]  }
  0xcf   :  { %3945 = vmatprep.subr.bf16.mxu1 %v7945_v33  ;;  %v8072_v32 = vld [vmem:[#allocation10 + $0x260] ss:$16 sps:$4 sm:$0xff]   ;;  %v8074_v33 = vld [vmem:[#allocation10 + $0x264] ss:$16 sps:$4 sm:$0xff]  }
  0xd1   :  { %3905 = vmatpush1.bf16.msra.mxu0 %v7940_v34  ;;  %v8026_v34 = vld [vmem:[#allocation10 + $0x1e4] ss:$16 sps:$4 sm:$0xff]  }
  0xd2   :  { %3946 = vmatpush1.bf16.msra.mxu1 %v7943_v35  ;;  %3906 = vmatprep.subr.bf16.mxu0 %v7948_v36  ;;  %v8024_v35 = vld [vmem:[#allocation10 + $0x1e0] ss:$16 sps:$4 sm:$0xff]  }
  0xd3   :  { %3947 = vmatprep.subr.bf16.mxu1 %v7951_v37  ;;  %v8078_v36 = vld [vmem:[#allocation10 + $0x240] ss:$16 sps:$4 sm:$0xff]   ;;  %v8080_v37 = vld [vmem:[#allocation10 + $0x244] ss:$16 sps:$4 sm:$0xff]  }
  0xd5   :  { %3907 = vmatpush1.bf16.msra.mxu0 %v7946_v38  ;;  %v8029_v38 = vld [vmem:[#allocation10 + $0x1c4] ss:$16 sps:$4 sm:$0xff]  }
  0xd6   :  { %3948 = vmatpush1.bf16.msra.mxu1 %v7949_v39  ;;  %3908 = vmatprep.subr.bf16.mxu0 %v7954_v40  ;;  %v8027_v39 = vld [vmem:[#allocation10 + $0x1c0] ss:$16 sps:$4 sm:$0xff]  }
  0xd7   :  { %3949 = vmatprep.subr.bf16.mxu1 %v7957_v41  ;;  %v8084_v40 = vld [vmem:[#allocation10 + $0x220] ss:$16 sps:$4 sm:$0xff]   ;;  %v8086_v41 = vld [vmem:[#allocation10 + $0x224] ss:$16 sps:$4 sm:$0xff]  }
  0xd9   :  { %3909 = vmatpush2.bf16.msra.mxu0 %v7952_v42  ;;  %v8032_v42 = vld [vmem:[#allocation10 + $0x1a4] ss:$16 sps:$4 sm:$0xff]  }
  0xda   :  { %3950 = vmatpush2.bf16.msra.mxu1 %v7955_v43  ;;  %3910 = vmatprep.subr.bf16.mxu0 %v7960_v44  ;;  %v8030_v43 = vld [vmem:[#allocation10 + $0x1a0] ss:$16 sps:$4 sm:$0xff]  }
  0xdb   :  { %3951 = vmatprep.subr.bf16.mxu1 %v7963_v45  ;;  %v8090_v44 = vld [vmem:[#allocation10 + $0x200] ss:$16 sps:$4 sm:$0xff]   ;;  %v8092_v45 = vld [vmem:[#allocation10 + $0x204] ss:$16 sps:$4 sm:$0xff]  }
  0xdd   :  { %3911 = vmatpush2.bf16.msra.mxu0 %v7958_v46  ;;  %v8035_v46 = vld [vmem:[#allocation10 + $0x184] ss:$16 sps:$4 sm:$0xff]  }
  0xde   :  { %3952 = vmatpush2.bf16.msra.mxu1 %v7961_v47  ;;  %3912 = vmatprep.subr.bf16.mxu0 %v7966_v48  ;;  %v8033_v47 = vld [vmem:[#allocation10 + $0x180] ss:$16 sps:$4 sm:$0xff]  }
  0xdf   :  { %3953 = vmatprep.subr.bf16.mxu1 %v7969_v49  ;;  %v8096_v48 = vld [vmem:[#allocation10 + $0x3e0] ss:$16 sps:$4 sm:$0xff]   ;;  %v8098_v49 = vld [vmem:[#allocation10 + $0x3e4] ss:$16 sps:$4 sm:$0xff]  }
  0xe1   :  { %3913 = vmatpush2.bf16.msra.mxu0 %v7964_v50  ;;  %v8038_v50 = vld [vmem:[#allocation10 + $0x164] ss:$16 sps:$4 sm:$0xff]  }
  0xe2   :  { %3954 = vmatpush2.bf16.msra.mxu1 %v7967_v51  ;;  %3914 = vmatprep.subr.bf16.mxu0 %v7972_v52  ;;  %v8036_v51 = vld [vmem:[#allocation10 + $0x160] ss:$16 sps:$4 sm:$0xff]  }
  0xe3   :  { %3955 = vmatprep.subr.bf16.mxu1 %v7975_v53  ;;  %v8102_v52 = vld [vmem:[#allocation10 + $0x3c0] ss:$16 sps:$4 sm:$0xff]   ;;  %v8104_v53 = vld [vmem:[#allocation10 + $0x3c4] ss:$16 sps:$4 sm:$0xff]  }
  0xe5   :  { %3915 = vmatpush2.bf16.msra.mxu0 %v7970_v54  ;;  %v8041_v54 = vld [vmem:[#allocation10 + $0x144] ss:$16 sps:$4 sm:$0xff]  }
  0xe6   :  { %3956 = vmatpush2.bf16.msra.mxu1 %v7973_v55  ;;  %3916 = vmatprep.subr.bf16.mxu0 %v7978_v56  ;;  %v8039_v55 = vld [vmem:[#allocation10 + $0x140] ss:$16 sps:$4 sm:$0xff]  }
  0xe7   :  { %3957 = vmatprep.subr.bf16.mxu1 %v7981_v57  ;;  %v8108_v56 = vld [vmem:[#allocation10 + $0x3a0] ss:$16 sps:$4 sm:$0xff]   ;;  %v8110_v57 = vld [vmem:[#allocation10 + $0x3a4] ss:$16 sps:$4 sm:$0xff]  }
  0xe9   :  { %3917 = vmatpush2.bf16.msra.mxu0 %v7976_v58  ;;  %v8044_v58 = vld [vmem:[#allocation10 + $0x124] ss:$16 sps:$4 sm:$0xff]  }
  0xea   :  { %3958 = vmatpush2.bf16.msra.mxu1 %v7979_v59  ;;  %3918 = vmatprep.subr.bf16.mxu0 %v7984_v60  ;;  %v8042_v59 = vld [vmem:[#allocation10 + $0x120] ss:$16 sps:$4 sm:$0xff]  }
  0xeb   :  { %3959 = vmatprep.subr.bf16.mxu1 %v7987_v61  ;;  %v8114_v60 = vld [vmem:[#allocation10 + $0x380] ss:$16 sps:$4 sm:$0xff]   ;;  %v8116_v61 = vld [vmem:[#allocation10 + $0x384] ss:$16 sps:$4 sm:$0xff]  }
  0xed   :  { %3919 = vmatpush2.bf16.msra.mxu0 %v7982_v62  ;;  %v8047_v62 = vld [vmem:[#allocation10 + $0x104] ss:$16 sps:$4 sm:$0xff]  }
  0xee   :  { %3960 = vmatpush2.bf16.msra.mxu1 %v7985_v63  ;;  %3920 = vmatprep.subr.bf16.mxu0 %v7990_v0  ;;  %v8045_v63 = vld [vmem:[#allocation10 + $0x100] ss:$16 sps:$4 sm:$0xff]  }
  0xef   :  { %3961 = vmatprep.subr.bf16.mxu1 %v7993_v1  ;;  %v8120_v0 = vld [vmem:[#allocation10 + $0x360] ss:$16 sps:$4 sm:$0xff]   ;;  %v8122_v1 = vld [vmem:[#allocation10 + $0x364] ss:$16 sps:$4 sm:$0xff]  }
  0xf1   :  { %3921 = vmatpush2.bf16.msra.mxu0 %v7988_v2  ;;  %v8053_v2 = vld [vmem:[#allocation10 + $0xec] ss:$16 sps:$4 sm:$0xff]  }
  0xf2   :  { %3962 = vmatpush2.bf16.msra.mxu1 %v7991_v3  ;;  %3922 = vmatprep.subr.bf16.mxu0 %v7996_v4  ;;  %v8126_v3 = vld [vmem:[#allocation10 + $0x340] ss:$16 sps:$4 sm:$0xff]   ;;  %v8128_v4 = vld [vmem:[#allocation10 + $0x344] ss:$16 sps:$4 sm:$0xff]  }
  0xf3   :  { %3963 = vmatprep.subr.bf16.mxu1 %v7999_v5  ;;  %v8134_v5 = vld [vmem:[#allocation10 + $0x324] ss:$16 sps:$4 sm:$0xff]  }
  0xf5   :  { %3923 = vmatpush2.bf16.msra.mxu0 %v7994_v6  ;;  %v8132_v6 = vld [vmem:[#allocation10 + $0x320] ss:$16 sps:$4 sm:$0xff]  }
  0xf6   :  { %3964 = vmatpush2.bf16.msra.mxu1 %v7997_v7  ;;  %4643 = vmatprep.subr.bf16.mxu0 %v8002_v10  ;;  %v8140_v7 = vld [vmem:[#allocation10 + $0x304] ss:$16 sps:$4 sm:$0xff]   ;;  %v8138_v10 = vld [vmem:[#allocation10 + $0x300] ss:$16 sps:$4 sm:$0xff]  }
  0xf7   :  { %4684 = vmatprep.subr.bf16.mxu1 %v8050_v18 }
  0xf8   :  { %3925 = vmatmul.mubr.bf16.vlgmr.msra.gmra.mxu0 %v8701_v8  ;;  %v8012_v8 = vld [vmem:[#allocation10 + $0x60] ss:$16 sps:$4 sm:$0xff]  }
  0xf9   :  { %3966 = vmatmul.mubr.bf16.vlgmr.msra.gmra.mxu1 %v8703_v9  ;;  %4644 = vmatpush1.bf16.msra.mxu0 %v8000_v11  ;;  %v8056_v9 = vld [vmem:[#allocation10 + $0x2c4] ss:$16 sps:$4 sm:$0xff]   ;;  %v8146_v11 = vld [vmem:[#allocation10 + $0x2ec] ss:$16 sps:$4 sm:$0xff]  }
  0xfa   :  { %4645 = vmatprep.subr.bf16.mxu0 %v8005_v12  ;;  %4685 = vmatpush1.bf16.msra.mxu1 %v8048_v20  ;;  %v11845_v12 = vlaneseq }
  0xfb   :  { %4686 = vmatprep.subr.bf16.mxu1 %v8056_v9 }
  0xfd   :  { %4646 = vmatpush1.bf16.msra.mxu0 %v8003_v13  ;;  %v8711_v13 = vshrl.u32 %v11845_v12, 7 }
  0xfe   :  { %4647 = vmatprep.subr.bf16.mxu0 %v8008_v14  ;;  %4687 = vmatpush1.bf16.msra.mxu1 %v8054_v21 }
  0xff   :  { %4688 = vmatprep.subr.bf16.mxu1 %v8062_v25  ;;  %v8714_v14 = vsub.s32 0, %v8711_v13 }
 0x101   :  { %4648 = vmatpush1.bf16.msra.mxu0 %v8006_v15  ;;  %11996 = vst [vmem:[#allocation35_spill] sm:$0xff] %v8714_v14  ;;  %v8719_v15 = vld [vmem:[%s11997_s4] sm:$0xf] }
 0x102   :  { %4649 = vmatprep.subr.bf16.mxu0 %v8011_v16  ;;  %4689 = vmatpush1.bf16.msra.mxu1 %v8060_v24  ;;  %v8722_v16 = vsub.s32 1, %v8711_v13 }
 0x103   :  { %4690 = vmatprep.subr.bf16.mxu1 %v8068_v29 }
 0x104   :  { %11998 = vst [vmem:[#allocation36_spill] sm:$0xff] %v8722_v16  ;;  %v3157_v18 = vrot.slane %v8719_v15, %v8722_v16 }
 0x105   :  { %4650 = vmatpush1.bf16.msra.mxu0 %v8009_v17  ;;  %v3153_v17 = vrot.slane %v8719_v15, %v8714_v14 }
 0x106   :  { %4651 = vmatprep.subr.bf16.mxu0 %v8014_v19  ;;  %4691 = vmatpush1.bf16.msra.mxu1 %v8066_v28 }
 0x107   :  { %4692 = vmatprep.subr.bf16.mxu1 %v8074_v33 }
 0x109   :  { %4652 = vmatpush1.bf16.msra.mxu0 %v8012_v8 }
 0x10a   :  { %4653 = vmatprep.subr.bf16.mxu0 %v8017_v22  ;;  %4693 = vmatpush1.bf16.msra.mxu1 %v8072_v32  ;;  %v8051_v32 = vld [vmem:[#allocation10 + $0xe8] ss:$16 sps:$4 sm:$0xff]  }
 0x10b   :  { %4694 = vmatprep.subr.bf16.mxu1 %v8080_v37  ;;  %v8063_v37 = vld [vmem:[#allocation10 + $0xa8] ss:$16 sps:$4 sm:$0xff]  }
 0x10d   :  { %4654 = vmatpush1.bf16.msra.mxu0 %v8015_v23 }
 0x10e   :  { %4655 = vmatprep.subr.bf16.mxu0 %v8020_v26  ;;  %4695 = vmatpush1.bf16.msra.mxu1 %v8078_v36  ;;  %v8065_v36 = vld [vmem:[#allocation10 + $0xac] ss:$16 sps:$4 sm:$0xff]  }
 0x10f   :  { %4696 = vmatprep.subr.bf16.mxu1 %v8086_v41  ;;  %v8075_v41 = vld [vmem:[#allocation10 + $0x68] ss:$16 sps:$4 sm:$0xff]  }
 0x111   :  { %4656 = vmatpush1.bf16.msra.mxu0 %v8018_v27 }
 0x112   :  { %4657 = vmatprep.subr.bf16.mxu0 %v8023_v30  ;;  %4697 = vmatpush1.bf16.msra.mxu1 %v8084_v40  ;;  %v8077_v40 = vld [vmem:[#allocation10 + $0x6c] ss:$16 sps:$4 sm:$0xff]  }
 0x113   :  { %4698 = vmatprep.subr.bf16.mxu1 %v8092_v45  ;;  %v8087_v45 = vld [vmem:[#allocation10 + $0x28] ss:$16 sps:$4 sm:$0xff]  }
 0x115   :  { %4658 = vmatpush1.bf16.msra.mxu0 %v8021_v31 }
 0x116   :  { %4659 = vmatprep.subr.bf16.mxu0 %v8026_v34  ;;  %4699 = vmatpush1.bf16.msra.mxu1 %v8090_v44  ;;  %v8059_v34 = vld [vmem:[#allocation10 + $0xcc] ss:$16 sps:$4 sm:$0xff]  }
 0x117   :  { %4700 = vmatprep.subr.bf16.mxu1 %v8098_v49  ;;  %v8089_v44 = vld [vmem:[#allocation10 + $0x2c] ss:$16 sps:$4 sm:$0xff]   ;;  %v8099_v49 = vld [vmem:[#allocation10 + $0x1e8] ss:$16 sps:$4 sm:$0xff]  }
 0x119   :  { %4660 = vmatpush2.bf16.msra.mxu0 %v8024_v35  ;;  %v8057_v35 = vld [vmem:[#allocation10 + $0xc8] ss:$16 sps:$4 sm:$0xff]  }
 0x11a   :  { %4661 = vmatprep.subr.bf16.mxu0 %v8029_v38  ;;  %4701 = vmatpush2.bf16.msra.mxu1 %v8096_v48  ;;  %v8071_v38 = vld [vmem:[#allocation10 + $0x8c] ss:$16 sps:$4 sm:$0xff]  }
 0x11b   :  { %4702 = vmatprep.subr.bf16.mxu1 %v8104_v53  ;;  %v8101_v48 = vld [vmem:[#allocation10 + $0x1ec] ss:$16 sps:$4 sm:$0xff]   ;;  %v8111_v53 = vld [vmem:[#allocation10 + $0x1a8] ss:$16 sps:$4 sm:$0xff]  }
 0x11d   :  { %4662 = vmatpush2.bf16.msra.mxu0 %v8027_v39  ;;  %v8069_v39 = vld [vmem:[#allocation10 + $0x88] ss:$16 sps:$4 sm:$0xff]  }
 0x11e   :  { %4663 = vmatprep.subr.bf16.mxu0 %v8032_v42  ;;  %4703 = vmatpush2.bf16.msra.mxu1 %v8102_v52  ;;  %v8083_v42 = vld [vmem:[#allocation10 + $0x4c] ss:$16 sps:$4 sm:$0xff]  }
 0x11f   :  { %4704 = vmatprep.subr.bf16.mxu1 %v8110_v57  ;;  %v8113_v52 = vld [vmem:[#allocation10 + $0x1ac] ss:$16 sps:$4 sm:$0xff]   ;;  %v8123_v57 = vld [vmem:[#allocation10 + $0x168] ss:$16 sps:$4 sm:$0xff]  }
 0x121   :  { %4664 = vmatpush2.bf16.msra.mxu0 %v8030_v43  ;;  %v8081_v43 = vld [vmem:[#allocation10 + $0x48] ss:$16 sps:$4 sm:$0xff]  }
 0x122   :  { %4665 = vmatprep.subr.bf16.mxu0 %v8035_v46  ;;  %4705 = vmatpush2.bf16.msra.mxu1 %v8108_v56  ;;  %v8095_v46 = vld [vmem:[#allocation10 + $0xc] ss:$16 sps:$4 sm:$0xff]  }
 0x123   :  { %4706 = vmatprep.subr.bf16.mxu1 %v8116_v61  ;;  %v8125_v56 = vld [vmem:[#allocation10 + $0x16c] ss:$16 sps:$4 sm:$0xff]   ;;  %v8129_v61 = vld [vmem:[#allocation10 + $0x148] ss:$16 sps:$4 sm:$0xff]  }
 0x125   :  { %4666 = vmatpush2.bf16.msra.mxu0 %v8033_v47  ;;  %v8093_v47 = vld [vmem:[#allocation10 + $0x8] ss:$16 sps:$4 sm:$0xff]  }
 0x126   :  { %4667 = vmatprep.subr.bf16.mxu0 %v8038_v50  ;;  %4707 = vmatpush2.bf16.msra.mxu1 %v8114_v60  ;;  %v8107_v50 = vld [vmem:[#allocation10 + $0x1cc] ss:$16 sps:$4 sm:$0xff]   ;;  %v8735_v60 = vsub.s32 3, %v8711_v13 }
 0x127   :  { %4708 = vmatprep.subr.bf16.mxu1 %v8122_v1 }
 0x128   :  { %12000 = vst [vmem:[#allocation38_spill] sm:$0xff] %v8735_v60 }
 0x129   :  { %4668 = vmatpush2.bf16.msra.mxu0 %v8036_v51  ;;  %v8105_v51 = vld [vmem:[#allocation10 + $0x1c8] ss:$16 sps:$4 sm:$0xff]  }
 0x12a   :  { %4669 = vmatprep.subr.bf16.mxu0 %v8041_v54  ;;  %4709 = vmatpush2.bf16.msra.mxu1 %v8120_v0  ;;  %v8119_v54 = vld [vmem:[#allocation10 + $0x18c] ss:$16 sps:$4 sm:$0xff]   ;;  %v3165_v0 = vrot.slane %v8719_v15, %v8735_v60 }
 0x12b   :  { %4710 = vmatprep.subr.bf16.mxu1 %v8128_v4  ;;  %v8135_v4 = vld [vmem:[#allocation10 + $0x128] ss:$16 sps:$4 sm:$0xff]  }
 0x12d   :  { %4670 = vmatpush2.bf16.msra.mxu0 %v8039_v55  ;;  %v8117_v55 = vld [vmem:[#allocation10 + $0x188] ss:$16 sps:$4 sm:$0xff]  }
 0x12e   :  { %4671 = vmatprep.subr.bf16.mxu0 %v8044_v58  ;;  %4711 = vmatpush2.bf16.msra.mxu1 %v8126_v3  ;;  %v8732_v58 = vsub.s32 2, %v8711_v13  ;;  %v4871_v13 = vld [vmem:[#allocation11 + $0x1c8] sm:$0xff] }
 0x12f   :  { %4712 = vmatprep.subr.bf16.mxu1 %v8134_v5 }
 0x130   :  { %11999 = vst [vmem:[#allocation37_spill] sm:$0xff] %v8732_v58 }
 0x131   :  { %4672 = vmatpush2.bf16.msra.mxu0 %v8042_v59  ;;  %v8131_v59 = vld [vmem:[#allocation10 + $0x14c] ss:$16 sps:$4 sm:$0xff]  }
 0x132   :  { %4673 = vmatprep.subr.bf16.mxu0 %v8047_v62  ;;  %4713 = vmatpush2.bf16.msra.mxu1 %v8132_v6  ;;  %v3161_v62 = vrot.slane %v8719_v15, %v8732_v58 }
 0x133   :  { %4714 = vmatprep.subr.bf16.mxu1 %v8140_v7  ;;  %v8143_v7 = vld [vmem:[#allocation10 + $0x10c] ss:$16 sps:$4 sm:$0xff]  }
 0x135   :  { %4674 = vmatpush2.bf16.msra.mxu0 %v8045_v63  ;;  %v8137_v63 = vld [vmem:[#allocation10 + $0x12c] ss:$16 sps:$4 sm:$0xff]  }
 0x136   :  { %4725 = vmatprep.subr.bf16.mxu0 %v8053_v2  ;;  %4715 = vmatpush2.bf16.msra.mxu1 %v8138_v10 }
 0x137   :  { %4766 = vmatprep.subr.bf16.mxu1 %v8146_v11 }
 0x178   :  { %v3844_v19 = vpop.f32.mrf.mxu0 }
 0x179   :  { %v3885_v20 = vpop.f32.mrf.mxu1  ;;  %v3845_v8 = vadd.f32 %v3844_v19, %v3153_v17  ;;  %v4875_v17 = vld [vmem:[#allocation11 + $0x1e8] sm:$0xff] }
 0x17a   :  { %v3846_v21 = vpop.f32.mrf.mxu0 }
 0x17b   :  { %v3887_v9 = vpop.f32.mrf.mxu1  ;;  %v3886_v22 = vadd.f32 %v3885_v20, %v3845_v8  ;;  %v3847_v23 = vadd.f32 %v3846_v21, %v3157_v18  ;;  %v8141_v8 = vld [vmem:[#allocation10 + $0x108] ss:$16 sps:$4 sm:$0xff]  }
 0x17c   :  { %v3848_v24 = vpop.f32.mrf.mxu0 }
 0x17d   :  { %v3889_v25 = vpop.f32.mrf.mxu1  ;;  %v3888_v26 = vadd.f32 %v3887_v9, %v3847_v23  ;;  %v3974_v27 = vmax.f32 %v3886_v22, 0.0  ;;  %v5296_v22 = vpack.c.bf16 %v4875_v17, %v4871_v13  ;;  %v4870_v24 = vld [vmem:[#allocation11 + $0x1c0] sm:$0xff]  ;;  %v8159_v13 = vld [vmem:[#allocation10 + $0x248] ss:$16 sps:$4 sm:$0xff]   ;;  %v8164_v17 = vld [vmem:[#allocation10 + $0x22c] ss:$16 sps:$4 sm:$0xff]  }
 0x17e   :  { %v3849_v28 = vpop.f32.mrf.mxu0  ;;  %v4874_v25 = vld [vmem:[#allocation11 + $0x1e0] sm:$0xff] }
 0x17f   :  { %v3890_v29 = vpop.f32.mrf.mxu1  ;;  %v3975_v30 = vmax.f32 %v3888_v26, 0.0  ;;  %v8728_v33 = vpack.c.bf16 %v3974_v27, %v3974_v27  ;;  %v4863_v26 = vld [vmem:[#allocation11 + $0x188] sm:$0xff]  ;;  %v4812_v28 = vld [vmem:[#allocation5 + $0x8] sm:$0xff] }
 0x180   :  { %v4867_v27 = vld [vmem:[#allocation11 + $0x1a8] sm:$0xff] }
 0x181   :  { %v3979_v31 = vpack.c.bf16 %v3975_v30, %v3975_v30  ;;  %v8144_v30 = vld [vmem:[#allocation10 + $0x2e8] ss:$16 sps:$4 sm:$0xff]  }
 0x183   :  { %4675 = vmatprep.mubr.bf16.mxu0 %v3979_v31 }
 0x184   :  { %4676 = vmatmul.mubr.bf16.vlgmr.msra.gmra.mxu0 %v8728_v33 }
 0x185   :  { %4726 = vmatpush1.bf16.msra.mxu0 %v8051_v32  ;;  %4757 = vmatprep.mubr.bf16.mxu0 %v3979_v31  ;;  %v8149_v32 = vld [vmem:[#allocation10 + $0x2cc] ss:$16 sps:$4 sm:$0xff]  }
 0x186   :  { %4727 = vmatprep.subr.bf16.mxu0 %v8059_v34  ;;  %v5295_v34 = vpack.c.bf16 %v4874_v25, %v4870_v24  ;;  %v4814_v25 = vld [vmem:[#allocation11] sm:$0xff] }
 0x189   :  { %4728 = vmatpush1.bf16.msra.mxu0 %v8057_v35  ;;  %v5292_v35 = vpack.c.bf16 %v4867_v27, %v4863_v26  ;;  %v4818_v26 = vld [vmem:[#allocation11 + $0x20] sm:$0xff]  ;;  %v4935_v27 = vld [vmem:[#allocation11 + $0x3c8] sm:$0xff] }
 0x18a   :  { %4729 = vmatprep.subr.bf16.mxu0 %v8065_v36  ;;  %v4862_v36 = vld [vmem:[#allocation11 + $0x180] sm:$0xff] }
 0x18d   :  { %4730 = vmatpush1.bf16.msra.mxu0 %v8063_v37  ;;  %v4866_v37 = vld [vmem:[#allocation11 + $0x1a0] sm:$0xff] }
 0x18e   :  { %4731 = vmatprep.subr.bf16.mxu0 %v8071_v38  ;;  %v8743_v38 = vpack.c.bf16 %v4812_v28, %v4812_v28  ;;  %v4939_v28 = vld [vmem:[#allocation11 + $0x3e8] sm:$0xff] }
 0x191   :  { %4732 = vmatpush1.bf16.msra.mxu0 %v8069_v39  ;;  %v4855_v39 = vld [vmem:[#allocation11 + $0x148] sm:$0xff] }
 0x192   :  { %4733 = vmatprep.subr.bf16.mxu0 %v8077_v40  ;;  %v4859_v40 = vld [vmem:[#allocation11 + $0x168] sm:$0xff] }
 0x195   :  { %4734 = vmatpush1.bf16.msra.mxu0 %v8075_v41  ;;  %v8147_v41 = vld [vmem:[#allocation10 + $0x2c8] ss:$16 sps:$4 sm:$0xff]  }
 0x196   :  { %4735 = vmatprep.subr.bf16.mxu0 %v8083_v42  ;;  %v8152_v42 = vld [vmem:[#allocation10 + $0x2ac] ss:$16 sps:$4 sm:$0xff]  }
 0x199   :  { %4736 = vmatpush1.bf16.msra.mxu0 %v8081_v43  ;;  %v5291_v43 = vpack.c.bf16 %v4866_v37, %v4862_v36  ;;  %v4938_v36 = vld [vmem:[#allocation11 + $0x3e0] sm:$0xff]  ;;  %v4927_v37 = vld [vmem:[#allocation11 + $0x388] sm:$0xff] }
 0x19a   :  { %4737 = vmatprep.subr.bf16.mxu0 %v8089_v44  ;;  %v5288_v44 = vpack.c.bf16 %v4859_v40, %v4855_v39  ;;  %v4931_v39 = vld [vmem:[#allocation11 + $0x3a8] sm:$0xff] }
 0x19b   :  { %v8168_v40 = vld [vmem:[#allocation10 + $0x3e8] ss:$16 sps:$4 sm:$0xff]  }
 0x19d   :  { %4738 = vmatpush1.bf16.msra.mxu0 %v8087_v45  ;;  %v4854_v45 = vld [vmem:[#allocation11 + $0x140] sm:$0xff] }
 0x19e   :  { %4739 = vmatprep.subr.bf16.mxu0 %v8095_v46  ;;  %v4858_v46 = vld [vmem:[#allocation11 + $0x160] sm:$0xff] }
 0x1a1   :  { %4740 = vmatpush1.bf16.msra.mxu0 %v8093_v47  ;;  %v4847_v47 = vld [vmem:[#allocation11 + $0x108] sm:$0xff] }
 0x1a2   :  { %4741 = vmatprep.subr.bf16.mxu0 %v8101_v48  ;;  %v4851_v48 = vld [vmem:[#allocation11 + $0x128] sm:$0xff] }
 0x1a5   :  { %4742 = vmatpush2.bf16.msra.mxu0 %v8099_v49  ;;  %v8155_v49 = vld [vmem:[#allocation10 + $0x28c] ss:$16 sps:$4 sm:$0xff]  }
 0x1a6   :  { %4743 = vmatprep.subr.bf16.mxu0 %v8107_v50  ;;  %v5287_v50 = vpack.c.bf16 %v4858_v46, %v4854_v45  ;;  %v4930_v45 = vld [vmem:[#allocation11 + $0x3a0] sm:$0xff]  ;;  %v4919_v46 = vld [vmem:[#allocation11 + $0x348] sm:$0xff] }
 0x1a9   :  { %4744 = vmatpush2.bf16.msra.mxu0 %v8105_v51  ;;  %v5284_v51 = vpack.c.bf16 %v4851_v48, %v4847_v47  ;;  %v4923_v47 = vld [vmem:[#allocation11 + $0x368] sm:$0xff] }
 0x1aa   :  { %4745 = vmatprep.subr.bf16.mxu0 %v8113_v52  ;;  %v4846_v52 = vld [vmem:[#allocation11 + $0x100] sm:$0xff]  ;;  %v8171_v48 = vld [vmem:[#allocation10 + $0x3c8] ss:$16 sps:$4 sm:$0xff]  }
 0x1ad   :  { %4746 = vmatpush2.bf16.msra.mxu0 %v8111_v53  ;;  %v4850_v53 = vld [vmem:[#allocation11 + $0x120] sm:$0xff] }
 0x1ae   :  { %4747 = vmatprep.subr.bf16.mxu0 %v8119_v54  ;;  %v4839_v54 = vld [vmem:[#allocation11 + $0xc8] sm:$0xff] }
 0x1b1   :  { %4748 = vmatpush2.bf16.msra.mxu0 %v8117_v55  ;;  %v4843_v55 = vld [vmem:[#allocation11 + $0xe8] sm:$0xff] }
 0x1b2   :  { %4749 = vmatprep.subr.bf16.mxu0 %v8125_v56  ;;  %v8153_v56 = vld [vmem:[#allocation10 + $0x288] ss:$16 sps:$4 sm:$0xff]  }
 0x1b5   :  { %4750 = vmatpush2.bf16.msra.mxu0 %v8123_v57  ;;  %v8158_v57 = vld [vmem:[#allocation10 + $0x26c] ss:$16 sps:$4 sm:$0xff]  }
 0x1b6   :  { %4751 = vmatprep.subr.bf16.mxu0 %v8131_v59  ;;  %v5283_v59 = vpack.c.bf16 %v4850_v53, %v4846_v52  ;;  %v4922_v52 = vld [vmem:[#allocation11 + $0x360] sm:$0xff]  ;;  %v4911_v53 = vld [vmem:[#allocation11 + $0x308] sm:$0xff] }
 0x1b8   :  { %v3926_v1 = vpop.f32.mrf.mxu0 }
 0x1b9   :  { %v3967_v2 = vpop.f32.mrf.mxu1  ;;  %v3927_v3 = vadd.f32 %v3926_v1, %v3161_v62  ;;  %4752 = vmatpush2.bf16.msra.mxu0 %v8129_v61  ;;  %v5280_v61 = vpack.c.bf16 %v4843_v55, %v4839_v54  ;;  %v4838_v62 = vld [vmem:[#allocation11 + $0xc0] sm:$0xff]  ;;  %v4835_v1 = vld [vmem:[#allocation11 + $0xa8] sm:$0xff] }
 0x1ba   :  { %v3928_v5 = vpop.f32.mrf.mxu0  ;;  %4753 = vmatprep.subr.bf16.mxu0 %v8137_v63  ;;  %v4842_v63 = vld [vmem:[#allocation11 + $0xe0] sm:$0xff]  ;;  %v4915_v54 = vld [vmem:[#allocation11 + $0x328] sm:$0xff] }
 0x1bb   :  { %v3969_v6 = vpop.f32.mrf.mxu1  ;;  %v3968_v10 = vadd.f32 %v3967_v2, %v3927_v3  ;;  %v3929_v11 = vadd.f32 %v3928_v5, %v3165_v0  ;;  %v4831_v0 = vld [vmem:[#allocation11 + $0x88] sm:$0xff] }
 0x1bc   :  { %v3930_v18 = vpop.f32.mrf.mxu0  ;;  %v8156_v2 = vld [vmem:[#allocation10 + $0x268] ss:$16 sps:$4 sm:$0xff]   ;;  %v8161_v3 = vld [vmem:[#allocation10 + $0x24c] ss:$16 sps:$4 sm:$0xff]   ;;  %v5276_v5 = vpack.c.bf16 %v4835_v1, %v4831_v0 }
 0x1bd   :  { %v3971_v19 = vpop.f32.mrf.mxu1  ;;  %v3970_v20 = vadd.f32 %v3969_v6, %v3929_v11  ;;  %4754 = vmatpush2.bf16.msra.mxu0 %v8135_v4  ;;  %v3976_v21 = vmax.f32 %v3968_v10, 0.0  ;;  %v5279_v4 = vpack.c.bf16 %v4842_v63, %v4838_v62  ;;  %v4830_v6 = vld [vmem:[#allocation11 + $0x80] sm:$0xff]  ;;  %v4823_v10 = vld [vmem:[#allocation11 + $0x48] sm:$0xff] }
 0x1be   :  { %v3931_v15 = vpop.f32.mrf.mxu0  ;;  %4755 = vmatprep.subr.bf16.mxu0 %v8143_v7  ;;  %v4834_v7 = vld [vmem:[#allocation11 + $0xa0] sm:$0xff]  ;;  %v4827_v11 = vld [vmem:[#allocation11 + $0x68] sm:$0xff] }
 0x1bf   :  { %v3972_v9 = vpop.f32.mrf.mxu1  ;;  %v3977_v23 = vmax.f32 %v3970_v20, 0.0  ;;  %v8741_v31 = vpack.c.bf16 %v3976_v21, %v3976_v21  ;;  %v5275_v18 = vpack.c.bf16 %v4834_v7, %v4830_v6  ;;  %v5272_v19 = vpack.c.bf16 %v4827_v11, %v4823_v10  ;;  %v4822_v20 = vld [vmem:[#allocation11 + $0x40] sm:$0xff]  ;;  %v4815_v21 = vld [vmem:[#allocation11 + $0x8] sm:$0xff] }
 0x1c0   :  { %v4819_v15 = vld [vmem:[#allocation11 + $0x28] sm:$0xff]  ;;  %v4914_v62 = vld [vmem:[#allocation11 + $0x320] sm:$0xff] }
 0x1c1   :  { %v3981_v29 = vpack.c.bf16 %v3977_v23, %v3977_v23  ;;  %4756 = vmatpush2.bf16.msra.mxu0 %v8141_v8  ;;  %v4826_v8 = vld [vmem:[#allocation11 + $0x60] sm:$0xff]  ;;  %v8162_v9 = vld [vmem:[#allocation10 + $0x228] ss:$16 sps:$4 sm:$0xff]   ;;  %v5268_v24 = vpack.c.bf16 %v4819_v15, %v4815_v21 }
 0x1c2   :  { %5384 = vmatprep.subr.bf16.mxu0 %v5296_v22  ;;  %v8167_v22 = vld [vmem:[#allocation10 + $0x20c] ss:$16 sps:$4 sm:$0xff]   ;;  %v5271_v23 = vpack.c.bf16 %v4826_v8, %v4822_v20  ;;  %v8174_v55 = vld [vmem:[#allocation10 + $0x3a8] ss:$16 sps:$4 sm:$0xff]   ;;  %v4906_v6 = vld [vmem:[#allocation11 + $0x2e0] sm:$0xff] }
 0x1c3   :  { %4716 = vmatprep.mubr.bf16.mxu1 %v3981_v29  ;;  %v4903_v63 = vld [vmem:[#allocation11 + $0x2c8] sm:$0xff]  ;;  %v4898_v20 = vld [vmem:[#allocation11 + $0x2a0] sm:$0xff] }
 0x1c4   :  { %4758 = vmatmul.mubr.bf16.vlgmr.msra.gmra.mxu0 %v8728_v33  ;;  %4717 = vmatmul.mubr.bf16.vlgmr.msra.gmra.mxu1 %v8741_v31  ;;  %v8150_v33 = vld [vmem:[#allocation10 + $0x2a8] ss:$16 sps:$4 sm:$0xff]  }
 0x1c5   :  { %4767 = vmatpush1.bf16.msra.mxu1 %v8144_v30  ;;  %4798 = vmatprep.mubr.bf16.mxu1 %v3981_v29  ;;  %v8165_v29 = vld [vmem:[#allocation10 + $0x208] ss:$16 sps:$4 sm:$0xff]   ;;  %v8170_v30 = vld [vmem:[#allocation10 + $0x3ec] ss:$16 sps:$4 sm:$0xff]  }
 0x1c6   :  { %4768 = vmatprep.subr.bf16.mxu1 %v8149_v32  ;;  %5385 = vmatpush1.bf16.msra.mxu0 %v5295_v34  ;;  %v5267_v32 = vpack.c.bf16 %v4818_v26, %v4814_v25  ;;  %v5328_v34 = vpack.c.bf16 %v4939_v28, %v4935_v27  ;;  %v4907_v0 = vld [vmem:[#allocation11 + $0x2e8] sm:$0xff]  ;;  %v4890_v25 = vld [vmem:[#allocation11 + $0x260] sm:$0xff] }
 0x1c7   :  { %5386 = vmatprep.subr.bf16.mxu0 %v5292_v35  ;;  %5416 = vmatprep.mubr.bf16.mxu0 %v8743_v38  ;;  %v4934_v35 = vld [vmem:[#allocation11 + $0x3c0] sm:$0xff]  ;;  %v8177_v1 = vld [vmem:[#allocation10 + $0x388] ss:$16 sps:$4 sm:$0xff]  }
 0x1c8   :  { %v4895_v7 = vld [vmem:[#allocation11 + $0x288] sm:$0xff] }
 0x1c9   :  { %4769 = vmatpush1.bf16.msra.mxu1 %v8147_v41  ;;  %v8173_v41 = vld [vmem:[#allocation10 + $0x3cc] ss:$16 sps:$4 sm:$0xff]   ;;  %v8180_v11 = vld [vmem:[#allocation10 + $0x368] ss:$16 sps:$4 sm:$0xff]  }
 0x1ca   :  { %4770 = vmatprep.subr.bf16.mxu1 %v8152_v42  ;;  %5387 = vmatpush1.bf16.msra.mxu0 %v5291_v43  ;;  %v5327_v42 = vpack.c.bf16 %v4938_v36, %v4934_v35  ;;  %v5324_v43 = vpack.c.bf16 %v4931_v39, %v4927_v37  ;;  %v4899_v10 = vld [vmem:[#allocation11 + $0x2a8] sm:$0xff]  ;;  %v4878_v36 = vld [vmem:[#allocation11 + $0x200] sm:$0xff]  ;;  %v5001_v39 = vld [vmem:[#allocation11 + $0x5d8] sm:$0xff] }
 0x1cb   :  { %5388 = vmatprep.subr.bf16.mxu0 %v5288_v44  ;;  %v4926_v44 = vld [vmem:[#allocation11 + $0x380] sm:$0xff]  ;;  %v4887_v8 = vld [vmem:[#allocation11 + $0x248] sm:$0xff] }
 0x1cc   :  { %v4891_v21 = vld [vmem:[#allocation11 + $0x268] sm:$0xff]  ;;  %v4882_v37 = vld [vmem:[#allocation11 + $0x220] sm:$0xff] }
 0x1cd   :  { %4771 = vmatpush1.bf16.msra.mxu1 %v8150_v33  ;;  %v8176_v33 = vld [vmem:[#allocation10 + $0x3ac] ss:$16 sps:$4 sm:$0xff]   ;;  %v8183_v15 = vld [vmem:[#allocation10 + $0x348] ss:$16 sps:$4 sm:$0xff]  }
 0x1ce   :  { %4772 = vmatprep.subr.bf16.mxu1 %v8155_v49  ;;  %5389 = vmatpush1.bf16.msra.mxu0 %v5287_v50  ;;  %v5323_v49 = vpack.c.bf16 %v4930_v45, %v4926_v44  ;;  %v5320_v50 = vpack.c.bf16 %v4923_v47, %v4919_v46  ;;  %v4879_v26 = vld [vmem:[#allocation11 + $0x208] sm:$0xff]  ;;  %v5002_v44 = vld [vmem:[#allocation11 + $0x5e0] sm:$0xff]  ;;  %v5299_v45 = vpack.c.bf16 %v4882_v37, %v4878_v36 }
 0x1cf   :  { %5390 = vmatprep.subr.bf16.mxu0 %v5284_v51  ;;  %v4918_v51 = vld [vmem:[#allocation11 + $0x340] sm:$0xff]  ;;  %v4883_v27 = vld [vmem:[#allocation11 + $0x228] sm:$0xff] }
 0x1d0   :  { %v8186_v28 = vld [vmem:[#allocation10 + $0x328] ss:$16 sps:$4 sm:$0xff]   ;;  %v5300_v35 = vpack.c.bf16 %v4883_v27, %v4879_v26  ;;  %v4976_v27 = vld [vmem:[#allocation11 + $0x510] sm:$0xff]  ;;  %v4970_v36 = vld [vmem:[#allocation11 + $0x4e0] sm:$0xff] }
 0x1d1   :  { %4773 = vmatpush1.bf16.msra.mxu1 %v8153_v56  ;;  %v8179_v56 = vld [vmem:[#allocation10 + $0x38c] ss:$16 sps:$4 sm:$0xff]  }
 0x1d2   :  { %4774 = vmatprep.subr.bf16.mxu1 %v8158_v57  ;;  %5391 = vmatpush1.bf16.msra.mxu0 %v5283_v59  ;;  %v5319_v57 = vpack.c.bf16 %v4922_v52, %v4918_v51  ;;  %v5316_v59 = vpack.c.bf16 %v4915_v54, %v4911_v53  ;;  %v4811_v46 = vld [vmem:[#allocation5] sm:$0xff]  ;;  %v4993_v53 = vld [vmem:[#allocation11 + $0x598] sm:$0xff] }
 0x1d3   :  { %5392 = vmatprep.subr.bf16.mxu0 %v5280_v61  ;;  %v4910_v61 = vld [vmem:[#allocation11 + $0x300] sm:$0xff]  ;;  %v4991_v47 = vld [vmem:[#allocation11 + $0x588] sm:$0xff]  ;;  %v8748_v52 = vpack.c.bf16 %v4811_v46, %v4811_v46  ;;  %v4997_v54 = vld [vmem:[#allocation11 + $0x5b8] sm:$0xff] }
 0x1d4   :  { %v4959_v37 = vld [vmem:[#allocation11 + $0x488] sm:$0xff]  ;;  %v4965_v46 = vld [vmem:[#allocation11 + $0x4b8] sm:$0xff] }
 0x1d5   :  { %4775 = vmatpush1.bf16.msra.mxu1 %v8156_v2  ;;  %v8182_v2 = vld [vmem:[#allocation10 + $0x36c] ss:$16 sps:$4 sm:$0xff]  }
 0x1d6   :  { %4776 = vmatprep.subr.bf16.mxu1 %v8161_v3  ;;  %5393 = vmatpush1.bf16.msra.mxu0 %v5279_v4  ;;  %v5315_v3 = vpack.c.bf16 %v4914_v62, %v4910_v61  ;;  %v5312_v4 = vpack.c.bf16 %v4907_v0, %v4903_v63  ;;  %v4987_v61 = vld [vmem:[#allocation11 + $0x568] sm:$0xff]  ;;  %v5358_v63 = vpack.c.bf16 %v4997_v54, %v4993_v53  ;;  %v4992_v0 = vld [vmem:[#allocation11 + $0x590] sm:$0xff] }
 0x1d7   :  { %5394 = vmatprep.subr.bf16.mxu0 %v5276_v5  ;;  %v4902_v5 = vld [vmem:[#allocation11 + $0x2c0] sm:$0xff]  ;;  %v4960_v54 = vld [vmem:[#allocation11 + $0x490] sm:$0xff] }
 0x1d9   :  { %4777 = vmatpush1.bf16.msra.mxu1 %v8159_v13  ;;  %v8185_v13 = vld [vmem:[#allocation10 + $0x34c] ss:$16 sps:$4 sm:$0xff]  }
 0x1da   :  { %4778 = vmatprep.subr.bf16.mxu1 %v8164_v17  ;;  %5395 = vmatpush1.bf16.msra.mxu0 %v5275_v18  ;;  %v5311_v17 = vpack.c.bf16 %v4906_v6, %v4902_v5  ;;  %v5308_v18 = vpack.c.bf16 %v4899_v10, %v4895_v7  ;;  %v4982_v6 = vld [vmem:[#allocation11 + $0x540] sm:$0xff]  ;;  %v11847_v10 = vmov 0  }
 0x1db   :  { %5396 = vmatprep.subr.bf16.mxu0 %v5272_v19  ;;  %v4894_v19 = vld [vmem:[#allocation11 + $0x280] sm:$0xff] }
 0x1dc   :  { %v4986_v7 = vld [vmem:[#allocation11 + $0x560] sm:$0xff] }
 0x1dd   :  { %4779 = vmatpush1.bf16.msra.mxu1 %v8162_v9  ;;  %v8188_v9 = vld [vmem:[#allocation10 + $0x32c] ss:$16 sps:$4 sm:$0xff]  }
 0x1de   :  { %4780 = vmatprep.subr.bf16.mxu1 %v8167_v22  ;;  %5397 = vmatpush1.bf16.msra.mxu0 %v5271_v23  ;;  %v5307_v22 = vpack.c.bf16 %v4898_v20, %v4894_v19  ;;  %v5304_v23 = vpack.c.bf16 %v4891_v21, %v4887_v8  ;;  %v4988_v19 = vld [vmem:[#allocation11 + $0x570] sm:$0xff]  ;;  %v5351_v20 = vpack.c.bf16 %v4986_v7, %v4982_v6  ;;  %v4977_v8 = vld [vmem:[#allocation11 + $0x518] sm:$0xff] }
 0x1df   :  { %5398 = vmatprep.subr.bf16.mxu0 %v5268_v24  ;;  %v4886_v24 = vld [vmem:[#allocation11 + $0x240] sm:$0xff]  ;;  %v4981_v21 = vld [vmem:[#allocation11 + $0x538] sm:$0xff] }
 0x1e0   :  { %v5350_v26 = vpack.c.bf16 %v4981_v21, %v4977_v8  ;;  %v4945_v7 = vld [vmem:[#allocation11 + $0x418] sm:$0xff]  ;;  %v4944_v21 = vld [vmem:[#allocation11 + $0x410] sm:$0xff] }
 0x1e1   :  { %4781 = vmatpush1.bf16.msra.mxu1 %v8165_v29  ;;  %v8191_v29 = vld [vmem:[#allocation10 + $0x30c] ss:$16 sps:$4 sm:$0xff]  }
 0x1e2   :  { %4782 = vmatprep.subr.bf16.mxu1 %v8170_v30  ;;  %5399 = vmatpush1.bf16.msra.mxu0 %v5267_v32  ;;  %v4999_v30 = vld [vmem:[#allocation11 + $0x5c8] sm:$0xff]  ;;  %v5303_v32 = vpack.c.bf16 %v4890_v25, %v4886_v24 }
 0x1e3   :  { %5400 = vmatprep.subr.bf16.mxu0 %v5328_v34  ;;  %v5003_v34 = vld [vmem:[#allocation11 + $0x5e8] sm:$0xff] }
 0x1e4   :  { %v4971_v24 = vld [vmem:[#allocation11 + $0x4e8] sm:$0xff] }
 0x1e5   :  { %4783 = vmatpush2.bf16.msra.mxu1 %v8168_v40  ;;  %v5005_v40 = vld [vmem:[#allocation11 + $0x5f8] sm:$0xff] }
 0x1e6   :  { %4784 = vmatprep.subr.bf16.mxu1 %v8173_v41  ;;  %5401 = vmatpush2.bf16.msra.mxu0 %v5327_v42  ;;  %v8189_v41 = vld [vmem:[#allocation10 + $0x308] ss:$16 sps:$4 sm:$0xff]   ;;  %v5360_v42 = vpack.c.bf16 %v5003_v34, %v4999_v30 }
 0x1e7   :  { %5402 = vmatprep.subr.bf16.mxu0 %v5324_v43  ;;  %v4998_v43 = vld [vmem:[#allocation11 + $0x5c0] sm:$0xff]  ;;  %v4969_v30 = vld [vmem:[#allocation11 + $0x4d8] sm:$0xff] }
 0x1e8   :  { %v5359_v51 = vpack.c.bf16 %v5002_v44, %v4998_v43  ;;  %v4972_v43 = vld [vmem:[#allocation11 + $0x4f0] sm:$0xff] }
 0x1e9   :  { %4785 = vmatpush2.bf16.msra.mxu1 %v8171_v48  ;;  %v4995_v48 = vld [vmem:[#allocation11 + $0x5a8] sm:$0xff] }
 0x1ea   :  { %4786 = vmatprep.subr.bf16.mxu1 %v8176_v33  ;;  %5403 = vmatpush2.bf16.msra.mxu0 %v5323_v49  ;;  %v5362_v33 = vpack.c.bf16 %v5005_v40, %v5001_v39  ;;  %v5000_v49 = vld [vmem:[#allocation11 + $0x5d0] sm:$0xff]  ;;  %v4963_v39 = vld [vmem:[#allocation11 + $0x4a8] sm:$0xff] }
 0x1eb   :  { %5404 = vmatprep.subr.bf16.mxu0 %v5320_v50  ;;  %v5004_v50 = vld [vmem:[#allocation11 + $0x5f0] sm:$0xff] }
 0x1ec   :  { %v5361_v62 = vpack.c.bf16 %v5004_v50, %v5000_v49  ;;  %v4951_v49 = vld [vmem:[#allocation11 + $0x448] sm:$0xff] }
 0x1ed   :  { %4787 = vmatpush2.bf16.msra.mxu1 %v8174_v55  ;;  %v5356_v55 = vpack.c.bf16 %v4995_v48, %v4991_v47  ;;  %v5340_v47 = vpack.c.bf16 %v4963_v39, %v4959_v37  ;;  %v4958_v48 = vld [vmem:[#allocation11 + $0x480] sm:$0xff]  ;;  %v4955_v50 = vld [vmem:[#allocation11 + $0x468] sm:$0xff] }
 0x1ee   :  { %4788 = vmatprep.subr.bf16.mxu1 %v8179_v56  ;;  %5405 = vmatpush2.bf16.msra.mxu0 %v5319_v57  ;;  %v4990_v56 = vld [vmem:[#allocation11 + $0x580] sm:$0xff]  ;;  %v5056_v39 = vld [vmem:[#allocation13 + $0x188] sm:$0xff] }
 0x1ef   :  { %5406 = vmatprep.subr.bf16.mxu0 %v5316_v59  ;;  %v4994_v57 = vld [vmem:[#allocation11 + $0x5a0] sm:$0xff]  ;;  %v4983_v59 = vld [vmem:[#allocation11 + $0x548] sm:$0xff] }
 0x1f0   :  { %v5352_v5 = vpack.c.bf16 %v4987_v61, %v4983_v59  ;;  %v4957_v59 = vld [vmem:[#allocation11 + $0x478] sm:$0xff]  ;;  %v5336_v61 = vpack.c.bf16 %v4955_v50, %v4951_v49  ;;  %v5048_v50 = vld [vmem:[#allocation13 + $0x148] sm:$0xff] }
 0x1f1   :  { %4789 = vmatpush2.bf16.msra.mxu1 %v8177_v1  ;;  %v4996_v1 = vld [vmem:[#allocation11 + $0x5b0] sm:$0xff] }
 0x1f2   :  { %4790 = vmatprep.subr.bf16.mxu1 %v8182_v2  ;;  %5407 = vmatpush2.bf16.msra.mxu0 %v5315_v3  ;;  %v5355_v2 = vpack.c.bf16 %v4994_v57, %v4990_v56  ;;  %v4985_v3 = vld [vmem:[#allocation11 + $0x558] sm:$0xff] }
 0x1f3   :  { %5408 = vmatprep.subr.bf16.mxu0 %v5312_v4  ;;  %v4989_v4 = vld [vmem:[#allocation11 + $0x578] sm:$0xff] }
 0x1f4   :  { %v4953_v57 = vld [vmem:[#allocation11 + $0x458] sm:$0xff] }
 0x1f5   :  { %4791 = vmatpush2.bf16.msra.mxu1 %v8180_v11  ;;  %v4975_v11 = vld [vmem:[#allocation11 + $0x508] sm:$0xff] }
 0x1f6   :  { %4792 = vmatprep.subr.bf16.mxu1 %v8185_v13  ;;  %5409 = vmatpush2.bf16.msra.mxu0 %v5311_v17  ;;  %v4979_v13 = vld [vmem:[#allocation11 + $0x528] sm:$0xff]  ;;  %v5354_v17 = vpack.c.bf16 %v4989_v4, %v4985_v3  ;;  %v5338_v3 = vpack.c.bf16 %v4957_v59, %v4953_v57  ;;  %v4952_v4 = vld [vmem:[#allocation11 + $0x450] sm:$0xff]  ;;  %v4853_v57 = vld [vmem:[#allocation11 + $0x138] sm:$0xff] }
 0x1f7   :  { %5410 = vmatprep.subr.bf16.mxu0 %v5308_v18  ;;  %v4984_v18 = vld [vmem:[#allocation11 + $0x550] sm:$0xff] }
 0x1f8   :  { %v5353_v25 = vpack.c.bf16 %v4988_v19, %v4984_v18  ;;  %v4873_v18 = vld [vmem:[#allocation11 + $0x1d8] sm:$0xff] }
 0x1f9   :  { %4793 = vmatpush2.bf16.msra.mxu1 %v8183_v15  ;;  %v5348_v15 = vpack.c.bf16 %v4979_v13, %v4975_v11  ;;  %v4949_v11 = vld [vmem:[#allocation11 + $0x438] sm:$0xff] }
 0x1fa   :  { %4794 = vmatprep.subr.bf16.mxu1 %v8188_v9  ;;  %5411 = vmatpush2.bf16.msra.mxu0 %v5307_v22  ;;  %v4974_v9 = vld [vmem:[#allocation11 + $0x500] sm:$0xff]  ;;  %v4877_v19 = vld [vmem:[#allocation11 + $0x1f8] sm:$0xff]  ;;  %v5334_v8 = vpack.c.bf16 %v4949_v11, %v4945_v7 }
 0x1fb   :  { %5412 = vmatprep.subr.bf16.mxu0 %v5304_v23  ;;  %v4978_v22 = vld [vmem:[#allocation11 + $0x520] sm:$0xff]  ;;  %v4967_v23 = vld [vmem:[#allocation11 + $0x4c8] sm:$0xff] }
 0x1fc   :  { %v5344_v34 = vpack.c.bf16 %v4971_v24, %v4967_v23  ;;  %v5064_v23 = vld [vmem:[#allocation13 + $0x1c8] sm:$0xff] }
 0x1fd   :  { %4795 = vmatpush2.bf16.msra.mxu1 %v8186_v28  ;;  %v4980_v28 = vld [vmem:[#allocation11 + $0x530] sm:$0xff]  ;;  %v5068_v24 = vld [vmem:[#allocation13 + $0x1e8] sm:$0xff] }
 0x1fe   :  { %4796 = vmatprep.subr.bf16.mxu1 %v8191_v29  ;;  %5413 = vmatpush2.bf16.msra.mxu0 %v5303_v32  ;;  %v5347_v29 = vpack.c.bf16 %v4978_v22, %v4974_v9  ;;  %v4973_v32 = vld [vmem:[#allocation11 + $0x4f8] sm:$0xff]  ;;  %v5349_v40 = vpack.c.bf16 %v4980_v28, %v4976_v27  ;;  %v4876_v27 = vld [vmem:[#allocation11 + $0x1f0] sm:$0xff] }
 0x1ff   :  { %5414 = vmatprep.subr.bf16.mxu0 %v5300_v35  ;;  %v4966_v35 = vld [vmem:[#allocation11 + $0x4c0] sm:$0xff]  ;;  %v4813_v22 = vld [vmem:[#allocation5 + $0x10] sm:$0xff] }
 0x200   :  { %v5343_v44 = vpack.c.bf16 %v4970_v36, %v4966_v35  ;;  %v4865_v28 = vld [vmem:[#allocation11 + $0x198] sm:$0xff]  ;;  %v5063_v35 = vld [vmem:[#allocation13 + $0x1c0] sm:$0xff] }
 0x201   :  { %4797 = vmatpush2.bf16.msra.mxu1 %v8189_v41  ;;  %v5346_v41 = vpack.c.bf16 %v4973_v32, %v4969_v30  ;;  %v5266_v32 = vpack.c.bf16 %v4813_v22, %v4813_v22  ;;  %v5067_v36 = vld [vmem:[#allocation13 + $0x1e0] sm:$0xff] }
 0x202   :  { %5425 = vmatprep.subr.bf16.mxu1 %v5360_v42  ;;  %5415 = vmatpush2.bf16.msra.mxu0 %v5299_v45  ;;  %v4968_v42 = vld [vmem:[#allocation11 + $0x4d0] sm:$0xff]  ;;  %v4961_v45 = vld [vmem:[#allocation11 + $0x498] sm:$0xff] }
 0x203   :  { %5507 = vmatprep.subr.bf16.mxu0 %v5362_v33  ;;  %v4962_v33 = vld [vmem:[#allocation11 + $0x4a0] sm:$0xff]  ;;  %v5342_v53 = vpack.c.bf16 %v4965_v46, %v4961_v45  ;;  %v4861_v45 = vld [vmem:[#allocation11 + $0x178] sm:$0xff]  ;;  %v5584_v46 = vpack.c.bf16 %v5067_v36, %v5063_v35 }
 0x204   :  { %4799 = vmatmul.mubr.bf16.vlgmr.msra.gmra.mxu1 %v8741_v31  ;;  %v5357_v31 = vpack.c.bf16 %v4996_v1, %v4992_v0  ;;  %v5339_v56 = vpack.c.bf16 %v4962_v33, %v4958_v48  ;;  %v4943_v0 = vld [vmem:[#allocation11 + $0x408] sm:$0xff]  ;;  %v5055_v48 = vld [vmem:[#allocation13 + $0x180] sm:$0xff]  ;;  %v4829_v35 = vld [vmem:[#allocation11 + $0x78] sm:$0xff] }
 0x205   :  { %5426 = vmatpush1.bf16.msra.mxu1 %v5359_v51  ;;  %5417 = vmatmul.mubr.bf16.vlgmr.msra.gmra.mxu0 %v8748_v52  ;;  %v5345_v51 = vpack.c.bf16 %v4972_v43, %v4968_v42  ;;  %v4947_v1 = vld [vmem:[#allocation11 + $0x428] sm:$0xff]  ;;  %v4864_v42 = vld [vmem:[#allocation11 + $0x190] sm:$0xff]  ;;  %v5059_v33 = vld [vmem:[#allocation13 + $0x1a0] sm:$0xff] }
 0x206   :  { %5427 = vmatprep.subr.bf16.mxu1 %v5356_v55  ;;  %5457 = vmatprep.mubr.bf16.mxu1 %v11847_v10  ;;  %v4964_v55 = vld [vmem:[#allocation11 + $0x4b0] sm:$0xff]  ;;  %v5332_v13 = vpack.c.bf16 %v4947_v1, %v4943_v0  ;;  %v5580_v59 = vpack.c.bf16 %v5059_v33, %v5055_v48  ;;  %v5040_v1 = vld [vmem:[#allocation13 + $0x108] sm:$0xff] }
 0x207   :  { %5508 = vmatpush1.bf16.msra.mxu0 %v5361_v62  ;;  %5539 = vmatprep.mubr.bf16.mxu0 %v11847_v10  ;;  %v4950_v62 = vld [vmem:[#allocation11 + $0x440] sm:$0xff]  ;;  %v4868_v43 = vld [vmem:[#allocation11 + $0x1b0] sm:$0xff] }
 0x208   :  { %5509 = vmatprep.subr.bf16.mxu0 %v5358_v63  ;;  %v4954_v63 = vld [vmem:[#allocation11 + $0x460] sm:$0xff]  ;;  %v5293_v49 = vpack.c.bf16 %v4868_v43, %v4864_v42  ;;  %v4824_v43 = vld [vmem:[#allocation11 + $0x50] sm:$0xff] }
 0x209   :  { %5428 = vmatpush1.bf16.msra.mxu1 %v5355_v2  ;;  %v5341_v2 = vpack.c.bf16 %v4964_v55, %v4960_v54  ;;  %v5335_v6 = vpack.c.bf16 %v4954_v63, %v4950_v62  ;;  %v4856_v54 = vld [vmem:[#allocation11 + $0x150] sm:$0xff]  ;;  %v5047_v62 = vld [vmem:[#allocation13 + $0x140] sm:$0xff] }
 0x20a   :  { %5429 = vmatprep.subr.bf16.mxu1 %v5352_v5  ;;  %v4956_v5 = vld [vmem:[#allocation11 + $0x470] sm:$0xff]  ;;  %v5051_v63 = vld [vmem:[#allocation13 + $0x160] sm:$0xff] }
 0x20b   :  { %5510 = vmatpush1.bf16.msra.mxu0 %v5357_v31  ;;  %v4942_v31 = vld [vmem:[#allocation11 + $0x400] sm:$0xff]  ;;  %v4860_v55 = vld [vmem:[#allocation11 + $0x170] sm:$0xff]  ;;  %v5576_v7 = vpack.c.bf16 %v5051_v63, %v5047_v62 }
 0x20c   :  { %5511 = vmatprep.subr.bf16.mxu0 %v5354_v17  ;;  %v4946_v17 = vld [vmem:[#allocation11 + $0x420] sm:$0xff]  ;;  %v5289_v0 = vpack.c.bf16 %v4860_v55, %v4856_v54  ;;  %v4928_v63 = vld [vmem:[#allocation11 + $0x390] sm:$0xff] }
 0x20d   :  { %5430 = vmatpush1.bf16.msra.mxu1 %v5351_v20  ;;  %v5337_v20 = vpack.c.bf16 %v4956_v5, %v4952_v4  ;;  %v5331_v9 = vpack.c.bf16 %v4946_v17, %v4942_v31  ;;  %v4852_v4 = vld [vmem:[#allocation11 + $0x130] sm:$0xff]  ;;  %v4841_v5 = vld [vmem:[#allocation11 + $0xd8] sm:$0xff]  ;;  %v5043_v31 = vld [vmem:[#allocation13 + $0x120] sm:$0xff] }
 0x20e   :  { %5431 = vmatprep.subr.bf16.mxu1 %v5348_v15  ;;  %v4948_v15 = vld [vmem:[#allocation11 + $0x430] sm:$0xff] }
 0x20f   :  { %5512 = vmatpush1.bf16.msra.mxu0 %v5353_v25  ;;  %v5298_v25 = vpack.c.bf16 %v4877_v19, %v4873_v18  ;;  %v5333_v30 = vpack.c.bf16 %v4948_v15, %v4944_v21  ;;  %v5032_v18 = vld [vmem:[#allocation13 + $0xc8] sm:$0xff]  ;;  %v4844_v21 = vld [vmem:[#allocation11 + $0xf0] sm:$0xff]  ;;  %v4833_v15 = vld [vmem:[#allocation11 + $0x98] sm:$0xff] }
 0x210   :  { %5513 = vmatprep.subr.bf16.mxu0 %v5350_v26  ;;  %v4872_v26 = vld [vmem:[#allocation11 + $0x1d0] sm:$0xff]  ;;  %v5036_v19 = vld [vmem:[#allocation13 + $0xe8] sm:$0xff] }
 0x211   :  { %5432 = vmatpush1.bf16.msra.mxu1 %v5347_v29  ;;  %v4869_v29 = vld [vmem:[#allocation11 + $0x1b8] sm:$0xff]  ;;  %v5297_v37 = vpack.c.bf16 %v4876_v27, %v4872_v26  ;;  %v5024_v27 = vld [vmem:[#allocation13 + $0x88] sm:$0xff] }
 0x212   :  { %5433 = vmatprep.subr.bf16.mxu1 %v5344_v34  ;;  %v5585_v34 = vpack.c.bf16 %v5068_v24, %v5064_v23  ;;  %v5569_v23 = vpack.c.bf16 %v5036_v19, %v5032_v18  ;;  %v5031_v24 = vld [vmem:[#allocation13 + $0xc0] sm:$0xff]  ;;  %v4924_v18 = vld [vmem:[#allocation11 + $0x370] sm:$0xff] }
 0x213   :  { %5514 = vmatpush1.bf16.msra.mxu0 %v5349_v40  ;;  %v5060_v40 = vld [vmem:[#allocation13 + $0x1a8] sm:$0xff] }
 0x214   :  { %5515 = vmatprep.subr.bf16.mxu0 %v5346_v41  ;;  %v5294_v41 = vpack.c.bf16 %v4869_v29, %v4865_v28  ;;  %v5028_v28 = vld [vmem:[#allocation13 + $0xa8] sm:$0xff] }
 0x215   :  { %5434 = vmatpush1.bf16.msra.mxu1 %v5343_v44  ;;  %v4857_v44 = vld [vmem:[#allocation11 + $0x158] sm:$0xff] }
 0x216   :  { %5435 = vmatprep.subr.bf16.mxu1 %v5340_v47  ;;  %v5581_v47 = vpack.c.bf16 %v5060_v40, %v5056_v39  ;;  %v5023_v39 = vld [vmem:[#allocation13 + $0x80] sm:$0xff] }
 0x217   :  { %5516 = vmatpush1.bf16.msra.mxu0 %v5345_v51  ;;  %v5052_v51 = vld [vmem:[#allocation13 + $0x168] sm:$0xff]  ;;  %v5027_v40 = vld [vmem:[#allocation13 + $0xa0] sm:$0xff] }
 0x218   :  { %5517 = vmatprep.subr.bf16.mxu0 %v5342_v53  ;;  %v5290_v53 = vpack.c.bf16 %v4861_v45, %v4857_v44  ;;  %v4828_v44 = vld [vmem:[#allocation11 + $0x70] sm:$0xff]  ;;  %v4817_v45 = vld [vmem:[#allocation11 + $0x18] sm:$0xff] }
 0x219   :  { %5436 = vmatpush1.bf16.msra.mxu1 %v5339_v56  ;;  %v4849_v56 = vld [vmem:[#allocation11 + $0x118] sm:$0xff]  ;;  %v5273_v48 = vpack.c.bf16 %v4828_v44, %v4824_v43  ;;  %v5124_v44 = vld [vmem:[#allocation13 + $0x3a8] sm:$0xff] }
 0x21a   :  { %5437 = vmatprep.subr.bf16.mxu1 %v5336_v61  ;;  %v5577_v61 = vpack.c.bf16 %v5052_v51, %v5048_v50  ;;  %v4820_v50 = vld [vmem:[#allocation11 + $0x30] sm:$0xff]  ;;  %v4937_v51 = vld [vmem:[#allocation11 + $0x3d8] sm:$0xff] }
 0x21b   :  { %5518 = vmatpush1.bf16.msra.mxu0 %v5341_v2  ;;  %v5044_v2 = vld [vmem:[#allocation13 + $0x128] sm:$0xff] }
 0x21c   :  { %5519 = vmatprep.subr.bf16.mxu0 %v5338_v3  ;;  %v4848_v3 = vld [vmem:[#allocation11 + $0x110] sm:$0xff]  ;;  %v5573_v11 = vpack.c.bf16 %v5044_v2, %v5040_v1  ;;  %v4921_v2 = vld [vmem:[#allocation11 + $0x358] sm:$0xff] }
 0x21d   :  { %5438 = vmatpush1.bf16.msra.mxu1 %v5335_v6  ;;  %v4845_v6 = vld [vmem:[#allocation11 + $0xf8] sm:$0xff]  ;;  %v5285_v17 = vpack.c.bf16 %v4852_v4, %v4848_v3  ;;  %v5020_v3 = vld [vmem:[#allocation13 + $0x68] sm:$0xff] }
 0x21e   :  { %5439 = vmatprep.subr.bf16.mxu1 %v5332_v13  ;;  %v5039_v13 = vld [vmem:[#allocation13 + $0x100] sm:$0xff]  ;;  %v4925_v4 = vld [vmem:[#allocation11 + $0x378] sm:$0xff] }
 0x21f   :  { %5520 = vmatpush1.bf16.msra.mxu0 %v5337_v20  ;;  %v5282_v20 = vpack.c.bf16 %v4845_v6, %v4841_v5  ;;  %v5572_v22 = vpack.c.bf16 %v5043_v31, %v5039_v13  ;;  %v5015_v6 = vld [vmem:[#allocation13 + $0x40] sm:$0xff] }
 0x220   :  { %5521 = vmatprep.subr.bf16.mxu0 %v5334_v8  ;;  %v4840_v8 = vld [vmem:[#allocation11 + $0xd0] sm:$0xff] }
 0x221   :  { %5440 = vmatpush1.bf16.msra.mxu1 %v5331_v9  ;;  %v4837_v9 = vld [vmem:[#allocation11 + $0xb8] sm:$0xff]  ;;  %v5281_v26 = vpack.c.bf16 %v4844_v21, %v4840_v8  ;;  %v5008_v21 = vld [vmem:[#allocation13 + $0x8] sm:$0xff] }
 0x222   :  { %5466 = vmatprep.subr.bf16.mxu1 %v5298_v25  ;;  %v5035_v25 = vld [vmem:[#allocation13 + $0xe0] sm:$0xff]  ;;  %v5278_v29 = vpack.c.bf16 %v4837_v9, %v4833_v15  ;;  %v4913_v8 = vld [vmem:[#allocation11 + $0x318] sm:$0xff]  ;;  %v5012_v15 = vld [vmem:[#allocation13 + $0x28] sm:$0xff] }
 0x223   :  { %5522 = vmatpush1.bf16.msra.mxu0 %v5333_v30  ;;  %v4832_v30 = vld [vmem:[#allocation11 + $0x90] sm:$0xff]  ;;  %v5568_v36 = vpack.c.bf16 %v5035_v25, %v5031_v24  ;;  %v4917_v9 = vld [vmem:[#allocation11 + $0x338] sm:$0xff]  ;;  %v5011_v24 = vld [vmem:[#allocation13 + $0x20] sm:$0xff] }
 0x224   :  { %5458 = vmatmul.mubr.bf16.vlgmr.msra.gmra.mxu1 %v5266_v32  ;;  %5705 = vmatprep.subr.bf16.mxu0 %v5585_v34  ;;  %v4825_v34 = vld [vmem:[#allocation11 + $0x58] sm:$0xff] }
 0x225   :  { %5467 = vmatpush1.bf16.msra.mxu1 %v5297_v37  ;;  %5498 = vmatprep.mubr.bf16.mxu1 %v8743_v38  ;;  %v5286_v38 = vpack.c.bf16 %v4853_v57, %v4849_v56  ;;  %v5565_v37 = vpack.c.bf16 %v5028_v28, %v5024_v27  ;;  %v5274_v42 = vpack.c.bf16 %v4829_v35, %v4825_v34  ;;  %v4936_v56 = vld [vmem:[#allocation11 + $0x3d0] sm:$0xff]  ;;  %v4909_v35 = vld [vmem:[#allocation11 + $0x2f8] sm:$0xff] }
 0x226   :  { %5468 = vmatprep.subr.bf16.mxu1 %v5294_v41  ;;  %5540 = vmatmul.mubr.bf16.vlgmr.msra.gmra.mxu0 %v5266_v32  ;;  %v4836_v32 = vld [vmem:[#allocation11 + $0xb0] sm:$0xff]  ;;  %v5318_v34 = vpack.c.bf16 %v4917_v9, %v4913_v8 }
 0x227   :  { %5706 = vmatpush1.bf16.msra.mxu0 %v5584_v46  ;;  %v5277_v41 = vpack.c.bf16 %v4836_v32, %v4832_v30  ;;  %v4821_v46 = vld [vmem:[#allocation11 + $0x38] sm:$0xff]  ;;  %v4940_v57 = vld [vmem:[#allocation11 + $0x3f0] sm:$0xff] }
 0x228   :  { %5707 = vmatprep.subr.bf16.mxu0 %v5581_v47  ;;  %v5564_v47 = vpack.c.bf16 %v5027_v40, %v5023_v39  ;;  %v5270_v33 = vpack.c.bf16 %v4821_v46, %v4817_v45  ;;  %v5329_v62 = vpack.c.bf16 %v4940_v57, %v4936_v56  ;;  %v4912_v28 = vld [vmem:[#allocation11 + $0x310] sm:$0xff]  ;;  %v4905_v30 = vld [vmem:[#allocation11 + $0x2d8] sm:$0xff]  ;;  %v5127_v40 = vld [vmem:[#allocation13 + $0x3c0] sm:$0xff] }
 0x229   :  { %5469 = vmatpush1.bf16.msra.mxu1 %v5293_v49  ;;  %v4816_v49 = vld [vmem:[#allocation11 + $0x10] sm:$0xff]  ;;  %v5119_v45 = vld [vmem:[#allocation13 + $0x380] sm:$0xff]  ;;  %v4901_v56 = vld [vmem:[#allocation11 + $0x2b8] sm:$0xff] }
 0x22a   :  { %5470 = vmatprep.subr.bf16.mxu1 %v5290_v53  ;;  %v4941_v53 = vld [vmem:[#allocation11 + $0x3f8] sm:$0xff]  ;;  %v5269_v54 = vpack.c.bf16 %v4820_v50, %v4816_v49  ;;  %v5123_v46 = vld [vmem:[#allocation13 + $0x3a0] sm:$0xff]  ;;  %v5116_v49 = vld [vmem:[#allocation13 + $0x368] sm:$0xff]  ;;  %v5314_v50 = vpack.c.bf16 %v4909_v35, %v4905_v30 }
 0x22b   :  { %5708 = vmatpush1.bf16.msra.mxu0 %v5580_v59  ;;  %v5330_v55 = vpack.c.bf16 %v4941_v53, %v4937_v51  ;;  %v4929_v59 = vld [vmem:[#allocation11 + $0x398] sm:$0xff]  ;;  %v4904_v51 = vld [vmem:[#allocation11 + $0x2d0] sm:$0xff] }
 0x22c   :  { %5709 = vmatprep.subr.bf16.mxu0 %v5577_v61  ;;  %v4933_v61 = vld [vmem:[#allocation11 + $0x3b8] sm:$0xff]  ;;  %v4908_v53 = vld [vmem:[#allocation11 + $0x2f0] sm:$0xff] }
 0x22d   :  { %5471 = vmatpush1.bf16.msra.mxu1 %v5289_v0  ;;  %v4932_v0 = vld [vmem:[#allocation11 + $0x3b0] sm:$0xff]  ;;  %v5326_v1 = vpack.c.bf16 %v4933_v61, %v4929_v59  ;;  %v5111_v59 = vld [vmem:[#allocation13 + $0x340] sm:$0xff] }
 0x22e   :  { %5472 = vmatprep.subr.bf16.mxu1 %v5286_v38  ;;  %v5016_v38 = vld [vmem:[#allocation13 + $0x48] sm:$0xff]  ;;  %v5325_v31 = vpack.c.bf16 %v4932_v0, %v4928_v63  ;;  %v5115_v61 = vld [vmem:[#allocation13 + $0x360] sm:$0xff]  ;;  %v5313_v0 = vpack.c.bf16 %v4908_v53, %v4904_v51  ;;  %v4888_v8 = vld [vmem:[#allocation11 + $0x250] sm:$0xff] }
 0x22f   :  { %5710 = vmatpush1.bf16.msra.mxu0 %v5576_v7  ;;  %v5561_v5 = vpack.c.bf16 %v5020_v3, %v5016_v38  ;;  %v5019_v7 = vld [vmem:[#allocation13 + $0x60] sm:$0xff]  ;;  %v5108_v63 = vld [vmem:[#allocation13 + $0x328] sm:$0xff]  ;;  %v4900_v38 = vld [vmem:[#allocation11 + $0x2b0] sm:$0xff] }
 0x230   :  { %5711 = vmatprep.subr.bf16.mxu0 %v5573_v11  ;;  %v5560_v13 = vpack.c.bf16 %v5019_v7, %v5015_v6  ;;  %v4889_v3 = vld [vmem:[#allocation11 + $0x258] sm:$0xff]  ;;  %v5103_v7 = vld [vmem:[#allocation13 + $0x300] sm:$0xff]  ;;  %v4880_v30 = vld [vmem:[#allocation11 + $0x210] sm:$0xff] }
 0x231   :  { %5473 = vmatpush1.bf16.msra.mxu1 %v5285_v17  ;;  %v4920_v17 = vld [vmem:[#allocation11 + $0x350] sm:$0xff]  ;;  %v5066_v53 = vld [vmem:[#allocation13 + $0x1d8] sm:$0xff] }
 0x232   :  { %5474 = vmatprep.subr.bf16.mxu1 %v5282_v20  ;;  %v5322_v20 = vpack.c.bf16 %v4925_v4, %v4921_v2  ;;  %v5321_v27 = vpack.c.bf16 %v4924_v18, %v4920_v17  ;;  %v4896_v2 = vld [vmem:[#allocation11 + $0x290] sm:$0xff]  ;;  %v5608_v4 = vpack.c.bf16 %v5115_v61, %v5111_v59  ;;  %v5100_v17 = vld [vmem:[#allocation13 + $0x2e8] sm:$0xff]  ;;  %v5191_v61 = vld [vmem:[#allocation13 + $0x5c0] sm:$0xff] }
 0x233   :  { %5712 = vmatpush1.bf16.msra.mxu0 %v5572_v22  ;;  %v5557_v22 = vpack.c.bf16 %v5012_v15, %v5008_v21  ;;  %v5309_v18 = vpack.c.bf16 %v4900_v38, %v4896_v2  ;;  %v4892_v21 = vld [vmem:[#allocation11 + $0x270] sm:$0xff]  ;;  %v4881_v15 = vld [vmem:[#allocation11 + $0x218] sm:$0xff]  ;;  %v5183_v2 = vld [vmem:[#allocation13 + $0x580] sm:$0xff] }
 0x234   :  { %5713 = vmatprep.subr.bf16.mxu0 %v5569_v23  ;;  %v5007_v23 = vld [vmem:[#allocation13] sm:$0xff] }
 0x235   :  { %5475 = vmatpush1.bf16.msra.mxu1 %v5281_v26  ;;  %v5556_v26 = vpack.c.bf16 %v5011_v24, %v5007_v23  ;;  %v5095_v24 = vld [vmem:[#allocation13 + $0x2c0] sm:$0xff] }
 0x236   :  { %5476 = vmatprep.subr.bf16.mxu1 %v5278_v29  ;;  %v4916_v29 = vld [vmem:[#allocation11 + $0x330] sm:$0xff]  ;;  %v5187_v38 = vld [vmem:[#allocation13 + $0x5a0] sm:$0xff] }
 0x237   :  { %5714 = vmatpush1.bf16.msra.mxu0 %v5568_v36  ;;  %v5128_v36 = vld [vmem:[#allocation13 + $0x3c8] sm:$0xff] }
 0x238   :  { %5715 = vmatprep.subr.bf16.mxu0 %v5565_v37  ;;  %v5132_v37 = vld [vmem:[#allocation13 + $0x3e8] sm:$0xff] }
 0x239   :  { %5477 = vmatpush1.bf16.msra.mxu1 %v5277_v41  ;;  %v5617_v39 = vpack.c.bf16 %v5132_v37, %v5128_v36  ;;  %v5131_v41 = vld [vmem:[#allocation13 + $0x3e0] sm:$0xff] }
 0x23a   :  { %5478 = vmatprep.subr.bf16.mxu1 %v5274_v42  ;;  %v5120_v42 = vld [vmem:[#allocation13 + $0x388] sm:$0xff]  ;;  %v5616_v43 = vpack.c.bf16 %v5131_v41, %v5127_v40  ;;  %v5087_v36 = vld [vmem:[#allocation13 + $0x280] sm:$0xff] }
 0x23b   :  { %5716 = vmatpush1.bf16.msra.mxu0 %v5564_v47  ;;  %v5317_v47 = vpack.c.bf16 %v4916_v29, %v4912_v28  ;;  %v5305_v28 = vpack.c.bf16 %v4892_v21, %v4888_v8  ;;  %v5091_v37 = vld [vmem:[#allocation13 + $0x2a0] sm:$0xff]  ;;  %v5080_v41 = vld [vmem:[#allocation13 + $0x248] sm:$0xff] }
 0x23c   :  { %5717 = vmatprep.subr.bf16.mxu0 %v5561_v5  ;;  %v4893_v5 = vld [vmem:[#allocation11 + $0x278] sm:$0xff]  ;;  %v5596_v40 = vpack.c.bf16 %v5091_v37, %v5087_v36  ;;  %v5167_v8 = vld [vmem:[#allocation13 + $0x500] sm:$0xff] }
 0x23d   :  { %5479 = vmatpush1.bf16.msra.mxu1 %v5273_v48  ;;  %v5613_v48 = vpack.c.bf16 %v5124_v44, %v5120_v42  ;;  %v5084_v42 = vld [vmem:[#allocation13 + $0x268] sm:$0xff]  ;;  %v5079_v44 = vld [vmem:[#allocation13 + $0x240] sm:$0xff] }
 0x23e   :  { %5480 = vmatprep.subr.bf16.mxu1 %v5270_v33  ;;  %v5112_v33 = vld [vmem:[#allocation13 + $0x348] sm:$0xff]  ;;  %v5171_v21 = vld [vmem:[#allocation13 + $0x520] sm:$0xff] }
 0x23f   :  { %5718 = vmatpush1.bf16.msra.mxu0 %v5560_v13  ;;  %v5609_v57 = vpack.c.bf16 %v5116_v49, %v5112_v33  ;;  %v5107_v13 = vld [vmem:[#allocation13 + $0x320] sm:$0xff] }
 0x240   :  { %5719 = vmatprep.subr.bf16.mxu0 %v5557_v22  ;;  %v5604_v9 = vpack.c.bf16 %v5107_v13, %v5103_v7  ;;  %v4885_v22 = vld [vmem:[#allocation11 + $0x238] sm:$0xff]  ;;  %v5071_v49 = vld [vmem:[#allocation13 + $0x200] sm:$0xff] }
 0x241   :  { %5481 = vmatpush1.bf16.msra.mxu1 %v5269_v54  ;;  %v4897_v54 = vld [vmem:[#allocation11 + $0x298] sm:$0xff]  ;;  %v5302_v29 = vpack.c.bf16 %v4885_v22, %v4881_v15  ;;  %v5175_v7 = vld [vmem:[#allocation13 + $0x540] sm:$0xff]  ;;  %v5636_v15 = vpack.c.bf16 %v5171_v21, %v5167_v8  ;;  %v5160_v22 = vld [vmem:[#allocation13 + $0x4c8] sm:$0xff] }
 0x242   :  { %5482 = vmatprep.subr.bf16.mxu1 %v5330_v55  ;;  %v5612_v55 = vpack.c.bf16 %v5123_v46, %v5119_v45  ;;  %v5083_v45 = vld [vmem:[#allocation13 + $0x260] sm:$0xff] }
 0x243   :  { %5720 = vmatpush1.bf16.msra.mxu0 %v5556_v26  ;;  %v5088_v26 = vld [vmem:[#allocation13 + $0x288] sm:$0xff]  ;;  %v5592_v46 = vpack.c.bf16 %v5083_v45, %v5079_v44  ;;  %v5179_v13 = vld [vmem:[#allocation13 + $0x560] sm:$0xff] }
 0x244   :  { %v8755_v11 = vpop.f32.mrf.mxu0  ;;  %5721 = vmatprep.subr.bf16.mxu0 %v5617_v39  ;;  %v5155_v36 = vld [vmem:[#allocation13 + $0x4a0] sm:$0xff]  ;;  %v5144_v44 = vld [vmem:[#allocation13 + $0x448] sm:$0xff] }
 0x245   :  { %5483 = vmatpush2.bf16.msra.mxu1 %v5329_v62  ;;  %v5104_v62 = vld [vmem:[#allocation13 + $0x308] sm:$0xff]  ;;  %v5239_v21 = vld [vmem:[#allocation13 + $0x740] sm:$0xff] }
 0x246   :  { %v8757_v19 = vpop.f32.mrf.mxu0  ;;  %5484 = vmatprep.subr.bf16.mxu1 %v5326_v1  ;;  %v5310_v1 = vpack.c.bf16 %v4901_v56, %v4897_v54  ;;  %v5605_v6 = vpack.c.bf16 %v5108_v63, %v5104_v62  ;;  %v5070_v54 = vld [vmem:[#allocation13 + $0x1f8] sm:$0xff]  ;;  %v5192_v56 = vld [vmem:[#allocation13 + $0x5c8] sm:$0xff] }
 0x247   :  { %5722 = vmatpush2.bf16.msra.mxu0 %v5616_v43  ;;  %v5593_v43 = vpack.c.bf16 %v5084_v42, %v5080_v41  ;;  %v5184_v63 = vld [vmem:[#allocation13 + $0x588] sm:$0xff] }
 0x248   :  { %v4681_v25 = vpop.f32.mrf.mxu0  ;;  %5723 = vmatprep.subr.bf16.mxu0 %v5613_v48  ;;  %v5076_v48 = vld [vmem:[#allocation13 + $0x228] sm:$0xff] }
 0x249   :  { %5485 = vmatpush2.bf16.msra.mxu1 %v5325_v31  ;;  %v5096_v31 = vld [vmem:[#allocation13 + $0x2c8] sm:$0xff]  ;;  %v5099_v25 = vld [vmem:[#allocation13 + $0x2e0] sm:$0xff] }
 0x24a   :  { %v4682_v32 = vpop.f32.mrf.mxu0  ;;  %5486 = vmatprep.subr.bf16.mxu1 %v5322_v20  ;;  %v5306_v20 = vpack.c.bf16 %v4893_v5, %v4889_v3  ;;  %v5601_v23 = vpack.c.bf16 %v5100_v17, %v5096_v31  ;;  %v5644_v3 = vpack.c.bf16 %v5187_v38, %v5183_v2  ;;  %v5180_v5 = vld [vmem:[#allocation13 + $0x568] sm:$0xff]  ;;  %v5640_v31 = vpack.c.bf16 %v5179_v13, %v5175_v7  ;;  %v5255_v38 = vld [vmem:[#allocation13 + $0x7c0] sm:$0xff] }
 0x24b   :  { %5724 = vmatpush2.bf16.msra.mxu0 %v5612_v55  ;;  %v4884_v32 = vld [vmem:[#allocation11 + $0x230] sm:$0xff]  ;;  %v5587_v55 = vpack.c.bf16 %v5070_v54, %v5066_v53  ;;  %v5168_v17 = vld [vmem:[#allocation13 + $0x508] sm:$0xff]  ;;  %v5247_v13 = vld [vmem:[#allocation13 + $0x780] sm:$0xff] }
 0x24c   :  { %5725 = vmatprep.subr.bf16.mxu0 %v5609_v57  ;;  %v5301_v39 = vpack.c.bf16 %v4884_v32, %v4880_v30  ;;  %v5196_v57 = vld [vmem:[#allocation13 + $0x5e8] sm:$0xff] }
 0x24d   :  { %5487 = vmatpush2.bf16.msra.mxu1 %v5321_v27  ;;  %v5092_v27 = vld [vmem:[#allocation13 + $0x2a8] sm:$0xff]  ;;  %v5649_v59 = vpack.c.bf16 %v5196_v57, %v5192_v56 }
 0x24e   :  { %5488 = vmatprep.subr.bf16.mxu1 %v5318_v34  ;;  %v5600_v34 = vpack.c.bf16 %v5099_v25, %v5095_v24  ;;  %v5597_v35 = vpack.c.bf16 %v5092_v27, %v5088_v26  ;;  %v5159_v25 = vld [vmem:[#allocation13 + $0x4c0] sm:$0xff]  ;;  %v5152_v30 = vld [vmem:[#allocation13 + $0x488] sm:$0xff] }
 0x24f   :  { %5726 = vmatpush2.bf16.msra.mxu0 %v5608_v4  ;;  %v5176_v4 = vld [vmem:[#allocation13 + $0x548] sm:$0xff]  ;;  %v5163_v26 = vld [vmem:[#allocation13 + $0x4e0] sm:$0xff] }
 0x250   :  { %5727 = vmatprep.subr.bf16.mxu0 %v5605_v6  ;;  %v5641_v6 = vpack.c.bf16 %v5180_v5, %v5176_v4  ;;  %v5156_v32 = vld [vmem:[#allocation13 + $0x4a8] sm:$0xff] }
 0x251   :  { %5489 = vmatpush2.bf16.msra.mxu1 %v5317_v47  ;;  %v5072_v47 = vld [vmem:[#allocation13 + $0x208] sm:$0xff] }
 0x252   :  { %5490 = vmatprep.subr.bf16.mxu1 %v5314_v50  ;;  %v5589_v33 = vpack.c.bf16 %v5076_v48, %v5072_v47  ;;  %v5075_v50 = vld [vmem:[#allocation13 + $0x220] sm:$0xff]  ;;  %v5148_v45 = vld [vmem:[#allocation13 + $0x468] sm:$0xff] }
 0x253   :  { %5728 = vmatpush2.bf16.msra.mxu0 %v5604_v9  ;;  %v5588_v51 = vpack.c.bf16 %v5075_v50, %v5071_v49  ;;  %v8763_v9 = vld [vmem:[%s11828_s6] sm:$0xf]  ;;  %v5625_v48 = vpack.c.bf16 %v5148_v45, %v5144_v44  ;;  %v5147_v49 = vld [vmem:[#allocation13 + $0x460] sm:$0xff] }
 0x254   :  { %5729 = vmatprep.subr.bf16.mxu0 %v5601_v23  ;;  %v5164_v23 = vld [vmem:[#allocation13 + $0x4e8] sm:$0xff]  ;;  %v3986_v27 = vrot.slane %v8763_v9, %v8714_v14 }
 0x255   :  { %5491 = vmatpush2.bf16.msra.mxu1 %v5313_v0  ;;  %v5188_v0 = vld [vmem:[#allocation13 + $0x5a8] sm:$0xff]  ;;  %v5633_v24 = vpack.c.bf16 %v5164_v23, %v5160_v22 }
 0x256   :  { %5492 = vmatprep.subr.bf16.mxu1 %v5310_v1  ;;  %v5645_v1 = vpack.c.bf16 %v5188_v0, %v5184_v63  ;;  %v4678_v37 = vadd.f32 %v8755_v11, %v3986_v27  ;;  %v5140_v56 = vld [vmem:[#allocation13 + $0x428] sm:$0xff]  ;;  %v5235_v27 = vld [vmem:[#allocation13 + $0x720] sm:$0xff] }
 0x257   :  { %5730 = vmatpush2.bf16.msra.mxu0 %v5600_v34  ;;  %v5629_v34 = vpack.c.bf16 %v5156_v32, %v5152_v30  ;;  %v5256_v0 = vld [vmem:[#allocation13 + $0x7c8] sm:$0xff] }
 0x258   :  { %5731 = vmatprep.subr.bf16.mxu0 %v5597_v35  ;;  %v5151_v35 = vld [vmem:[#allocation13 + $0x480] sm:$0xff]  ;;  %v5248_v5 = vld [vmem:[#allocation13 + $0x788] sm:$0xff] }
 0x259   :  { %5493 = vmatpush2.bf16.msra.mxu1 %v5309_v18  ;;  %v5172_v18 = vld [vmem:[#allocation13 + $0x528] sm:$0xff] }
 0x25a   :  { %5494 = vmatprep.subr.bf16.mxu1 %v5306_v20  ;;  %v5637_v20 = vpack.c.bf16 %v5172_v18, %v5168_v17  ;;  %v5240_v18 = vld [vmem:[#allocation13 + $0x748] sm:$0xff] }
 0x25b   :  { %5732 = vmatpush2.bf16.msra.mxu0 %v5596_v40  ;;  %v5232_v23 = vld [vmem:[#allocation13 + $0x708] sm:$0xff] }
 0x25c   :  { %5733 = vmatprep.subr.bf16.mxu0 %v5593_v43  ;;  %v5228_v30 = vld [vmem:[#allocation13 + $0x6e8] sm:$0xff] }
 0x25d   :  { %5495 = vmatpush2.bf16.msra.mxu1 %v5305_v28  ;;  %v5632_v28 = vpack.c.bf16 %v5163_v26, %v5159_v25  ;;  %v5231_v26 = vld [vmem:[#allocation13 + $0x700] sm:$0xff]  ;;  %v5208_v45 = vld [vmem:[#allocation13 + $0x648] sm:$0xff] }
 0x25e   :  { %5496 = vmatprep.subr.bf16.mxu1 %v5302_v29  ;;  %v3990_v29 = vrot.slane %v8763_v9, %v8722_v16 }
 0x25f   :  { %5734 = vmatpush2.bf16.msra.mxu0 %v5592_v46 }
 0x260   :  { %5735 = vmatprep.subr.bf16.mxu0 %v5589_v33  ;;  %v4680_v42 = vadd.f32 %v8757_v19, %v3990_v29  ;;  %v5143_v33 = vld [vmem:[#allocation13 + $0x440] sm:$0xff]  ;;  %v5136_v19 = vld [vmem:[#allocation13 + $0x408] sm:$0xff] }
 0x261   :  { %5497 = vmatpush2.bf16.msra.mxu1 %v5301_v39  ;;  %v5628_v39 = vpack.c.bf16 %v5155_v36, %v5151_v35  ;;  %v5624_v11 = vpack.c.bf16 %v5147_v49, %v5143_v33  ;;  %v5224_v29 = vld [vmem:[#allocation13 + $0x6c8] sm:$0xff]  ;;  %v5227_v35 = vld [vmem:[#allocation13 + $0x6e0] sm:$0xff] }
 0x262   :  { %5746 = vmatprep.subr.bf16.mxu1 %v5649_v59  ;;  %v5665_v32 = vpack.c.bf16 %v5228_v30, %v5224_v29  ;;  %v5207_v33 = vld [vmem:[#allocation13 + $0x640] sm:$0xff]  ;;  %v228_v29 = vld [vmem:[#allocation14 + $0x188] sm:$0xff] }
 0x263   :  { %5736 = vmatpush2.bf16.msra.mxu0 %v5588_v51  ;;  %v5211_v49 = vld [vmem:[#allocation13 + $0x660] sm:$0xff] }
 0x264   :  { %5499 = vmatmul.mubr.bf16.vlgmr.msra.gmra.mxu1 %v8748_v52  ;;  %5787 = vmatprep.subr.bf16.mxu0 %v5587_v55  ;;  %v5195_v52 = vld [vmem:[#allocation13 + $0x5e0] sm:$0xff] }
 0x265   :  { %v5648_v62 = vpack.c.bf16 %v5195_v52, %v5191_v61  ;;  %v5621_v61 = vpack.c.bf16 %v5140_v56, %v5136_v19  ;;  %v5135_v52 = vld [vmem:[#allocation13 + $0x400] sm:$0xff]  ;;  %v5194_v56 = vld [vmem:[#allocation13 + $0x5d8] sm:$0xff] }
 0x267   :  { %5747 = vmatpush1.bf16.msra.mxu1 %v5648_v62  ;;  %v5139_v62 = vld [vmem:[#allocation13 + $0x420] sm:$0xff] }
 0x268   :  { %5748 = vmatprep.subr.bf16.mxu1 %v5645_v1  ;;  %v5620_v63 = vpack.c.bf16 %v5139_v62, %v5135_v52  ;;  %v5260_v1 = vld [vmem:[#allocation13 + $0x7e8] sm:$0xff]  ;;  %v3998_v52 = vrot.slane %v8763_v9, %v8735_v60 }
 0x269   :  { %v5681_v2 = vpack.c.bf16 %v5260_v1, %v5256_v0 }
 0x26b   :  { %5749 = vmatpush1.bf16.msra.mxu1 %v5644_v3  ;;  %v5259_v3 = vld [vmem:[#allocation13 + $0x7e0] sm:$0xff] }
 0x26c   :  { %5750 = vmatprep.subr.bf16.mxu1 %v5641_v6  ;;  %v5680_v4 = vpack.c.bf16 %v5259_v3, %v5255_v38  ;;  %v5252_v6 = vld [vmem:[#allocation13 + $0x7a8] sm:$0xff] }
 0x26d   :  { %v5677_v7 = vpack.c.bf16 %v5252_v6, %v5248_v5  ;;  %v236_v38 = vld [vmem:[#allocation14 + $0x1c8] sm:$0xff] }
 0x26e   :  { %v428_v5 = vmul.f32 0.999, %v236_v38  ;;  %v608_v38 = vld [vmem:[#allocation11 + $0x168] sm:$0xff] }
 0x26f   :  { %5751 = vmatpush1.bf16.msra.mxu1 %v5640_v31  ;;  %v5251_v31 = vld [vmem:[#allocation13 + $0x7a0] sm:$0xff] }
 0x270   :  { %5752 = vmatprep.subr.bf16.mxu1 %v5637_v20  ;;  %v5676_v17 = vpack.c.bf16 %v5251_v31, %v5247_v13  ;;  %v5244_v20 = vld [vmem:[#allocation13 + $0x768] sm:$0xff] }
 0x271   :  { %v5673_v8 = vpack.c.bf16 %v5244_v20, %v5240_v18  ;;  %v624_v18 = vld [vmem:[#allocation11 + $0x1e8] sm:$0xff] }
 0x273   :  { %5753 = vmatpush1.bf16.msra.mxu1 %v5636_v15  ;;  %v5243_v15 = vld [vmem:[#allocation13 + $0x760] sm:$0xff] }
 0x274   :  { %5754 = vmatprep.subr.bf16.mxu1 %v5633_v24  ;;  %v5672_v22 = vpack.c.bf16 %v5243_v15, %v5239_v21  ;;  %v5236_v24 = vld [vmem:[#allocation13 + $0x728] sm:$0xff]  ;;  %v239_v21 = vld [vmem:[#allocation14 + $0x1e0] sm:$0xff] }
 0x275   :  { %v5669_v25 = vpack.c.bf16 %v5236_v24, %v5232_v23  ;;  %v623_v24 = vld [vmem:[#allocation11 + $0x1e0] sm:$0xff] }
 0x277   :  { %5755 = vmatpush1.bf16.msra.mxu1 %v5632_v28  ;;  %v5668_v28 = vpack.c.bf16 %v5235_v27, %v5231_v26 }
 0x278   :  { %5756 = vmatprep.subr.bf16.mxu1 %v5629_v34  ;;  %v5223_v34 = vld [vmem:[#allocation13 + $0x6c0] sm:$0xff] }
 0x279   :  { %v5664_v36 = vpack.c.bf16 %v5227_v35, %v5223_v34  ;;  %v815_v34 = vmul.f32 0.001, %v623_v24  ;;  %v232_v35 = vld [vmem:[#allocation14 + $0x1a8] sm:$0xff] }
 0x27b   :  { %5757 = vmatpush1.bf16.msra.mxu1 %v5628_v39  ;;  %v5220_v39 = vld [vmem:[#allocation13 + $0x6a8] sm:$0xff] }
 0x27c   :  { %5758 = vmatprep.subr.bf16.mxu1 %v5625_v48 }
 0x27f   :  { %5759 = vmatpush1.bf16.msra.mxu1 %v5624_v11  ;;  %v5204_v11 = vld [vmem:[#allocation13 + $0x628] sm:$0xff] }
 0x280   :  { %5760 = vmatprep.subr.bf16.mxu1 %v5621_v61  ;;  %v3994_v61 = vrot.slane %v8763_v9, %v8732_v58  ;;  %v235_v9 = vld [vmem:[#allocation14 + $0x1c0] sm:$0xff] }
 0x281   :  { %v427_v23 = vmul.f32 0.999, %v235_v9 }
 0x283   :  { %5761 = vmatpush1.bf16.msra.mxu1 %v5620_v63 }
 0x284   :  { %v8770_v40 = vpop.f32.mrf.mxu0  ;;  %v4718_v41 = vpop.f32.mrf.mxu1  ;;  %5762 = vmatprep.subr.bf16.mxu1 %v5681_v2 }
 0x285   :  { %v4719_v43 = vadd.f32 %v4718_v41, %v4678_v37  ;;  %v5216_v37 = vld [vmem:[#allocation13 + $0x688] sm:$0xff]  ;;  %v4760_v62 = vadd.f32 %v8770_v40, %v3994_v61 }
 0x286   :  { %v8773_v46 = vpop.f32.mrf.mxu0  ;;  %v4720_v47 = vpop.f32.mrf.mxu1  ;;  %v5661_v41 = vpack.c.bf16 %v5220_v39, %v5216_v37  ;;  %v420_v39 = vmul.f32 0.999, %v228_v29  ;;  %v224_v61 = vld [vmem:[#allocation14 + $0x168] sm:$0xff]  ;;  %v8951_v37 = vld [vmem:[#allocation13 + $0x110] sm:$0xff] }
 0x287   :  { %v4807_v50 = vmax.f32 %v4719_v43, 0.0  ;;  %v4721_v51 = vadd.f32 %v4720_v47, %v4680_v42  ;;  %5763 = vmatpush2.bf16.msra.mxu1 %v5680_v4  ;;  %v5215_v42 = vld [vmem:[#allocation13 + $0x680] sm:$0xff]  ;;  %v5212_v47 = vld [vmem:[#allocation13 + $0x668] sm:$0xff]  ;;  %v4762_v0 = vadd.f32 %v8773_v46, %v3998_v52 }
 0x288   :  { %v4763_v53 = vpop.f32.mrf.mxu0  ;;  %v4722_v54 = vpop.f32.mrf.mxu1  ;;  %5764 = vmatprep.subr.bf16.mxu1 %v5677_v7  ;;  %v5219_v43 = vld [vmem:[#allocation13 + $0x6a0] sm:$0xff]  ;;  %v5657_v48 = vpack.c.bf16 %v5212_v47, %v5208_v45  ;;  %v240_v4 = vld [vmem:[#allocation14 + $0x1e8] sm:$0xff] }
 0x289   :  { %7275 = vst [vmem:[#allocation18] sm:$0xff] %v4807_v50  ;;  %v4808_v55 = vmax.f32 %v4721_v51, 0.0  ;;  %v5660_v44 = vpack.c.bf16 %v5219_v43, %v5215_v42  ;;  %v5656_v50 = vpack.c.bf16 %v5211_v49, %v5207_v33  ;;  %v5200_v51 = vld [vmem:[#allocation13 + $0x608] sm:$0xff]  ;;  %v5199_v54 = vld [vmem:[#allocation13 + $0x600] sm:$0xff]  ;;  %v432_v31 = vmul.f32 0.999, %v240_v4 }
 0x28a   :  { %v4764_v57 = vpop.f32.mrf.mxu0  ;;  %v4723_v59 = vpop.f32.mrf.mxu1  ;;  %v5653_v53 = vpack.c.bf16 %v5204_v11, %v5200_v51  ;;  %v619_v46 = vld [vmem:[#allocation11 + $0x1c0] sm:$0xff]  ;;  %v616_v42 = vld [vmem:[#allocation11 + $0x1a8] sm:$0xff]  ;;  %v800_v4 = vmul.f32 0.001, %v608_v38 }
 0x28b   :  { %7276 = vst [vmem:[#allocation18 + $0x8] sm:$0xff] %v4808_v55  ;;  %5765 = vmatpush2.bf16.msra.mxu1 %v5676_v17  ;;  %v5203_v55 = vld [vmem:[#allocation13 + $0x620] sm:$0xff]  ;;  %v5198_v57 = vld [vmem:[#allocation13 + $0x5f8] sm:$0xff]  ;;  %v620_v17 = vld [vmem:[#allocation11 + $0x1c8] sm:$0xff] }
 0x28c   :  { %5766 = vmatprep.subr.bf16.mxu1 %v5673_v8  ;;  %v5652_v19 = vpack.c.bf16 %v5203_v55, %v5199_v54  ;;  %v5651_v59 = vpack.c.bf16 %v5198_v57, %v5194_v56  ;;  %v812_v40 = vmul.f32 0.001, %v620_v17  ;;  %v816_v8 = vmul.f32 0.001, %v624_v18  ;;  %v227_v43 = vld [vmem:[#allocation14 + $0x180] sm:$0xff]  ;;  %v220_v55 = vld [vmem:[#allocation14 + $0x148] sm:$0xff] }
 0x28d   :  { %v231_v33 = vld [vmem:[#allocation14 + $0x1a0] sm:$0xff]  ;;  %v419_v49 = vmul.f32 0.999, %v227_v43  ;;  %v412_v52 = vmul.f32 0.999, %v220_v55 }
 0x28e   :  { %v8785_v26 = vadd.f32 %v812_v40, %v428_v5  ;;  %v8787_v27 = vadd.f32 %v816_v8, %v432_v31  ;;  %v615_v54 = vld [vmem:[#allocation11 + $0x1a0] sm:$0xff] }
 0x28f   :  { %5767 = vmatpush2.bf16.msra.mxu1 %v5672_v22  ;;  %v807_v57 = vmul.f32 0.001, %v615_v54  ;;  %v219_v5 = vld [vmem:[#allocation14 + $0x140] sm:$0xff] }
 0x290   :  { %5768 = vmatprep.subr.bf16.mxu1 %v5669_v25  ;;  %2486 = vst [vmem:[#allocation20 + $0x1c8] sm:$0xff] %v8785_v26  ;;  %2490 = vst [vmem:[#allocation20 + $0x1e8] sm:$0xff] %v8787_v27  ;;  %v411_v31 = vmul.f32 0.999, %v219_v5  ;;  %v603_v17 = vld [vmem:[#allocation11 + $0x140] sm:$0xff] }
 0x291   :  { %v607_v18 = vld [vmem:[#allocation11 + $0x160] sm:$0xff]  ;;  %v795_v8 = vmul.f32 0.001, %v603_v17 }
 0x292   :  { %v599_v43 = vld [vmem:[#allocation11 + $0x120] sm:$0xff] }
 0x293   :  { %5769 = vmatpush2.bf16.msra.mxu1 %v5668_v28  ;;  %v431_v28 = vmul.f32 0.999, %v239_v21  ;;  %v799_v21 = vmul.f32 0.001, %v607_v18  ;;  %v791_v55 = vmul.f32 0.001, %v599_v43 }
 0x294   :  { %5770 = vmatprep.subr.bf16.mxu1 %v5665_v32  ;;  %v811_v32 = vmul.f32 0.001, %v619_v46  ;;  %v212_v46 = vld [vmem:[#allocation14 + $0x108] sm:$0xff]  ;;  %v207_v17 = vld [vmem:[#allocation14 + $0xe0] sm:$0xff] }
 0x295   :  { %v8795_v45 = vadd.f32 %v815_v34, %v431_v28  ;;  %v404_v28 = vmul.f32 0.999, %v212_v46 }
 0x297   :  { %5771 = vmatpush2.bf16.msra.mxu1 %v5664_v36  ;;  %v612_v36 = vld [vmem:[#allocation11 + $0x188] sm:$0xff]  ;;  %2489 = vst [vmem:[#allocation20 + $0x1e0] sm:$0xff] %v8795_v45 }
 0x298   :  { %5772 = vmatprep.subr.bf16.mxu1 %v5661_v41  ;;  %v424_v41 = vmul.f32 0.999, %v232_v35  ;;  %v804_v47 = vmul.f32 0.001, %v612_v36  ;;  %v211_v36 = vld [vmem:[#allocation14 + $0x100] sm:$0xff] }
 0x29a   :  { %v8801_v51 = vadd.f32 %v804_v47, %v420_v39  ;;  %v215_v39 = vld [vmem:[#allocation14 + $0x120] sm:$0xff]  ;;  %v8918_v47 = vld [vmem:[#allocation13 + $0x158] sm:$0xff] }
 0x29b   :  { %5773 = vmatpush2.bf16.msra.mxu1 %v5660_v44  ;;  %v8793_v44 = vadd.f32 %v811_v32, %v427_v23  ;;  %v8824_v23 = vld [vmem:[%s11830_s8] sm:$0xf] }
 0x29c   :  { %5774 = vmatprep.subr.bf16.mxu1 %v5657_v48  ;;  %v808_v48 = vmul.f32 0.001, %v616_v42  ;;  %2478 = vst [vmem:[#allocation20 + $0x188] sm:$0xff] %v8801_v51  ;;  %v595_v42 = vld [vmem:[#allocation11 + $0x100] sm:$0xff] }
 0x29d   :  { %2485 = vst [vmem:[#allocation20 + $0x1c0] sm:$0xff] %v8793_v44  ;;  %v787_v54 = vmul.f32 0.001, %v595_v42  ;;  %v584_v42 = vld [vmem:[#allocation11 + $0xa8] sm:$0xff] }
 0x29e   :  { %v8803_v11 = vadd.f32 %v808_v48, %v424_v41  ;;  %v403_v41 = vmul.f32 0.999, %v211_v36 }
 0x29f   :  { %5775 = vmatpush2.bf16.msra.mxu1 %v5656_v50  ;;  %v304_v50 = vld [vmem:[#allocation14 + $0x3e8] sm:$0xff] }
 0x2a0   :  { %5776 = vmatprep.subr.bf16.mxu1 %v5653_v53  ;;  %v611_v53 = vld [vmem:[#allocation11 + $0x180] sm:$0xff]  ;;  %2482 = vst [vmem:[#allocation20 + $0x1a8] sm:$0xff] %v8803_v11  ;;  %v8848_v38 = vadd.f32 %v787_v54, %v403_v41  ;;  %v776_v54 = vmul.f32 0.001, %v584_v42  ;;  %v576_v42 = vld [vmem:[#allocation11 + $0x68] sm:$0xff] }
 0x2a1   :  { %v803_v56 = vmul.f32 0.001, %v611_v53  ;;  %v204_v53 = vld [vmem:[#allocation14 + $0xc8] sm:$0xff] }
 0x2a2   :  { %2461 = vst [vmem:[#allocation20 + $0x100] sm:$0xff] %v8848_v38 }
 0x2a3   :  { %5777 = vmatpush2.bf16.msra.mxu1 %v5652_v19  ;;  %v423_v19 = vmul.f32 0.999, %v231_v33 }
 0x2a4   :  { %5828 = vmatprep.subr.bf16.mxu1 %v5651_v59 }
 0x2c4   :  { %v4800_v63 = vpop.f32.mrf.mxu1 }
 0x2c5   :  { %v4801_v1 = vadd.f32 %v4800_v63, %v4760_v62  ;;  %v8781_v2 = vpop.f32.mrf.mxu0  ;;  %v8809_v62 = vadd.f32 %v803_v56, %v419_v49  ;;  %v8811_v63 = vadd.f32 %v807_v57, %v423_v19  ;;  %v407_v49 = vmul.f32 0.999, %v215_v39  ;;  %v208_v19 = vld [vmem:[#allocation14 + $0xe8] sm:$0xff] }
 0x2c6   :  { %v4802_v3 = vpop.f32.mrf.mxu1  ;;  %v588_v56 = vld [vmem:[#allocation11 + $0xc8] sm:$0xff]  ;;  %v5367_v57 = vrot.slane %v8824_v23, %v8714_v14 }
 0x2c7   :  { %v4809_v6 = vmax.f32 %v4801_v1, 0.0  ;;  %v4803_v7 = vadd.f32 %v4802_v3, %v4762_v0  ;;  %v8783_v13 = vpop.f32.mrf.mxu0  ;;  %v416_v0 = vmul.f32 0.999, %v224_v61  ;;  %v604_v1 = vld [vmem:[#allocation11 + $0x148] sm:$0xff]  ;;  %2477 = vst [vmem:[#allocation20 + $0x180] sm:$0xff] %v8809_v62  ;;  %2481 = vst [vmem:[#allocation20 + $0x1a0] sm:$0xff] %v8811_v63 }
 0x2c8   :  { %v4804_v20 = vpop.f32.mrf.mxu1  ;;  %v796_v3 = vmul.f32 0.001, %v604_v1  ;;  %v592_v1 = vld [vmem:[#allocation11 + $0xe8] sm:$0xff] }
 0x2c9   :  { %7277 = vst [vmem:[#allocation18 + $0x10] sm:$0xff] %v4809_v6  ;;  %v4810_v15 = vmax.f32 %v4803_v7, 0.0  ;;  %v5422_v22 = vpop.f32.mrf.mxu0  ;;  %v223_v7 = vld [vmem:[#allocation14 + $0x160] sm:$0xff]  ;;  %v8819_v20 = vadd.f32 %v800_v4, %v416_v0  ;;  %v400_v0 = vmul.f32 0.999, %v208_v19  ;;  %v564_v61 = vld [vmem:[#allocation11 + $0x8] sm:$0xff] }
 0x2ca   :  { %v4805_v25 = vpop.f32.mrf.mxu1  ;;  %v8817_v9 = vadd.f32 %v796_v3, %v412_v52  ;;  %v415_v40 = vmul.f32 0.999, %v223_v7  ;;  %v596_v22 = vld [vmem:[#allocation11 + $0x108] sm:$0xff]  ;;  %v396_v52 = vmul.f32 0.999, %v204_v53  ;;  %v8850_v3 = vadd.f32 %v791_v55, %v407_v49  ;;  %v203_v7 = vld [vmem:[#allocation14 + $0xc0] sm:$0xff] }
 0x2cb   :  { %7278 = vst [vmem:[#allocation18 + $0x18] sm:$0xff] %v4810_v15  ;;  %v5423_v30 = vpop.f32.mrf.mxu0  ;;  %v216_v15 = vld [vmem:[#allocation14 + $0x128] sm:$0xff]  ;;  %2474 = vst [vmem:[#allocation20 + $0x168] sm:$0xff] %v8819_v20  ;;  %v8830_v25 = vadd.f32 %v795_v8, %v411_v31  ;;  %v788_v34 = vmul.f32 0.001, %v596_v22  ;;  %v5371_v31 = vrot.slane %v8824_v23, %v8722_v16  ;;  %v591_v8 = vld [vmem:[#allocation11 + $0xe0] sm:$0xff] }
 0x2cc   :  { %2470 = vst [vmem:[#allocation20 + $0x148] sm:$0xff] %v8817_v9  ;;  %v408_v29 = vmul.f32 0.999, %v216_v15  ;;  %v600_v30 = vld [vmem:[#allocation11 + $0x128] sm:$0xff]  ;;  %v8832_v32 = vadd.f32 %v799_v21, %v415_v40  ;;  %v780_v4 = vmul.f32 0.001, %v588_v56 }
 0x2cd   :  { %v792_v35 = vmul.f32 0.001, %v600_v30  ;;  %2469 = vst [vmem:[#allocation20 + $0x140] sm:$0xff] %v8830_v25  ;;  %v8838_v48 = vadd.f32 %v788_v34, %v404_v28  ;;  %v784_v5 = vmul.f32 0.001, %v592_v1  ;;  %v587_v40 = vld [vmem:[#allocation11 + $0xc0] sm:$0xff]  ;;  %v5421_v19 = vadd.f32 %v8783_v13, %v5371_v31 }
 0x2ce   :  { %2473 = vst [vmem:[#allocation20 + $0x160] sm:$0xff] %v8832_v32  ;;  %v395_v18 = vmul.f32 0.999, %v203_v7  ;;  %2465 = vst [vmem:[#allocation20 + $0x120] sm:$0xff] %v8850_v3  ;;  %v8858_v46 = vadd.f32 %v780_v4, %v396_v52  ;;  %v399_v22 = vmul.f32 0.999, %v207_v17 }
 0x2cf   :  { %v8840_v33 = vadd.f32 %v792_v35, %v408_v29  ;;  %2462 = vst [vmem:[#allocation20 + $0x108] sm:$0xff] %v8838_v48  ;;  %v8860_v15 = vadd.f32 %v784_v5, %v400_v0  ;;  %v196_v28 = vld [vmem:[#allocation14 + $0x88] sm:$0xff]  ;;  %v779_v29 = vmul.f32 0.001, %v587_v40  ;;  %v783_v30 = vmul.f32 0.001, %v591_v8 }
 0x2d0   :  { %v200_v23 = vld [vmem:[#allocation14 + $0xa8] sm:$0xff]  ;;  %v5419_v35 = vadd.f32 %v8781_v2, %v5367_v57  ;;  %2454 = vst [vmem:[#allocation20 + $0xc8] sm:$0xff] %v8858_v46  ;;  %v388_v39 = vmul.f32 0.999, %v196_v28  ;;  %v195_v55 = vld [vmem:[#allocation14 + $0x80] sm:$0xff]  ;;  %v8872_v1 = vld [vmem:[#allocation13 + $0x1d0] sm:$0xff] }
 0x2d1   :  { %2466 = vst [vmem:[#allocation20 + $0x128] sm:$0xff] %v8840_v33  ;;  %v580_v34 = vld [vmem:[#allocation11 + $0x88] sm:$0xff]  ;;  %2458 = vst [vmem:[#allocation20 + $0xe8] sm:$0xff] %v8860_v15  ;;  %v392_v41 = vmul.f32 0.999, %v200_v23  ;;  %v8867_v43 = vadd.f32 %v779_v29, %v395_v18  ;;  %v8869_v49 = vadd.f32 %v783_v30, %v399_v22  ;;  %v199_v2 = vld [vmem:[#allocation14 + $0xa0] sm:$0xff] }
 0x2d2   :  { %v772_v53 = vmul.f32 0.001, %v580_v34  ;;  %v387_v56 = vmul.f32 0.999, %v195_v55  ;;  %v579_v57 = vld [vmem:[#allocation11 + $0x80] sm:$0xff]  ;;  %v8874_v4 = vld [vmem:[#allocation13 + $0x1f0] sm:$0xff] }
 0x2d3   :  { %v583_v52 = vld [vmem:[#allocation11 + $0xa0] sm:$0xff]  ;;  %2453 = vst [vmem:[#allocation20 + $0xc0] sm:$0xff] %v8867_v43  ;;  %2457 = vst [vmem:[#allocation20 + $0xe0] sm:$0xff] %v8869_v49  ;;  %v8882_v17 = vadd.f32 %v776_v54, %v392_v41  ;;  %v391_v13 = vmul.f32 0.999, %v199_v2  ;;  %v188_v31 = vld [vmem:[#allocation14 + $0x48] sm:$0xff] }
 0x2d4   :  { %v8880_v7 = vadd.f32 %v772_v53, %v388_v39  ;;  %v771_v40 = vmul.f32 0.001, %v579_v57  ;;  %v775_v8 = vmul.f32 0.001, %v583_v52  ;;  %v192_v22 = vld [vmem:[#allocation14 + $0x68] sm:$0xff]  ;;  %v8884_v30 = vld [vmem:[#allocation13 + $0x198] sm:$0xff] }
 0x2d5   :  { %v572_v28 = vld [vmem:[#allocation11 + $0x48] sm:$0xff]  ;;  %2450 = vst [vmem:[#allocation20 + $0xa8] sm:$0xff] %v8882_v17  ;;  %v380_v39 = vmul.f32 0.999, %v188_v31  ;;  %v384_v41 = vmul.f32 0.999, %v192_v22  ;;  %v5586_v31 = vpack.c.bf16 %v8874_v4, %v8872_v1 }
 0x2d6   :  { %2446 = vst [vmem:[#allocation20 + $0x88] sm:$0xff] %v8880_v7  ;;  %v8892_v54 = vld [vmem:[#allocation13 + $0x1b8] sm:$0xff]  ;;  %v8894_v55 = vadd.f32 %v771_v40, %v387_v56  ;;  %v8896_v2 = vadd.f32 %v775_v8, %v391_v13  ;;  %v187_v57 = vld [vmem:[#allocation14 + $0x40] sm:$0xff]  ;;  %v764_v10 = vmul.f32 0.001, %v572_v28  ;;  %v8908_v22 = vld [vmem:[#allocation13 + $0x1b0] sm:$0xff] }
 0x2d7   :  { %v191_v52 = vld [vmem:[#allocation14 + $0x60] sm:$0xff]  ;;  %v768_v5 = vmul.f32 0.001, %v576_v42  ;;  %v379_v36 = vmul.f32 0.999, %v187_v57  ;;  %v300_v6 = vld [vmem:[#allocation14 + $0x3c8] sm:$0xff] }
 0x2d8   :  { %2445 = vst [vmem:[#allocation20 + $0x80] sm:$0xff] %v8894_v55  ;;  %2449 = vst [vmem:[#allocation20 + $0xa0] sm:$0xff] %v8896_v2  ;;  %v383_v56 = vmul.f32 0.999, %v191_v52  ;;  %v571_v13 = vld [vmem:[#allocation11 + $0x40] sm:$0xff]  ;;  %v184_v52 = vld [vmem:[#allocation14 + $0x28] sm:$0xff] }
 0x2d9   :  { %v575_v40 = vld [vmem:[#allocation11 + $0x60] sm:$0xff]  ;;  %v8912_v42 = vadd.f32 %v768_v5, %v384_v41  ;;  %v763_v1 = vmul.f32 0.001, %v571_v13  ;;  %v756_v13 = vmul.f32 0.001, %v564_v61  ;;  %v676_v14 = vld [vmem:[#allocation11 + $0x388] sm:$0xff] }
 0x2da   :  { %v767_v4 = vmul.f32 0.001, %v575_v40  ;;  %v179_v41 = vld [vmem:[#allocation14] sm:$0xff] }
 0x2db   :  { %2442 = vst [vmem:[#allocation20 + $0x68] sm:$0xff] %v8912_v42  ;;  %v567_v61 = vld [vmem:[#allocation11 + $0x20] sm:$0xff] }
 0x2dc   :  { %v683_v16 = vld [vmem:[#allocation11 + $0x3c0] sm:$0xff] }
 0x2e4   :  { %v5459_v0 = vpop.f32.mrf.mxu1 }
 0x2e5   :  { %v5460_v18 = vadd.f32 %v5459_v0, %v5419_v35 }
 0x2e6   :  { %v5461_v29 = vpop.f32.mrf.mxu1  ;;  %v8886_v23 = vpop.f32.mrf.mxu0 }
 0x2e7   :  { %v5548_v35 = vmax.f32 %v5460_v18, 0.0  ;;  %v5462_v53 = vadd.f32 %v5461_v29, %v5421_v19  ;;  %v8902_v18 = vld [vmem:[#allocation13 + $0x190] sm:$0xff]  ;;  %v8910_v29 = vadd.f32 %v764_v10, %v380_v39  ;;  %v5583_v19 = vpack.c.bf16 %v8892_v54, %v8884_v30 }
 0x2e8   :  { %v5463_v0 = vpop.f32.mrf.mxu1  ;;  %v8898_v12 = vpop.f32.mrf.mxu0  ;;  %v8928_v39 = vadd.f32 %v767_v4, %v383_v56  ;;  %v376_v30 = vmul.f32 0.999, %v184_v52  ;;  %v8932_v54 = vld [vmem:[#allocation13 + $0x170] sm:$0xff]  ;;  %v5582_v5 = vpack.c.bf16 %v8908_v22, %v8902_v18  ;;  %v8943_v52 = vld [vmem:[#allocation13 + $0x138] sm:$0xff]  ;;  %v759_v22 = vmul.f32 0.001, %v567_v61 }
 0x2e9   :  { %v5549_v34 = vmax.f32 %v5462_v53, 0.0  ;;  %v180_v53 = vld [vmem:[#allocation14 + $0x8] sm:$0xff]  ;;  %v8914_v57 = vpack.c.bf16 %v5548_v35, %v5548_v35  ;;  %2438 = vst [vmem:[#allocation20 + $0x48] sm:$0xff] %v8910_v29  ;;  %v8930_v35 = vld [vmem:[#allocation13 + $0x150] sm:$0xff]  ;;  %v492_v56 = vmul.f32 0.999, %v300_v6 }
 0x2ea   :  { %v5464_v8 = vpop.f32.mrf.mxu1  ;;  %v5545_v28 = vpop.f32.mrf.mxu0  ;;  %v372_v21 = vmul.f32 0.999, %v180_v53  ;;  %12002 = vst [vmem:[#allocation40_spill] sm:$0xff] %v8928_v39  ;;  %v183_v53 = vld [vmem:[#allocation14 + $0x20] sm:$0xff]  ;;  %2441 = vst [vmem:[#allocation20 + $0x60] sm:$0xff] %v8928_v39  ;;  %v5578_v6 = vpack.c.bf16 %v8932_v54, %v8930_v35 }
 0x2eb   :  { %v5553_v0 = vpack.c.bf16 %v5549_v34, %v5549_v34  ;;  %v568_v8 = vld [vmem:[#allocation11 + $0x28] sm:$0xff]  ;;  %v8920_v28 = vld [vmem:[#allocation13 + $0x178] sm:$0xff]  ;;  %v8926_v34 = vadd.f32 %v763_v1, %v379_v36  ;;  %v371_v1 = vmul.f32 0.999, %v179_v41  ;;  %v375_v4 = vmul.f32 0.999, %v183_v53 }
 0x2ec   :  { %v5546_v10 = vpop.f32.mrf.mxu0  ;;  %v760_v40 = vmul.f32 0.001, %v568_v8  ;;  %v8937_v36 = vld [vmem:[#allocation13 + $0x118] sm:$0xff]  ;;  %v8945_v8 = vadd.f32 %v756_v13, %v372_v21  ;;  %v5579_v59 = vpack.c.bf16 %v8920_v28, %v8918_v47  ;;  %v684_v41 = vld [vmem:[#allocation11 + $0x3c8] sm:$0xff]  ;;  %v496_v47 = vmul.f32 0.999, %v304_v50 }
 0x2ed   :  { %12001 = vst [vmem:[#allocation39_spill] sm:$0xff] %v8926_v34  ;;  %5737 = vmatprep.mubr.bf16.mxu0 %v5553_v0  ;;  %v563_v10 = vld [vmem:[#allocation11] sm:$0xff]  ;;  %2437 = vst [vmem:[#allocation20 + $0x40] sm:$0xff] %v8926_v34  ;;  %v688_v53 = vld [vmem:[#allocation11 + $0x3e8] sm:$0xff] }
 0x2ee   :  { %5738 = vmatmul.mubr.bf16.vlgmr.msra.gmra.mxu0 %v8914_v57  ;;  %12003 = vst [vmem:[#allocation41_spill] sm:$0xff] %v8945_v8  ;;  %v8947_v24 = vadd.f32 %v760_v40, %v376_v30  ;;  %v755_v18 = vmul.f32 0.001, %v563_v10  ;;  %2430 = vst [vmem:[#allocation20 + $0x8] sm:$0xff] %v8945_v8  ;;  %v299_v28 = vld [vmem:[#allocation14 + $0x3c0] sm:$0xff]  ;;  %v8965_v30 = vld [vmem:[#allocation13 + $0xd8] sm:$0xff] }
 0x2ef   :  { %5788 = vmatpush1.bf16.msra.mxu0 %v5586_v31  ;;  %5819 = vmatprep.mubr.bf16.mxu0 %v5553_v0  ;;  %v8953_v31 = vld [vmem:[#allocation13 + $0x130] sm:$0xff]  ;;  %v8967_v13 = vld [vmem:[#allocation13 + $0xf8] sm:$0xff]  ;;  %v876_v40 = vmul.f32 0.001, %v684_v41  ;;  %v880_v10 = vmul.f32 0.001, %v688_v53 }
 0x2f0   :  { %12004 = vst [vmem:[#allocation42_spill] sm:$0xff] %v8947_v24  ;;  %5789 = vmatprep.subr.bf16.mxu0 %v5583_v19  ;;  %2434 = vst [vmem:[#allocation20 + $0x28] sm:$0xff] %v8947_v24  ;;  %v8959_v0 = vadd.f32 %v755_v18, %v371_v1  ;;  %v8961_v19 = vadd.f32 %v759_v22, %v375_v4  ;;  %v303_v61 = vld [vmem:[#allocation14 + $0x3e0] sm:$0xff]  ;;  %v5575_v1 = vpack.c.bf16 %v8943_v52, %v8937_v36  ;;  %v292_v18 = vld [vmem:[#allocation14 + $0x388] sm:$0xff] }
 0x2f1   :  { %v491_v35 = vmul.f32 0.999, %v299_v28  ;;  %v495_v54 = vmul.f32 0.999, %v303_v61  ;;  %v687_v4 = vld [vmem:[#allocation11 + $0x3e0] sm:$0xff]  ;;  %v8975_v22 = vld [vmem:[#allocation13 + $0xd0] sm:$0xff]  ;;  %v8981_v53 = vadd.f32 %v880_v10, %v496_v47  ;;  %v5574_v50 = vpack.c.bf16 %v8953_v31, %v8951_v37 }
 0x2f2   :  { %12005 = vst [vmem:[#allocation43_spill] sm:$0xff] %v8959_v0  ;;  %12006 = vst [vmem:[#allocation44_spill] sm:$0xff] %v8961_v19  ;;  %v8977_v41 = vld [vmem:[#allocation13 + $0xf0] sm:$0xff]  ;;  %v875_v36 = vmul.f32 0.001, %v683_v16  ;;  %v296_v21 = vld [vmem:[#allocation14 + $0x3a8] sm:$0xff]  ;;  %v5571_v10 = vpack.c.bf16 %v8967_v13, %v8965_v30 }
 0x2f3   :  { %5790 = vmatpush1.bf16.msra.mxu0 %v5582_v5  ;;  %2429 = vst [vmem:[#allocation20] sm:$0xff] %v8959_v0  ;;  %2433 = vst [vmem:[#allocation20 + $0x20] sm:$0xff] %v8961_v19  ;;  %v8979_v5 = vadd.f32 %v876_v40, %v492_v56  ;;  %v879_v52 = vmul.f32 0.001, %v687_v4  ;;  %v484_v28 = vmul.f32 0.999, %v292_v18  ;;  %v5570_v30 = vpack.c.bf16 %v8977_v41, %v8975_v22 }
 0x2f4   :  { %5791 = vmatprep.subr.bf16.mxu0 %v5579_v59  ;;  %12008 = vst [vmem:[#allocation46_spill] sm:$0xff] %v8981_v53  ;;  %v488_v61 = vmul.f32 0.999, %v296_v21  ;;  %v680_v0 = vld [vmem:[#allocation11 + $0x3a8] sm:$0xff]  ;;  %v8985_v59 = vld [vmem:[#allocation13 + $0x98] sm:$0xff]  ;;  %2554 = vst [vmem:[#allocation20 + $0x3e8] sm:$0xff] %v8981_v53  ;;  %v8993_v56 = vadd.f32 %v875_v36, %v491_v35 }
 0x2f5   :  { %12007 = vst [vmem:[#allocation45_spill] sm:$0xff] %v8979_v5  ;;  %v364_v19 = vld [vmem:[#allocation14 + $0x5c8] sm:$0xff]  ;;  %v8987_v8 = vld [vmem:[#allocation13 + $0xb8] sm:$0xff]  ;;  %2550 = vst [vmem:[#allocation20 + $0x3c8] sm:$0xff] %v8979_v5  ;;  %v8995_v47 = vadd.f32 %v879_v52, %v495_v54  ;;  %v868_v37 = vmul.f32 0.001, %v676_v14 }
 0x2f6   :  { %12009 = vst [vmem:[#allocation47_spill] sm:$0xff] %v8993_v56  ;;  %v368_v31 = vld [vmem:[#allocation14 + $0x5e8] sm:$0xff]  ;;  %v872_v4 = vmul.f32 0.001, %v680_v0  ;;  %v556_v18 = vmul.f32 0.999, %v364_v19  ;;  %v5567_v41 = vpack.c.bf16 %v8987_v8, %v8985_v59 }
 0x2f7   :  { %12010 = vst [vmem:[#allocation48_spill] sm:$0xff] %v8995_v47  ;;  %v748_v21 = vld [vmem:[#allocation11 + $0x5c8] sm:$0xff]  ;;  %5792 = vmatpush1.bf16.msra.mxu0 %v5578_v6  ;;  %v560_v24 = vmul.f32 0.999, %v368_v31  ;;  %2549 = vst [vmem:[#allocation20 + $0x3c0] sm:$0xff] %v8993_v56  ;;  %v9003_v54 = vadd.f32 %v868_v37, %v484_v28  ;;  %v291_v52 = vld [vmem:[#allocation14 + $0x380] sm:$0xff] }
 0x2f8   :  { %v752_v40 = vld [vmem:[#allocation11 + $0x5e8] sm:$0xff]  ;;  %5793 = vmatprep.subr.bf16.mxu0 %v5575_v1  ;;  %2553 = vst [vmem:[#allocation20 + $0x3e0] sm:$0xff] %v8995_v47  ;;  %v940_v14 = vmul.f32 0.001, %v748_v21  ;;  %v295_v6 = vld [vmem:[#allocation14 + $0x3a0] sm:$0xff]  ;;  %v9007_v0 = vld [vmem:[#allocation13 + $0x90] sm:$0xff]  ;;  %v9011_v13 = vadd.f32 %v872_v4, %v488_v61 }
 0x2f9   :  { %12011 = vst [vmem:[#allocation49_spill] sm:$0xff] %v9003_v54  ;;  %v944_v36 = vmul.f32 0.001, %v752_v40  ;;  %v9009_v19 = vld [vmem:[#allocation13 + $0xb0] sm:$0xff]  ;;  %v483_v1 = vmul.f32 0.999, %v291_v52 }
 0x2fa   :  { %12012 = vst [vmem:[#allocation50_spill] sm:$0xff] %v9011_v13  ;;  %v487_v31 = vmul.f32 0.999, %v295_v6  ;;  %v675_v16 = vld [vmem:[#allocation11 + $0x380] sm:$0xff]  ;;  %2542 = vst [vmem:[#allocation20 + $0x388] sm:$0xff] %v9003_v54  ;;  %v9014_v28 = vadd.f32 %v940_v14, %v556_v18  ;;  %v9020_v61 = vld [vmem:[#allocation13 + $0x58] sm:$0xff]  ;;  %v5566_v56 = vpack.c.bf16 %v9009_v19, %v9007_v0 }
 0x2fb   :  { %v679_v5 = vld [vmem:[#allocation11 + $0x3a0] sm:$0xff]  ;;  %v9016_v37 = vadd.f32 %v944_v36, %v560_v24  ;;  %v867_v21 = vmul.f32 0.001, %v675_v16  ;;  %5794 = vmatpush1.bf16.msra.mxu0 %v5574_v50  ;;  %v9022_v4 = vld [vmem:[#allocation13 + $0x78] sm:$0xff]  ;;  %2546 = vst [vmem:[#allocation20 + $0x3a8] sm:$0xff] %v9011_v13  ;;  %v284_v52 = vld [vmem:[#allocation14 + $0x348] sm:$0xff] }
 0x2fc   :  { %12013 = vst [vmem:[#allocation51_spill] sm:$0xff] %v9014_v28  ;;  %v871_v40 = vmul.f32 0.001, %v679_v5  ;;  %v363_v35 = vld [vmem:[#allocation14 + $0x5c0] sm:$0xff]  ;;  %5795 = vmatprep.subr.bf16.mxu0 %v5571_v10  ;;  %2614 = vst [vmem:[#allocation20 + $0x5c8] sm:$0xff] %v9014_v28  ;;  %v288_v6 = vld [vmem:[#allocation14 + $0x368] sm:$0xff] }
 0x2fd   :  { %12014 = vst [vmem:[#allocation52_spill] sm:$0xff] %v9016_v37  ;;  %v367_v22 = vld [vmem:[#allocation14 + $0x5e0] sm:$0xff]  ;;  %v555_v14 = vmul.f32 0.999, %v363_v35  ;;  %2618 = vst [vmem:[#allocation20 + $0x5e8] sm:$0xff] %v9016_v37  ;;  %v9031_v50 = vadd.f32 %v867_v21, %v483_v1  ;;  %v668_v18 = vld [vmem:[#allocation11 + $0x348] sm:$0xff]  ;;  %v5563_v1 = vpack.c.bf16 %v9022_v4, %v9020_v61 }
 0x2fe   :  { %v559_v24 = vmul.f32 0.999, %v367_v22  ;;  %v747_v36 = vld [vmem:[#allocation11 + $0x5c0] sm:$0xff]  ;;  %v9033_v5 = vadd.f32 %v871_v40, %v487_v31  ;;  %v9035_v35 = vld [vmem:[#allocation13 + $0x50] sm:$0xff]  ;;  %v476_v54 = vmul.f32 0.999, %v284_v52 }
 0x2ff   :  { %v751_v16 = vld [vmem:[#allocation11 + $0x5e0] sm:$0xff]  ;;  %12015 = vst [vmem:[#allocation53_spill] sm:$0xff] %v9031_v50  ;;  %v939_v59 = vmul.f32 0.001, %v747_v36  ;;  %v9037_v22 = vld [vmem:[#allocation13 + $0x70] sm:$0xff]  ;;  %2541 = vst [vmem:[#allocation20 + $0x380] sm:$0xff] %v9031_v50  ;;  %5796 = vmatpush1.bf16.msra.mxu0 %v5570_v30 }
 0x300   :  { %12016 = vst [vmem:[#allocation54_spill] sm:$0xff] %v9033_v5  ;;  %v943_v10 = vmul.f32 0.001, %v751_v16  ;;  %v480_v13 = vmul.f32 0.999, %v288_v6  ;;  %2545 = vst [vmem:[#allocation20 + $0x3a0] sm:$0xff] %v9033_v5  ;;  %5797 = vmatprep.subr.bf16.mxu0 %v5567_v41 }
 0x301   :  { %v9045_v31 = vadd.f32 %v939_v59, %v555_v14  ;;  %v672_v21 = vld [vmem:[#allocation11 + $0x368] sm:$0xff]  ;;  %v860_v40 = vmul.f32 0.001, %v668_v18  ;;  %v9047_v16 = vld [vmem:[#allocation13 + $0x18] sm:$0xff]  ;;  %v283_v30 = vld [vmem:[#allocation14 + $0x340] sm:$0xff] }
 0x302   :  { %v356_v36 = vld [vmem:[#allocation14 + $0x588] sm:$0xff]  ;;  %v9049_v52 = vld [vmem:[#allocation13 + $0x38] sm:$0xff]  ;;  %v9051_v6 = vadd.f32 %v943_v10, %v559_v24  ;;  %v864_v0 = vmul.f32 0.001, %v672_v21  ;;  %v9058_v37 = vld [vmem:[#allocation13 + $0x10] sm:$0xff] }
 0x303   :  { %12017 = vst [vmem:[#allocation55_spill] sm:$0xff] %v9045_v31  ;;  %v360_v8 = vld [vmem:[#allocation14 + $0x5a8] sm:$0xff]  ;;  %v548_v19 = vmul.f32 0.999, %v356_v36  ;;  %2613 = vst [vmem:[#allocation20 + $0x5c0] sm:$0xff] %v9045_v31  ;;  %v9056_v14 = vadd.f32 %v860_v40, %v476_v54  ;;  %v9060_v50 = vld [vmem:[#allocation13 + $0x30] sm:$0xff]  ;;  %v5562_v54 = vpack.c.bf16 %v9037_v22, %v9035_v35  ;;  %5798 = vmatpush1.bf16.msra.mxu0 %v5566_v56 }
 0x304   :  { %12018 = vst [vmem:[#allocation56_spill] sm:$0xff] %v9051_v6  ;;  %v552_v28 = vmul.f32 0.999, %v360_v8  ;;  %v740_v18 = vld [vmem:[#allocation11 + $0x588] sm:$0xff]  ;;  %2617 = vst [vmem:[#allocation20 + $0x5e0] sm:$0xff] %v9051_v6  ;;  %v9065_v41 = vadd.f32 %v864_v0, %v480_v13  ;;  %v287_v4 = vld [vmem:[#allocation14 + $0x360] sm:$0xff]  ;;  %5799 = vmatprep.subr.bf16.mxu0 %v5563_v1  ;;  %v5559_v56 = vpack.c.bf16 %v9049_v52, %v9047_v16 }
 0x305   :  { %12019 = vst [vmem:[#allocation57_spill] sm:$0xff] %v9056_v14  ;;  %v744_v59 = vld [vmem:[#allocation11 + $0x5a8] sm:$0xff]  ;;  %v932_v8 = vmul.f32 0.001, %v740_v18  ;;  %v667_v10 = vld [vmem:[#allocation11 + $0x340] sm:$0xff]  ;;  %2534 = vst [vmem:[#allocation20 + $0x348] sm:$0xff] %v9056_v14 }
 0x306   :  { %12020 = vst [vmem:[#allocation58_spill] sm:$0xff] %v9065_v41  ;;  %v936_v61 = vmul.f32 0.001, %v744_v59  ;;  %v475_v21 = vmul.f32 0.999, %v283_v30  ;;  %v671_v36 = vld [vmem:[#allocation11 + $0x360] sm:$0xff] }
 0x307   :  { %v479_v40 = vmul.f32 0.999, %v287_v4  ;;  %v355_v5 = vld [vmem:[#allocation14 + $0x580] sm:$0xff]  ;;  %v9070_v47 = vld [vmem:[#allocation13 + $0x3d8] sm:$0xff]  ;;  %2538 = vst [vmem:[#allocation20 + $0x368] sm:$0xff] %v9065_v41  ;;  %v9077_v0 = vadd.f32 %v932_v8, %v548_v19  ;;  %v9083_v6 = vld [vmem:[#allocation13 + $0x3d0] sm:$0xff]  ;;  %5800 = vmatpush1.bf16.msra.mxu0 %v5562_v54 }
 0x308   :  { %v9072_v53 = vld [vmem:[#allocation13 + $0x3f8] sm:$0xff]  ;;  %v9079_v18 = vadd.f32 %v936_v61, %v552_v28  ;;  %v859_v35 = vmul.f32 0.001, %v667_v10  ;;  %v359_v22 = vld [vmem:[#allocation14 + $0x5a0] sm:$0xff]  ;;  %v863_v4 = vmul.f32 0.001, %v671_v36  ;;  %5801 = vmatprep.subr.bf16.mxu0 %v5559_v56 }
 0x309   :  { %12021 = vst [vmem:[#allocation59_spill] sm:$0xff] %v9077_v0  ;;  %v739_v59 = vld [vmem:[#allocation11 + $0x580] sm:$0xff]  ;;  %v547_v24 = vmul.f32 0.999, %v355_v5  ;;  %v551_v31 = vmul.f32 0.999, %v359_v22  ;;  %v5558_v5 = vpack.c.bf16 %v9060_v50, %v9058_v37 }
 0x30a   :  { %12022 = vst [vmem:[#allocation60_spill] sm:$0xff] %v9079_v18  ;;  %v743_v30 = vld [vmem:[#allocation11 + $0x5a0] sm:$0xff]  ;;  %v9085_v34 = vld [vmem:[#allocation13 + $0x3f0] sm:$0xff]  ;;  %2606 = vst [vmem:[#allocation20 + $0x588] sm:$0xff] %v9077_v0  ;;  %v9091_v19 = vadd.f32 %v859_v35, %v475_v21  ;;  %v931_v1 = vmul.f32 0.001, %v739_v59  ;;  %v9099_v36 = vadd.f32 %v863_v4, %v479_v40  ;;  %v5619_v40 = vpack.c.bf16 %v9072_v53, %v9070_v47 }
 0x30b   :  { %2610 = vst [vmem:[#allocation20 + $0x5a8] sm:$0xff] %v9079_v18  ;;  %v935_v8 = vmul.f32 0.001, %v743_v30  ;;  %v276_v61 = vld [vmem:[#allocation14 + $0x308] sm:$0xff]  ;;  %v9095_v52 = vld [vmem:[#allocation13 + $0x398] sm:$0xff]  ;;  %v275_v47 = vld [vmem:[#allocation14 + $0x300] sm:$0xff]  ;;  %5802 = vmatpush1.bf16.msra.mxu0 %v5558_v5 }
 0x30c   :  { %12023 = vst [vmem:[#allocation61_spill] sm:$0xff] %v9091_v19  ;;  %v280_v16 = vld [vmem:[#allocation14 + $0x328] sm:$0xff]  ;;  %v9097_v10 = vld [vmem:[#allocation13 + $0x3b8] sm:$0xff]  ;;  %12024 = vst [vmem:[#allocation62_spill] sm:$0xff] %v9099_v36  ;;  %v468_v22 = vmul.f32 0.999, %v276_v61  ;;  %v9102_v21 = vadd.f32 %v931_v1, %v547_v24  ;;  %5803 = vmatprep.subr.bf16.mxu0 %v5619_v40 }
 0x30d   :  { %v472_v13 = vmul.f32 0.999, %v280_v16  ;;  %v660_v14 = vld [vmem:[#allocation11 + $0x308] sm:$0xff]  ;;  %2533 = vst [vmem:[#allocation20 + $0x340] sm:$0xff] %v9091_v19  ;;  %v9104_v35 = vadd.f32 %v935_v8, %v551_v31  ;;  %2537 = vst [vmem:[#allocation20 + $0x360] sm:$0xff] %v9099_v36  ;;  %v279_v56 = vld [vmem:[#allocation14 + $0x320] sm:$0xff]  ;;  %v5618_v8 = vpack.c.bf16 %v9085_v34, %v9083_v6 }
 0x30e   :  { %v664_v41 = vld [vmem:[#allocation11 + $0x328] sm:$0xff]  ;;  %12025 = vst [vmem:[#allocation63_spill] sm:$0xff] %v9102_v21  ;;  %v852_v59 = vmul.f32 0.001, %v660_v14  ;;  %2605 = vst [vmem:[#allocation20 + $0x580] sm:$0xff] %v9102_v21  ;;  %v659_v1 = vld [vmem:[#allocation11 + $0x300] sm:$0xff] }
 0x30f   :  { %12026 = vst [vmem:[#allocation64_spill] sm:$0xff] %v9104_v35  ;;  %v856_v30 = vmul.f32 0.001, %v664_v41  ;;  %v348_v37 = vld [vmem:[#allocation14 + $0x548] sm:$0xff]  ;;  %2609 = vst [vmem:[#allocation20 + $0x5a0] sm:$0xff] %v9104_v35  ;;  %v9125_v28 = vld [vmem:[#allocation13 + $0x358] sm:$0xff]  ;;  %5804 = vmatpush2.bf16.msra.mxu0 %v5618_v8 }
 0x310   :  { %v352_v50 = vld [vmem:[#allocation14 + $0x568] sm:$0xff]  ;;  %v540_v54 = vmul.f32 0.999, %v348_v37  ;;  %v9115_v14 = vadd.f32 %v852_v59, %v468_v22  ;;  %v9121_v37 = vld [vmem:[#allocation13 + $0x390] sm:$0xff]  ;;  %v9127_v4 = vld [vmem:[#allocation13 + $0x378] sm:$0xff] }
 0x311   :  { %v544_v61 = vmul.f32 0.999, %v352_v50  ;;  %v732_v16 = vld [vmem:[#allocation11 + $0x548] sm:$0xff]  ;;  %v9117_v41 = vadd.f32 %v856_v30, %v472_v13  ;;  %v9123_v50 = vld [vmem:[#allocation13 + $0x3b0] sm:$0xff]  ;;  %v467_v22 = vmul.f32 0.999, %v275_v47  ;;  %v5615_v13 = vpack.c.bf16 %v9097_v10, %v9095_v52 }
 0x312   :  { %v736_v24 = vld [vmem:[#allocation11 + $0x568] sm:$0xff]  ;;  %12027 = vst [vmem:[#allocation65_spill] sm:$0xff] %v9115_v14  ;;  %v924_v53 = vmul.f32 0.001, %v732_v16  ;;  %v471_v59 = vmul.f32 0.999, %v279_v56 }
 0x313   :  { %12028 = vst [vmem:[#allocation66_spill] sm:$0xff] %v9117_v41  ;;  %v928_v31 = vmul.f32 0.001, %v736_v24  ;;  %2526 = vst [vmem:[#allocation20 + $0x308] sm:$0xff] %v9115_v14  ;;  %v663_v30 = vld [vmem:[#allocation11 + $0x320] sm:$0xff]  ;;  %v9137_v24 = vld [vmem:[#allocation13 + $0x350] sm:$0xff]  ;;  %5805 = vmatprep.subr.bf16.mxu0 %v5615_v13 }
 0x314   :  { %2530 = vst [vmem:[#allocation20 + $0x328] sm:$0xff] %v9117_v41  ;;  %v9135_v6 = vadd.f32 %v924_v53, %v540_v54  ;;  %v851_v16 = vmul.f32 0.001, %v659_v1  ;;  %v347_v21 = vld [vmem:[#allocation14 + $0x540] sm:$0xff]  ;;  %v9139_v5 = vld [vmem:[#allocation13 + $0x370] sm:$0xff]  ;;  %v268_v34 = vld [vmem:[#allocation14 + $0x2c8] sm:$0xff] }
 0x315   :  { %v351_v35 = vld [vmem:[#allocation14 + $0x560] sm:$0xff]  ;;  %v9141_v47 = vadd.f32 %v928_v31, %v544_v61  ;;  %v855_v52 = vmul.f32 0.001, %v663_v30  ;;  %v539_v10 = vmul.f32 0.999, %v347_v21  ;;  %v9146_v1 = vld [vmem:[#allocation13 + $0x318] sm:$0xff] }
 0x316   :  { %12029 = vst [vmem:[#allocation67_spill] sm:$0xff] %v9135_v6  ;;  %v543_v56 = vmul.f32 0.999, %v351_v35  ;;  %2598 = vst [vmem:[#allocation20 + $0x548] sm:$0xff] %v9135_v6  ;;  %v9144_v0 = vadd.f32 %v851_v16, %v467_v22  ;;  %v731_v54 = vld [vmem:[#allocation11 + $0x540] sm:$0xff]  ;;  %v9148_v18 = vld [vmem:[#allocation13 + $0x338] sm:$0xff]  ;;  %v5614_v22 = vpack.c.bf16 %v9123_v50, %v9121_v37  ;;  %v5611_v16 = vpack.c.bf16 %v9127_v4, %v9125_v28 }
 0x317   :  { %12030 = vst [vmem:[#allocation68_spill] sm:$0xff] %v9141_v47  ;;  %v735_v53 = vld [vmem:[#allocation11 + $0x560] sm:$0xff]  ;;  %2602 = vst [vmem:[#allocation20 + $0x568] sm:$0xff] %v9141_v47  ;;  %v9153_v61 = vadd.f32 %v855_v52, %v471_v59  ;;  %v923_v21 = vmul.f32 0.001, %v731_v54  ;;  %v272_v31 = vld [vmem:[#allocation14 + $0x2e8] sm:$0xff]  ;;  %v5610_v4 = vpack.c.bf16 %v9139_v5, %v9137_v24 }
 0x318   :  { %12031 = vst [vmem:[#allocation69_spill] sm:$0xff] %v9144_v0  ;;  %v927_v35 = vmul.f32 0.001, %v735_v53  ;;  %v652_v30 = vld [vmem:[#allocation11 + $0x2c8] sm:$0xff]  ;;  %2525 = vst [vmem:[#allocation20 + $0x300] sm:$0xff] %v9144_v0  ;;  %v9169_v13 = vld [vmem:[#allocation13 + $0x310] sm:$0xff]  ;;  %5806 = vmatpush2.bf16.msra.mxu0 %v5614_v22 }
 0x319   :  { %12032 = vst [vmem:[#allocation70_spill] sm:$0xff] %v9153_v61  ;;  %v460_v14 = vmul.f32 0.999, %v268_v34  ;;  %v464_v41 = vmul.f32 0.999, %v272_v31  ;;  %v656_v19 = vld [vmem:[#allocation11 + $0x2e8] sm:$0xff]  ;;  %v9163_v52 = vadd.f32 %v923_v21, %v539_v10  ;;  %5807 = vmatprep.subr.bf16.mxu0 %v5611_v16 }
 0x31a   :  { %v340_v36 = vld [vmem:[#allocation14 + $0x508] sm:$0xff]  ;;  %2529 = vst [vmem:[#allocation20 + $0x320] sm:$0xff] %v9153_v61  ;;  %v9165_v8 = vadd.f32 %v927_v35, %v543_v56  ;;  %v844_v37 = vmul.f32 0.001, %v652_v30  ;;  %v848_v34 = vmul.f32 0.001, %v656_v19  ;;  %v5607_v19 = vpack.c.bf16 %v9148_v18, %v9146_v1 }
 0x31b   :  { %12033 = vst [vmem:[#allocation71_spill] sm:$0xff] %v9163_v52  ;;  %v344_v50 = vld [vmem:[#allocation14 + $0x528] sm:$0xff]  ;;  %v532_v53 = vmul.f32 0.999, %v340_v36  ;;  %v9171_v40 = vld [vmem:[#allocation13 + $0x330] sm:$0xff]  ;;  %2597 = vst [vmem:[#allocation20 + $0x540] sm:$0xff] %v9163_v52 }
 0x31c   :  { %12034 = vst [vmem:[#allocation72_spill] sm:$0xff] %v9165_v8  ;;  %v724_v54 = vld [vmem:[#allocation11 + $0x508] sm:$0xff]  ;;  %v536_v31 = vmul.f32 0.999, %v344_v50  ;;  %2601 = vst [vmem:[#allocation20 + $0x560] sm:$0xff] %v9165_v8  ;;  %v9177_v56 = vadd.f32 %v844_v37, %v460_v14  ;;  %v267_v30 = vld [vmem:[#allocation14 + $0x2c0] sm:$0xff]  ;;  %v9185_v50 = vadd.f32 %v848_v34, %v464_v41  ;;  %5808 = vmatpush2.bf16.msra.mxu0 %v5610_v4 }
 0x31d   :  { %v728_v28 = vld [vmem:[#allocation11 + $0x528] sm:$0xff]  ;;  %v916_v21 = vmul.f32 0.001, %v724_v54  ;;  %v271_v24 = vld [vmem:[#allocation14 + $0x2e0] sm:$0xff]  ;;  %v9181_v36 = vld [vmem:[#allocation13 + $0x2d8] sm:$0xff]  ;;  %5809 = vmatprep.subr.bf16.mxu0 %v5607_v19 }
 0x31e   :  { %12035 = vst [vmem:[#allocation73_spill] sm:$0xff] %v9177_v56  ;;  %v920_v35 = vmul.f32 0.001, %v728_v28  ;;  %v9183_v5 = vld [vmem:[#allocation13 + $0x2f8] sm:$0xff]  ;;  %12036 = vst [vmem:[#allocation74_spill] sm:$0xff] %v9185_v50  ;;  %v651_v47 = vld [vmem:[#allocation11 + $0x2c0] sm:$0xff] }
 0x31f   :  { %v459_v59 = vmul.f32 0.999, %v267_v30  ;;  %v463_v6 = vmul.f32 0.999, %v271_v24  ;;  %v655_v10 = vld [vmem:[#allocation11 + $0x2e0] sm:$0xff]  ;;  %2518 = vst [vmem:[#allocation20 + $0x2c8] sm:$0xff] %v9177_v56  ;;  %v9188_v14 = vadd.f32 %v916_v21, %v532_v53 }
 0x320   :  { %v9190_v37 = vadd.f32 %v920_v35, %v536_v31  ;;  %v843_v22 = vmul.f32 0.001, %v651_v47  ;;  %v847_v54 = vmul.f32 0.001, %v655_v10  ;;  %v339_v18 = vld [vmem:[#allocation14 + $0x500] sm:$0xff]  ;;  %v9192_v28 = vld [vmem:[#allocation13 + $0x2d0] sm:$0xff] }
 0x321   :  { %12037 = vst [vmem:[#allocation75_spill] sm:$0xff] %v9188_v14  ;;  %v343_v1 = vld [vmem:[#allocation14 + $0x520] sm:$0xff]  ;;  %v9194_v52 = vld [vmem:[#allocation13 + $0x2f0] sm:$0xff]  ;;  %v9196_v41 = vld [vmem:[#allocation13 + $0x298] sm:$0xff]  ;;  %v531_v53 = vmul.f32 0.999, %v339_v18  ;;  %v5606_v18 = vpack.c.bf16 %v9171_v40, %v9169_v13 }
 0x322   :  { %12038 = vst [vmem:[#allocation76_spill] sm:$0xff] %v9190_v37  ;;  %v9198_v34 = vld [vmem:[#allocation13 + $0x2b8] sm:$0xff]  ;;  %2522 = vst [vmem:[#allocation20 + $0x2e8] sm:$0xff] %v9185_v50  ;;  %v535_v31 = vmul.f32 0.999, %v343_v1  ;;  %v723_v21 = vld [vmem:[#allocation11 + $0x500] sm:$0xff]  ;;  %v9207_v35 = vadd.f32 %v843_v22, %v459_v59  ;;  %v9209_v30 = vadd.f32 %v847_v54, %v463_v6  ;;  %v5603_v6 = vpack.c.bf16 %v9183_v5, %v9181_v36 }
 0x323   :  { %v727_v47 = vld [vmem:[#allocation11 + $0x520] sm:$0xff]  ;;  %2590 = vst [vmem:[#allocation20 + $0x508] sm:$0xff] %v9188_v14  ;;  %2594 = vst [vmem:[#allocation20 + $0x528] sm:$0xff] %v9190_v37  ;;  %v915_v24 = vmul.f32 0.001, %v723_v21  ;;  %v260_v8 = vld [vmem:[#allocation14 + $0x288] sm:$0xff]  ;;  %5810 = vmatpush2.bf16.msra.mxu0 %v5606_v18 }
 0x324   :  { %12039 = vst [vmem:[#allocation77_spill] sm:$0xff] %v9207_v35  ;;  %v264_v0 = vld [vmem:[#allocation14 + $0x2a8] sm:$0xff]  ;;  %v9213_v1 = vld [vmem:[#allocation13 + $0x290] sm:$0xff]  ;;  %v919_v56 = vmul.f32 0.001, %v727_v47  ;;  %2517 = vst [vmem:[#allocation20 + $0x2c0] sm:$0xff] %v9207_v35  ;;  %v5602_v47 = vpack.c.bf16 %v9194_v52, %v9192_v28  ;;  %5811 = vmatprep.subr.bf16.mxu0 %v5603_v6 }
 0x325   :  { %v644_v61 = vld [vmem:[#allocation11 + $0x288] sm:$0xff]  ;;  %v9215_v16 = vld [vmem:[#allocation13 + $0x2b0] sm:$0xff]  ;;  %v452_v50 = vmul.f32 0.999, %v260_v8  ;;  %v456_v39 = vmul.f32 0.999, %v264_v0  ;;  %v9223_v4 = vadd.f32 %v915_v24, %v531_v53  ;;  %v5599_v53 = vpack.c.bf16 %v9198_v34, %v9196_v41 }
 0x326   :  { %2521 = vst [vmem:[#allocation20 + $0x2e0] sm:$0xff] %v9209_v30  ;;  %v648_v40 = vld [vmem:[#allocation11 + $0x2a8] sm:$0xff]  ;;  %v836_v13 = vmul.f32 0.001, %v644_v61  ;;  %v9225_v21 = vld [vmem:[#allocation13 + $0x258] sm:$0xff]  ;;  %v9229_v8 = vadd.f32 %v919_v56, %v535_v31  ;;  %v259_v59 = vld [vmem:[#allocation14 + $0x280] sm:$0xff] }
 0x327   :  { %12040 = vst [vmem:[#allocation78_spill] sm:$0xff] %v9223_v4  ;;  %v332_v22 = vld [vmem:[#allocation14 + $0x4c8] sm:$0xff]  ;;  %v9227_v0 = vld [vmem:[#allocation13 + $0x278] sm:$0xff]  ;;  %v840_v19 = vmul.f32 0.001, %v648_v40  ;;  %2589 = vst [vmem:[#allocation20 + $0x500] sm:$0xff] %v9223_v4  ;;  %v5598_v40 = vpack.c.bf16 %v9215_v16, %v9213_v1  ;;  %5812 = vmatpush2.bf16.msra.mxu0 %v5602_v47 }
 0x328   :  { %v336_v54 = vld [vmem:[#allocation14 + $0x4e8] sm:$0xff]  ;;  %12041 = vst [vmem:[#allocation79_spill] sm:$0xff] %v9229_v8  ;;  %v524_v36 = vmul.f32 0.999, %v332_v22  ;;  %v9236_v61 = vadd.f32 %v836_v13, %v452_v50  ;;  %v9238_v14 = vld [vmem:[#allocation13 + $0x250] sm:$0xff]  ;;  %2593 = vst [vmem:[#allocation20 + $0x520] sm:$0xff] %v9229_v8  ;;  %v5595_v13 = vpack.c.bf16 %v9227_v0, %v9225_v21  ;;  %5813 = vmatprep.subr.bf16.mxu0 %v5599_v53 }
 0x329   :  { %v528_v5 = vmul.f32 0.999, %v336_v54  ;;  %v716_v24 = vld [vmem:[#allocation11 + $0x4c8] sm:$0xff]  ;;  %v9240_v56 = vld [vmem:[#allocation13 + $0x270] sm:$0xff]  ;;  %v9245_v28 = vadd.f32 %v840_v19, %v456_v39  ;;  %v263_v31 = vld [vmem:[#allocation14 + $0x2a0] sm:$0xff] }
 0x32a   :  { %12042 = vst [vmem:[#allocation80_spill] sm:$0xff] %v9236_v61  ;;  %v720_v10 = vld [vmem:[#allocation11 + $0x4e8] sm:$0xff]  ;;  %v908_v41 = vmul.f32 0.001, %v716_v24  ;;  %v643_v50 = vld [vmem:[#allocation11 + $0x280] sm:$0xff]  ;;  %2510 = vst [vmem:[#allocation20 + $0x288] sm:$0xff] %v9236_v61  ;;  %v5594_v47 = vpack.c.bf16 %v9240_v56, %v9238_v14 }
 0x32b   :  { %12043 = vst [vmem:[#allocation81_spill] sm:$0xff] %v9245_v28  ;;  %v912_v34 = vmul.f32 0.001, %v720_v10  ;;  %v9252_v18 = vld [vmem:[%s11830_s8] sm:$0xf]  ;;  %v647_v54 = vld [vmem:[#allocation11 + $0x2a0] sm:$0xff]  ;;  %5814 = vmatpush2.bf16.msra.mxu0 %v5598_v40 }
 0x32c   :  { %v451_v39 = vmul.f32 0.999, %v259_v59  ;;  %v455_v22 = vmul.f32 0.999, %v263_v31  ;;  %v331_v10 = vld [vmem:[#allocation14 + $0x4c0] sm:$0xff]  ;;  %2514 = vst [vmem:[#allocation20 + $0x2a8] sm:$0xff] %v9245_v28  ;;  %v9260_v16 = vadd.f32 %v908_v41, %v524_v36  ;;  %v5379_v56 = vrot.slane %v9252_v18, %v8735_v60  ;;  %5815 = vmatprep.subr.bf16.mxu0 %v5595_v13 }
 0x32d   :  { %v9262_v1 = vadd.f32 %v912_v34, %v528_v5  ;;  %v835_v19 = vmul.f32 0.001, %v643_v50  ;;  %v335_v24 = vld [vmem:[#allocation14 + $0x4e0] sm:$0xff]  ;;  %v839_v59 = vmul.f32 0.001, %v647_v54  ;;  %v9266_v37 = vld [vmem:[#allocation13 + $0x218] sm:$0xff]  ;;  %v12049_v28 = vrot.slane %v9252_v18, %v8732_v58 }
 0x32e   :  { %12044 = vst [vmem:[#allocation82_spill] sm:$0xff] %v9260_v16  ;;  %v715_v52 = vld [vmem:[#allocation11 + $0x4c0] sm:$0xff]  ;;  %v523_v31 = vmul.f32 0.999, %v331_v10  ;;  %v527_v8 = vmul.f32 0.999, %v335_v24 }
 0x32f   :  { %12045 = vst [vmem:[#allocation83_spill] sm:$0xff] %v9262_v1  ;;  %v719_v4 = vld [vmem:[#allocation11 + $0x4e0] sm:$0xff]  ;;  %v9268_v35 = vld [vmem:[#allocation13 + $0x238] sm:$0xff]  ;;  %2582 = vst [vmem:[#allocation20 + $0x4c8] sm:$0xff] %v9260_v16  ;;  %v9274_v5 = vadd.f32 %v835_v19, %v451_v39  ;;  %v907_v41 = vmul.f32 0.001, %v715_v52  ;;  %v9282_v10 = vadd.f32 %v839_v59, %v455_v22  ;;  %5816 = vmatpush2.bf16.msra.mxu0 %v5594_v47 }
 0x330   :  { %2586 = vst [vmem:[#allocation20 + $0x4e8] sm:$0xff] %v9262_v1  ;;  %v911_v34 = vmul.f32 0.001, %v719_v4  ;;  %v252_v21 = vld [vmem:[#allocation14 + $0x248] sm:$0xff]  ;;  %v9278_v50 = vld [vmem:[#allocation13 + $0x210] sm:$0xff]  ;;  %v251_v60 = vld [vmem:[#allocation14 + $0x240] sm:$0xff]  ;;  %v5591_v40 = vpack.c.bf16 %v9268_v35, %v9266_v37 }
 0x331   :  { %12046 = vst [vmem:[#allocation84_spill] sm:$0xff] %v9274_v5  ;;  %v256_v0 = vld [vmem:[#allocation14 + $0x268] sm:$0xff]  ;;  %v9280_v54 = vld [vmem:[#allocation13 + $0x230] sm:$0xff]  ;;  %12047 = vst [vmem:[#allocation85_spill] sm:$0xff] %v9282_v10  ;;  %v444_v24 = vmul.f32 0.999, %v252_v21  ;;  %v9285_v52 = vadd.f32 %v907_v41, %v523_v31 }
 0x332   :  { %v448_v6 = vmul.f32 0.999, %v256_v0  ;;  %v636_v61 = vld [vmem:[#allocation11 + $0x248] sm:$0xff]  ;;  %2509 = vst [vmem:[#allocation20 + $0x280] sm:$0xff] %v9274_v5  ;;  %v9287_v4 = vadd.f32 %v911_v34, %v527_v8  ;;  %v9291_v16 = vld [vmem:[#allocation13 + $0x5d0] sm:$0xff]  ;;  %2513 = vst [vmem:[#allocation20 + $0x2a0] sm:$0xff] %v9282_v10  ;;  %5817 = vmatprep.subr.bf16.mxu0 %v5591_v40 }
 0x333   :  { %v640_v36 = vld [vmem:[#allocation11 + $0x268] sm:$0xff]  ;;  %12048 = vst [vmem:[#allocation86_spill] sm:$0xff] %v9285_v52  ;;  %v828_v53 = vmul.f32 0.001, %v636_v61  ;;  %v9293_v22 = vld [vmem:[#allocation13 + $0x5f0] sm:$0xff]  ;;  %2581 = vst [vmem:[#allocation20 + $0x4c0] sm:$0xff] %v9285_v52 }
 0x334   :  { %v832_v39 = vmul.f32 0.001, %v640_v36  ;;  %v324_v19 = vld [vmem:[#allocation14 + $0x488] sm:$0xff]  ;;  %2585 = vst [vmem:[#allocation20 + $0x4e0] sm:$0xff] %v9287_v4  ;;  %v255_v1 = vld [vmem:[#allocation14 + $0x260] sm:$0xff] }
 0x335   :  { %v328_v14 = vld [vmem:[#allocation14 + $0x4a8] sm:$0xff]  ;;  %v516_v31 = vmul.f32 0.999, %v324_v19  ;;  %v9302_v36 = vadd.f32 %v828_v53, %v444_v24  ;;  %v635_v59 = vld [vmem:[#allocation11 + $0x240] sm:$0xff]  ;;  %v5500_v19 = vpop.f32.mrf.mxu1  ;;  %v443_v5 = vmul.f32 0.999, %v251_v60 }
 0x336   :  { %v520_v41 = vmul.f32 0.999, %v328_v14  ;;  %v708_v8 = vld [vmem:[#allocation11 + $0x488] sm:$0xff]  ;;  %v9304_v21 = vadd.f32 %v832_v39, %v448_v6  ;;  %v447_v10 = vmul.f32 0.999, %v255_v1  ;;  %v5501_v61 = vadd.f32 %v5500_v19, %v12049_v28  ;;  %v9313_v24 = vld [vmem:[#allocation13 + $0x598] sm:$0xff] }
 0x337   :  { %v712_v34 = vld [vmem:[#allocation11 + $0x4a8] sm:$0xff]  ;;  %v900_v0 = vmul.f32 0.001, %v708_v8  ;;  %v5590_v6 = vpack.c.bf16 %v9280_v54, %v9278_v50  ;;  %v9315_v53 = vld [vmem:[#allocation13 + $0x5b8] sm:$0xff]  ;;  %2502 = vst [vmem:[#allocation20 + $0x248] sm:$0xff] %v9302_v36  ;;  %v639_v37 = vld [vmem:[#allocation11 + $0x260] sm:$0xff]  ;;  %v5502_v39 = vpop.f32.mrf.mxu1 }
 0x338   :  { %v904_v14 = vmul.f32 0.001, %v712_v34  ;;  %2506 = vst [vmem:[#allocation20 + $0x268] sm:$0xff] %v9304_v21  ;;  %v827_v60 = vmul.f32 0.001, %v635_v59  ;;  %v323_v35 = vld [vmem:[#allocation14 + $0x480] sm:$0xff]  ;;  %v5542_v54 = vadd.f32 %v8886_v23, %v5501_v61  ;;  %v5503_v34 = vadd.f32 %v5502_v39, %v5379_v56 }
 0x339   :  { %v9319_v13 = vadd.f32 %v900_v0, %v516_v31  ;;  %v327_v1 = vld [vmem:[#allocation14 + $0x4a0] sm:$0xff]  ;;  %v831_v28 = vmul.f32 0.001, %v639_v37  ;;  %v515_v8 = vmul.f32 0.999, %v323_v35  ;;  %v244_v58 = vld [vmem:[#allocation14 + $0x208] sm:$0xff]  ;;  %v5504_v52 = vpop.f32.mrf.mxu1  ;;  %5818 = vmatpush2.bf16.msra.mxu0 %v5590_v6 }
 0x33a   :  { %v9321_v18 = vadd.f32 %v904_v14, %v520_v41  ;;  %v519_v50 = vmul.f32 0.999, %v327_v1  ;;  %v9327_v31 = vadd.f32 %v827_v60, %v443_v5  ;;  %v707_v59 = vld [vmem:[#allocation11 + $0x480] sm:$0xff]  ;;  %v248_v61 = vld [vmem:[#allocation14 + $0x228] sm:$0xff]  ;;  %v5550_v37 = vmax.f32 %v5542_v54, 0.0  ;;  %v9345_v41 = vld [vmem:[#allocation13 + $0x590] sm:$0xff] }
 0x33b   :  { %12050 = vst [vmem:[#allocation87_spill] sm:$0xff] %v9319_v13  ;;  %2574 = vst [vmem:[#allocation20 + $0x488] sm:$0xff] %v9319_v13  ;;  %v711_v0 = vld [vmem:[#allocation11 + $0x4a0] sm:$0xff]  ;;  %v9332_v23 = vadd.f32 %v831_v28, %v447_v10  ;;  %v899_v47 = vmul.f32 0.001, %v707_v59  ;;  %v628_v14 = vld [vmem:[#allocation11 + $0x208] sm:$0xff]  ;;  %v5544_v5 = vadd.f32 %v8898_v12, %v5503_v34  ;;  %v5505_v40 = vpop.f32.mrf.mxu1 }
 0x33c   :  { %2578 = vst [vmem:[#allocation20 + $0x4a8] sm:$0xff] %v9321_v18  ;;  %v903_v56 = vmul.f32 0.001, %v711_v0  ;;  %2501 = vst [vmem:[#allocation20 + $0x240] sm:$0xff] %v9327_v31  ;;  %v436_v60 = vmul.f32 0.999, %v244_v58  ;;  %v9343_v12 = vpack.c.bf16 %v5550_v37, %v5550_v37  ;;  %5820 = vmatmul.mubr.bf16.vlgmr.msra.gmra.mxu0 %v8914_v57 }
 0x33d   :  { %v440_v35 = vmul.f32 0.999, %v248_v61  ;;  %v632_v52 = vld [vmem:[#allocation11 + $0x228] sm:$0xff]  ;;  %2505 = vst [vmem:[#allocation20 + $0x260] sm:$0xff] %v9332_v23  ;;  %v9339_v10 = vadd.f32 %v899_v47, %v515_v8  ;;  %v820_v28 = vmul.f32 0.001, %v628_v14  ;;  %v12051_v8 = vpack.c.bf16 %v8787_v27, %v8785_v26 }
 0x33e   :  { %v9341_v39 = vadd.f32 %v903_v56, %v519_v50  ;;  %v316_v59 = vld [vmem:[#allocation14 + $0x448] sm:$0xff]  ;;  %v5551_v34 = vmax.f32 %v5544_v5, 0.0  ;;  %v824_v58 = vmul.f32 0.001, %v632_v52  ;;  %v9347_v1 = vld [vmem:[#allocation13 + $0x5b0] sm:$0xff]  ;;  %v243_v14 = vld [vmem:[#allocation14 + $0x200] sm:$0xff] }
 0x33f   :  { %v320_v54 = vld [vmem:[#allocation14 + $0x468] sm:$0xff]  ;;  %v508_v61 = vmul.f32 0.999, %v316_v59  ;;  %6062 = vmatprep.subr.bf16.mxu0 %v12051_v8  ;;  %2573 = vst [vmem:[#allocation20 + $0x480] sm:$0xff] %v9339_v10  ;;  %v9356_v47 = vadd.f32 %v820_v28, %v436_v60  ;;  %v247_v37 = vld [vmem:[#allocation14 + $0x220] sm:$0xff]  ;;  %v9358_v52 = vld [vmem:[#allocation13 + $0x558] sm:$0xff] }
 0x340   :  { %v700_v0 = vld [vmem:[#allocation11 + $0x448] sm:$0xff]  ;;  %2577 = vst [vmem:[#allocation20 + $0x4a0] sm:$0xff] %v9341_v39  ;;  %v512_v6 = vmul.f32 0.999, %v320_v54  ;;  %v5555_v5 = vpack.c.bf16 %v5551_v34, %v5551_v34  ;;  %v9360_v59 = vld [vmem:[#allocation13 + $0x578] sm:$0xff]  ;;  %v9362_v26 = vadd.f32 %v824_v58, %v440_v35  ;;  %v627_v19 = vld [vmem:[#allocation11 + $0x200] sm:$0xff]  ;;  %v12052_v34 = vpack.c.bf16 %v8795_v45, %v8793_v44 }
 0x341   :  { %v704_v40 = vld [vmem:[#allocation11 + $0x468] sm:$0xff]  ;;  %v892_v56 = vmul.f32 0.001, %v700_v0  ;;  %v435_v8 = vmul.f32 0.999, %v243_v14  ;;  %v631_v13 = vld [vmem:[#allocation11 + $0x220] sm:$0xff] }
 0x342   :  { %v896_v27 = vmul.f32 0.001, %v704_v40  ;;  %2494 = vst [vmem:[#allocation20 + $0x208] sm:$0xff] %v9356_v47  ;;  %v439_v28 = vmul.f32 0.999, %v247_v37  ;;  %5778 = vmatprep.mubr.bf16.mxu1 %v5555_v5  ;;  %6063 = vmatpush1.bf16.msra.mxu0 %v12052_v34  ;;  %2498 = vst [vmem:[#allocation20 + $0x228] sm:$0xff] %v9362_v26  ;;  %v5646_v34 = vpack.c.bf16 %v9347_v1, %v9345_v41 }
 0x343   :  { %v9366_v60 = vadd.f32 %v892_v56, %v508_v61  ;;  %v819_v54 = vmul.f32 0.001, %v627_v19  ;;  %v823_v0 = vmul.f32 0.001, %v631_v13  ;;  %v315_v58 = vld [vmem:[#allocation14 + $0x440] sm:$0xff]  ;;  %5779 = vmatmul.mubr.bf16.vlgmr.msra.gmra.mxu1 %v9343_v12  ;;  %v9375_v57 = vld [vmem:[#allocation13 + $0x550] sm:$0xff]  ;;  %v12053_v13 = vpack.c.bf16 %v8803_v11, %v8801_v51 }
 0x344   :  { %v9372_v35 = vadd.f32 %v896_v27, %v512_v6  ;;  %v319_v40 = vld [vmem:[#allocation14 + $0x460] sm:$0xff]  ;;  %v9377_v61 = vld [vmem:[#allocation13 + $0x570] sm:$0xff]  ;;  %v507_v19 = vmul.f32 0.999, %v315_v58  ;;  %v5874_v37 = vld [vmem:[#allocation7 + $0x8] sm:$0xff]  ;;  %v12054_v27 = vpack.c.bf16 %v9293_v22, %v9291_v16  ;;  %5860 = vmatprep.mubr.bf16.mxu1 %v5555_v5  ;;  %v5643_v16 = vpack.c.bf16 %v9360_v59, %v9358_v52 }
 0x345   :  { %v699_v14 = vld [vmem:[#allocation11 + $0x440] sm:$0xff]  ;;  %6064 = vmatprep.subr.bf16.mxu0 %v12053_v13  ;;  %2566 = vst [vmem:[#allocation20 + $0x448] sm:$0xff] %v9366_v60  ;;  %v9383_v44 = vadd.f32 %v819_v54, %v435_v8  ;;  %v9385_v45 = vadd.f32 %v823_v0, %v439_v28  ;;  %v511_v6 = vmul.f32 0.999, %v319_v40  ;;  %v9392_v51 = vld [vmem:[#allocation13 + $0x518] sm:$0xff]  ;;  %v12055_v0 = vpack.c.bf16 %v9315_v53, %v9313_v24  ;;  %v308_v1 = vld [vmem:[#allocation14 + $0x408] sm:$0xff] }
 0x346   :  { %v703_v56 = vld [vmem:[#allocation11 + $0x460] sm:$0xff]  ;;  %5829 = vmatpush1.bf16.msra.mxu1 %v12054_v27  ;;  %2570 = vst [vmem:[#allocation20 + $0x468] sm:$0xff] %v9372_v35  ;;  %v891_v8 = vmul.f32 0.001, %v699_v14  ;;  %v5174_v22 = vld [vmem:[#allocation13 + $0x538] sm:$0xff]  ;;  %v312_v5 = vld [vmem:[#allocation14 + $0x428] sm:$0xff]  ;;  %v12057_v58 = vpack.c.bf16 %v8811_v63, %v8809_v62 }
 0x347   :  { %v895_v28 = vmul.f32 0.001, %v703_v56  ;;  %v5877_v54 = vld [vmem:[#allocation7 + $0x20] sm:$0xff]  ;;  %5830 = vmatprep.subr.bf16.mxu1 %v12055_v0  ;;  %2493 = vst [vmem:[#allocation20 + $0x200] sm:$0xff] %v9383_v44  ;;  %2497 = vst [vmem:[#allocation20 + $0x220] sm:$0xff] %v9385_v45  ;;  %v692_v14 = vld [vmem:[#allocation11 + $0x408] sm:$0xff]  ;;  %v5639_v27 = vpack.c.bf16 %v5174_v22, %v9392_v51 }
 0x348   :  { %v9404_v41 = vpack.c.bf16 %v5877_v54, %v5874_v37  ;;  %6065 = vmatpush1.bf16.msra.mxu0 %v12057_v58  ;;  %v9409_v40 = vadd.f32 %v891_v8, %v507_v19  ;;  %v500_v53 = vmul.f32 0.999, %v308_v1  ;;  %v696_v52 = vld [vmem:[#allocation11 + $0x428] sm:$0xff]  ;;  %v307_v59 = vld [vmem:[#allocation14 + $0x400] sm:$0xff]  ;;  %v9413_v13 = vld [vmem:[#allocation13 + $0x510] sm:$0xff]  ;;  %v12058_v37 = vpack.c.bf16 %v8819_v20, %v8817_v9 }
 0x349   :  { %v9411_v24 = vadd.f32 %v895_v28, %v511_v6  ;;  %v9415_v56 = vld [vmem:[#allocation13 + $0x530] sm:$0xff]  ;;  %v504_v62 = vmul.f32 0.999, %v312_v5  ;;  %v884_v63 = vmul.f32 0.001, %v692_v14  ;;  %v5642_v6 = vpack.c.bf16 %v9377_v61, %v9375_v57  ;;  %v311_v9 = vld [vmem:[#allocation14 + $0x420] sm:$0xff] }
 0x34a   :  { %12056 = vst [vmem:[#allocation88_spill] sm:$0xff] %v9404_v41  ;;  %6066 = vmatprep.subr.bf16.mxu0 %v12058_v37  ;;  %6094 = vmatprep.mubr.bf16.mxu0 %v9404_v41  ;;  %v888_v19 = vmul.f32 0.001, %v696_v52  ;;  %2565 = vst [vmem:[#allocation20 + $0x440] sm:$0xff] %v9409_v40  ;;  %v499_v20 = vmul.f32 0.999, %v307_v59  ;;  %v12059_v58 = vpack.c.bf16 %v8832_v32, %v8830_v25 }
 0x34b   :  { %5831 = vmatpush1.bf16.msra.mxu1 %v5646_v34  ;;  %2569 = vst [vmem:[#allocation20 + $0x460] sm:$0xff] %v9411_v24  ;;  %v691_v28 = vld [vmem:[#allocation11 + $0x400] sm:$0xff]  ;;  %v9428_v0 = vld [vmem:[#allocation13 + $0x4d8] sm:$0xff]  ;;  %v9430_v1 = vadd.f32 %v884_v63, %v500_v53  ;;  %v503_v61 = vmul.f32 0.999, %v311_v9  ;;  %v9434_v22 = vld [vmem:[#allocation13 + $0x4d0] sm:$0xff]  ;;  %v12060_v53 = vpack.c.bf16 %v8840_v33, %v8838_v48  ;;  %v5638_v9 = vpack.c.bf16 %v9415_v56, %v9413_v13 }
 0x34c   :  { %v695_v54 = vld [vmem:[#allocation11 + $0x420] sm:$0xff]  ;;  %5832 = vmatprep.subr.bf16.mxu1 %v5643_v16  ;;  %v5166_v34 = vld [vmem:[#allocation13 + $0x4f8] sm:$0xff]  ;;  %v9432_v57 = vadd.f32 %v888_v19, %v504_v62  ;;  %v883_v51 = vmul.f32 0.001, %v691_v28  ;;  %v9436_v5 = vld [vmem:[#allocation13 + $0x4f0] sm:$0xff]  ;;  %6067 = vmatpush1.bf16.msra.mxu0 %v12059_v58  ;;  %v12061_v13 = vpack.c.bf16 %v8850_v3, %v8848_v38  ;;  %v12062_v3 = vpack.c.bf16 %v8860_v15, %v8858_v46 }
 0x34d   :  { %v887_v14 = vmul.f32 0.001, %v695_v54  ;;  %v238_v52 = vld [vmem:[#allocation14 + $0x1d8] sm:$0xff]  ;;  %6068 = vmatprep.subr.bf16.mxu0 %v12060_v53  ;;  %2558 = vst [vmem:[#allocation20 + $0x408] sm:$0xff] %v9430_v1  ;;  %v237_v19 = vld [vmem:[#allocation14 + $0x1d0] sm:$0xff] }
 0x34e   :  { %v242_v16 = vld [vmem:[#allocation14 + $0x1f8] sm:$0xff]  ;;  %2562 = vst [vmem:[#allocation20 + $0x428] sm:$0xff] %v9432_v57  ;;  %v9448_v62 = vadd.f32 %v883_v51, %v499_v20  ;;  %v430_v63 = vmul.f32 0.999, %v238_v52  ;;  %v241_v53 = vld [vmem:[#allocation14 + $0x1f0] sm:$0xff]  ;;  %v5635_v20 = vpack.c.bf16 %v5166_v34, %v9428_v0 }
 0x34f   :  { %v622_v59 = vld [vmem:[#allocation11 + $0x1d8] sm:$0xff]  ;;  %v434_v25 = vmul.f32 0.999, %v242_v16  ;;  %5833 = vmatpush1.bf16.msra.mxu1 %v5642_v6  ;;  %v9456_v33 = vadd.f32 %v887_v14, %v503_v61  ;;  %v621_v37 = vld [vmem:[#allocation11 + $0x1d0] sm:$0xff]  ;;  %v429_v51 = vmul.f32 0.999, %v237_v19 }
 0x350   :  { %v626_v32 = vld [vmem:[#allocation11 + $0x1f8] sm:$0xff]  ;;  %v814_v54 = vmul.f32 0.001, %v622_v59  ;;  %5834 = vmatprep.subr.bf16.mxu1 %v5639_v27  ;;  %2557 = vst [vmem:[#allocation20 + $0x400] sm:$0xff] %v9448_v62  ;;  %v433_v6 = vmul.f32 0.999, %v241_v53  ;;  %6069 = vmatpush1.bf16.msra.mxu0 %v12061_v13 }
 0x351   :  { %v9452_v28 = vld [vmem:[#allocation13 + $0x498] sm:$0xff]  ;;  %v818_v58 = vmul.f32 0.001, %v626_v32  ;;  %v625_v52 = vld [vmem:[#allocation11 + $0x1f0] sm:$0xff]  ;;  %2561 = vst [vmem:[#allocation20 + $0x420] sm:$0xff] %v9456_v33  ;;  %v5634_v32 = vpack.c.bf16 %v9436_v5, %v9434_v22  ;;  %6070 = vmatprep.subr.bf16.mxu0 %v12062_v3 }
 0x352   :  { %v9454_v48 = vld [vmem:[#allocation13 + $0x4b8] sm:$0xff]  ;;  %v9466_v61 = vadd.f32 %v814_v54, %v430_v63  ;;  %v813_v0 = vmul.f32 0.001, %v621_v37  ;;  %v9472_v19 = vld [vmem:[#allocation13 + $0x490] sm:$0xff]  ;;  %v817_v53 = vmul.f32 0.001, %v625_v52 }
 0x353   :  { %v366_v16 = vld [vmem:[#allocation14 + $0x5d8] sm:$0xff]  ;;  %v9468_v27 = vadd.f32 %v818_v58, %v434_v25  ;;  %v9474_v38 = vld [vmem:[#allocation13 + $0x4b0] sm:$0xff]  ;;  %5835 = vmatpush1.bf16.msra.mxu1 %v5638_v9  ;;  %v5631_v15 = vpack.c.bf16 %v9454_v48, %v9452_v28  ;;  %v12065_v48 = vpack.c.bf16 %v8882_v17, %v8880_v7 }
 0x354   :  { %v370_v34 = vld [vmem:[#allocation14 + $0x5f8] sm:$0xff]  ;;  %v558_v63 = vmul.f32 0.999, %v366_v16  ;;  %2488 = vst [vmem:[#allocation20 + $0x1d8] sm:$0xff] %v9466_v61  ;;  %v9487_v5 = vadd.f32 %v813_v0, %v429_v51  ;;  %5836 = vmatprep.subr.bf16.mxu1 %v5635_v20  ;;  %v9491_v9 = vadd.f32 %v817_v53, %v433_v6  ;;  %v365_v52 = vld [vmem:[#allocation14 + $0x5d0] sm:$0xff] }
 0x355   :  { %v750_v14 = vld [vmem:[#allocation11 + $0x5d8] sm:$0xff]  ;;  %v562_v54 = vmul.f32 0.999, %v370_v34  ;;  %2492 = vst [vmem:[#allocation20 + $0x1f8] sm:$0xff] %v9468_v27  ;;  %v369_v16 = vld [vmem:[#allocation14 + $0x5f0] sm:$0xff]  ;;  %v12064_v34 = vpack.c.bf16 %v8869_v49, %v8867_v43 }
 0x356   :  { %v754_v59 = vld [vmem:[#allocation11 + $0x5f8] sm:$0xff]  ;;  %12063 = vst [vmem:[#allocation89_spill] sm:$0xff] %v9487_v5  ;;  %v942_v58 = vmul.f32 0.001, %v750_v14  ;;  %v749_v13 = vld [vmem:[#allocation11 + $0x5d0] sm:$0xff]  ;;  %2487 = vst [vmem:[#allocation20 + $0x1d0] sm:$0xff] %v9487_v5 }
 0x357   :  { %v9479_v25 = vld [vmem:[#allocation13 + $0x458] sm:$0xff]  ;;  %v946_v46 = vmul.f32 0.001, %v754_v59  ;;  %6071 = vmatpush1.bf16.msra.mxu0 %v12064_v34  ;;  %v557_v0 = vmul.f32 0.999, %v365_v52  ;;  %v753_v14 = vld [vmem:[#allocation11 + $0x5f0] sm:$0xff]  ;;  %5837 = vmatpush1.bf16.msra.mxu1 %v5634_v32 }
 0x358   :  { %v9481_v37 = vld [vmem:[#allocation13 + $0x478] sm:$0xff]  ;;  %v9497_v3 = vadd.f32 %v942_v58, %v558_v63  ;;  %v561_v20 = vmul.f32 0.999, %v369_v16  ;;  %v9501_v59 = vld [vmem:[#allocation13 + $0x450] sm:$0xff]  ;;  %6072 = vmatprep.subr.bf16.mxu0 %v12065_v48  ;;  %2491 = vst [vmem:[#allocation20 + $0x1f0] sm:$0xff] %v9491_v9  ;;  %v5630_v63 = vpack.c.bf16 %v9474_v38, %v9472_v19  ;;  %5838 = vmatprep.subr.bf16.mxu1 %v5631_v15 }
 0x359   :  { %v9499_v51 = vadd.f32 %v946_v46, %v562_v54  ;;  %v9503_v28 = vld [vmem:[#allocation13 + $0x470] sm:$0xff]  ;;  %v941_v49 = vmul.f32 0.001, %v749_v13  ;;  %v945_v6 = vmul.f32 0.001, %v753_v14  ;;  %v230_v53 = vld [vmem:[#allocation14 + $0x198] sm:$0xff]  ;;  %v5627_v54 = vpack.c.bf16 %v9481_v37, %v9479_v25 }
 0x35a   :  { %v9515_v58 = vld [vmem:[#allocation13 + $0x418] sm:$0xff]  ;;  %2616 = vst [vmem:[#allocation20 + $0x5d8] sm:$0xff] %v9497_v3  ;;  %v422_v17 = vmul.f32 0.999, %v230_v53  ;;  %v229_v25 = vld [vmem:[#allocation14 + $0x190] sm:$0xff]  ;;  %v12066_v48 = vpack.c.bf16 %v8896_v2, %v8894_v55  ;;  %v5626_v55 = vpack.c.bf16 %v9503_v28, %v9501_v59 }
 0x35b   :  { %v9517_v46 = vld [vmem:[#allocation13 + $0x438] sm:$0xff]  ;;  %2620 = vst [vmem:[#allocation20 + $0x5f8] sm:$0xff] %v9499_v51  ;;  %v9521_v32 = vadd.f32 %v941_v49, %v557_v0  ;;  %v9523_v13 = vadd.f32 %v945_v6, %v561_v20  ;;  %v233_v37 = vld [vmem:[#allocation14 + $0x1b0] sm:$0xff]  ;;  %v421_v43 = vmul.f32 0.999, %v229_v25  ;;  %v12067_v0 = vpack.c.bf16 %v8912_v42, %v8910_v29  ;;  %5839 = vmatpush1.bf16.msra.mxu1 %v5630_v63 }
 0x35c   :  { %v234_v7 = vld [vmem:[#allocation14 + $0x1b8] sm:$0xff]  ;;  %v9525_v34 = vld [vmem:[#allocation13 + $0x410] sm:$0xff]  ;;  %6073 = vmatpush1.bf16.msra.mxu0 %v12066_v48  ;;  %v425_v22 = vmul.f32 0.999, %v233_v37  ;;  %5840 = vmatprep.subr.bf16.mxu1 %v5627_v54  ;;  %v5623_v42 = vpack.c.bf16 %v9517_v46, %v9515_v58 }
 0x35d   :  { %v614_v52 = vld [vmem:[#allocation11 + $0x198] sm:$0xff]  ;;  %v426_v19 = vmul.f32 0.999, %v234_v7  ;;  %v9527_v14 = vld [vmem:[#allocation13 + $0x430] sm:$0xff]  ;;  %6074 = vmatprep.subr.bf16.mxu0 %v12067_v0  ;;  %2615 = vst [vmem:[#allocation20 + $0x5d0] sm:$0xff] %v9521_v32  ;;  %2619 = vst [vmem:[#allocation20 + $0x5f0] sm:$0xff] %v9523_v13 }
 0x35e   :  { %v618_v16 = vld [vmem:[#allocation11 + $0x1b8] sm:$0xff]  ;;  %v806_v38 = vmul.f32 0.001, %v614_v52  ;;  %v613_v49 = vld [vmem:[#allocation11 + $0x190] sm:$0xff] }
 0x35f   :  { %v810_v53 = vmul.f32 0.001, %v618_v16  ;;  %v9532_v15 = vld [vmem:[#allocation13 + $0x7d8] sm:$0xff]  ;;  %v617_v6 = vld [vmem:[#allocation11 + $0x1b0] sm:$0xff]  ;;  %v805_v52 = vmul.f32 0.001, %v613_v49  ;;  %5841 = vmatpush1.bf16.msra.mxu1 %v5626_v55 }
 0x360   :  { %v9539_v20 = vadd.f32 %v806_v38, %v422_v17  ;;  %v9543_v2 = vld [vmem:[#allocation13 + $0x7f8] sm:$0xff]  ;;  %v809_v16 = vmul.f32 0.001, %v617_v6  ;;  %v9550_v37 = vld [vmem:[#allocation13 + $0x7d0] sm:$0xff]  ;;  %5842 = vmatprep.subr.bf16.mxu1 %v5623_v42 }
 0x361   :  { %v9545_v7 = vadd.f32 %v810_v53, %v426_v19  ;;  %v222_v29 = vld [vmem:[#allocation14 + $0x158] sm:$0xff]  ;;  %v9552_v59 = vld [vmem:[#allocation13 + $0x7f0] sm:$0xff]  ;;  %v9560_v58 = vadd.f32 %v805_v52, %v421_v43 }
 0x362   :  { %12068 = vst [vmem:[#allocation90_spill] sm:$0xff] %v9539_v20  ;;  %2480 = vst [vmem:[#allocation20 + $0x198] sm:$0xff] %v9539_v20  ;;  %v226_v17 = vld [vmem:[#allocation14 + $0x178] sm:$0xff]  ;;  %v414_v38 = vmul.f32 0.999, %v222_v29  ;;  %v12071_v19 = vld [vmem:[#allocation39_spill] sm:$0xff]  ;;  %v9562_v46 = vadd.f32 %v809_v16, %v425_v22  ;;  %v5622_v29 = vpack.c.bf16 %v9527_v14, %v9525_v34  ;;  %v5683_v22 = vpack.c.bf16 %v9543_v2, %v9532_v15 }
 0x363   :  { %12069 = vst [vmem:[#allocation91_spill] sm:$0xff] %v9545_v7  ;;  %v606_v25 = vld [vmem:[#allocation11 + $0x158] sm:$0xff]  ;;  %2484 = vst [vmem:[#allocation20 + $0x1b8] sm:$0xff] %v9545_v7  ;;  %v418_v53 = vmul.f32 0.999, %v226_v17  ;;  %v221_v0 = vld [vmem:[#allocation14 + $0x150] sm:$0xff]  ;;  %v5682_v42 = vpack.c.bf16 %v9552_v59, %v9550_v37 }
 0x364   :  { %v610_v63 = vld [vmem:[#allocation11 + $0x178] sm:$0xff]  ;;  %12074 = vst [vmem:[#allocation39_spill] sm:$0xff] %v9562_v46  ;;  %v225_v49 = vld [vmem:[#allocation14 + $0x170] sm:$0xff]  ;;  %v798_v54 = vmul.f32 0.001, %v606_v25  ;;  %2479 = vst [vmem:[#allocation20 + $0x190] sm:$0xff] %v9560_v58  ;;  %5843 = vmatpush1.bf16.msra.mxu1 %v5622_v29 }
 0x365   :  { %v12070_v28 = vld [vmem:[#allocation40_spill] sm:$0xff]  ;;  %v802_v43 = vmul.f32 0.001, %v610_v63  ;;  %v413_v52 = vmul.f32 0.999, %v221_v0  ;;  %2483 = vst [vmem:[#allocation20 + $0x1b0] sm:$0xff] %v9562_v46  ;;  %5844 = vmatprep.subr.bf16.mxu1 %v5683_v22 }
 0x366   :  { %v12072_v48 = vpack.c.bf16 %v12070_v28, %v12071_v19  ;;  %12073 = vst [vmem:[#allocation40_spill] sm:$0xff] %v9560_v58  ;;  %v605_v6 = vld [vmem:[#allocation11 + $0x150] sm:$0xff]  ;;  %v9566_v56 = vld [vmem:[#allocation13 + $0x798] sm:$0xff]  ;;  %v12075_v19 = vld [vmem:[#allocation42_spill] sm:$0xff]  ;;  %v417_v14 = vmul.f32 0.999, %v225_v49 }
 0x367   :  { %v9568_v28 = vld [vmem:[#allocation13 + $0x7b8] sm:$0xff]  ;;  %v609_v16 = vld [vmem:[#allocation11 + $0x170] sm:$0xff]  ;;  %v797_v17 = vmul.f32 0.001, %v605_v6  ;;  %v9581_v25 = vadd.f32 %v802_v43, %v418_v53  ;;  %v12084_v53 = vld [vmem:[#allocation46_spill] sm:$0xff] }
 0x368   :  { %6075 = vmatpush1.bf16.msra.mxu0 %v12072_v48  ;;  %v12076_v48 = vld [vmem:[#allocation41_spill] sm:$0xff]  ;;  %v801_v55 = vmul.f32 0.001, %v609_v16  ;;  %v12080_v2 = vld [vmem:[#allocation44_spill] sm:$0xff]  ;;  %v5679_v59 = vpack.c.bf16 %v9568_v28, %v9566_v56  ;;  %v12091_v43 = vld [vmem:[#allocation50_spill] sm:$0xff]  ;;  %5845 = vmatpush2.bf16.msra.mxu1 %v5682_v42 }
 0x369   :  { %v12077_v8 = vpack.c.bf16 %v12075_v19, %v12076_v48  ;;  %v358_v11 = vld [vmem:[#allocation14 + $0x598] sm:$0xff]  ;;  %12079 = vst [vmem:[#allocation41_spill] sm:$0xff] %v9581_v25  ;;  %v12081_v19 = vld [vmem:[#allocation43_spill] sm:$0xff]  ;;  %v9586_v50 = vadd.f32 %v797_v17, %v413_v52  ;;  %2476 = vst [vmem:[#allocation20 + $0x178] sm:$0xff] %v9581_v25 }
 0x36a   :  { %v362_v63 = vld [vmem:[#allocation14 + $0x5b8] sm:$0xff]  ;;  %v550_v0 = vmul.f32 0.999, %v358_v11  ;;  %v12082_v48 = vpack.c.bf16 %v12080_v2, %v12081_v19  ;;  %v9601_v52 = vadd.f32 %v801_v55, %v417_v14  ;;  %v357_v17 = vld [vmem:[#allocation14 + $0x590] sm:$0xff]  ;;  %5846 = vmatprep.subr.bf16.mxu1 %v5679_v59  ;;  %v12104_v20 = vld [vmem:[#allocation62_spill] sm:$0xff] }
 0x36b   :  { %6076 = vmatprep.subr.bf16.mxu0 %v12077_v8  ;;  %v9579_v8 = vadd.f32 %v798_v54, %v414_v38  ;;  %v742_v15 = vld [vmem:[#allocation11 + $0x598] sm:$0xff]  ;;  %12083 = vst [vmem:[#allocation44_spill] sm:$0xff] %v9586_v50  ;;  %v554_v34 = vmul.f32 0.999, %v362_v63  ;;  %v9590_v38 = vld [vmem:[#allocation13 + $0x790] sm:$0xff]  ;;  %2471 = vst [vmem:[#allocation20 + $0x150] sm:$0xff] %v9586_v50 }
 0x36c   :  { %6077 = vmatpush1.bf16.msra.mxu0 %v12082_v48  ;;  %v746_v49 = vld [vmem:[#allocation11 + $0x5b8] sm:$0xff]  ;;  %v934_v41 = vmul.f32 0.001, %v742_v15  ;;  %v9592_v54 = vld [vmem:[#allocation13 + $0x7b0] sm:$0xff]  ;;  %12087 = vst [vmem:[#allocation43_spill] sm:$0xff] %v9601_v52  ;;  %2475 = vst [vmem:[#allocation20 + $0x170] sm:$0xff] %v9601_v52 }
 0x36d   :  { %12078 = vst [vmem:[#allocation42_spill] sm:$0xff] %v9579_v8  ;;  %v12085_v6 = vld [vmem:[#allocation45_spill] sm:$0xff]  ;;  %2472 = vst [vmem:[#allocation20 + $0x158] sm:$0xff] %v9579_v8  ;;  %v938_v16 = vmul.f32 0.001, %v746_v49  ;;  %v361_v37 = vld [vmem:[#allocation14 + $0x5b0] sm:$0xff] }
 0x36e   :  { %v12086_v11 = vpack.c.bf16 %v12084_v53, %v12085_v6  ;;  %v9606_v63 = vadd.f32 %v934_v41, %v550_v0  ;;  %v549_v15 = vmul.f32 0.999, %v357_v17  ;;  %v553_v2 = vmul.f32 0.999, %v361_v37  ;;  %v741_v19 = vld [vmem:[#allocation11 + $0x590] sm:$0xff]  ;;  %v5242_v53 = vld [vmem:[#allocation13 + $0x758] sm:$0xff] }
 0x36f   :  { %v745_v48 = vld [vmem:[#allocation11 + $0x5b0] sm:$0xff]  ;;  %v5246_v6 = vld [vmem:[#allocation13 + $0x778] sm:$0xff]  ;;  %v9611_v29 = vadd.f32 %v938_v16, %v554_v34  ;;  %v933_v55 = vmul.f32 0.001, %v741_v19 }
 0x370   :  { %6078 = vmatprep.subr.bf16.mxu0 %v12086_v11  ;;  %v937_v56 = vmul.f32 0.001, %v745_v48  ;;  %v9613_v28 = vld [vmem:[#allocation13 + $0x750] sm:$0xff]  ;;  %2608 = vst [vmem:[#allocation20 + $0x598] sm:$0xff] %v9606_v63  ;;  %v214_v22 = vld [vmem:[#allocation14 + $0x118] sm:$0xff] }
 0x371   :  { %v9615_v41 = vld [vmem:[#allocation13 + $0x770] sm:$0xff]  ;;  %v218_v17 = vld [vmem:[#allocation14 + $0x138] sm:$0xff]  ;;  %2612 = vst [vmem:[#allocation20 + $0x5b8] sm:$0xff] %v9611_v29  ;;  %v9625_v34 = vadd.f32 %v933_v55, %v549_v15  ;;  %v406_v19 = vmul.f32 0.999, %v214_v22  ;;  %v12094_v22 = vld [vmem:[#allocation54_spill] sm:$0xff] }
 0x372   :  { %v12088_v0 = vld [vmem:[#allocation48_spill] sm:$0xff]  ;;  %v12089_v49 = vld [vmem:[#allocation47_spill] sm:$0xff]  ;;  %v12092_v8 = vld [vmem:[#allocation49_spill] sm:$0xff]  ;;  %v9627_v16 = vadd.f32 %v937_v56, %v553_v2 }
 0x373   :  { %v12090_v11 = vpack.c.bf16 %v12088_v0, %v12089_v49  ;;  %v598_v37 = vld [vmem:[#allocation11 + $0x118] sm:$0xff]  ;;  %v12093_v14 = vpack.c.bf16 %v12091_v43, %v12092_v8  ;;  %v213_v50 = vld [vmem:[#allocation14 + $0x110] sm:$0xff]  ;;  %v5678_v49 = vpack.c.bf16 %v9592_v54, %v9590_v38  ;;  %v5675_v8 = vpack.c.bf16 %v5246_v6, %v5242_v53  ;;  %2607 = vst [vmem:[#allocation20 + $0x590] sm:$0xff] %v9625_v34 }
 0x374   :  { %v602_v48 = vld [vmem:[#allocation11 + $0x138] sm:$0xff]  ;;  %v217_v0 = vld [vmem:[#allocation14 + $0x130] sm:$0xff]  ;;  %v790_v52 = vmul.f32 0.001, %v598_v37  ;;  %2611 = vst [vmem:[#allocation20 + $0x5b0] sm:$0xff] %v9627_v16  ;;  %v5674_v6 = vpack.c.bf16 %v9615_v41, %v9613_v28 }
 0x375   :  { %6079 = vmatpush2.bf16.msra.mxu0 %v12090_v11  ;;  %v410_v11 = vmul.f32 0.999, %v218_v17  ;;  %v794_v25 = vmul.f32 0.001, %v602_v48  ;;  %v405_v43 = vmul.f32 0.999, %v213_v50  ;;  %5847 = vmatpush2.bf16.msra.mxu1 %v5678_v49 }
 0x376   :  { %6080 = vmatprep.subr.bf16.mxu0 %v12093_v14  ;;  %v409_v15 = vmul.f32 0.999, %v217_v0  ;;  %v597_v2 = vld [vmem:[#allocation11 + $0x110] sm:$0xff]  ;;  %v5234_v55 = vld [vmem:[#allocation13 + $0x718] sm:$0xff]  ;;  %v9636_v38 = vadd.f32 %v790_v52, %v406_v19  ;;  %v12099_v0 = vld [vmem:[#allocation58_spill] sm:$0xff]  ;;  %5848 = vmatprep.subr.bf16.mxu1 %v5675_v8 }
 0x377   :  { %v601_v14 = vld [vmem:[#allocation11 + $0x130] sm:$0xff]  ;;  %v5238_v56 = vld [vmem:[#allocation13 + $0x738] sm:$0xff]  ;;  %v9638_v54 = vadd.f32 %v794_v25, %v410_v11  ;;  %v789_v59 = vmul.f32 0.001, %v597_v2 }
 0x378   :  { %v12095_v42 = vld [vmem:[#allocation53_spill] sm:$0xff]  ;;  %12097 = vst [vmem:[#allocation46_spill] sm:$0xff] %v9636_v38  ;;  %v793_v53 = vmul.f32 0.001, %v601_v14  ;;  %v9642_v17 = vld [vmem:[#allocation13 + $0x710] sm:$0xff]  ;;  %2464 = vst [vmem:[#allocation20 + $0x118] sm:$0xff] %v9636_v38 }
 0x379   :  { %v12096_v58 = vpack.c.bf16 %v12094_v22, %v12095_v42  ;;  %12098 = vst [vmem:[#allocation45_spill] sm:$0xff] %v9638_v54  ;;  %v9644_v50 = vld [vmem:[#allocation13 + $0x730] sm:$0xff]  ;;  %v9646_v37 = vld [vmem:[#allocation13 + $0x6d8] sm:$0xff]  ;;  %2468 = vst [vmem:[#allocation20 + $0x138] sm:$0xff] %v9638_v54  ;;  %v9657_v41 = vadd.f32 %v789_v59, %v405_v43  ;;  %5849 = vmatpush2.bf16.msra.mxu1 %v5674_v6 }
 0x37a   :  { %v9648_v48 = vld [vmem:[#allocation13 + $0x6f8] sm:$0xff]  ;;  %v9659_v11 = vadd.f32 %v793_v53, %v409_v15  ;;  %v205_v42 = vld [vmem:[#allocation14 + $0xd0] sm:$0xff]  ;;  %v12116_v54 = vld [vmem:[#allocation74_spill] sm:$0xff] }
 0x37b   :  { %6081 = vmatpush2.bf16.msra.mxu0 %v12096_v58  ;;  %v12100_v22 = vld [vmem:[#allocation57_spill] sm:$0xff]  ;;  %12102 = vst [vmem:[#allocation48_spill] sm:$0xff] %v9657_v41  ;;  %2463 = vst [vmem:[#allocation20 + $0x110] sm:$0xff] %v9657_v41  ;;  %v397_v15 = vmul.f32 0.999, %v205_v42  ;;  %v589_v53 = vld [vmem:[#allocation11 + $0xd0] sm:$0xff]  ;;  %v5670_v42 = vpack.c.bf16 %v9644_v50, %v9642_v17 }
 0x37c   :  { %v12101_v58 = vpack.c.bf16 %v12099_v0, %v12100_v22  ;;  %v206_v52 = vld [vmem:[#allocation14 + $0xd8] sm:$0xff]  ;;  %12103 = vst [vmem:[#allocation47_spill] sm:$0xff] %v9659_v11  ;;  %v209_v0 = vld [vmem:[#allocation14 + $0xf0] sm:$0xff]  ;;  %v5671_v22 = vpack.c.bf16 %v5238_v56, %v5234_v55  ;;  %2467 = vst [vmem:[#allocation20 + $0x130] sm:$0xff] %v9659_v11 }
 0x37d   :  { %v210_v25 = vld [vmem:[#allocation14 + $0xf8] sm:$0xff]  ;;  %v398_v2 = vmul.f32 0.999, %v206_v52  ;;  %v401_v59 = vmul.f32 0.999, %v209_v0  ;;  %v593_v52 = vld [vmem:[#allocation11 + $0xf0] sm:$0xff]  ;;  %v5667_v0 = vpack.c.bf16 %v9648_v48, %v9646_v37 }
 0x37e   :  { %6082 = vmatprep.subr.bf16.mxu0 %v12101_v58  ;;  %v590_v19 = vld [vmem:[#allocation11 + $0xd8] sm:$0xff]  ;;  %v402_v58 = vmul.f32 0.999, %v210_v25  ;;  %v9668_v8 = vld [vmem:[#allocation13 + $0x6d0] sm:$0xff]  ;;  %v12107_v56 = vld [vmem:[#allocation66_spill] sm:$0xff]  ;;  %5850 = vmatprep.subr.bf16.mxu1 %v5671_v22 }
 0x37f   :  { %v594_v14 = vld [vmem:[#allocation11 + $0xf8] sm:$0xff]  ;;  %v782_v46 = vmul.f32 0.001, %v590_v19  ;;  %v9670_v55 = vld [vmem:[#allocation13 + $0x6f0] sm:$0xff]  ;;  %5851 = vmatpush2.bf16.msra.mxu1 %v5670_v42 }
 0x380   :  { %v786_v49 = vmul.f32 0.001, %v594_v14  ;;  %v12105_v7 = vld [vmem:[#allocation61_spill] sm:$0xff]  ;;  %v785_v14 = vmul.f32 0.001, %v593_v52  ;;  %v349_v48 = vld [vmem:[#allocation14 + $0x550] sm:$0xff]  ;;  %5852 = vmatprep.subr.bf16.mxu1 %v5667_v0 }
 0x381   :  { %v12106_v5 = vpack.c.bf16 %v12104_v20, %v12105_v7  ;;  %v12108_v25 = vld [vmem:[#allocation65_spill] sm:$0xff]  ;;  %v781_v7 = vmul.f32 0.001, %v589_v53  ;;  %v541_v53 = vmul.f32 0.999, %v349_v48  ;;  %v733_v52 = vld [vmem:[#allocation11 + $0x550] sm:$0xff]  ;;  %v5666_v48 = vpack.c.bf16 %v9670_v55, %v9668_v8 }
 0x382   :  { %v12109_v19 = vpack.c.bf16 %v12107_v56, %v12108_v25  ;;  %v9677_v20 = vadd.f32 %v786_v49, %v402_v58  ;;  %v350_v28 = vld [vmem:[#allocation14 + $0x558] sm:$0xff]  ;;  %v9693_v50 = vadd.f32 %v785_v14, %v401_v59  ;;  %v9698_v25 = vld [vmem:[#allocation13 + $0x690] sm:$0xff] }
 0x383   :  { %6083 = vmatpush2.bf16.msra.mxu0 %v12106_v5  ;;  %v9675_v5 = vadd.f32 %v782_v46, %v398_v2  ;;  %v354_v43 = vld [vmem:[#allocation14 + $0x578] sm:$0xff]  ;;  %v542_v41 = vmul.f32 0.999, %v350_v28  ;;  %v9691_v17 = vadd.f32 %v781_v7, %v397_v15  ;;  %v12113_v28 = vld [vmem:[#allocation70_spill] sm:$0xff]  ;;  %v737_v14 = vld [vmem:[#allocation11 + $0x570] sm:$0xff]  ;;  %5853 = vmatpush2.bf16.msra.mxu1 %v5666_v48 }
 0x384   :  { %6084 = vmatprep.subr.bf16.mxu0 %v12109_v19  ;;  %v546_v11 = vmul.f32 0.999, %v354_v43  ;;  %v734_v38 = vld [vmem:[#allocation11 + $0x558] sm:$0xff]  ;;  %2460 = vst [vmem:[#allocation20 + $0xf8] sm:$0xff] %v9677_v20  ;;  %12112 = vst [vmem:[#allocation54_spill] sm:$0xff] %v9693_v50  ;;  %v353_v43 = vld [vmem:[#allocation14 + $0x570] sm:$0xff] }
 0x385   :  { %12110 = vst [vmem:[#allocation50_spill] sm:$0xff] %v9675_v5  ;;  %v738_v56 = vld [vmem:[#allocation11 + $0x578] sm:$0xff]  ;;  %2456 = vst [vmem:[#allocation20 + $0xd8] sm:$0xff] %v9675_v5  ;;  %v926_v37 = vmul.f32 0.001, %v734_v38  ;;  %v9700_v19 = vld [vmem:[#allocation13 + $0x6b0] sm:$0xff] }
 0x386   :  { %v9683_v46 = vld [vmem:[#allocation13 + $0x698] sm:$0xff]  ;;  %12111 = vst [vmem:[#allocation49_spill] sm:$0xff] %v9691_v17  ;;  %v930_v49 = vmul.f32 0.001, %v738_v56  ;;  %2455 = vst [vmem:[#allocation20 + $0xd0] sm:$0xff] %v9691_v17 }
 0x387   :  { %v9685_v2 = vld [vmem:[#allocation13 + $0x6b8] sm:$0xff]  ;;  %2459 = vst [vmem:[#allocation20 + $0xf0] sm:$0xff] %v9693_v50  ;;  %v9709_v59 = vadd.f32 %v926_v37, %v542_v41  ;;  %v545_v7 = vmul.f32 0.999, %v353_v43  ;;  %v925_v56 = vmul.f32 0.001, %v733_v52 }
 0x388   :  { %v12114_v58 = vld [vmem:[#allocation69_spill] sm:$0xff]  ;;  %v5663_v41 = vpack.c.bf16 %v9685_v2, %v9683_v46  ;;  %v201_v46 = vld [vmem:[#allocation14 + $0xb0] sm:$0xff] }
 0x389   :  { %v12115_v22 = vpack.c.bf16 %v12113_v28, %v12114_v58  ;;  %v12117_v6 = vld [vmem:[#allocation73_spill] sm:$0xff]  ;;  %v929_v58 = vmul.f32 0.001, %v737_v14  ;;  %2600 = vst [vmem:[#allocation20 + $0x558] sm:$0xff] %v9709_v59  ;;  %v9722_v37 = vadd.f32 %v925_v56, %v541_v53  ;;  %v197_v14 = vld [vmem:[#allocation14 + $0x90] sm:$0xff] }
 0x38a   :  { %v12118_v15 = vpack.c.bf16 %v12116_v54, %v12117_v6  ;;  %v9713_v28 = vld [vmem:[#allocation13 + $0x658] sm:$0xff]  ;;  %v9717_v6 = vadd.f32 %v930_v49, %v546_v11  ;;  %v9730_v2 = vld [vmem:[#allocation13 + $0x650] sm:$0xff]  ;;  %5854 = vmatprep.subr.bf16.mxu1 %v5663_v41 }
 0x38b   :  { %6085 = vmatpush2.bf16.msra.mxu0 %v12115_v22  ;;  %v9715_v54 = vld [vmem:[#allocation13 + $0x678] sm:$0xff]  ;;  %v9728_v11 = vadd.f32 %v929_v58, %v545_v7  ;;  %v9732_v53 = vld [vmem:[#allocation13 + $0x670] sm:$0xff]  ;;  %2599 = vst [vmem:[#allocation20 + $0x550] sm:$0xff] %v9722_v37  ;;  %v393_v7 = vmul.f32 0.999, %v201_v46 }
 0x38c   :  { %6086 = vmatprep.subr.bf16.mxu0 %v12118_v15  ;;  %v198_v22 = vld [vmem:[#allocation14 + $0x98] sm:$0xff]  ;;  %2604 = vst [vmem:[#allocation20 + $0x578] sm:$0xff] %v9717_v6  ;;  %v581_v58 = vld [vmem:[#allocation11 + $0x90] sm:$0xff] }
 0x38d   :  { %v202_v15 = vld [vmem:[#allocation14 + $0xb8] sm:$0xff]  ;;  %v390_v42 = vmul.f32 0.999, %v198_v22  ;;  %2603 = vst [vmem:[#allocation20 + $0x570] sm:$0xff] %v9728_v11 }
 0x38e   :  { %v394_v43 = vmul.f32 0.999, %v202_v15  ;;  %v582_v8 = vld [vmem:[#allocation11 + $0x98] sm:$0xff] }
 0x38f   :  { %v586_v55 = vld [vmem:[#allocation11 + $0xb8] sm:$0xff]  ;;  %v774_v0 = vmul.f32 0.001, %v582_v8  ;;  %v585_v8 = vld [vmem:[#allocation11 + $0xb0] sm:$0xff] }
 0x390   :  { %v12119_v52 = vld [vmem:[#allocation77_spill] sm:$0xff]  ;;  %v778_v49 = vmul.f32 0.001, %v586_v55  ;;  %v12122_v22 = vld [vmem:[#allocation80_spill] sm:$0xff]  ;;  %v5662_v55 = vpack.c.bf16 %v9700_v19, %v9698_v25  ;;  %v777_v48 = vmul.f32 0.001, %v585_v8 }
 0x391   :  { %v12120_v38 = vpack.c.bf16 %v9209_v30, %v12119_v52  ;;  %v12121_v56 = vld [vmem:[#allocation81_spill] sm:$0xff]  ;;  %v5982_v30 = vpack.c.bf16 %v9304_v21, %v9302_v36  ;;  %v773_v36 = vmul.f32 0.001, %v581_v58  ;;  %v12126_v50 = vld [vmem:[#allocation84_spill] sm:$0xff] }
 0x392   :  { %v12123_v15 = vpack.c.bf16 %v12121_v56, %v12122_v22  ;;  %v9742_v52 = vld [vmem:[#allocation13 + $0x618] sm:$0xff]  ;;  %v9747_v56 = vadd.f32 %v774_v0, %v390_v42  ;;  %v9749_v22 = vadd.f32 %v778_v49, %v394_v43  ;;  %v5981_v42 = vpack.c.bf16 %v9332_v23, %v9327_v31  ;;  %v9762_v49 = vld [vmem:[#allocation13 + $0x610] sm:$0xff]  ;;  %5855 = vmatpush2.bf16.msra.mxu1 %v5662_v55 }
 0x393   :  { %6087 = vmatpush2.bf16.msra.mxu0 %v12120_v38  ;;  %v389_v38 = vmul.f32 0.999, %v197_v14  ;;  %v9744_v17 = vld [vmem:[#allocation13 + $0x638] sm:$0xff]  ;;  %v5659_v14 = vpack.c.bf16 %v9715_v54, %v9713_v28  ;;  %v189_v54 = vld [vmem:[#allocation14 + $0x50] sm:$0xff] }
 0x394   :  { %6088 = vmatprep.subr.bf16.mxu0 %v12123_v15  ;;  %12124 = vst [vmem:[#allocation53_spill] sm:$0xff] %v9749_v22  ;;  %v190_v21 = vld [vmem:[#allocation14 + $0x58] sm:$0xff]  ;;  %2448 = vst [vmem:[#allocation20 + $0x98] sm:$0xff] %v9747_v56  ;;  %v9764_v58 = vld [vmem:[#allocation13 + $0x630] sm:$0xff]  ;;  %v381_v8 = vmul.f32 0.999, %v189_v54 }
 0x395   :  { %v194_v46 = vld [vmem:[#allocation14 + $0x78] sm:$0xff]  ;;  %v382_v15 = vmul.f32 0.999, %v190_v21  ;;  %2452 = vst [vmem:[#allocation20 + $0xb8] sm:$0xff] %v9749_v22  ;;  %v9760_v43 = vadd.f32 %v773_v36, %v389_v38  ;;  %v193_v23 = vld [vmem:[#allocation14 + $0x70] sm:$0xff]  ;;  %v5658_v38 = vpack.c.bf16 %v9732_v53, %v9730_v2  ;;  %v5873_v36 = vld [vmem:[#allocation7] sm:$0xff]  ;;  %5856 = vmatprep.subr.bf16.mxu1 %v5659_v14 }
 0x396   :  { %v574_v25 = vld [vmem:[#allocation11 + $0x58] sm:$0xff]  ;;  %v386_v41 = vmul.f32 0.999, %v194_v46  ;;  %v573_v21 = vld [vmem:[#allocation11 + $0x50] sm:$0xff] }
 0x397   :  { %v12125_v19 = vld [vmem:[#allocation85_spill] sm:$0xff]  ;;  %v766_v28 = vmul.f32 0.001, %v574_v25  ;;  %2447 = vst [vmem:[#allocation20 + $0x90] sm:$0xff] %v9760_v43  ;;  %v765_v22 = vmul.f32 0.001, %v573_v21  ;;  %5857 = vmatpush2.bf16.msra.mxu1 %v5658_v38 }
 0x398   :  { %v12127_v5 = vpack.c.bf16 %v12125_v19, %v12126_v50  ;;  %v578_v0 = vld [vmem:[#allocation11 + $0x78] sm:$0xff]  ;;  %v9768_v50 = vadd.f32 %v777_v48, %v393_v7  ;;  %v577_v19 = vld [vmem:[#allocation11 + $0x70] sm:$0xff] }
 0x399   :  { %v770_v31 = vmul.f32 0.001, %v578_v0  ;;  %v5876_v46 = vld [vmem:[#allocation7 + $0x18] sm:$0xff]  ;;  %v9773_v25 = vadd.f32 %v766_v28, %v382_v15  ;;  %v769_v55 = vmul.f32 0.001, %v577_v19  ;;  %v5977_v15 = vpack.c.bf16 %v9385_v45, %v9383_v44  ;;  %v345_v44 = vld [vmem:[#allocation14 + $0x530] sm:$0xff] }
 0x39a   :  { %6089 = vmatpush2.bf16.msra.mxu0 %v12127_v5  ;;  %v5978_v5 = vpack.c.bf16 %v9362_v26, %v9356_v47  ;;  %v342_v47 = vld [vmem:[#allocation14 + $0x518] sm:$0xff]  ;;  %v5655_v26 = vpack.c.bf16 %v9744_v17, %v9742_v52  ;;  %2451 = vst [vmem:[#allocation20 + $0xb0] sm:$0xff] %v9768_v50  ;;  %v9783_v28 = vadd.f32 %v765_v22, %v381_v8  ;;  %v537_v8 = vmul.f32 0.999, %v345_v44  ;;  %v725_v21 = vld [vmem:[#allocation11 + $0x510] sm:$0xff] }
 0x39b   :  { %6090 = vmatprep.subr.bf16.mxu0 %v5982_v30  ;;  %v385_v30 = vmul.f32 0.999, %v193_v23  ;;  %v9778_v7 = vadd.f32 %v770_v31, %v386_v41  ;;  %v346_v2 = vld [vmem:[#allocation14 + $0x538] sm:$0xff]  ;;  %v534_v53 = vmul.f32 0.999, %v342_v47  ;;  %2440 = vst [vmem:[#allocation20 + $0x58] sm:$0xff] %v9773_v25  ;;  %v6040_v52 = vpack.c.bf16 %v9499_v51, %v9497_v3 }
 0x39c   :  { %v726_v48 = vld [vmem:[#allocation11 + $0x518] sm:$0xff]  ;;  %v538_v14 = vmul.f32 0.999, %v346_v2  ;;  %v5883_v41 = vld [vmem:[#allocation7 + $0x50] sm:$0xff]  ;;  %v5654_v45 = vpack.c.bf16 %v9764_v58, %v9762_v49  ;;  %2439 = vst [vmem:[#allocation20 + $0x50] sm:$0xff] %v9783_v28  ;;  %5858 = vmatprep.subr.bf16.mxu1 %v5655_v26  ;;  %v9795_v51 = vpack.c.bf16 %v5876_v46, %v5873_v36  ;;  %v6039_v49 = vpack.c.bf16 %v9523_v13, %v9521_v32 }
 0x39d   :  { %v5880_v0 = vld [vmem:[#allocation7 + $0x38] sm:$0xff]  ;;  %v918_v17 = vmul.f32 0.001, %v726_v48  ;;  %2444 = vst [vmem:[#allocation20 + $0x78] sm:$0xff] %v9778_v7  ;;  %v9788_v31 = vadd.f32 %v769_v55, %v385_v30  ;;  %v341_v23 = vld [vmem:[#allocation14 + $0x510] sm:$0xff]  ;;  %v6036_v36 = vpack.c.bf16 %v9611_v29, %v9606_v63  ;;  %v6035_v63 = vpack.c.bf16 %v9627_v16, %v9625_v34  ;;  %v5886_v34 = vld [vmem:[#allocation7 + $0x68] sm:$0xff] }
 0x39e   :  { %6091 = vmatpush2.bf16.msra.mxu0 %v5981_v42  ;;  %v730_v54 = vld [vmem:[#allocation11 + $0x538] sm:$0xff]  ;;  %v729_v3 = vld [vmem:[#allocation11 + $0x530] sm:$0xff]  ;;  %12128 = vst [vmem:[#allocation58_spill] sm:$0xff] %v9795_v51  ;;  %v917_v19 = vmul.f32 0.001, %v725_v21  ;;  %v9800_v47 = vpack.c.bf16 %v5883_v41, %v5880_v0  ;;  %5859 = vmatpush2.bf16.msra.mxu1 %v5654_v45  ;;  %v5882_v45 = vld [vmem:[#allocation7 + $0x48] sm:$0xff] }
 0x39f   :  { %6092 = vmatprep.subr.bf16.mxu0 %v5978_v5  ;;  %v922_v42 = vmul.f32 0.001, %v730_v54  ;;  %v9793_v22 = vadd.f32 %v918_v17, %v534_v53  ;;  %v533_v5 = vmul.f32 0.999, %v341_v23  ;;  %2443 = vst [vmem:[#allocation20 + $0x70] sm:$0xff] %v9788_v31  ;;  %v182_v58 = vld [vmem:[#allocation14 + $0x18] sm:$0xff] }
 0x3a0   :  { %v921_v38 = vmul.f32 0.001, %v729_v3  ;;  %12129 = vst [vmem:[#allocation57_spill] sm:$0xff] %v9800_v47  ;;  %v186_v55 = vld [vmem:[#allocation14 + $0x38] sm:$0xff]  ;;  %v374_v53 = vmul.f32 0.999, %v182_v58 }
 0x3a1   :  { %v9798_v30 = vadd.f32 %v922_v42, %v538_v14  ;;  %2592 = vst [vmem:[#allocation20 + $0x518] sm:$0xff] %v9793_v22  ;;  %v566_v2 = vld [vmem:[#allocation11 + $0x18] sm:$0xff]  ;;  %v9808_v46 = vadd.f32 %v917_v19, %v533_v5  ;;  %v185_v0 = vld [vmem:[#allocation14 + $0x30] sm:$0xff]  ;;  %v378_v32 = vmul.f32 0.999, %v186_v55  ;;  %5861 = vmatmul.mubr.bf16.vlgmr.msra.gmra.mxu1 %v9343_v12  ;;  %v5889_v16 = vld [vmem:[#allocation7 + $0x80] sm:$0xff]  ;;  %v6032_v19 = vpack.c.bf16 %v9717_v6, %v9709_v59 }
 0x3a2   :  { %6093 = vmatpush2.bf16.msra.mxu0 %v5977_v15  ;;  %v9810_v26 = vadd.f32 %v921_v38, %v537_v8  ;;  %v570_v48 = vld [vmem:[#allocation11 + $0x38] sm:$0xff]  ;;  %v181_v15 = vld [vmem:[#allocation14 + $0x10] sm:$0xff]  ;;  %v758_v13 = vmul.f32 0.001, %v566_v2  ;;  %v377_v41 = vmul.f32 0.999, %v185_v0 }
 0x3a3   :  { %6401 = vmatprep.subr.bf16.mxu0 %v6040_v52  ;;  %2596 = vst [vmem:[#allocation20 + $0x538] sm:$0xff] %v9798_v30  ;;  %v762_v14 = vmul.f32 0.001, %v570_v48  ;;  %v12130_v54 = vld [vmem:[#allocation52_spill] sm:$0xff]  ;;  %v12131_v17 = vld [vmem:[#allocation51_spill] sm:$0xff]  ;;  %2591 = vst [vmem:[#allocation20 + $0x510] sm:$0xff] %v9808_v46 }
 0x3a4   :  { %v12132_v52 = vpack.c.bf16 %v12130_v54, %v12131_v17  ;;  %2595 = vst [vmem:[#allocation20 + $0x530] sm:$0xff] %v9810_v26  ;;  %v373_v29 = vmul.f32 0.999, %v181_v15  ;;  %v565_v42 = vld [vmem:[#allocation11 + $0x10] sm:$0xff]  ;;  %v9821_v5 = vadd.f32 %v758_v13, %v374_v53  ;;  %v302_v38 = vld [vmem:[#allocation14 + $0x3d8] sm:$0xff]  ;;  %v12136_v2 = vmov 0  }
 0x3a5   :  { %6095 = vmatmul.mubr.bf16.vlgmr.msra.gmra.mxu0 %v9795_v51  ;;  %v569_v23 = vld [vmem:[#allocation11 + $0x30] sm:$0xff]  ;;  %v9823_v8 = vadd.f32 %v762_v14, %v378_v32  ;;  %v757_v21 = vmul.f32 0.001, %v565_v42  ;;  %6207 = vmatprep.mubr.bf16.mxu1 %v12136_v2  ;;  %v494_v48 = vmul.f32 0.999, %v302_v38  ;;  %v686_v15 = vld [vmem:[#allocation11 + $0x3d8] sm:$0xff] }
 0x3a6   :  { %6175 = vmatprep.subr.bf16.mxu1 %v12132_v52  ;;  %6104 = vmatprep.mubr.bf16.mxu0 %v9800_v47  ;;  %v5879_v44 = vld [vmem:[#allocation7 + $0x30] sm:$0xff]  ;;  %v761_v3 = vmul.f32 0.001, %v569_v23  ;;  %2432 = vst [vmem:[#allocation20 + $0x18] sm:$0xff] %v9821_v5  ;;  %v690_v0 = vld [vmem:[#allocation11 + $0x3f8] sm:$0xff]  ;;  %v9843_v52 = vpack.c.bf16 %v5889_v16, %v5886_v34 }
 0x3a7   :  { %6402 = vmatpush1.bf16.msra.mxu0 %v6039_v49  ;;  %v12133_v58 = vld [vmem:[#allocation56_spill] sm:$0xff]  ;;  %v12134_v55 = vld [vmem:[#allocation55_spill] sm:$0xff]  ;;  %2436 = vst [vmem:[#allocation20 + $0x38] sm:$0xff] %v9823_v8  ;;  %v9834_v53 = vadd.f32 %v757_v21, %v373_v29  ;;  %v9841_v13 = vpack.c.bf16 %v5882_v45, %v5879_v44  ;;  %v878_v54 = vmul.f32 0.001, %v686_v15  ;;  %v6031_v29 = vpack.c.bf16 %v9728_v11, %v9722_v37 }
 0x3a8   :  { %6403 = vmatprep.subr.bf16.mxu0 %v6036_v36  ;;  %v12135_v49 = vpack.c.bf16 %v12133_v58, %v12134_v55  ;;  %v9836_v12 = vadd.f32 %v761_v3, %v377_v41  ;;  %v306_v36 = vld [vmem:[#allocation14 + $0x3f8] sm:$0xff]  ;;  %v12138_v6 = vld [vmem:[#allocation59_spill] sm:$0xff]  ;;  %v882_v17 = vmul.f32 0.001, %v690_v0  ;;  %12141 = vst [vmem:[#allocation61_spill] sm:$0xff] %v9843_v52  ;;  %v6028_v41 = vpack.c.bf16 %v9798_v30, %v9793_v22  ;;  %v5885_v22 = vld [vmem:[#allocation7 + $0x60] sm:$0xff] }
 0x3a9   :  { %v12137_v59 = vld [vmem:[#allocation60_spill] sm:$0xff]  ;;  %12140 = vst [vmem:[#allocation62_spill] sm:$0xff] %v9841_v13  ;;  %v498_v14 = vmul.f32 0.999, %v306_v36  ;;  %2431 = vst [vmem:[#allocation20 + $0x10] sm:$0xff] %v9834_v53  ;;  %v9851_v45 = vadd.f32 %v878_v54, %v494_v48  ;;  %v12143_v11 = vld [vmem:[#allocation63_spill] sm:$0xff] }
 0x3aa   :  { %6176 = vmatpush1.bf16.msra.mxu1 %v12135_v49  ;;  %v12139_v32 = vpack.c.bf16 %v12137_v59, %v12138_v6  ;;  %2435 = vst [vmem:[#allocation20 + $0x30] sm:$0xff] %v9836_v12  ;;  %v301_v42 = vld [vmem:[#allocation14 + $0x3d0] sm:$0xff]  ;;  %v334_v16 = vld [vmem:[#allocation14 + $0x4d8] sm:$0xff]  ;;  %v6027_v59 = vpack.c.bf16 %v9810_v26, %v9808_v46 }
 0x3ab   :  { %6404 = vmatpush1.bf16.msra.mxu0 %v6035_v63  ;;  %v305_v23 = vld [vmem:[#allocation14 + $0x3f0] sm:$0xff]  ;;  %v9853_v21 = vadd.f32 %v882_v17, %v498_v14  ;;  %v493_v3 = vmul.f32 0.999, %v301_v42  ;;  %v5888_v30 = vld [vmem:[#allocation7 + $0x78] sm:$0xff]  ;;  %2552 = vst [vmem:[#allocation20 + $0x3d8] sm:$0xff] %v9851_v45 }
 0x3ac   :  { %6177 = vmatprep.subr.bf16.mxu1 %v12139_v32  ;;  %v685_v44 = vld [vmem:[#allocation11 + $0x3d0] sm:$0xff]  ;;  %6405 = vmatprep.subr.bf16.mxu0 %v6032_v19  ;;  %v497_v63 = vmul.f32 0.999, %v305_v23  ;;  %v338_v49 = vld [vmem:[#allocation14 + $0x4f8] sm:$0xff]  ;;  %v526_v6 = vmul.f32 0.999, %v334_v16 }
 0x3ad   :  { %v689_v34 = vld [vmem:[#allocation11 + $0x3f0] sm:$0xff]  ;;  %v877_v58 = vmul.f32 0.001, %v685_v44  ;;  %v718_v36 = vld [vmem:[#allocation11 + $0x4d8] sm:$0xff]  ;;  %6105 = vmatmul.mubr.bf16.gmra.mxu0 %v9841_v13  ;;  %2556 = vst [vmem:[#allocation20 + $0x3f8] sm:$0xff] %v9853_v21 }
 0x3ae   :  { %v12142_v37 = vld [vmem:[#allocation64_spill] sm:$0xff]  ;;  %v881_v55 = vmul.f32 0.001, %v689_v34  ;;  %v12146_v19 = vld [vmem:[#allocation67_spill] sm:$0xff]  ;;  %v530_v32 = vmul.f32 0.999, %v338_v49  ;;  %6114 = vmatprep.mubr.bf16.mxu0 %v9843_v52 }
 0x3af   :  { %v12144_v38 = vpack.c.bf16 %v12142_v37, %v12143_v11  ;;  %v12145_v15 = vld [vmem:[#allocation68_spill] sm:$0xff]  ;;  %6406 = vmatpush1.bf16.msra.mxu0 %v6031_v29  ;;  %v9867_v17 = vadd.f32 %v877_v58, %v493_v3  ;;  %v910_v23 = vmul.f32 0.001, %v718_v36  ;;  %v12149_v16 = vld [vmem:[#allocation71_spill] sm:$0xff] }
 0x3b0   :  { %v12147_v48 = vpack.c.bf16 %v12145_v15, %v12146_v19  ;;  %v5892_v0 = vld [vmem:[#allocation7 + $0x98] sm:$0xff]  ;;  %v5895_v54 = vld [vmem:[#allocation7 + $0xb0] sm:$0xff]  ;;  %v9869_v42 = vadd.f32 %v881_v55, %v497_v63  ;;  %6407 = vmatprep.subr.bf16.mxu0 %v6028_v41  ;;  %v9879_v41 = vpack.c.bf16 %v5888_v30, %v5885_v22 }
 0x3b1   :  { %6178 = vmatpush1.bf16.msra.mxu1 %v12144_v38  ;;  %v722_v14 = vld [vmem:[#allocation11 + $0x4f8] sm:$0xff]  ;;  %v333_v34 = vld [vmem:[#allocation14 + $0x4d0] sm:$0xff]  ;;  %2551 = vst [vmem:[#allocation20 + $0x3d0] sm:$0xff] %v9867_v17  ;;  %v1102_v29 = vadd.f32 %v910_v23, %v526_v6 }
 0x3b2   :  { %6179 = vmatprep.subr.bf16.mxu1 %v12147_v48  ;;  %v914_v44 = vmul.f32 0.001, %v722_v14  ;;  %v337_v46 = vld [vmem:[#allocation14 + $0x4f0] sm:$0xff]  ;;  %v525_v26 = vmul.f32 0.999, %v333_v34  ;;  %2555 = vst [vmem:[#allocation20 + $0x3f0] sm:$0xff] %v9869_v42 }
 0x3b3   :  { %v717_v37 = vld [vmem:[#allocation11 + $0x4d0] sm:$0xff]  ;;  %v529_v63 = vmul.f32 0.999, %v337_v46  ;;  %v294_v58 = vld [vmem:[#allocation14 + $0x398] sm:$0xff]  ;;  %12154 = vst [vmem:[#allocation66_spill] sm:$0xff] %v9879_v41  ;;  %6408 = vmatpush1.bf16.msra.mxu0 %v6027_v59  ;;  %2584 = vst [vmem:[#allocation20 + $0x4d8] sm:$0xff] %v1102_v29 }
 0x3b4   :  { %v721_v11 = vld [vmem:[#allocation11 + $0x4f0] sm:$0xff]  ;;  %v1106_v3 = vadd.f32 %v914_v44, %v530_v32  ;;  %v909_v19 = vmul.f32 0.001, %v717_v37  ;;  %v298_v14 = vld [vmem:[#allocation14 + $0x3b8] sm:$0xff]  ;;  %v486_v6 = vmul.f32 0.999, %v294_v58 }
 0x3b5   :  { %v12148_v38 = vld [vmem:[#allocation72_spill] sm:$0xff]  ;;  %v12152_v36 = vld [vmem:[#allocation75_spill] sm:$0xff]  ;;  %v913_v48 = vmul.f32 0.001, %v721_v11  ;;  %v490_v32 = vmul.f32 0.999, %v298_v14  ;;  %6115 = vmatmul.mubr.bf16.gmra.mxu0 %v9879_v41 }
 0x3b6   :  { %v12150_v49 = vpack.c.bf16 %v12148_v38, %v12149_v16  ;;  %v12151_v55 = vld [vmem:[#allocation76_spill] sm:$0xff]  ;;  %v9881_v38 = vpack.c.bf16 %v5895_v54, %v5892_v0  ;;  %2588 = vst [vmem:[#allocation20 + $0x4f8] sm:$0xff] %v1106_v3  ;;  %v6024_v16 = vpack.c.bf16 %v1106_v3, %v1102_v29  ;;  %v1101_v46 = vadd.f32 %v909_v19, %v525_v26  ;;  %v12156_v37 = vld [vmem:[#allocation79_spill] sm:$0xff]  ;;  %v12157_v11 = vld [vmem:[#allocation78_spill] sm:$0xff] }
 0x3b7   :  { %v12153_v15 = vpack.c.bf16 %v12151_v55, %v12152_v36  ;;  %v678_v34 = vld [vmem:[#allocation11 + $0x398] sm:$0xff]  ;;  %v293_v44 = vld [vmem:[#allocation14 + $0x390] sm:$0xff]  ;;  %v5894_v54 = vld [vmem:[#allocation7 + $0xa8] sm:$0xff] }
 0x3b8   :  { %6180 = vmatpush1.bf16.msra.mxu1 %v12150_v49  ;;  %12155 = vst [vmem:[#allocation65_spill] sm:$0xff] %v9881_v38  ;;  %v682_v23 = vld [vmem:[#allocation11 + $0x3b8] sm:$0xff]  ;;  %v1105_v49 = vadd.f32 %v913_v48, %v529_v63  ;;  %v870_v55 = vmul.f32 0.001, %v678_v34  ;;  %v297_v22 = vld [vmem:[#allocation14 + $0x3b0] sm:$0xff]  ;;  %6409 = vmatprep.subr.bf16.mxu0 %v6024_v16  ;;  %v12160_v58 = vld [vmem:[#allocation82_spill] sm:$0xff] }
 0x3b9   :  { %6181 = vmatprep.subr.bf16.mxu1 %v12153_v15  ;;  %v874_v36 = vmul.f32 0.001, %v682_v23  ;;  %v677_v30 = vld [vmem:[#allocation11 + $0x390] sm:$0xff]  ;;  %v12158_v15 = vpack.c.bf16 %v12156_v37, %v12157_v11  ;;  %v485_v59 = vmul.f32 0.999, %v293_v44  ;;  %v5898_v26 = vld [vmem:[#allocation7 + $0xc8] sm:$0xff]  ;;  %6124 = vmatprep.mubr.bf16.mxu0 %v9881_v38 }
 0x3ba   :  { %v5891_v0 = vld [vmem:[#allocation7 + $0x90] sm:$0xff]  ;;  %v489_v52 = vmul.f32 0.999, %v297_v22  ;;  %v5901_v63 = vld [vmem:[#allocation7 + $0xe0] sm:$0xff]  ;;  %2583 = vst [vmem:[#allocation20 + $0x4d0] sm:$0xff] %v1101_v46  ;;  %2587 = vst [vmem:[#allocation20 + $0x4f0] sm:$0xff] %v1105_v49  ;;  %v6023_v19 = vpack.c.bf16 %v1105_v49, %v1101_v46  ;;  %v9890_v48 = vadd.f32 %v870_v55, %v486_v6 }
 0x3bb   :  { %v681_v29 = vld [vmem:[#allocation11 + $0x3b0] sm:$0xff]  ;;  %v9892_v34 = vadd.f32 %v874_v36, %v490_v32  ;;  %v869_v23 = vmul.f32 0.001, %v677_v30  ;;  %v286_v16 = vld [vmem:[#allocation14 + $0x358] sm:$0xff]  ;;  %v12162_v32 = vld [vmem:[#allocation86_spill] sm:$0xff] }
 0x3bc   :  { %6182 = vmatpush1.bf16.msra.mxu1 %v12158_v15  ;;  %v12159_v3 = vld [vmem:[#allocation83_spill] sm:$0xff]  ;;  %v290_v44 = vld [vmem:[#allocation14 + $0x378] sm:$0xff]  ;;  %v873_v22 = vmul.f32 0.001, %v681_v29  ;;  %v478_v37 = vmul.f32 0.999, %v286_v16  ;;  %6410 = vmatpush1.bf16.msra.mxu0 %v6023_v19  ;;  %v12163_v55 = vpack.c.bf16 %v9287_v4, %v12162_v32  ;;  %v9907_v16 = vpack.c.bf16 %v5894_v54, %v5891_v0 }
 0x3bd   :  { %v12161_v14 = vpack.c.bf16 %v12159_v3, %v12160_v58  ;;  %v482_v11 = vmul.f32 0.999, %v290_v44  ;;  %2544 = vst [vmem:[#allocation20 + $0x398] sm:$0xff] %v9890_v48  ;;  %2548 = vst [vmem:[#allocation20 + $0x3b8] sm:$0xff] %v9892_v34  ;;  %v9897_v15 = vadd.f32 %v869_v23, %v485_v59  ;;  %v670_v46 = vld [vmem:[#allocation11 + $0x358] sm:$0xff]  ;;  %v285_v49 = vld [vmem:[#allocation14 + $0x350] sm:$0xff]  ;;  %v9910_v4 = vpack.c.bf16 %v5901_v63, %v5898_v26 }
 0x3be   :  { %v674_v6 = vld [vmem:[#allocation11 + $0x378] sm:$0xff]  ;;  %v9902_v36 = vadd.f32 %v873_v22, %v489_v52  ;;  %v862_v30 = vmul.f32 0.001, %v670_v46  ;;  %v289_v3 = vld [vmem:[#allocation14 + $0x370] sm:$0xff]  ;;  %12166 = vst [vmem:[#allocation70_spill] sm:$0xff] %v9907_v16  ;;  %6125 = vmatmul.mubr.bf16.gmra.mxu0 %v9907_v16 }
 0x3bf   :  { %6183 = vmatprep.subr.bf16.mxu1 %v12161_v14  ;;  %v866_v29 = vmul.f32 0.001, %v674_v6  ;;  %v669_v58 = vld [vmem:[#allocation11 + $0x350] sm:$0xff]  ;;  %2543 = vst [vmem:[#allocation20 + $0x390] sm:$0xff] %v9897_v15  ;;  %v477_v59 = vmul.f32 0.999, %v285_v49  ;;  %v12168_v49 = vpack.c.bf16 %v9341_v39, %v9339_v10  ;;  %6134 = vmatprep.mubr.bf16.mxu0 %v9910_v4 }
 0x3c0   :  { %6184 = vmatpush1.bf16.msra.mxu1 %v12163_v55  ;;  %v12164_v14 = vld [vmem:[#allocation87_spill] sm:$0xff]  ;;  %v481_v23 = vmul.f32 0.999, %v289_v3  ;;  %v326_v38 = vld [vmem:[#allocation14 + $0x498] sm:$0xff]  ;;  %12167 = vst [vmem:[#allocation69_spill] sm:$0xff] %v9910_v4  ;;  %2547 = vst [vmem:[#allocation20 + $0x3b0] sm:$0xff] %v9902_v36  ;;  %v9913_v52 = vadd.f32 %v862_v30, %v478_v37  ;;  %v12169_v30 = vpack.c.bf16 %v9372_v35, %v9366_v60 }
 0x3c1   :  { %v12165_v19 = vpack.c.bf16 %v9321_v18, %v12164_v14  ;;  %v673_v44 = vld [vmem:[#allocation11 + $0x370] sm:$0xff]  ;;  %v9915_v22 = vadd.f32 %v866_v29, %v482_v11  ;;  %v861_v46 = vmul.f32 0.001, %v669_v58  ;;  %v330_v6 = vld [vmem:[#allocation14 + $0x4b8] sm:$0xff]  ;;  %v518_v54 = vmul.f32 0.999, %v326_v38 }
 0x3c2   :  { %v710_v18 = vld [vmem:[#allocation11 + $0x498] sm:$0xff]  ;;  %v865_v0 = vmul.f32 0.001, %v673_v44  ;;  %v522_v55 = vmul.f32 0.999, %v330_v6  ;;  %v5897_v3 = vld [vmem:[#allocation7 + $0xc0] sm:$0xff] }
 0x3c3   :  { %6185 = vmatprep.subr.bf16.mxu1 %v12165_v19  ;;  %v714_v32 = vld [vmem:[#allocation11 + $0x4b8] sm:$0xff]  ;;  %2536 = vst [vmem:[#allocation20 + $0x358] sm:$0xff] %v9913_v52  ;;  %2540 = vst [vmem:[#allocation20 + $0x378] sm:$0xff] %v9915_v22  ;;  %v9922_v63 = vadd.f32 %v861_v46, %v477_v59  ;;  %v902_v37 = vmul.f32 0.001, %v710_v18  ;;  %v325_v10 = vld [vmem:[#allocation14 + $0x490] sm:$0xff] }
 0x3c4   :  { %6186 = vmatpush1.bf16.msra.mxu1 %v12168_v49  ;;  %v5900_v26 = vld [vmem:[#allocation7 + $0xd8] sm:$0xff]  ;;  %v906_v11 = vmul.f32 0.001, %v714_v32  ;;  %v9928_v38 = vadd.f32 %v865_v0, %v481_v23  ;;  %v329_v39 = vld [vmem:[#allocation14 + $0x4b0] sm:$0xff]  ;;  %v5878_v14 = vld [vmem:[#allocation7 + $0x28] sm:$0xff]  ;;  %v12170_v0 = vpack.c.bf16 %v9411_v24, %v9409_v40 }
 0x3c5   :  { %6187 = vmatprep.subr.bf16.mxu1 %v12169_v30  ;;  %v709_v29 = vld [vmem:[#allocation11 + $0x490] sm:$0xff]  ;;  %v5904_v19 = vld [vmem:[#allocation7 + $0xf8] sm:$0xff]  ;;  %2535 = vst [vmem:[#allocation20 + $0x350] sm:$0xff] %v9922_v63  ;;  %v1094_v59 = vadd.f32 %v902_v37, %v518_v54  ;;  %v517_v46 = vmul.f32 0.999, %v325_v10  ;;  %v9936_v49 = vpack.c.bf16 %v5900_v26, %v5897_v3  ;;  %v12172_v10 = vpack.c.bf16 %v9432_v57, %v9430_v1 }
 0x3c6   :  { %v5875_v58 = vld [vmem:[#allocation7 + $0x10] sm:$0xff]  ;;  %v1098_v44 = vadd.f32 %v906_v11, %v522_v55  ;;  %v521_v6 = vmul.f32 0.999, %v329_v39  ;;  %2539 = vst [vmem:[#allocation20 + $0x370] sm:$0xff] %v9928_v38  ;;  %v901_v23 = vmul.f32 0.001, %v709_v29 }
 0x3c7   :  { %v713_v60 = vld [vmem:[#allocation11 + $0x4b0] sm:$0xff]  ;;  %v278_v32 = vld [vmem:[#allocation14 + $0x318] sm:$0xff]  ;;  %12171 = vst [vmem:[#allocation74_spill] sm:$0xff] %v9936_v49  ;;  %2576 = vst [vmem:[#allocation20 + $0x498] sm:$0xff] %v1094_v59  ;;  %6135 = vmatmul.mubr.bf16.gmra.mxu0 %v9936_v49 }
 0x3c8   :  { %v5907_v35 = vld [vmem:[#allocation7 + $0x110] sm:$0xff]  ;;  %v905_v18 = vmul.f32 0.001, %v713_v60  ;;  %6188 = vmatpush1.bf16.msra.mxu1 %v12170_v0  ;;  %2580 = vst [vmem:[#allocation20 + $0x4b8] sm:$0xff] %v1098_v44  ;;  %v6020_v30 = vpack.c.bf16 %v1098_v44, %v1094_v59  ;;  %v282_v54 = vld [vmem:[#allocation14 + $0x338] sm:$0xff]  ;;  %v1093_v39 = vadd.f32 %v901_v23, %v517_v46  ;;  %v9943_v44 = vpack.c.bf16 %v5878_v14, %v5875_v58  ;;  %v5913_v14 = vld [vmem:[#allocation7 + $0x140] sm:$0xff] }
 0x3c9   :  { %v470_v55 = vmul.f32 0.999, %v278_v32  ;;  %v662_v37 = vld [vmem:[#allocation11 + $0x318] sm:$0xff]  ;;  %6189 = vmatprep.subr.bf16.mxu1 %v12172_v10  ;;  %v474_v60 = vmul.f32 0.999, %v282_v54  ;;  %v277_v16 = vld [vmem:[#allocation14 + $0x310] sm:$0xff]  ;;  %v9941_v24 = vpack.c.bf16 %v5907_v35, %v5904_v19  ;;  %v12175_v58 = vpack.c.bf16 %v9468_v27, %v9466_v61 }
 0x3ca   :  { %v666_v11 = vld [vmem:[#allocation11 + $0x338] sm:$0xff]  ;;  %v1097_v29 = vadd.f32 %v905_v18, %v521_v6  ;;  %v854_v4 = vmul.f32 0.001, %v662_v37  ;;  %v281_v40 = vld [vmem:[#allocation14 + $0x330] sm:$0xff]  ;;  %6411 = vmatprep.subr.bf16.mxu0 %v6020_v30  ;;  %v469_v26 = vmul.f32 0.999, %v277_v16  ;;  %v12174_v6 = vpack.c.bf16 %v9456_v33, %v9448_v62 }
 0x3cb   :  { %12173 = vst [vmem:[#allocation73_spill] sm:$0xff] %v9941_v24  ;;  %v858_v3 = vmul.f32 0.001, %v666_v11  ;;  %v473_v59 = vmul.f32 0.999, %v281_v40  ;;  %v5903_v32 = vld [vmem:[#allocation7 + $0xf0] sm:$0xff]  ;;  %6144 = vmatprep.mubr.bf16.mxu0 %v9941_v24 }
 0x3cc   :  { %2575 = vst [vmem:[#allocation20 + $0x490] sm:$0xff] %v1093_v39  ;;  %2579 = vst [vmem:[#allocation20 + $0x4b0] sm:$0xff] %v1097_v29  ;;  %v6019_v0 = vpack.c.bf16 %v1097_v29, %v1093_v39  ;;  %v9945_v1 = vadd.f32 %v854_v4, %v470_v55  ;;  %v661_v57 = vld [vmem:[#allocation11 + $0x310] sm:$0xff]  ;;  %6190 = vmatpush1.bf16.msra.mxu1 %v12174_v6  ;;  %v5906_v19 = vld [vmem:[#allocation7 + $0x108] sm:$0xff] }
 0x3cd   :  { %v665_v46 = vld [vmem:[#allocation11 + $0x330] sm:$0xff]  ;;  %v9950_v35 = vadd.f32 %v858_v3, %v474_v60  ;;  %v853_v23 = vmul.f32 0.001, %v661_v57  ;;  %v270_v18 = vld [vmem:[#allocation14 + $0x2d8] sm:$0xff]  ;;  %6288 = vmatprep.subr.bf16.mxu1 %v12175_v58  ;;  %v5910_v4 = vld [vmem:[#allocation7 + $0x128] sm:$0xff] }
 0x3ce   :  { %v857_v16 = vmul.f32 0.001, %v665_v46  ;;  %2528 = vst [vmem:[#allocation20 + $0x318] sm:$0xff] %v9945_v1  ;;  %v274_v30 = vld [vmem:[#allocation14 + $0x2f8] sm:$0xff]  ;;  %v462_v54 = vmul.f32 0.999, %v270_v18  ;;  %6412 = vmatpush1.bf16.msra.mxu0 %v6019_v0  ;;  %v9968_v0 = vpack.c.bf16 %v5906_v19, %v5903_v32 }
 0x3cf   :  { %v654_v62 = vld [vmem:[#allocation11 + $0x2d8] sm:$0xff]  ;;  %v5881_v55 = vld [vmem:[#allocation7 + $0x40] sm:$0xff]  ;;  %2532 = vst [vmem:[#allocation20 + $0x338] sm:$0xff] %v9950_v35  ;;  %v9959_v11 = vadd.f32 %v853_v23, %v469_v26  ;;  %v466_v27 = vmul.f32 0.999, %v274_v30  ;;  %v269_v10 = vld [vmem:[#allocation14 + $0x2d0] sm:$0xff]  ;;  %6208 = vmatmul.mubr.bf16.vlgmr.msra.gmra.mxu1 %v9943_v44 }
 0x3d0   :  { %v658_v33 = vld [vmem:[#allocation11 + $0x2f8] sm:$0xff]  ;;  %v9961_v61 = vadd.f32 %v857_v16, %v473_v59  ;;  %v273_v39 = vld [vmem:[#allocation14 + $0x2f0] sm:$0xff]  ;;  %v846_v60 = vmul.f32 0.001, %v654_v62  ;;  %v461_v3 = vmul.f32 0.999, %v269_v10  ;;  %6217 = vmatprep.mubr.bf16.mxu1 %v12136_v2  ;;  %v9979_v10 = vpack.c.bf16 %v5913_v14, %v5910_v4  ;;  %6145 = vmatmul.mubr.bf16.gmra.mxu0 %v9968_v0 }
 0x3d1   :  { %v5884_v37 = vld [vmem:[#allocation7 + $0x58] sm:$0xff]  ;;  %v653_v29 = vld [vmem:[#allocation11 + $0x2d0] sm:$0xff]  ;;  %v850_v40 = vmul.f32 0.001, %v658_v33  ;;  %12178 = vst [vmem:[#allocation77_spill] sm:$0xff] %v9968_v0  ;;  %2527 = vst [vmem:[#allocation20 + $0x310] sm:$0xff] %v9959_v11 }
 0x3d2   :  { %v12176_v57 = vld [vmem:[#allocation89_spill] sm:$0xff]  ;;  %2531 = vst [vmem:[#allocation20 + $0x330] sm:$0xff] %v9961_v61  ;;  %v465_v26 = vmul.f32 0.999, %v273_v39  ;;  %v657_v59 = vld [vmem:[#allocation11 + $0x2f0] sm:$0xff]  ;;  %v12180_v18 = vld [vmem:[#allocation90_spill] sm:$0xff]  ;;  %v9975_v30 = vadd.f32 %v846_v60, %v462_v54  ;;  %v9983_v24 = vpack.c.bf16 %v5884_v37, %v5881_v55  ;;  %6154 = vmatprep.mubr.bf16.mxu0 %v9979_v10 }
 0x3d3   :  { %v12177_v46 = vpack.c.bf16 %v9491_v9, %v12176_v57  ;;  %v845_v6 = vmul.f32 0.001, %v653_v29  ;;  %v318_v23 = vld [vmem:[#allocation14 + $0x458] sm:$0xff]  ;;  %v12179_v16 = vld [vmem:[#allocation91_spill] sm:$0xff]  ;;  %v9977_v9 = vadd.f32 %v850_v40, %v466_v27  ;;  %v849_v62 = vmul.f32 0.001, %v657_v59 }
 0x3d4   :  { %v12181_v58 = vpack.c.bf16 %v12179_v16, %v12180_v18  ;;  %v322_v33 = vld [vmem:[#allocation14 + $0x478] sm:$0xff]  ;;  %v510_v32 = vmul.f32 0.999, %v318_v23  ;;  %12182 = vst [vmem:[#allocation81_spill] sm:$0xff] %v9979_v10  ;;  %v5909_v49 = vld [vmem:[#allocation7 + $0x120] sm:$0xff]  ;;  %2520 = vst [vmem:[#allocation20 + $0x2d8] sm:$0xff] %v9975_v30 }
 0x3d5   :  { %6289 = vmatpush1.bf16.msra.mxu1 %v12177_v46  ;;  %v702_v19 = vld [vmem:[#allocation11 + $0x458] sm:$0xff]  ;;  %v9981_v57 = vadd.f32 %v845_v6, %v461_v3  ;;  %v514_v39 = vmul.f32 0.999, %v322_v33  ;;  %2524 = vst [vmem:[#allocation20 + $0x2f8] sm:$0xff] %v9977_v9  ;;  %v9987_v54 = vadd.f32 %v849_v62, %v465_v26  ;;  %v317_v60 = vld [vmem:[#allocation14 + $0x450] sm:$0xff] }
 0x3d6   :  { %6290 = vmatprep.subr.bf16.mxu1 %v12181_v58  ;;  %v706_v46 = vld [vmem:[#allocation11 + $0x478] sm:$0xff]  ;;  %v894_v29 = vmul.f32 0.001, %v702_v19  ;;  %v321_v40 = vld [vmem:[#allocation14 + $0x470] sm:$0xff]  ;;  %v509_v55 = vmul.f32 0.999, %v317_v60 }
 0x3d7   :  { %12183 = vst [vmem:[#allocation80_spill] sm:$0xff] %v9981_v57  ;;  %v5912_v16 = vld [vmem:[#allocation7 + $0x138] sm:$0xff]  ;;  %12184 = vst [vmem:[#allocation85_spill] sm:$0xff] %v9987_v54  ;;  %v898_v27 = vmul.f32 0.001, %v706_v46  ;;  %v12185_v4 = vld [vmem:[#allocation39_spill] sm:$0xff]  ;;  %6218 = vmatmul.mubr.bf16.gmra.mxu1 %v9983_v24 }
 0x3d8   :  { %v12186_v14 = vld [vmem:[#allocation40_spill] sm:$0xff]  ;;  %2519 = vst [vmem:[#allocation20 + $0x2d0] sm:$0xff] %v9981_v57  ;;  %v1086_v59 = vadd.f32 %v894_v29, %v510_v32  ;;  %v513_v37 = vmul.f32 0.999, %v321_v40  ;;  %v12188_v18 = vld [vmem:[#allocation41_spill] sm:$0xff]  ;;  %v12189_v58 = vld [vmem:[#allocation42_spill] sm:$0xff]  ;;  %6227 = vmatprep.mubr.bf16.mxu1 %v12136_v2  ;;  %v10004_v10 = vpack.c.bf16 %v5912_v16, %v5909_v49 }
 0x3d9   :  { %v12187_v3 = vpack.c.bf16 %v12185_v4, %v12186_v14  ;;  %v701_v6 = vld [vmem:[#allocation11 + $0x450] sm:$0xff]  ;;  %v12190_v33 = vpack.c.bf16 %v12188_v18, %v12189_v58  ;;  %2523 = vst [vmem:[#allocation20 + $0x2f0] sm:$0xff] %v9987_v54  ;;  %v1090_v26 = vadd.f32 %v898_v27, %v514_v39  ;;  %v5916_v62 = vld [vmem:[#allocation7 + $0x158] sm:$0xff]  ;;  %v12195_v57 = vld [vmem:[#allocation46_spill] sm:$0xff] }
 0x3da   :  { %v705_v23 = vld [vmem:[#allocation11 + $0x470] sm:$0xff]  ;;  %v893_v46 = vmul.f32 0.001, %v701_v6  ;;  %2568 = vst [vmem:[#allocation20 + $0x458] sm:$0xff] %v1086_v59  ;;  %v262_v32 = vld [vmem:[#allocation14 + $0x298] sm:$0xff]  ;;  %6155 = vmatmul.mubr.bf16.gmra.mxu0 %v10004_v10 }
 0x3db   :  { %6291 = vmatpush1.bf16.msra.mxu1 %v12187_v3  ;;  %v5919_v19 = vld [vmem:[#allocation7 + $0x170] sm:$0xff]  ;;  %v897_v4 = vmul.f32 0.001, %v705_v23  ;;  %v5890_v3 = vld [vmem:[#allocation7 + $0x88] sm:$0xff]  ;;  %v266_v29 = vld [vmem:[#allocation14 + $0x2b8] sm:$0xff]  ;;  %2572 = vst [vmem:[#allocation20 + $0x478] sm:$0xff] %v1090_v26  ;;  %v6016_v40 = vpack.c.bf16 %v1090_v26, %v1086_v59 }
 0x3dc   :  { %6292 = vmatprep.subr.bf16.mxu1 %v12190_v33  ;;  %v5887_v14 = vld [vmem:[#allocation7 + $0x70] sm:$0xff]  ;;  %v646_v60 = vld [vmem:[#allocation11 + $0x298] sm:$0xff]  ;;  %v1085_v18 = vadd.f32 %v893_v46, %v509_v55  ;;  %v454_v33 = vmul.f32 0.999, %v262_v32  ;;  %v458_v13 = vmul.f32 0.999, %v266_v29  ;;  %v10009_v55 = vpack.c.bf16 %v5919_v19, %v5916_v62 }
 0x3dd   :  { %v1089_v58 = vadd.f32 %v897_v4, %v513_v37  ;;  %v650_v39 = vld [vmem:[#allocation11 + $0x2b8] sm:$0xff]  ;;  %v261_v27 = vld [vmem:[#allocation14 + $0x290] sm:$0xff]  ;;  %v838_v47 = vmul.f32 0.001, %v646_v60  ;;  %6413 = vmatprep.subr.bf16.mxu0 %v6016_v40  ;;  %v10015_v60 = vpack.c.bf16 %v5890_v3, %v5887_v14 }
 0x3de   :  { %v265_v0 = vld [vmem:[#allocation14 + $0x2b0] sm:$0xff]  ;;  %v842_v51 = vmul.f32 0.001, %v650_v39  ;;  %v12194_v54 = vld [vmem:[#allocation45_spill] sm:$0xff]  ;;  %2567 = vst [vmem:[#allocation20 + $0x450] sm:$0xff] %v1085_v18  ;;  %6164 = vmatprep.mubr.bf16.mxu0 %v10009_v55 }
 0x3df   :  { %v12191_v6 = vld [vmem:[#allocation43_spill] sm:$0xff]  ;;  %v12192_v23 = vld [vmem:[#allocation44_spill] sm:$0xff]  ;;  %v12196_v59 = vpack.c.bf16 %v12194_v54, %v12195_v57  ;;  %2571 = vst [vmem:[#allocation20 + $0x470] sm:$0xff] %v1089_v58  ;;  %v6015_v37 = vpack.c.bf16 %v1089_v58, %v1085_v18  ;;  %v453_v26 = vmul.f32 0.999, %v261_v27  ;;  %v10011_v32 = vadd.f32 %v838_v47, %v454_v33  ;;  %v12200_v33 = vld [vmem:[#allocation50_spill] sm:$0xff]  ;;  %6228 = vmatmul.mubr.bf16.gmra.mxu1 %v10015_v60 }
 0x3e0   :  { %v12193_v41 = vpack.c.bf16 %v12191_v6, %v12192_v23  ;;  %v457_v46 = vmul.f32 0.999, %v265_v0  ;;  %v649_v4 = vld [vmem:[#allocation11 + $0x2b0] sm:$0xff]  ;;  %v10013_v49 = vadd.f32 %v842_v51, %v458_v13  ;;  %v254_v57 = vld [vmem:[#allocation14 + $0x258] sm:$0xff]  ;;  %v5918_v0 = vld [vmem:[#allocation7 + $0x168] sm:$0xff]  ;;  %v12201_v27 = vpack.c.bf16 %v9677_v20, %v12200_v33  ;;  %6237 = vmatprep.mubr.bf16.mxu1 %v12136_v2 }
 0x3e1   :  { %v841_v29 = vmul.f32 0.001, %v649_v4  ;;  %6414 = vmatpush1.bf16.msra.mxu0 %v6015_v37  ;;  %v258_v54 = vld [vmem:[#allocation14 + $0x278] sm:$0xff]  ;;  %v12197_v19 = vld [vmem:[#allocation47_spill] sm:$0xff]  ;;  %2512 = vst [vmem:[#allocation20 + $0x298] sm:$0xff] %v10011_v32 }
 0x3e2   :  { %6293 = vmatpush1.bf16.msra.mxu1 %v12193_v41  ;;  %v645_v41 = vld [vmem:[#allocation11 + $0x290] sm:$0xff]  ;;  %v638_v62 = vld [vmem:[#allocation11 + $0x258] sm:$0xff]  ;;  %2516 = vst [vmem:[#allocation20 + $0x2b8] sm:$0xff] %v10013_v49  ;;  %v446_v13 = vmul.f32 0.999, %v254_v57 }
 0x3e3   :  { %6294 = vmatprep.subr.bf16.mxu1 %v12196_v59  ;;  %v837_v16 = vmul.f32 0.001, %v645_v41  ;;  %v12198_v40 = vld [vmem:[#allocation48_spill] sm:$0xff]  ;;  %v10024_v47 = vadd.f32 %v841_v29, %v457_v46  ;;  %v12202_v6 = vld [vmem:[#allocation53_spill] sm:$0xff]  ;;  %v450_v41 = vmul.f32 0.999, %v258_v54 }
 0x3e4   :  { %v12199_v39 = vpack.c.bf16 %v12197_v19, %v12198_v40  ;;  %v5915_v18 = vld [vmem:[#allocation7 + $0x150] sm:$0xff]  ;;  %v642_v14 = vld [vmem:[#allocation11 + $0x278] sm:$0xff]  ;;  %v5956_v23 = vpack.c.bf16 %v12202_v6, %v9747_v56  ;;  %v5893_v59 = vld [vmem:[#allocation7 + $0xa0] sm:$0xff] }
 0x3e5   :  { %v10022_v51 = vadd.f32 %v837_v16, %v453_v26  ;;  %v310_v3 = vld [vmem:[#allocation14 + $0x418] sm:$0xff]  ;;  %v830_v26 = vmul.f32 0.001, %v638_v62  ;;  %v834_v4 = vmul.f32 0.001, %v642_v14  ;;  %2515 = vst [vmem:[#allocation20 + $0x2b0] sm:$0xff] %v10024_v47 }
 0x3e6   :  { %6295 = vmatpush1.bf16.msra.mxu1 %v12199_v39  ;;  %v314_v58 = vld [vmem:[#allocation14 + $0x438] sm:$0xff]  ;;  %v502_v46 = vmul.f32 0.999, %v310_v3  ;;  %v253_v62 = vld [vmem:[#allocation14 + $0x250] sm:$0xff]  ;;  %v12203_v39 = vld [vmem:[#allocation54_spill] sm:$0xff]  ;;  %v5955_v3 = vpack.c.bf16 %v9768_v50, %v9760_v43 }
 0x3e7   :  { %6296 = vmatprep.subr.bf16.mxu1 %v12201_v27  ;;  %v5896_v37 = vld [vmem:[#allocation7 + $0xb8] sm:$0xff]  ;;  %2511 = vst [vmem:[#allocation20 + $0x290] sm:$0xff] %v10022_v51  ;;  %v506_v16 = vmul.f32 0.999, %v314_v58  ;;  %v10036_v56 = vadd.f32 %v830_v26, %v446_v13  ;;  %v10038_v57 = vadd.f32 %v834_v4, %v450_v41  ;;  %v257_v40 = vld [vmem:[#allocation14 + $0x270] sm:$0xff]  ;;  %v5952_v58 = vpack.c.bf16 %v9778_v7, %v9773_v25 }
 0x3e8   :  { %v694_v20 = vld [vmem:[#allocation11 + $0x418] sm:$0xff]  ;;  %v445_v13 = vmul.f32 0.999, %v253_v62  ;;  %v449_v27 = vmul.f32 0.999, %v257_v40  ;;  %v637_v6 = vld [vmem:[#allocation11 + $0x250] sm:$0xff]  ;;  %v10048_v26 = vpack.c.bf16 %v5918_v0, %v5915_v18 }
 0x3e9   :  { %v698_v29 = vld [vmem:[#allocation11 + $0x438] sm:$0xff]  ;;  %v886_v19 = vmul.f32 0.001, %v694_v20  ;;  %v641_v41 = vld [vmem:[#allocation11 + $0x270] sm:$0xff]  ;;  %2504 = vst [vmem:[#allocation20 + $0x258] sm:$0xff] %v10036_v56  ;;  %2508 = vst [vmem:[#allocation20 + $0x278] sm:$0xff] %v10038_v57 }
 0x3ea   :  { %v890_v54 = vmul.f32 0.001, %v698_v29  ;;  %v12204_v14 = vld [vmem:[#allocation49_spill] sm:$0xff]  ;;  %v829_v29 = vmul.f32 0.001, %v637_v6  ;;  %v309_v43 = vld [vmem:[#allocation14 + $0x410] sm:$0xff]  ;;  %v5948_v6 = vpack.c.bf16 %v9823_v8, %v9821_v5  ;;  %6165 = vmatmul.mubr.bf16.gmra.mxu0 %v10048_v26  ;;  %v5947_v8 = vpack.c.bf16 %v9836_v12, %v9834_v53 }
 0x3eb   :  { %v12205_v33 = vpack.c.bf16 %v12203_v39, %v12204_v14  ;;  %v1078_v4 = vadd.f32 %v886_v19, %v502_v46  ;;  %v313_v50 = vld [vmem:[#allocation14 + $0x430] sm:$0xff]  ;;  %v10052_v14 = vpack.c.bf16 %v5896_v37, %v5893_v59  ;;  %v833_v25 = vmul.f32 0.001, %v641_v41  ;;  %v250_v19 = vld [vmem:[#allocation14 + $0x238] sm:$0xff]  ;;  %6433 = vmatprep.mubr.bf16.mxu0 %v12136_v2 }
 0x3ec   :  { %v1082_v20 = vadd.f32 %v890_v54, %v506_v16  ;;  %v693_v39 = vld [vmem:[#allocation11 + $0x410] sm:$0xff]  ;;  %v501_v7 = vmul.f32 0.999, %v309_v43  ;;  %v505_v62 = vmul.f32 0.999, %v313_v50  ;;  %v10056_v0 = vadd.f32 %v829_v29, %v445_v13  ;;  %v246_v16 = vld [vmem:[#allocation14 + $0x218] sm:$0xff] }
 0x3ed   :  { %6297 = vmatpush1.bf16.msra.mxu1 %v12205_v33  ;;  %2560 = vst [vmem:[#allocation20 + $0x418] sm:$0xff] %v1078_v4  ;;  %v697_v40 = vld [vmem:[#allocation11 + $0x430] sm:$0xff]  ;;  %v885_v46 = vmul.f32 0.001, %v693_v39  ;;  %v10058_v54 = vadd.f32 %v833_v25, %v449_v27  ;;  %v438_v37 = vmul.f32 0.999, %v246_v16  ;;  %v6008_v53 = vpack.c.bf16 %v9853_v21, %v9851_v45 }
 0x3ee   :  { %6298 = vmatprep.subr.bf16.mxu1 %v5956_v23  ;;  %v5951_v23 = vpack.c.bf16 %v9788_v31, %v9783_v28  ;;  %2564 = vst [vmem:[#allocation20 + $0x438] sm:$0xff] %v1082_v20  ;;  %v6012_v18 = vpack.c.bf16 %v1082_v20, %v1078_v4  ;;  %v889_v59 = vmul.f32 0.001, %v697_v40  ;;  %v442_v33 = vmul.f32 0.999, %v250_v19  ;;  %v5899_v28 = vld [vmem:[#allocation7 + $0xd0] sm:$0xff]  ;;  %6238 = vmatmul.mubr.bf16.gmra.mxu1 %v10052_v14 }
 0x3ef   :  { %v5902_v31 = vld [vmem:[#allocation7 + $0xe8] sm:$0xff]  ;;  %2503 = vst [vmem:[#allocation20 + $0x250] sm:$0xff] %v10056_v0  ;;  %v1077_v13 = vadd.f32 %v885_v46, %v501_v7  ;;  %v630_v41 = vld [vmem:[#allocation11 + $0x218] sm:$0xff]  ;;  %v245_v20 = vld [vmem:[#allocation14 + $0x210] sm:$0xff]  ;;  %6247 = vmatprep.mubr.bf16.mxu1 %v12136_v2 }
 0x3f0   :  { %v634_v4 = vld [vmem:[#allocation11 + $0x238] sm:$0xff]  ;;  %6415 = vmatprep.subr.bf16.mxu0 %v6012_v18  ;;  %2507 = vst [vmem:[#allocation20 + $0x270] sm:$0xff] %v10058_v54  ;;  %v249_v29 = vld [vmem:[#allocation14 + $0x230] sm:$0xff]  ;;  %v437_v43 = vmul.f32 0.999, %v245_v20  ;;  %v1201_v25 = vld [vmem:[#allocation16 + $0x1c8] sm:$0xff] }
 0x3f1   :  { %6299 = vmatpush1.bf16.msra.mxu1 %v5955_v3  ;;  %v1081_v3 = vadd.f32 %v889_v59, %v505_v62  ;;  %v826_v27 = vmul.f32 0.001, %v634_v4  ;;  %v629_v5 = vld [vmem:[#allocation11 + $0x210] sm:$0xff]  ;;  %2559 = vst [vmem:[#allocation20 + $0x410] sm:$0xff] %v1077_v13  ;;  %v441_v50 = vmul.f32 0.999, %v249_v29 }
 0x3f2   :  { %6300 = vmatprep.subr.bf16.mxu1 %v5952_v58  ;;  %v822_v58 = vmul.f32 0.001, %v630_v41  ;;  %v633_v39 = vld [vmem:[#allocation11 + $0x230] sm:$0xff]  ;;  %v821_v40 = vmul.f32 0.001, %v629_v5  ;;  %v1205_v46 = vld [vmem:[#allocation16 + $0x1e8] sm:$0xff] }
 0x3f3   :  { %2563 = vst [vmem:[#allocation20 + $0x430] sm:$0xff] %v1081_v3  ;;  %v6011_v7 = vpack.c.bf16 %v1081_v3, %v1077_v13  ;;  %v10072_v18 = vadd.f32 %v826_v27, %v442_v33  ;;  %v1713_v16 = vld [vmem:[#allocation13 + $0x1c8] sm:$0xff]  ;;  %v825_v12 = vmul.f32 0.001, %v633_v39  ;;  %v1457_v59 = vmul.f32 0.999, %v1201_v25  ;;  %v10091_v25 = vpop.f32.mrf.mxu0 }
 0x3f4   :  { %v10070_v62 = vadd.f32 %v822_v58, %v438_v37  ;;  %v1717_v19 = vld [vmem:[#allocation13 + $0x1e8] sm:$0xff]  ;;  %v1461_v41 = vmul.f32 0.999, %v1205_v46  ;;  %v10080_v37 = vadd.f32 %v821_v40, %v437_v43  ;;  %v1969_v33 = vmul.f32 0.001, %v1713_v16  ;;  %v1200_v4 = vld [vmem:[#allocation16 + $0x1c0] sm:$0xff] }
 0x3f5   :  { %6301 = vmatpush1.bf16.msra.mxu1 %v5951_v23  ;;  %v10076_v23 = vpack.c.bf16 %v5902_v31, %v5899_v28  ;;  %6416 = vmatpush1.bf16.msra.mxu0 %v6011_v7  ;;  %2500 = vst [vmem:[#allocation20 + $0x238] sm:$0xff] %v10072_v18  ;;  %v1973_v13 = vmul.f32 0.001, %v1717_v19  ;;  %v1204_v20 = vld [vmem:[#allocation16 + $0x1e0] sm:$0xff]  ;;  %v10084_v45 = vadd.f32 %v825_v12, %v441_v50  ;;  %v1456_v21 = vmul.f32 0.999, %v1200_v4 }
 0x3f6   :  { %6302 = vmatprep.subr.bf16.mxu1 %v5948_v6  ;;  %2496 = vst [vmem:[#allocation20 + $0x218] sm:$0xff] %v10070_v62  ;;  %v6007_v6 = vpack.c.bf16 %v9869_v42, %v9867_v17  ;;  %v1460_v3 = vmul.f32 0.999, %v1204_v20  ;;  %v1712_v28 = vld [vmem:[#allocation13 + $0x1c0] sm:$0xff]  ;;  %2495 = vst [vmem:[#allocation20 + $0x210] sm:$0xff] %v10080_v37  ;;  %v10087_v58 = vadd.f32 %v1969_v33, %v1457_v59  ;;  %v1193_v43 = vld [vmem:[#allocation16 + $0x188] sm:$0xff] }
 0x3f7   :  { %v1716_v31 = vld [vmem:[#allocation13 + $0x1e0] sm:$0xff]  ;;  %v10089_v27 = vadd.f32 %v1973_v13, %v1461_v41  ;;  %v1968_v29 = vmul.f32 0.001, %v1712_v28  ;;  %v1197_v39 = vld [vmem:[#allocation16 + $0x1a8] sm:$0xff]  ;;  %v6004_v17 = vpack.c.bf16 %v9892_v34, %v9890_v48  ;;  %2499 = vst [vmem:[#allocation20 + $0x230] sm:$0xff] %v10084_v45  ;;  %v5908_v46 = vld [vmem:[#allocation7 + $0x118] sm:$0xff]  ;;  %6248 = vmatmul.mubr.bf16.gmra.mxu1 %v10076_v23  ;;  %v6003_v33 = vpack.c.bf16 %v9902_v36, %v9897_v15 }
 0x3f8   :  { %v1972_v5 = vmul.f32 0.001, %v1716_v31  ;;  %6434 = vmatmul.mubr.bf16.vlgmr.msra.gmra.mxu0 %v9943_v44  ;;  %v1449_v42 = vmul.f32 0.999, %v1193_v43  ;;  %v1705_v50 = vld [vmem:[#allocation13 + $0x188] sm:$0xff]  ;;  %v5905_v40 = vld [vmem:[#allocation7 + $0x100] sm:$0xff]  ;;  %6257 = vmatprep.mubr.bf16.mxu1 %v12136_v2  ;;  %v6000_v13 = vpack.c.bf16 %v9915_v22, %v9913_v52 }
 0x3f9   :  { %6303 = vmatpush1.bf16.msra.mxu1 %v5947_v8  ;;  %v1453_v8 = vmul.f32 0.999, %v1197_v39  ;;  %v1709_v7 = vld [vmem:[#allocation13 + $0x1a8] sm:$0xff]  ;;  %6443 = vmatprep.mubr.bf16.mxu0 %v12136_v2  ;;  %2683 = vst [vmem:[#allocation23 + $0x1c8] sm:$0xff] %v10087_v58  ;;  %2687 = vst [vmem:[#allocation23 + $0x1e8] sm:$0xff] %v10089_v27  ;;  %v10100_v16 = vadd.f32 %v1968_v29, %v1456_v21  ;;  %v1192_v48 = vld [vmem:[#allocation16 + $0x180] sm:$0xff] }
 0x3fa   :  { %6304 = vmatprep.subr.bf16.mxu1 %v6008_v53  ;;  %v10102_v19 = vadd.f32 %v1972_v5, %v1460_v3  ;;  %v1196_v34 = vld [vmem:[#allocation16 + $0x1a0] sm:$0xff]  ;;  %v10105_v53 = vpop.f32.mrf.mxu0  ;;  %v1961_v12 = vmul.f32 0.001, %v1705_v50  ;;  %v1965_v59 = vmul.f32 0.001, %v1709_v7  ;;  %v1185_v3 = vld [vmem:[#allocation16 + $0x148] sm:$0xff] }
 0x3fb   :  { %v1704_v44 = vld [vmem:[#allocation13 + $0x180] sm:$0xff]  ;;  %v1448_v41 = vmul.f32 0.999, %v1192_v48  ;;  %2682 = vst [vmem:[#allocation23 + $0x1c0] sm:$0xff] %v10100_v16  ;;  %v1452_v4 = vmul.f32 0.999, %v1196_v34  ;;  %v10120_v48 = vpack.c.bf16 %v5908_v46, %v5905_v40 }
 0x3fc   :  { %2686 = vst [vmem:[#allocation23 + $0x1e0] sm:$0xff] %v10102_v19  ;;  %v1708_v20 = vld [vmem:[#allocation13 + $0x1a0] sm:$0xff]  ;;  %v1960_v21 = vmul.f32 0.001, %v1704_v44  ;;  %v5743_v28 = vpop.f32.mrf.mxu0  ;;  %v10114_v31 = vadd.f32 %v1961_v12, %v1449_v42  ;;  %v1189_v36 = vld [vmem:[#allocation16 + $0x168] sm:$0xff]  ;;  %v5999_v12 = vpack.c.bf16 %v9928_v38, %v9922_v63 }
 0x3fd   :  { %6305 = vmatpush2.bf16.msra.mxu1 %v6007_v6  ;;  %v10116_v6 = vadd.f32 %v1965_v59, %v1453_v8  ;;  %v1964_v15 = vmul.f32 0.001, %v1708_v20  ;;  %v1441_v29 = vmul.f32 0.999, %v1185_v3  ;;  %v1697_v5 = vld [vmem:[#allocation13 + $0x148] sm:$0xff]  ;;  %v1184_v50 = vld [vmem:[#allocation16 + $0x140] sm:$0xff] }
 0x3fe   :  { %6306 = vmatprep.subr.bf16.mxu1 %v6004_v17  ;;  %v10118_v43 = vadd.f32 %v1960_v21, %v1448_v41  ;;  %v1445_v52 = vmul.f32 0.999, %v1189_v36  ;;  %v1701_v22 = vld [vmem:[#allocation13 + $0x168] sm:$0xff]  ;;  %v1953_v39 = vmul.f32 0.001, %v1697_v5  ;;  %v5744_v7 = vpop.f32.mrf.mxu0  ;;  %2675 = vst [vmem:[#allocation23 + $0x188] sm:$0xff] %v10114_v31 }
 0x3ff   :  { %2679 = vst [vmem:[#allocation23 + $0x1a8] sm:$0xff] %v10116_v6  ;;  %v10124_v17 = vadd.f32 %v1964_v15, %v1452_v4  ;;  %v1957_v42 = vmul.f32 0.001, %v1701_v22  ;;  %v1188_v8 = vld [vmem:[#allocation16 + $0x160] sm:$0xff]  ;;  %v1440_v34 = vmul.f32 0.999, %v1184_v50  ;;  %v5996_v4 = vpack.c.bf16 %v9950_v35, %v9945_v1  ;;  %6258 = vmatmul.mubr.bf16.gmra.mxu1 %v10120_v48 }
 0x400   :  { %v1696_v44 = vld [vmem:[#allocation13 + $0x140] sm:$0xff]  ;;  %2674 = vst [vmem:[#allocation23 + $0x180] sm:$0xff] %v10118_v43  ;;  %v10129_v59 = vadd.f32 %v1953_v39, %v1441_v29  ;;  %v1444_v40 = vmul.f32 0.999, %v1188_v8  ;;  %v1177_v20 = vld [vmem:[#allocation16 + $0x108] sm:$0xff]  ;;  %6444 = vmatmul.mubr.bf16.gmra.mxu0 %v9983_v24  ;;  %v5911_v28 = vld [vmem:[#allocation7 + $0x130] sm:$0xff]  ;;  %v5995_v50 = vpack.c.bf16 %v9961_v61, %v9959_v11  ;;  %6267 = vmatprep.mubr.bf16.mxu1 %v12136_v2 }
 0x401   :  { %6307 = vmatpush2.bf16.msra.mxu1 %v6003_v33  ;;  %v1700_v46 = vld [vmem:[#allocation13 + $0x160] sm:$0xff]  ;;  %v1952_v41 = vmul.f32 0.001, %v1696_v44  ;;  %2678 = vst [vmem:[#allocation23 + $0x1a0] sm:$0xff] %v10124_v17  ;;  %v10135_v33 = vadd.f32 %v1957_v42, %v1445_v52  ;;  %v1181_v63 = vld [vmem:[#allocation16 + $0x128] sm:$0xff]  ;;  %6453 = vmatprep.mubr.bf16.mxu0 %v12136_v2 }
 0x402   :  { %6308 = vmatprep.subr.bf16.mxu1 %v6000_v13  ;;  %v1956_v21 = vmul.f32 0.001, %v1700_v46  ;;  %v1433_v38 = vmul.f32 0.999, %v1177_v20  ;;  %v1689_v3 = vld [vmem:[#allocation13 + $0x108] sm:$0xff]  ;;  %2667 = vst [vmem:[#allocation23 + $0x148] sm:$0xff] %v10129_v59 }
 0x403   :  { %v5914_v15 = vld [vmem:[#allocation7 + $0x148] sm:$0xff]  ;;  %v10139_v13 = vadd.f32 %v1952_v41, %v1440_v34  ;;  %v1437_v36 = vmul.f32 0.999, %v1181_v63  ;;  %v1945_v35 = vmul.f32 0.001, %v1689_v3  ;;  %v1176_v24 = vld [vmem:[#allocation16 + $0x100] sm:$0xff] }
 0x404   :  { %v1693_v1 = vld [vmem:[#allocation13 + $0x128] sm:$0xff]  ;;  %2671 = vst [vmem:[#allocation23 + $0x168] sm:$0xff] %v10135_v33  ;;  %v10143_v29 = vadd.f32 %v1956_v21, %v1444_v40  ;;  %v1180_v52 = vld [vmem:[#allocation16 + $0x120] sm:$0xff]  ;;  %v1432_v22 = vmul.f32 0.999, %v1176_v24  ;;  %v5992_v40 = vpack.c.bf16 %v9977_v9, %v9975_v30  ;;  %v12206_v24 = vld [vmem:[#allocation80_spill] sm:$0xff] }
 0x405   :  { %v1949_v5 = vmul.f32 0.001, %v1693_v1  ;;  %v1688_v39 = vld [vmem:[#allocation13 + $0x100] sm:$0xff]  ;;  %6309 = vmatpush2.bf16.msra.mxu1 %v5999_v12  ;;  %2666 = vst [vmem:[#allocation23 + $0x140] sm:$0xff] %v10139_v13  ;;  %v10149_v7 = vadd.f32 %v1945_v35, %v1433_v38  ;;  %v1436_v42 = vmul.f32 0.999, %v1180_v52 }
 0x406   :  { %v1692_v8 = vld [vmem:[#allocation13 + $0x120] sm:$0xff]  ;;  %v1944_v34 = vmul.f32 0.001, %v1688_v39  ;;  %v1169_v44 = vld [vmem:[#allocation16 + $0xc8] sm:$0xff]  ;;  %6310 = vmatprep.subr.bf16.mxu1 %v5996_v4  ;;  %2670 = vst [vmem:[#allocation23 + $0x160] sm:$0xff] %v10143_v29  ;;  %v10159_v4 = vpack.c.bf16 %v5914_v15, %v5911_v28 }
 0x407   :  { %v10154_v12 = vadd.f32 %v1949_v5, %v1437_v36  ;;  %v1948_v46 = vmul.f32 0.001, %v1692_v8  ;;  %v1173_v11 = vld [vmem:[#allocation16 + $0xe8] sm:$0xff]  ;;  %v1425_v61 = vmul.f32 0.999, %v1169_v44  ;;  %2659 = vst [vmem:[#allocation23 + $0x108] sm:$0xff] %v10149_v7 }
 0x408   :  { %v1681_v41 = vld [vmem:[#allocation13 + $0xc8] sm:$0xff]  ;;  %v10157_v20 = vadd.f32 %v1944_v34, %v1432_v22  ;;  %v1429_v21 = vmul.f32 0.999, %v1173_v11  ;;  %v1168_v3 = vld [vmem:[#allocation16 + $0xc0] sm:$0xff]  ;;  %6454 = vmatmul.mubr.bf16.gmra.mxu0 %v10015_v60  ;;  %6268 = vmatmul.mubr.bf16.gmra.mxu1 %v10159_v4 }
 0x409   :  { %v1685_v63 = vld [vmem:[#allocation13 + $0xe8] sm:$0xff]  ;;  %v1937_v38 = vmul.f32 0.001, %v1681_v41  ;;  %2663 = vst [vmem:[#allocation23 + $0x128] sm:$0xff] %v10154_v12  ;;  %v10162_v30 = vadd.f32 %v1948_v46, %v1436_v42  ;;  %v1172_v36 = vld [vmem:[#allocation16 + $0xe0] sm:$0xff]  ;;  %6311 = vmatpush2.bf16.msra.mxu1 %v5995_v50  ;;  %v5988_v42 = vpack.c.bf16 %v10013_v49, %v10011_v32  ;;  %v5920_v41 = vld [vmem:[#allocation7 + $0x178] sm:$0xff]  ;;  %6463 = vmatprep.mubr.bf16.mxu0 %v12136_v2 }
 0x40a   :  { %v1941_v9 = vmul.f32 0.001, %v1685_v63  ;;  %v1424_v1 = vmul.f32 0.999, %v1168_v3  ;;  %v1680_v35 = vld [vmem:[#allocation13 + $0xc0] sm:$0xff]  ;;  %2658 = vst [vmem:[#allocation23 + $0x100] sm:$0xff] %v10157_v20  ;;  %6312 = vmatprep.subr.bf16.mxu1 %v5992_v40  ;;  %6277 = vmatprep.mubr.bf16.mxu1 %v12136_v2 }
 0x40b   :  { %v12207_v5 = vld [vmem:[#allocation85_spill] sm:$0xff]  ;;  %v10167_v22 = vadd.f32 %v1937_v38, %v1425_v61  ;;  %v1428_v39 = vmul.f32 0.999, %v1172_v36  ;;  %v1936_v28 = vmul.f32 0.001, %v1680_v35  ;;  %v1161_v15 = vld [vmem:[#allocation16 + $0x88] sm:$0xff]  ;;  %v5987_v35 = vpack.c.bf16 %v10024_v47, %v10022_v51 }
 0x40c   :  { %v5991_v52 = vpack.c.bf16 %v12207_v5, %v12206_v24  ;;  %v1684_v8 = vld [vmem:[#allocation13 + $0xe0] sm:$0xff]  ;;  %2662 = vst [vmem:[#allocation23 + $0x120] sm:$0xff] %v10162_v30  ;;  %v10173_v50 = vadd.f32 %v1941_v9, %v1429_v21  ;;  %v1165_v44 = vld [vmem:[#allocation16 + $0xa8] sm:$0xff]  ;;  %v1417_v46 = vmul.f32 0.999, %v1161_v15 }
 0x40d   :  { %v1940_v34 = vmul.f32 0.001, %v1684_v8  ;;  %v1673_v11 = vld [vmem:[#allocation13 + $0x88] sm:$0xff]  ;;  %v5917_v61 = vld [vmem:[#allocation7 + $0x160] sm:$0xff]  ;;  %2651 = vst [vmem:[#allocation23 + $0xc8] sm:$0xff] %v10167_v22  ;;  %v10177_v40 = vadd.f32 %v1936_v28, %v1424_v1 }
 0x40e   :  { %v1421_v63 = vmul.f32 0.999, %v1165_v44  ;;  %v1677_v32 = vld [vmem:[#allocation13 + $0xa8] sm:$0xff]  ;;  %v1929_v49 = vmul.f32 0.001, %v1673_v11  ;;  %v1160_v60 = vld [vmem:[#allocation16 + $0x80] sm:$0xff]  ;;  %6313 = vmatpush2.bf16.msra.mxu1 %v5991_v52 }
 0x40f   :  { %2655 = vst [vmem:[#allocation23 + $0xe8] sm:$0xff] %v10173_v50  ;;  %v10181_v21 = vadd.f32 %v1940_v34, %v1428_v39  ;;  %v1933_v38 = vmul.f32 0.001, %v1677_v32  ;;  %v1164_v3 = vld [vmem:[#allocation16 + $0xa0] sm:$0xff]  ;;  %v1416_v9 = vmul.f32 0.999, %v1160_v60  ;;  %6314 = vmatprep.subr.bf16.mxu1 %v5988_v42  ;;  %v5984_v39 = vpack.c.bf16 %v10038_v57, %v10036_v56 }
 0x410   :  { %v1672_v36 = vld [vmem:[#allocation13 + $0x80] sm:$0xff]  ;;  %2650 = vst [vmem:[#allocation23 + $0xc0] sm:$0xff] %v10177_v40  ;;  %v10187_v1 = vadd.f32 %v1929_v49, %v1417_v46  ;;  %v1420_v24 = vmul.f32 0.999, %v1164_v3  ;;  %v1153_v28 = vld [vmem:[#allocation16 + $0x48] sm:$0xff]  ;;  %v10197_v42 = vpack.c.bf16 %v5920_v41, %v5917_v61  ;;  %v5983_v3 = vpack.c.bf16 %v10058_v54, %v10056_v0  ;;  %6464 = vmatmul.mubr.bf16.gmra.mxu0 %v10052_v14 }
 0x411   :  { %v1676_v5 = vld [vmem:[#allocation13 + $0xa0] sm:$0xff]  ;;  %v1928_v8 = vmul.f32 0.001, %v1672_v36  ;;  %2654 = vst [vmem:[#allocation23 + $0xe0] sm:$0xff] %v10181_v21  ;;  %v10192_v52 = vadd.f32 %v1933_v38, %v1421_v63  ;;  %v1157_v51 = vld [vmem:[#allocation16 + $0x68] sm:$0xff]  ;;  %6473 = vmatprep.mubr.bf16.mxu0 %v12136_v2 }
 0x412   :  { %v1932_v15 = vmul.f32 0.001, %v1676_v5  ;;  %v1409_v47 = vmul.f32 0.999, %v1153_v28  ;;  %v1665_v34 = vld [vmem:[#allocation13 + $0x48] sm:$0xff]  ;;  %2643 = vst [vmem:[#allocation23 + $0x88] sm:$0xff] %v10187_v1  ;;  %6315 = vmatpush2.bf16.msra.mxu1 %v5987_v35 }
 0x413   :  { %v10195_v44 = vadd.f32 %v1928_v8, %v1416_v9  ;;  %v1413_v46 = vmul.f32 0.999, %v1157_v51  ;;  %v1669_v11 = vld [vmem:[#allocation13 + $0x68] sm:$0xff]  ;;  %v1921_v32 = vmul.f32 0.001, %v1665_v34  ;;  %v1152_v49 = vld [vmem:[#allocation16 + $0x40] sm:$0xff]  ;;  %6316 = vmatprep.subr.bf16.mxu1 %v5984_v39  ;;  %6278 = vmatmul.mubr.bf16.gmra.mxu1 %v10197_v42 }
 0x414   :  { %2647 = vst [vmem:[#allocation23 + $0xa8] sm:$0xff] %v10192_v52  ;;  %v10200_v56 = vadd.f32 %v1932_v15, %v1420_v24  ;;  %v1925_v57 = vmul.f32 0.001, %v1669_v11  ;;  %v1156_v63 = vld [vmem:[#allocation16 + $0x60] sm:$0xff]  ;;  %v1408_v60 = vmul.f32 0.999, %v1152_v49  ;;  %v5980_v24 = vpack.c.bf16 %v10072_v18, %v10070_v62 }
 0x415   :  { %v1664_v38 = vld [vmem:[#allocation13 + $0x40] sm:$0xff]  ;;  %2642 = vst [vmem:[#allocation23 + $0x80] sm:$0xff] %v10195_v44  ;;  %v10205_v9 = vadd.f32 %v1921_v32, %v1409_v47  ;;  %v1412_v36 = vmul.f32 0.999, %v1156_v63  ;;  %v1145_v41 = vld [vmem:[#allocation16 + $0x8] sm:$0xff]  ;;  %v5979_v32 = vpack.c.bf16 %v10084_v45, %v10080_v37  ;;  %v12208_v49 = vld [vmem:[#allocation88_spill] sm:$0xff] }
 0x416   :  { %v1668_v5 = vld [vmem:[#allocation13 + $0x60] sm:$0xff]  ;;  %v1920_v61 = vmul.f32 0.001, %v1664_v38  ;;  %2646 = vst [vmem:[#allocation23 + $0xa0] sm:$0xff] %v10200_v56  ;;  %v10211_v35 = vadd.f32 %v1925_v57, %v1413_v46  ;;  %v1149_v0 = vld [vmem:[#allocation16 + $0x28] sm:$0xff]  ;;  %6317 = vmatpush2.bf16.msra.mxu1 %v5983_v3  ;;  %6320 = vmatprep.mubr.bf16.mxu1 %v12208_v49 }
 0x417   :  { %v1924_v8 = vmul.f32 0.001, %v1668_v5  ;;  %v1401_v54 = vmul.f32 0.999, %v1145_v41  ;;  %v1657_v28 = vld [vmem:[#allocation13 + $0x8] sm:$0xff]  ;;  %2635 = vst [vmem:[#allocation23 + $0x48] sm:$0xff] %v10205_v9  ;;  %6318 = vmatprep.subr.bf16.mxu1 %v5980_v24 }
 0x418   :  { %v10215_v15 = vadd.f32 %v1920_v61, %v1408_v60  ;;  %v1405_v39 = vmul.f32 0.999, %v1149_v0  ;;  %v1661_v51 = vld [vmem:[#allocation13 + $0x28] sm:$0xff]  ;;  %v1913_v47 = vmul.f32 0.001, %v1657_v28  ;;  %v1144_v62 = vld [vmem:[#allocation16] sm:$0xff]  ;;  %6474 = vmatmul.mubr.bf16.gmra.mxu0 %v10076_v23 }
 0x419   :  { %2639 = vst [vmem:[#allocation23 + $0x68] sm:$0xff] %v10211_v35  ;;  %v10219_v14 = vadd.f32 %v1924_v8, %v1412_v36  ;;  %v1917_v18 = vmul.f32 0.001, %v1661_v51  ;;  %v1148_v34 = vld [vmem:[#allocation16 + $0x20] sm:$0xff]  ;;  %v1400_v46 = vmul.f32 0.999, %v1144_v62  ;;  %v6639_v36 = vpack.c.bf16 %v10089_v27, %v10087_v58  ;;  %6483 = vmatprep.mubr.bf16.mxu0 %v12136_v2 }
 0x41a   :  { %v1656_v11 = vld [vmem:[#allocation13] sm:$0xff]  ;;  %2634 = vst [vmem:[#allocation23 + $0x40] sm:$0xff] %v10215_v15  ;;  %v10225_v57 = vadd.f32 %v1913_v47, %v1401_v54  ;;  %v1404_v63 = vmul.f32 0.999, %v1148_v34  ;;  %v1265_v5 = vld [vmem:[#allocation16 + $0x3c8] sm:$0xff]  ;;  %6319 = vmatpush2.bf16.msra.mxu1 %v5979_v32  ;;  %v6638_v62 = vpack.c.bf16 %v10102_v19, %v10100_v16 }
 0x41b   :  { %v1660_v60 = vld [vmem:[#allocation13 + $0x20] sm:$0xff]  ;;  %v1912_v38 = vmul.f32 0.001, %v1656_v11  ;;  %2638 = vst [vmem:[#allocation23 + $0x60] sm:$0xff] %v10219_v14  ;;  %v10230_v3 = vadd.f32 %v1917_v18, %v1405_v39  ;;  %v1269_v37 = vld [vmem:[#allocation16 + $0x3e8] sm:$0xff]  ;;  %6759 = vmatprep.subr.bf16.mxu1 %v6639_v36 }
 0x41c   :  { %v1916_v61 = vmul.f32 0.001, %v1660_v60  ;;  %v1521_v45 = vmul.f32 0.999, %v1265_v5  ;;  %v1777_v41 = vld [vmem:[#allocation13 + $0x3c8] sm:$0xff]  ;;  %2627 = vst [vmem:[#allocation23 + $0x8] sm:$0xff] %v10225_v57 }
 0x41d   :  { %v10233_v8 = vadd.f32 %v1912_v38, %v1400_v46  ;;  %v1525_v0 = vmul.f32 0.999, %v1269_v37  ;;  %v1781_v54 = vld [vmem:[#allocation13 + $0x3e8] sm:$0xff]  ;;  %v2033_v28 = vmul.f32 0.001, %v1777_v41  ;;  %v1264_v51 = vld [vmem:[#allocation16 + $0x3c0] sm:$0xff] }
 0x41e   :  { %2631 = vst [vmem:[#allocation23 + $0x28] sm:$0xff] %v10230_v3  ;;  %v10236_v24 = vadd.f32 %v1916_v61, %v1404_v63  ;;  %v2037_v58 = vmul.f32 0.001, %v1781_v54  ;;  %v1268_v27 = vld [vmem:[#allocation16 + $0x3e0] sm:$0xff]  ;;  %v1520_v39 = vmul.f32 0.999, %v1264_v51  ;;  %v6635_v63 = vpack.c.bf16 %v10116_v6, %v10114_v31 }
 0x41f   :  { %v1776_v47 = vld [vmem:[#allocation13 + $0x3c0] sm:$0xff]  ;;  %2626 = vst [vmem:[#allocation23] sm:$0xff] %v10233_v8  ;;  %v10241_v18 = vadd.f32 %v2033_v28, %v1521_v45  ;;  %v1524_v34 = vmul.f32 0.999, %v1268_v27  ;;  %v1257_v49 = vld [vmem:[#allocation16 + $0x388] sm:$0xff]  ;;  %v6634_v51 = vpack.c.bf16 %v10124_v17, %v10118_v43 }
 0x420   :  { %v1780_v46 = vld [vmem:[#allocation13 + $0x3e0] sm:$0xff]  ;;  %v2032_v11 = vmul.f32 0.001, %v1776_v47  ;;  %2630 = vst [vmem:[#allocation23 + $0x20] sm:$0xff] %v10236_v24  ;;  %v10247_v32 = vadd.f32 %v2037_v58, %v1525_v0  ;;  %v1261_v16 = vld [vmem:[#allocation16 + $0x3a8] sm:$0xff]  ;;  %6484 = vmatmul.mubr.bf16.gmra.mxu0 %v10120_v48 }
 0x421   :  { %v2036_v60 = vmul.f32 0.001, %v1780_v46  ;;  %v1513_v19 = vmul.f32 0.999, %v1257_v49  ;;  %v1769_v38 = vld [vmem:[#allocation13 + $0x388] sm:$0xff]  ;;  %2747 = vst [vmem:[#allocation23 + $0x3c8] sm:$0xff] %v10241_v18  ;;  %6493 = vmatprep.mubr.bf16.mxu0 %v12136_v2 }
 0x422   :  { %v10251_v5 = vadd.f32 %v2032_v11, %v1520_v39  ;;  %v1517_v61 = vmul.f32 0.999, %v1261_v16  ;;  %v1773_v23 = vld [vmem:[#allocation13 + $0x3a8] sm:$0xff]  ;;  %v2025_v36 = vmul.f32 0.001, %v1769_v38  ;;  %v1256_v37 = vld [vmem:[#allocation16 + $0x380] sm:$0xff] }
 0x423   :  { %v12209_v45 = vld [vmem:[#allocation58_spill] sm:$0xff]  ;;  %2751 = vst [vmem:[#allocation23 + $0x3e8] sm:$0xff] %v10247_v32  ;;  %v10255_v31 = vadd.f32 %v2036_v60, %v1524_v34  ;;  %v2029_v6 = vmul.f32 0.001, %v1773_v23  ;;  %v1512_v0 = vmul.f32 0.999, %v1256_v37  ;;  %v6631_v34 = vpack.c.bf16 %v10135_v33, %v10129_v59 }
 0x424   :  { %6321 = vmatmul.mubr.bf16.vlgmr.msra.gmra.mxu1 %v12209_v45  ;;  %v1260_v41 = vld [vmem:[#allocation16 + $0x3a0] sm:$0xff]  ;;  %2746 = vst [vmem:[#allocation23 + $0x3c0] sm:$0xff] %v10251_v5  ;;  %v10261_v58 = vadd.f32 %v2025_v36, %v1513_v19  ;;  %v1249_v46 = vld [vmem:[#allocation16 + $0x348] sm:$0xff]  ;;  %v6630_v37 = vpack.c.bf16 %v10143_v29, %v10139_v13 }
 0x425   :  { %v1768_v54 = vld [vmem:[#allocation13 + $0x380] sm:$0xff]  ;;  %6760 = vmatpush1.bf16.msra.mxu1 %v6638_v62  ;;  %v1516_v27 = vmul.f32 0.999, %v1260_v41  ;;  %2750 = vst [vmem:[#allocation23 + $0x3e0] sm:$0xff] %v10255_v31  ;;  %v10266_v11 = vadd.f32 %v2029_v6, %v1517_v61  ;;  %v1253_v49 = vld [vmem:[#allocation16 + $0x368] sm:$0xff] }
 0x426   :  { %v12210_v28 = vld [vmem:[#allocation57_spill] sm:$0xff]  ;;  %v2024_v47 = vmul.f32 0.001, %v1768_v54  ;;  %6761 = vmatprep.subr.bf16.mxu1 %v6635_v63  ;;  %v1505_v60 = vmul.f32 0.999, %v1249_v46  ;;  %v1761_v43 = vld [vmem:[#allocation13 + $0x348] sm:$0xff] }
 0x427   :  { %6330 = vmatprep.mubr.bf16.mxu1 %v12210_v28  ;;  %v1772_v39 = vld [vmem:[#allocation13 + $0x3a0] sm:$0xff]  ;;  %2739 = vst [vmem:[#allocation23 + $0x388] sm:$0xff] %v10261_v58  ;;  %v1509_v16 = vmul.f32 0.999, %v1253_v49  ;;  %v1765_v19 = vld [vmem:[#allocation13 + $0x368] sm:$0xff]  ;;  %2743 = vst [vmem:[#allocation23 + $0x3a8] sm:$0xff] %v10266_v11  ;;  %v6627_v28 = vpack.c.bf16 %v10154_v12, %v10149_v7 }
 0x428   :  { %v2028_v62 = vmul.f32 0.001, %v1772_v39  ;;  %v10269_v17 = vadd.f32 %v2024_v47, %v1512_v0  ;;  %v2017_v38 = vmul.f32 0.001, %v1761_v43  ;;  %v1248_v23 = vld [vmem:[#allocation16 + $0x340] sm:$0xff]  ;;  %v1241_v54 = vld [vmem:[#allocation16 + $0x308] sm:$0xff]  ;;  %6494 = vmatmul.mubr.bf16.gmra.mxu0 %v10159_v4 }
 0x429   :  { %v2021_v59 = vmul.f32 0.001, %v1765_v19  ;;  %v1252_v33 = vld [vmem:[#allocation16 + $0x360] sm:$0xff]  ;;  %v1504_v61 = vmul.f32 0.999, %v1248_v23  ;;  %6762 = vmatpush1.bf16.msra.mxu1 %v6634_v51  ;;  %v1245_v13 = vld [vmem:[#allocation16 + $0x328] sm:$0xff]  ;;  %6503 = vmatprep.mubr.bf16.mxu0 %v12136_v2 }
 0x42a   :  { %v10272_v63 = vadd.f32 %v2028_v62, %v1516_v27  ;;  %v1760_v36 = vld [vmem:[#allocation13 + $0x340] sm:$0xff]  ;;  %2738 = vst [vmem:[#allocation23 + $0x380] sm:$0xff] %v10269_v17  ;;  %v10277_v45 = vadd.f32 %v2017_v38, %v1505_v60  ;;  %v1508_v6 = vmul.f32 0.999, %v1252_v33  ;;  %6763 = vmatprep.subr.bf16.mxu1 %v6631_v34  ;;  %v1497_v29 = vmul.f32 0.999, %v1241_v54 }
 0x42b   :  { %v1764_v41 = vld [vmem:[#allocation13 + $0x360] sm:$0xff]  ;;  %v2016_v0 = vmul.f32 0.001, %v1760_v36  ;;  %v10283_v51 = vadd.f32 %v2021_v59, %v1509_v16  ;;  %v1753_v39 = vld [vmem:[#allocation13 + $0x308] sm:$0xff]  ;;  %v1501_v46 = vmul.f32 0.999, %v1245_v13  ;;  %v6626_v38 = vpack.c.bf16 %v10162_v30, %v10157_v20 }
 0x42c   :  { %2742 = vst [vmem:[#allocation23 + $0x3a0] sm:$0xff] %v10272_v63  ;;  %v2020_v27 = vmul.f32 0.001, %v1764_v41  ;;  %2731 = vst [vmem:[#allocation23 + $0x348] sm:$0xff] %v10277_v45  ;;  %v1757_v48 = vld [vmem:[#allocation13 + $0x328] sm:$0xff]  ;;  %v1240_v62 = vld [vmem:[#allocation16 + $0x300] sm:$0xff] }
 0x42d   :  { %v10287_v47 = vadd.f32 %v2016_v0, %v1504_v61  ;;  %v2009_v34 = vmul.f32 0.001, %v1753_v39  ;;  %v12211_v49 = vld [vmem:[#allocation62_spill] sm:$0xff]  ;;  %2735 = vst [vmem:[#allocation23 + $0x368] sm:$0xff] %v10283_v51  ;;  %v2013_v12 = vmul.f32 0.001, %v1757_v48  ;;  %6764 = vmatpush1.bf16.msra.mxu1 %v6630_v37 }
 0x42e   :  { %6331 = vmatmul.mubr.bf16.gmra.mxu1 %v12211_v49  ;;  %v10291_v7 = vadd.f32 %v2020_v27, %v1508_v6  ;;  %v1244_v60 = vld [vmem:[#allocation16 + $0x320] sm:$0xff]  ;;  %v1496_v43 = vmul.f32 0.999, %v1240_v62  ;;  %v1233_v36 = vld [vmem:[#allocation16 + $0x2c8] sm:$0xff]  ;;  %6765 = vmatprep.subr.bf16.mxu1 %v6627_v28  ;;  %v6623_v6 = vpack.c.bf16 %v10173_v50, %v10167_v22  ;;  %v6622_v22 = vpack.c.bf16 %v10181_v21, %v10177_v40 }
 0x42f   :  { %v1752_v16 = vld [vmem:[#allocation13 + $0x300] sm:$0xff]  ;;  %2730 = vst [vmem:[#allocation23 + $0x340] sm:$0xff] %v10287_v47  ;;  %v10297_v23 = vadd.f32 %v2009_v34, %v1497_v29  ;;  %v1500_v59 = vmul.f32 0.999, %v1244_v60  ;;  %v10302_v41 = vadd.f32 %v2013_v12, %v1501_v46  ;;  %v1237_v30 = vld [vmem:[#allocation16 + $0x2e8] sm:$0xff]  ;;  %v6619_v34 = vpack.c.bf16 %v10192_v52, %v10187_v1 }
 0x430   :  { %v12212_v19 = vld [vmem:[#allocation61_spill] sm:$0xff]  ;;  %v2008_v61 = vmul.f32 0.001, %v1752_v16  ;;  %2734 = vst [vmem:[#allocation23 + $0x360] sm:$0xff] %v10291_v7  ;;  %v1745_v0 = vld [vmem:[#allocation13 + $0x2c8] sm:$0xff]  ;;  %6504 = vmatmul.mubr.bf16.gmra.mxu0 %v10197_v42 }
 0x431   :  { %6340 = vmatprep.mubr.bf16.mxu1 %v12212_v19  ;;  %v1756_v33 = vld [vmem:[#allocation13 + $0x320] sm:$0xff]  ;;  %2723 = vst [vmem:[#allocation23 + $0x308] sm:$0xff] %v10297_v23  ;;  %2727 = vst [vmem:[#allocation23 + $0x328] sm:$0xff] %v10302_v41  ;;  %v1489_v27 = vmul.f32 0.999, %v1233_v36  ;;  %v1749_v13 = vld [vmem:[#allocation13 + $0x2e8] sm:$0xff]  ;;  %6766 = vmatpush1.bf16.msra.mxu1 %v6626_v38 }
 0x432   :  { %v2012_v37 = vmul.f32 0.001, %v1756_v33  ;;  %v10305_v20 = vadd.f32 %v2008_v61, %v1496_v43  ;;  %v1493_v28 = vmul.f32 0.999, %v1237_v30  ;;  %v1232_v29 = vld [vmem:[#allocation16 + $0x2c0] sm:$0xff]  ;;  %6767 = vmatprep.subr.bf16.mxu1 %v6623_v6  ;;  %v1225_v60 = vld [vmem:[#allocation16 + $0x288] sm:$0xff]  ;;  %v6618_v33 = vpack.c.bf16 %v10200_v56, %v10195_v44 }
 0x433   :  { %v2001_v50 = vmul.f32 0.001, %v1745_v0  ;;  %v2005_v39 = vmul.f32 0.001, %v1749_v13  ;;  %v1236_v46 = vld [vmem:[#allocation16 + $0x2e0] sm:$0xff]  ;;  %v1229_v43 = vld [vmem:[#allocation16 + $0x2a8] sm:$0xff] }
 0x434   :  { %v10308_v54 = vadd.f32 %v2012_v37, %v1500_v59  ;;  %2722 = vst [vmem:[#allocation23 + $0x300] sm:$0xff] %v10305_v20  ;;  %v1744_v48 = vld [vmem:[#allocation13 + $0x2c0] sm:$0xff]  ;;  %v1488_v62 = vmul.f32 0.999, %v1232_v29  ;;  %v1492_v49 = vmul.f32 0.999, %v1236_v46  ;;  %v6615_v37 = vpack.c.bf16 %v10211_v35, %v10205_v9 }
 0x435   :  { %v1748_v12 = vld [vmem:[#allocation13 + $0x2e0] sm:$0xff]  ;;  %v10318_v40 = vadd.f32 %v2001_v50, %v1489_v27  ;;  %v10320_v21 = vadd.f32 %v2005_v39, %v1493_v28  ;;  %v1737_v16 = vld [vmem:[#allocation13 + $0x288] sm:$0xff]  ;;  %v2000_v38 = vmul.f32 0.001, %v1744_v48  ;;  %v1481_v1 = vmul.f32 0.999, %v1225_v60  ;;  %6768 = vmatpush1.bf16.msra.mxu1 %v6622_v22 }
 0x436   :  { %2726 = vst [vmem:[#allocation23 + $0x320] sm:$0xff] %v10308_v54  ;;  %v1741_v19 = vld [vmem:[#allocation13 + $0x2a8] sm:$0xff]  ;;  %v2004_v59 = vmul.f32 0.001, %v1748_v12  ;;  %v12214_v52 = vld [vmem:[#allocation65_spill] sm:$0xff]  ;;  %6769 = vmatprep.subr.bf16.mxu1 %v6619_v34  ;;  %v6614_v34 = vpack.c.bf16 %v10219_v14, %v10215_v15 }
 0x437   :  { %v12213_v4 = vld [vmem:[#allocation66_spill] sm:$0xff]  ;;  %2715 = vst [vmem:[#allocation23 + $0x2c8] sm:$0xff] %v10318_v40  ;;  %2719 = vst [vmem:[#allocation23 + $0x2e8] sm:$0xff] %v10320_v21  ;;  %v1485_v2 = vmul.f32 0.999, %v1229_v43  ;;  %v10335_v30 = vadd.f32 %v2000_v38, %v1488_v62  ;;  %v6611_v62 = vpack.c.bf16 %v10230_v3, %v10225_v57  ;;  %v12215_v57 = vld [vmem:[#allocation35_spill] sm:$0xff] }
 0x438   :  { %6341 = vmatmul.mubr.bf16.gmra.mxu1 %v12213_v4  ;;  %v1993_v61 = vmul.f32 0.001, %v1737_v16  ;;  %v1997_v36 = vmul.f32 0.001, %v1741_v19  ;;  %v10331_v6 = vld [vmem:[%s11832_s10] sm:$0xf]  ;;  %v10337_v0 = vadd.f32 %v2004_v59, %v1492_v49 }
 0x439   :  { %6350 = vmatprep.mubr.bf16.mxu1 %v12214_v52  ;;  %v1224_v44 = vld [vmem:[#allocation16 + $0x280] sm:$0xff]  ;;  %v1217_v39 = vld [vmem:[#allocation16 + $0x248] sm:$0xff]  ;;  %2714 = vst [vmem:[#allocation23 + $0x2c0] sm:$0xff] %v10335_v30  ;;  %6770 = vmatpush1.bf16.msra.mxu1 %v6618_v33  ;;  %v5688_v3 = vrot.slane %v10331_v6, %v12215_v57 }
 0x43a   :  { %v1228_v56 = vld [vmem:[#allocation16 + $0x2a0] sm:$0xff]  ;;  %v10339_v28 = vadd.f32 %v1993_v61, %v1481_v1  ;;  %v10341_v13 = vadd.f32 %v1997_v36, %v1485_v2  ;;  %v1480_v29 = vmul.f32 0.999, %v1224_v44  ;;  %2718 = vst [vmem:[#allocation23 + $0x2e0] sm:$0xff] %v10337_v0  ;;  %v1221_v46 = vld [vmem:[#allocation16 + $0x268] sm:$0xff]  ;;  %6771 = vmatprep.subr.bf16.mxu1 %v6615_v37  ;;  %v12216_v2 = vld [vmem:[#allocation36_spill] sm:$0xff] }
 0x43b   :  { %v1736_v27 = vld [vmem:[#allocation13 + $0x280] sm:$0xff]  ;;  %v1484_v22 = vmul.f32 0.999, %v1228_v56  ;;  %v1729_v48 = vld [vmem:[#allocation13 + $0x248] sm:$0xff]  ;;  %v1473_v49 = vmul.f32 0.999, %v1217_v39  ;;  %v5692_v61 = vrot.slane %v10331_v6, %v12216_v2  ;;  %v6610_v6 = vpack.c.bf16 %v10236_v24, %v10233_v8 }
 0x43c   :  { %v1740_v50 = vld [vmem:[#allocation13 + $0x2a0] sm:$0xff]  ;;  %v1992_v9 = vmul.f32 0.001, %v1736_v27  ;;  %2707 = vst [vmem:[#allocation23 + $0x288] sm:$0xff] %v10339_v28  ;;  %2711 = vst [vmem:[#allocation23 + $0x2a8] sm:$0xff] %v10341_v13  ;;  %v1733_v60 = vld [vmem:[#allocation13 + $0x268] sm:$0xff] }
 0x43d   :  { %v1996_v35 = vmul.f32 0.001, %v1740_v50  ;;  %v1477_v12 = vmul.f32 0.999, %v1221_v46  ;;  %v1216_v43 = vld [vmem:[#allocation16 + $0x240] sm:$0xff]  ;;  %v1209_v33 = vld [vmem:[#allocation16 + $0x208] sm:$0xff]  ;;  %6772 = vmatpush1.bf16.msra.mxu1 %v6614_v34 }
 0x43e   :  { %v10352_v16 = vadd.f32 %v1992_v9, %v1480_v29  ;;  %v1985_v4 = vmul.f32 0.001, %v1729_v48  ;;  %v1989_v15 = vmul.f32 0.001, %v1733_v60  ;;  %v1220_v14 = vld [vmem:[#allocation16 + $0x260] sm:$0xff]  ;;  %v1213_v56 = vld [vmem:[#allocation16 + $0x228] sm:$0xff]  ;;  %6773 = vmatprep.subr.bf16.mxu1 %v6611_v62  ;;  %v5740_v60 = vadd.f32 %v10091_v25, %v5688_v3 }
 0x43f   :  { %v10354_v19 = vadd.f32 %v1996_v35, %v1484_v22  ;;  %v1728_v38 = vld [vmem:[#allocation13 + $0x240] sm:$0xff]  ;;  %v1472_v59 = vmul.f32 0.999, %v1216_v43  ;;  %v1476_v1 = vmul.f32 0.999, %v1220_v14  ;;  %v1721_v27 = vld [vmem:[#allocation13 + $0x208] sm:$0xff]  ;;  %v6671_v35 = vpack.c.bf16 %v10247_v32, %v10241_v18 }
 0x440   :  { %v1732_v52 = vld [vmem:[#allocation13 + $0x260] sm:$0xff]  ;;  %2706 = vst [vmem:[#allocation23 + $0x280] sm:$0xff] %v10352_v16  ;;  %v10363_v36 = vadd.f32 %v1985_v4, %v1473_v49  ;;  %v10365_v37 = vadd.f32 %v1989_v15, %v1477_v12  ;;  %v1984_v44 = vmul.f32 0.001, %v1728_v38  ;;  %v1725_v29 = vld [vmem:[#allocation13 + $0x228] sm:$0xff]  ;;  %v1203_v38 = vld [vmem:[#allocation16 + $0x1d8] sm:$0xff]  ;;  %v6670_v25 = vpack.c.bf16 %v10255_v31, %v10251_v5 }
 0x441   :  { %v12217_v42 = vld [vmem:[#allocation70_spill] sm:$0xff]  ;;  %2710 = vst [vmem:[#allocation23 + $0x2a0] sm:$0xff] %v10354_v19  ;;  %v12218_v22 = vld [vmem:[#allocation69_spill] sm:$0xff]  ;;  %v1988_v50 = vmul.f32 0.001, %v1732_v52  ;;  %v5742_v52 = vadd.f32 %v10105_v53, %v5692_v61  ;;  %6774 = vmatpush1.bf16.msra.mxu1 %v6610_v6  ;;  %v1202_v31 = vld [vmem:[#allocation16 + $0x1d0] sm:$0xff] }
 0x442   :  { %6351 = vmatmul.mubr.bf16.gmra.mxu1 %v12217_v42  ;;  %v1465_v39 = vmul.f32 0.999, %v1209_v33  ;;  %v1469_v9 = vmul.f32 0.999, %v1213_v56  ;;  %2699 = vst [vmem:[#allocation23 + $0x248] sm:$0xff] %v10363_v36  ;;  %2703 = vst [vmem:[#allocation23 + $0x268] sm:$0xff] %v10365_v37  ;;  %v10374_v46 = vadd.f32 %v1984_v44, %v1472_v59  ;;  %v10388_v44 = vpop.f32.mrf.mxu0  ;;  %6775 = vmatprep.subr.bf16.mxu1 %v6671_v35 }
 0x443   :  { %6360 = vmatprep.mubr.bf16.mxu1 %v12218_v22  ;;  %v1977_v48 = vmul.f32 0.001, %v1721_v27  ;;  %v1981_v49 = vmul.f32 0.001, %v1725_v29  ;;  %v1208_v12 = vld [vmem:[#allocation16 + $0x200] sm:$0xff]  ;;  %v10377_v8 = vadd.f32 %v1988_v50, %v1476_v1  ;;  %v1207_v59 = vld [vmem:[#allocation16 + $0x1f8] sm:$0xff]  ;;  %v6667_v56 = vpack.c.bf16 %v10266_v11, %v10261_v58  ;;  %v5780_v11 = vpop.f32.mrf.mxu1 }
 0x444   :  { %v1212_v34 = vld [vmem:[#allocation16 + $0x220] sm:$0xff]  ;;  %v1464_v24 = vmul.f32 0.999, %v1208_v12  ;;  %2698 = vst [vmem:[#allocation23 + $0x240] sm:$0xff] %v10374_v46  ;;  %v1459_v3 = vmul.f32 0.999, %v1203_v38  ;;  %v6666_v22 = vpack.c.bf16 %v10272_v63, %v10269_v17  ;;  %v6663_v35 = vpack.c.bf16 %v10283_v51, %v10277_v45 }
 0x445   :  { %v1468_v43 = vmul.f32 0.999, %v1212_v34  ;;  %v1720_v62 = vld [vmem:[#allocation13 + $0x200] sm:$0xff]  ;;  %v10380_v18 = vadd.f32 %v1977_v48, %v1465_v39  ;;  %v10382_v32 = vadd.f32 %v1981_v49, %v1469_v9  ;;  %2702 = vst [vmem:[#allocation23 + $0x260] sm:$0xff] %v10377_v8  ;;  %v1463_v1 = vmul.f32 0.999, %v1207_v59  ;;  %v10400_v9 = vpop.f32.mrf.mxu0  ;;  %6776 = vmatpush2.bf16.msra.mxu1 %v6670_v25  ;;  %v5782_v59 = vpop.f32.mrf.mxu1 }
 0x446   :  { %v1724_v4 = vld [vmem:[#allocation13 + $0x220] sm:$0xff]  ;;  %v1976_v15 = vmul.f32 0.001, %v1720_v62  ;;  %v1715_v33 = vld [vmem:[#allocation13 + $0x1d8] sm:$0xff]  ;;  %v1206_v27 = vld [vmem:[#allocation16 + $0x1f0] sm:$0xff]  ;;  %v6662_v48 = vpack.c.bf16 %v10291_v7, %v10287_v47  ;;  %v6659_v45 = vpack.c.bf16 %v10302_v41, %v10297_v23  ;;  %6777 = vmatprep.subr.bf16.mxu1 %v6667_v56  ;;  %v6654_v23 = vpack.c.bf16 %v10337_v0, %v10335_v30 }
 0x447   :  { %v1980_v14 = vmul.f32 0.001, %v1724_v4  ;;  %v1719_v42 = vld [vmem:[#allocation13 + $0x1f8] sm:$0xff]  ;;  %2691 = vst [vmem:[#allocation23 + $0x208] sm:$0xff] %v10380_v18  ;;  %2695 = vst [vmem:[#allocation23 + $0x228] sm:$0xff] %v10382_v32  ;;  %v1714_v29 = vld [vmem:[#allocation13 + $0x1d0] sm:$0xff]  ;;  %v5825_v38 = vpop.f32.mrf.mxu0 }
 0x448   :  { %v10394_v53 = vadd.f32 %v1976_v15, %v1464_v24  ;;  %v1971_v5 = vmul.f32 0.001, %v1715_v33  ;;  %v1975_v6 = vmul.f32 0.001, %v1719_v42  ;;  %v1458_v50 = vmul.f32 0.999, %v1202_v31 }
 0x449   :  { %v10396_v61 = vadd.f32 %v1980_v14, %v1468_v43  ;;  %v1462_v39 = vmul.f32 0.999, %v1206_v27  ;;  %v12219_v58 = vld [vmem:[#allocation74_spill] sm:$0xff]  ;;  %v1718_v17 = vld [vmem:[#allocation13 + $0x1f0] sm:$0xff]  ;;  %v1970_v63 = vmul.f32 0.001, %v1714_v29  ;;  %v5781_v24 = vadd.f32 %v5780_v11, %v5740_v60  ;;  %v5826_v56 = vpop.f32.mrf.mxu0  ;;  %6778 = vmatpush2.bf16.msra.mxu1 %v6666_v22 }
 0x44a   :  { %6361 = vmatmul.mubr.bf16.gmra.mxu1 %v12219_v58  ;;  %2690 = vst [vmem:[#allocation23 + $0x200] sm:$0xff] %v10394_v53  ;;  %v10409_v49 = vadd.f32 %v1971_v5, %v1459_v3  ;;  %v1329_v12 = vld [vmem:[#allocation16 + $0x5c8] sm:$0xff]  ;;  %v12220_v43 = vld [vmem:[#allocation73_spill] sm:$0xff]  ;;  %v10414_v51 = vadd.f32 %v1975_v6, %v1463_v1  ;;  %v1974_v62 = vmul.f32 0.001, %v1718_v17  ;;  %v5783_v5 = vadd.f32 %v5782_v59, %v5742_v52  ;;  %v5784_v58 = vpop.f32.mrf.mxu1  ;;  %v1194_v52 = vld [vmem:[#allocation16 + $0x190] sm:$0xff] }
 0x44b   :  { %2694 = vst [vmem:[#allocation23 + $0x220] sm:$0xff] %v10396_v61  ;;  %v1333_v34 = vld [vmem:[#allocation16 + $0x5e8] sm:$0xff]  ;;  %6370 = vmatprep.mubr.bf16.mxu1 %v12220_v43  ;;  %v1328_v14 = vld [vmem:[#allocation16 + $0x5c0] sm:$0xff]  ;;  %v10417_v3 = vadd.f32 %v1970_v63, %v1458_v50  ;;  %v1585_v60 = vmul.f32 0.999, %v1329_v12  ;;  %v5869_v25 = vmax.f32 %v5781_v24, 0.0  ;;  %6779 = vmatprep.subr.bf16.mxu1 %v6663_v35 }
 0x44c   :  { %v1841_v4 = vld [vmem:[#allocation13 + $0x5c8] sm:$0xff]  ;;  %2685 = vst [vmem:[#allocation23 + $0x1d8] sm:$0xff] %v10409_v49  ;;  %v1589_v33 = vmul.f32 0.999, %v1333_v34  ;;  %2689 = vst [vmem:[#allocation23 + $0x1f8] sm:$0xff] %v10414_v51  ;;  %v10422_v31 = vadd.f32 %v1974_v62, %v1462_v39  ;;  %v1332_v27 = vld [vmem:[#allocation16 + $0x5e0] sm:$0xff] }
 0x44d   :  { %v1845_v15 = vld [vmem:[#allocation13 + $0x5e8] sm:$0xff]  ;;  %v2097_v42 = vmul.f32 0.001, %v1841_v4  ;;  %v1840_v29 = vld [vmem:[#allocation13 + $0x5c0] sm:$0xff]  ;;  %2684 = vst [vmem:[#allocation23 + $0x1d0] sm:$0xff] %v10417_v3  ;;  %v5870_v12 = vmax.f32 %v5783_v5, 0.0  ;;  %v5785_v4 = vpop.f32.mrf.mxu1  ;;  %6780 = vmatpush2.bf16.msra.mxu1 %v6662_v48 }
 0x44e   :  { %v1844_v6 = vld [vmem:[#allocation13 + $0x5e0] sm:$0xff]  ;;  %v2101_v50 = vmul.f32 0.001, %v1845_v15  ;;  %v1584_v17 = vmul.f32 0.999, %v1328_v14  ;;  %2688 = vst [vmem:[#allocation23 + $0x1f0] sm:$0xff] %v10422_v31  ;;  %6781 = vmatprep.subr.bf16.mxu1 %v6659_v45 }
 0x44f   :  { %v2353_v11 = vadd.f32 %v2097_v42, %v1585_v60  ;;  %v1588_v63 = vmul.f32 0.999, %v1332_v27  ;;  %v2096_v34 = vmul.f32 0.001, %v1840_v29  ;;  %v1195_v24 = vld [vmem:[#allocation16 + $0x198] sm:$0xff]  ;;  %v8199_v22 = vld [vmem:[#allocation18] sm:$0xff] }
 0x450   :  { %v1199_v43 = vld [vmem:[#allocation16 + $0x1b8] sm:$0xff]  ;;  %v2357_v15 = vadd.f32 %v2101_v50, %v1589_v33  ;;  %v2100_v14 = vmul.f32 0.001, %v1844_v6  ;;  %v1451_v38 = vmul.f32 0.999, %v1195_v24  ;;  %v7279_v60 = vmul.f32 %v8199_v22, %v5869_v25  ;;  %v8200_v42 = vld [vmem:[#allocation18 + $0x8] sm:$0xff] }
 0x451   :  { %v1707_v62 = vld [vmem:[#allocation13 + $0x198] sm:$0xff]  ;;  %2811 = vst [vmem:[#allocation23 + $0x5c8] sm:$0xff] %v2353_v11  ;;  %v1455_v59 = vmul.f32 0.999, %v1199_v43  ;;  %v7280_v5 = vmul.f32 %v8200_v42, %v5870_v12  ;;  %v2352_v27 = vadd.f32 %v2096_v34, %v1584_v17  ;;  %v1198_v39 = vld [vmem:[#allocation16 + $0x1b0] sm:$0xff]  ;;  %v1321_v34 = vld [vmem:[#allocation16 + $0x588] sm:$0xff] }
 0x452   :  { %v1711_v56 = vld [vmem:[#allocation13 + $0x1b8] sm:$0xff]  ;;  %v1963_v58 = vmul.f32 0.001, %v1707_v62  ;;  %2815 = vst [vmem:[#allocation23 + $0x5e8] sm:$0xff] %v2357_v15  ;;  %v6703_v1 = vpack.c.bf16 %v2357_v15, %v2353_v11  ;;  %v2356_v4 = vadd.f32 %v2100_v14, %v1588_v63  ;;  %v1450_v33 = vmul.f32 0.999, %v1194_v52 }
 0x453   :  { %v12221_v29 = vld [vmem:[#allocation77_spill] sm:$0xff]  ;;  %v1967_v35 = vmul.f32 0.001, %v1711_v56  ;;  %v1706_v50 = vld [vmem:[#allocation13 + $0x190] sm:$0xff]  ;;  %v10432_v43 = vadd.f32 %v7280_v5, %v7279_v60  ;;  %2810 = vst [vmem:[#allocation23 + $0x5c0] sm:$0xff] %v2352_v27  ;;  %v1325_v11 = vld [vmem:[#allocation16 + $0x5a8] sm:$0xff]  ;;  %v12223_v60 = vpack.c.bf16 %v10308_v54, %v10305_v20 }
 0x454   :  { %6371 = vmatmul.mubr.bf16.gmra.mxu1 %v12221_v29  ;;  %v1710_v6 = vld [vmem:[#allocation13 + $0x1b0] sm:$0xff]  ;;  %v12222_v24 = vld [vmem:[#allocation81_spill] sm:$0xff]  ;;  %v10437_v25 = vadd.f32 %v1963_v58, %v1451_v38  ;;  %v1454_v17 = vmul.f32 0.999, %v1198_v39  ;;  %v1962_v12 = vmul.f32 0.001, %v1706_v50  ;;  %6872 = vmatprep.subr.bf16.mxu0 %v6703_v1  ;;  %v6702_v63 = vpack.c.bf16 %v2356_v4, %v2352_v27 }
 0x455   :  { %6380 = vmatprep.mubr.bf16.mxu1 %v12222_v24  ;;  %2814 = vst [vmem:[#allocation23 + $0x5e0] sm:$0xff] %v2356_v4  ;;  %v10442_v52 = vadd.f32 %v1967_v35, %v1455_v59  ;;  %v1966_v62 = vmul.f32 0.001, %v1710_v6  ;;  %v1577_v15 = vmul.f32 0.999, %v1321_v34  ;;  %v1833_v47 = vld [vmem:[#allocation13 + $0x588] sm:$0xff]  ;;  %6782 = vmatpush2.bf16.msra.mxu1 %v12223_v60  ;;  %v12224_v58 = vpack.c.bf16 %v10320_v21, %v10318_v40 }
 0x456   :  { %v1837_v7 = vld [vmem:[#allocation13 + $0x5a8] sm:$0xff]  ;;  %2677 = vst [vmem:[#allocation23 + $0x198] sm:$0xff] %v10437_v25  ;;  %v10445_v48 = vadd.f32 %v1962_v12, %v1450_v33  ;;  %v1581_v39 = vmul.f32 0.999, %v1325_v11  ;;  %v2089_v14 = vmul.f32 0.001, %v1833_v47  ;;  %6873 = vmatpush1.bf16.msra.mxu0 %v6702_v63  ;;  %v6651_v29 = vpack.c.bf16 %v10341_v13, %v10339_v28 }
 0x457   :  { %v2093_v38 = vmul.f32 0.001, %v1837_v7  ;;  %2681 = vst [vmem:[#allocation23 + $0x1b8] sm:$0xff] %v10442_v52  ;;  %v10452_v45 = vadd.f32 %v1966_v62, %v1454_v17  ;;  %v1320_v1 = vld [vmem:[#allocation16 + $0x580] sm:$0xff]  ;;  %v1187_v56 = vld [vmem:[#allocation16 + $0x158] sm:$0xff]  ;;  %6783 = vmatprep.subr.bf16.mxu1 %v12224_v58  ;;  %v1186_v40 = vld [vmem:[#allocation16 + $0x150] sm:$0xff]  ;;  %v6650_v63 = vpack.c.bf16 %v10354_v19, %v10352_v16  ;;  %v6647_v62 = vpack.c.bf16 %v10365_v37, %v10363_v36 }
 0x458   :  { %v1324_v59 = vld [vmem:[#allocation16 + $0x5a0] sm:$0xff]  ;;  %2676 = vst [vmem:[#allocation23 + $0x190] sm:$0xff] %v10445_v48  ;;  %v2345_v42 = vadd.f32 %v2089_v14, %v1577_v15  ;;  %v1576_v30 = vmul.f32 0.999, %v1320_v1  ;;  %v1191_v35 = vld [vmem:[#allocation16 + $0x178] sm:$0xff]  ;;  %v1190_v34 = vld [vmem:[#allocation16 + $0x170] sm:$0xff]  ;;  %v6646_v19 = vpack.c.bf16 %v10377_v8, %v10374_v46  ;;  %v6643_v46 = vpack.c.bf16 %v10382_v32, %v10380_v18 }
 0x459   :  { %v1832_v22 = vld [vmem:[#allocation13 + $0x580] sm:$0xff]  ;;  %v2349_v5 = vadd.f32 %v2093_v38, %v1581_v39  ;;  %v1580_v0 = vmul.f32 0.999, %v1324_v59  ;;  %2680 = vst [vmem:[#allocation23 + $0x1b0] sm:$0xff] %v10452_v45  ;;  %v1699_v33 = vld [vmem:[#allocation13 + $0x158] sm:$0xff]  ;;  %v1698_v11 = vld [vmem:[#allocation13 + $0x150] sm:$0xff]  ;;  %6784 = vmatpush2.bf16.msra.mxu1 %v6654_v23 }
 0x45a   :  { %v1836_v27 = vld [vmem:[#allocation13 + $0x5a0] sm:$0xff]  ;;  %v2088_v54 = vmul.f32 0.001, %v1832_v22  ;;  %2803 = vst [vmem:[#allocation23 + $0x588] sm:$0xff] %v2345_v42  ;;  %v1443_v6 = vmul.f32 0.999, %v1187_v56  ;;  %6785 = vmatprep.subr.bf16.mxu1 %v6651_v29 }
 0x45b   :  { %v2092_v4 = vmul.f32 0.001, %v1836_v27  ;;  %2807 = vst [vmem:[#allocation23 + $0x5a8] sm:$0xff] %v2349_v5  ;;  %v6699_v50 = vpack.c.bf16 %v2349_v5, %v2345_v42  ;;  %v1447_v24 = vmul.f32 0.999, %v1191_v35  ;;  %v1703_v17 = vld [vmem:[#allocation13 + $0x178] sm:$0xff] }
 0x45c   :  { %6381 = vmatmul.mubr.bf16.gmra.mxu1 %v10004_v10  ;;  %v2344_v21 = vadd.f32 %v2088_v54, %v1576_v30  ;;  %v1955_v13 = vmul.f32 0.001, %v1699_v33  ;;  %v1959_v12 = vmul.f32 0.001, %v1703_v17  ;;  %v1442_v15 = vmul.f32 0.999, %v1186_v40 }
 0x45d   :  { %v2348_v28 = vadd.f32 %v2092_v4, %v1580_v0  ;;  %6390 = vmatprep.mubr.bf16.mxu1 %v10009_v55  ;;  %v1446_v47 = vmul.f32 0.999, %v1190_v34  ;;  %v1702_v7 = vld [vmem:[#allocation13 + $0x170] sm:$0xff]  ;;  %v1313_v39 = vld [vmem:[#allocation16 + $0x548] sm:$0xff]  ;;  %6874 = vmatprep.subr.bf16.mxu0 %v6699_v50  ;;  %v1954_v55 = vmul.f32 0.001, %v1698_v11 }
 0x45e   :  { %2802 = vst [vmem:[#allocation23 + $0x580] sm:$0xff] %v2344_v21  ;;  %v10472_v14 = vadd.f32 %v1955_v13, %v1443_v6  ;;  %v10474_v38 = vadd.f32 %v1959_v12, %v1447_v24  ;;  %v1317_v23 = vld [vmem:[#allocation16 + $0x568] sm:$0xff]  ;;  %v1958_v36 = vmul.f32 0.001, %v1702_v7  ;;  %v1569_v37 = vmul.f32 0.999, %v1313_v39  ;;  %6786 = vmatpush2.bf16.msra.mxu1 %v6650_v63 }
 0x45f   :  { %2806 = vst [vmem:[#allocation23 + $0x5a0] sm:$0xff] %v2348_v28  ;;  %v6698_v10 = vpack.c.bf16 %v2348_v28, %v2344_v21  ;;  %v1825_v1 = vld [vmem:[#allocation13 + $0x548] sm:$0xff]  ;;  %v1573_v59 = vmul.f32 0.999, %v1317_v23  ;;  %v10482_v60 = vadd.f32 %v1954_v55, %v1442_v15  ;;  %v1312_v30 = vld [vmem:[#allocation16 + $0x540] sm:$0xff]  ;;  %6787 = vmatprep.subr.bf16.mxu1 %v6647_v62  ;;  %v1179_v50 = vld [vmem:[#allocation16 + $0x118] sm:$0xff]  ;;  %v6642_v62 = vpack.c.bf16 %v10396_v61, %v10394_v53 }
 0x460   :  { %v1829_v16 = vld [vmem:[#allocation13 + $0x568] sm:$0xff]  ;;  %2669 = vst [vmem:[#allocation23 + $0x158] sm:$0xff] %v10472_v14  ;;  %2673 = vst [vmem:[#allocation23 + $0x178] sm:$0xff] %v10474_v38  ;;  %v2081_v42 = vmul.f32 0.001, %v1825_v1  ;;  %v1316_v0 = vld [vmem:[#allocation16 + $0x560] sm:$0xff]  ;;  %v10486_v8 = vadd.f32 %v1958_v36, %v1446_v47 }
 0x461   :  { %6875 = vmatpush1.bf16.msra.mxu0 %v6698_v10  ;;  %v2085_v5 = vmul.f32 0.001, %v1829_v16  ;;  %v1568_v27 = vmul.f32 0.999, %v1312_v30  ;;  %v1572_v56 = vmul.f32 0.999, %v1316_v0 }
 0x462   :  { %v1824_v58 = vld [vmem:[#allocation13 + $0x540] sm:$0xff]  ;;  %2668 = vst [vmem:[#allocation23 + $0x150] sm:$0xff] %v10482_v60  ;;  %v2337_v54 = vadd.f32 %v2081_v42, %v1569_v37  ;;  %v1183_v6 = vld [vmem:[#allocation16 + $0x138] sm:$0xff]  ;;  %2672 = vst [vmem:[#allocation23 + $0x170] sm:$0xff] %v10486_v8  ;;  %v1435_v32 = vmul.f32 0.999, %v1179_v50  ;;  %6788 = vmatpush2.bf16.msra.mxu1 %v6646_v19 }
 0x463   :  { %v1828_v29 = vld [vmem:[#allocation13 + $0x560] sm:$0xff]  ;;  %v2341_v4 = vadd.f32 %v2085_v5, %v1573_v59  ;;  %v2080_v35 = vmul.f32 0.001, %v1824_v58  ;;  %v1439_v24 = vmul.f32 0.999, %v1183_v6  ;;  %v1691_v17 = vld [vmem:[#allocation13 + $0x118] sm:$0xff]  ;;  %6789 = vmatprep.subr.bf16.mxu1 %v6643_v46 }
 0x464   :  { %v2084_v33 = vmul.f32 0.001, %v1828_v29  ;;  %v1695_v40 = vld [vmem:[#allocation13 + $0x138] sm:$0xff]  ;;  %6391 = vmatmul.mubr.bf16.gmra.mxu1 %v10048_v26  ;;  %2795 = vst [vmem:[#allocation23 + $0x548] sm:$0xff] %v2337_v54  ;;  %v1947_v12 = vmul.f32 0.001, %v1691_v17  ;;  %v6641_v26 = vpack.c.bf16 %v10414_v51, %v10409_v49 }
 0x465   :  { %2799 = vst [vmem:[#allocation23 + $0x568] sm:$0xff] %v2341_v4  ;;  %v6695_v21 = vpack.c.bf16 %v2341_v4, %v2337_v54  ;;  %v2336_v28 = vadd.f32 %v2080_v35, %v1568_v27  ;;  %v1178_v34 = vld [vmem:[#allocation16 + $0x110] sm:$0xff]  ;;  %v1951_v15 = vmul.f32 0.001, %v1695_v40  ;;  %v1305_v1 = vld [vmem:[#allocation16 + $0x508] sm:$0xff]  ;;  %v1304_v59 = vld [vmem:[#allocation16 + $0x500] sm:$0xff] }
 0x466   :  { %v2340_v13 = vadd.f32 %v2084_v33, %v1572_v56  ;;  %v1182_v11 = vld [vmem:[#allocation16 + $0x130] sm:$0xff]  ;;  %v1434_v47 = vmul.f32 0.999, %v1178_v34  ;;  %v10497_v10 = vadd.f32 %v1947_v12, %v1435_v32  ;;  %v1309_v16 = vld [vmem:[#allocation16 + $0x528] sm:$0xff]  ;;  %v1561_v61 = vmul.f32 0.999, %v1305_v1  ;;  %6790 = vmatpush2.bf16.msra.mxu1 %v6642_v62 }
 0x467   :  { %v1690_v63 = vld [vmem:[#allocation13 + $0x110] sm:$0xff]  ;;  %v1438_v7 = vmul.f32 0.999, %v1182_v11  ;;  %6876 = vmatprep.subr.bf16.mxu0 %v6695_v21  ;;  %2794 = vst [vmem:[#allocation23 + $0x540] sm:$0xff] %v2336_v28  ;;  %v10499_v19 = vadd.f32 %v1951_v15, %v1439_v24  ;;  %v1565_v36 = vmul.f32 0.999, %v1309_v16  ;;  %6985 = vmatprep.subr.bf16.mxu1 %v6641_v26 }
 0x468   :  { %2798 = vst [vmem:[#allocation23 + $0x560] sm:$0xff] %v2340_v13  ;;  %v6694_v39 = vpack.c.bf16 %v2340_v13, %v2336_v28  ;;  %v1694_v55 = vld [vmem:[#allocation13 + $0x130] sm:$0xff]  ;;  %v1946_v23 = vmul.f32 0.001, %v1690_v63  ;;  %2661 = vst [vmem:[#allocation23 + $0x118] sm:$0xff] %v10497_v10  ;;  %v1817_v49 = vld [vmem:[#allocation13 + $0x508] sm:$0xff] }
 0x469   :  { %v1950_v53 = vmul.f32 0.001, %v1694_v55  ;;  %v1821_v51 = vld [vmem:[#allocation13 + $0x528] sm:$0xff]  ;;  %2665 = vst [vmem:[#allocation23 + $0x138] sm:$0xff] %v10499_v19  ;;  %v2073_v30 = vmul.f32 0.001, %v1817_v49 }
 0x46a   :  { %6877 = vmatpush1.bf16.msra.mxu0 %v6694_v39  ;;  %v10502_v37 = vadd.f32 %v1946_v23, %v1434_v47  ;;  %v2077_v0 = vmul.f32 0.001, %v1821_v51  ;;  %v1308_v46 = vld [vmem:[#allocation16 + $0x520] sm:$0xff]  ;;  %v1560_v56 = vmul.f32 0.999, %v1304_v59  ;;  %v1171_v54 = vld [vmem:[#allocation16 + $0xd8] sm:$0xff] }
 0x46b   :  { %v10507_v5 = vadd.f32 %v1950_v53, %v1438_v7  ;;  %v1816_v27 = vld [vmem:[#allocation13 + $0x500] sm:$0xff]  ;;  %v1564_v58 = vmul.f32 0.999, %v1308_v46  ;;  %v2329_v35 = vadd.f32 %v2073_v30, %v1561_v61  ;;  %v1175_v6 = vld [vmem:[#allocation16 + $0xf8] sm:$0xff]  ;;  %v1427_v40 = vmul.f32 0.999, %v1171_v54 }
 0x46c   :  { %12225 = vst [vmem:[#allocation84_spill] sm:$0xff] %v10502_v37  ;;  %2660 = vst [vmem:[#allocation23 + $0x110] sm:$0xff] %v10502_v37  ;;  %v1820_v29 = vld [vmem:[#allocation13 + $0x520] sm:$0xff]  ;;  %v2333_v33 = vadd.f32 %v2077_v0, %v1565_v36  ;;  %v2072_v50 = vmul.f32 0.001, %v1816_v27  ;;  %v1683_v32 = vld [vmem:[#allocation13 + $0xd8] sm:$0xff] }
 0x46d   :  { %2664 = vst [vmem:[#allocation23 + $0x130] sm:$0xff] %v10507_v5  ;;  %v1687_v24 = vld [vmem:[#allocation13 + $0xf8] sm:$0xff]  ;;  %v2076_v17 = vmul.f32 0.001, %v1820_v29  ;;  %v1431_v21 = vmul.f32 0.999, %v1175_v6 }
 0x46e   :  { %2787 = vst [vmem:[#allocation23 + $0x508] sm:$0xff] %v2329_v35  ;;  %2791 = vst [vmem:[#allocation23 + $0x528] sm:$0xff] %v2333_v33  ;;  %v6691_v28 = vpack.c.bf16 %v2333_v33, %v2329_v35  ;;  %v2328_v13 = vadd.f32 %v2072_v50, %v1560_v56  ;;  %v1939_v12 = vmul.f32 0.001, %v1683_v32  ;;  %v1943_v34 = vmul.f32 0.001, %v1687_v24 }
 0x46f   :  { %v1170_v11 = vld [vmem:[#allocation16 + $0xd0] sm:$0xff]  ;;  %v2332_v62 = vadd.f32 %v2076_v17, %v1564_v58  ;;  %v1297_v16 = vld [vmem:[#allocation16 + $0x4c8] sm:$0xff]  ;;  %v1296_v58 = vld [vmem:[#allocation16 + $0x4c0] sm:$0xff] }
 0x470   :  { %v1174_v63 = vld [vmem:[#allocation16 + $0xf0] sm:$0xff]  ;;  %v1426_v15 = vmul.f32 0.999, %v1170_v11  ;;  %6878 = vmatprep.subr.bf16.mxu0 %v6691_v28  ;;  %2786 = vst [vmem:[#allocation23 + $0x500] sm:$0xff] %v2328_v13  ;;  %v10513_v39 = vadd.f32 %v1939_v12, %v1427_v40  ;;  %v10515_v55 = vadd.f32 %v1943_v34, %v1431_v21  ;;  %v1301_v53 = vld [vmem:[#allocation16 + $0x4e8] sm:$0xff]  ;;  %v1300_v29 = vld [vmem:[#allocation16 + $0x4e0] sm:$0xff] }
 0x471   :  { %v1430_v47 = vmul.f32 0.999, %v1174_v63  ;;  %v1682_v7 = vld [vmem:[#allocation13 + $0xd0] sm:$0xff]  ;;  %v1139_v61 = vld [vmem:[%s11834_s12] sm:$0xf]  ;;  %2790 = vst [vmem:[#allocation23 + $0x520] sm:$0xff] %v2332_v62  ;;  %v6690_v36 = vpack.c.bf16 %v2332_v62, %v2328_v13 }
 0x472   :  { %v1686_v26 = vld [vmem:[#allocation13 + $0xf0] sm:$0xff]  ;;  %12226 = vst [vmem:[#allocation52_spill] sm:$0xff] %v10513_v39  ;;  %12227 = vst [vmem:[#allocation51_spill] sm:$0xff] %v10515_v55  ;;  %v1938_v23 = vmul.f32 0.001, %v1682_v7  ;;  %v1809_v59 = vld [vmem:[#allocation13 + $0x4c8] sm:$0xff] }
 0x473   :  { %v1942_v1 = vmul.f32 0.001, %v1686_v26  ;;  %v1553_v49 = vmul.f32 0.999, %v1297_v16  ;;  %v1557_v51 = vmul.f32 0.999, %v1301_v53  ;;  %6879 = vmatpush1.bf16.msra.mxu0 %v6690_v36 }
 0x474   :  { %v1813_v30 = vld [vmem:[#allocation13 + $0x4e8] sm:$0xff]  ;;  %2653 = vst [vmem:[#allocation23 + $0xd8] sm:$0xff] %v10513_v39  ;;  %2657 = vst [vmem:[#allocation23 + $0xf8] sm:$0xff] %v10515_v55  ;;  %v10524_v46 = vadd.f32 %v1938_v23, %v1426_v15  ;;  %v2065_v56 = vmul.f32 0.001, %v1809_v59  ;;  %v1808_v54 = vld [vmem:[#allocation13 + $0x4c0] sm:$0xff] }
 0x475   :  { %v10526_v27 = vadd.f32 %v1942_v1, %v1430_v47  ;;  %v2069_v35 = vmul.f32 0.001, %v1813_v30  ;;  %v1552_v33 = vmul.f32 0.999, %v1296_v58  ;;  %v1556_v50 = vmul.f32 0.999, %v1300_v29 }
 0x476   :  { %12228 = vst [vmem:[#allocation56_spill] sm:$0xff] %v10524_v46  ;;  %2652 = vst [vmem:[#allocation23 + $0xd0] sm:$0xff] %v10524_v46  ;;  %v2321_v32 = vadd.f32 %v2065_v56, %v1553_v49  ;;  %v1812_v24 = vld [vmem:[#allocation13 + $0x4e0] sm:$0xff]  ;;  %v2064_v17 = vmul.f32 0.001, %v1808_v54  ;;  %v1163_v40 = vld [vmem:[#allocation16 + $0x98] sm:$0xff] }
 0x477   :  { %12229 = vst [vmem:[#allocation55_spill] sm:$0xff] %v10526_v27  ;;  %2656 = vst [vmem:[#allocation23 + $0xf0] sm:$0xff] %v10526_v27  ;;  %v1167_v21 = vld [vmem:[#allocation16 + $0xb8] sm:$0xff]  ;;  %v2325_v28 = vadd.f32 %v2069_v35, %v1557_v51  ;;  %v2068_v13 = vmul.f32 0.001, %v1812_v24  ;;  %v1162_v47 = vld [vmem:[#allocation16 + $0x90] sm:$0xff] }
 0x478   :  { %v1419_v12 = vmul.f32 0.999, %v1163_v40  ;;  %v1423_v34 = vmul.f32 0.999, %v1167_v21  ;;  %v10532_v11 = vmul.f32 0.999, %v1139_v61  ;;  %v2320_v63 = vadd.f32 %v2064_v17, %v1552_v33 }
 0x479   :  { %2779 = vst [vmem:[#allocation23 + $0x4c8] sm:$0xff] %v2321_v32  ;;  %v1675_v62 = vld [vmem:[#allocation13 + $0x98] sm:$0xff]  ;;  %2783 = vst [vmem:[#allocation23 + $0x4e8] sm:$0xff] %v2325_v28  ;;  %v6687_v7 = vpack.c.bf16 %v2325_v28, %v2321_v32  ;;  %v2324_v26 = vadd.f32 %v2068_v13, %v1556_v50  ;;  %v1166_v16 = vld [vmem:[#allocation16 + $0xb0] sm:$0xff]  ;;  %v1418_v36 = vmul.f32 0.999, %v1162_v47 }
 0x47a   :  { %v1679_v15 = vld [vmem:[#allocation13 + $0xb8] sm:$0xff]  ;;  %v1931_v23 = vmul.f32 0.001, %v1675_v62  ;;  %v1674_v53 = vld [vmem:[#allocation13 + $0x90] sm:$0xff]  ;;  %2778 = vst [vmem:[#allocation23 + $0x4c0] sm:$0xff] %v2320_v63  ;;  %v1289_v59 = vld [vmem:[#allocation16 + $0x488] sm:$0xff] }
 0x47b   :  { %v1935_v1 = vmul.f32 0.001, %v1679_v15  ;;  %v1422_v49 = vmul.f32 0.999, %v1166_v16  ;;  %v1678_v51 = vld [vmem:[#allocation13 + $0xb0] sm:$0xff]  ;;  %6880 = vmatprep.subr.bf16.mxu0 %v6687_v7  ;;  %2782 = vst [vmem:[#allocation23 + $0x4e0] sm:$0xff] %v2324_v26  ;;  %v6686_v61 = vpack.c.bf16 %v2324_v26, %v2320_v63 }
 0x47c   :  { %v10534_v30 = vadd.f32 %v1931_v23, %v1419_v12  ;;  %v1930_v58 = vmul.f32 0.001, %v1674_v53  ;;  %v1293_v29 = vld [vmem:[#allocation16 + $0x4a8] sm:$0xff]  ;;  %v1934_v33 = vmul.f32 0.001, %v1678_v51  ;;  %v1288_v28 = vld [vmem:[#allocation16 + $0x480] sm:$0xff] }
 0x47d   :  { %v10536_v56 = vadd.f32 %v1935_v1, %v1423_v34  ;;  %v1801_v54 = vld [vmem:[#allocation13 + $0x488] sm:$0xff]  ;;  %v1545_v50 = vmul.f32 0.999, %v1289_v59  ;;  %v1549_v32 = vmul.f32 0.999, %v1293_v29  ;;  %6881 = vmatpush1.bf16.msra.mxu0 %v6686_v61  ;;  %v1292_v13 = vld [vmem:[#allocation16 + $0x4a0] sm:$0xff] }
 0x47e   :  { %12230 = vst [vmem:[#allocation60_spill] sm:$0xff] %v10534_v30  ;;  %v1805_v35 = vld [vmem:[#allocation13 + $0x4a8] sm:$0xff]  ;;  %2645 = vst [vmem:[#allocation23 + $0x98] sm:$0xff] %v10534_v30  ;;  %v10542_v17 = vadd.f32 %v1930_v58, %v1418_v36  ;;  %v2057_v40 = vmul.f32 0.001, %v1801_v54  ;;  %v10544_v12 = vadd.f32 %v1934_v33, %v1422_v49  ;;  %v1800_v62 = vld [vmem:[#allocation13 + $0x480] sm:$0xff] }
 0x47f   :  { %12231 = vst [vmem:[#allocation59_spill] sm:$0xff] %v10536_v56  ;;  %2649 = vst [vmem:[#allocation23 + $0xb8] sm:$0xff] %v10536_v56  ;;  %v2061_v21 = vmul.f32 0.001, %v1805_v35  ;;  %v1544_v34 = vmul.f32 0.999, %v1288_v28 }
 0x480   :  { %12232 = vst [vmem:[#allocation64_spill] sm:$0xff] %v10542_v17  ;;  %12233 = vst [vmem:[#allocation63_spill] sm:$0xff] %v10544_v12  ;;  %v1548_v63 = vmul.f32 0.999, %v1292_v13  ;;  %v1804_v15 = vld [vmem:[#allocation13 + $0x4a0] sm:$0xff]  ;;  %v2313_v47 = vadd.f32 %v2057_v40, %v1545_v50  ;;  %v1155_v1 = vld [vmem:[#allocation16 + $0x58] sm:$0xff] }
 0x481   :  { %2644 = vst [vmem:[#allocation23 + $0x90] sm:$0xff] %v10542_v17  ;;  %v2317_v7 = vadd.f32 %v2061_v21, %v1549_v32  ;;  %v2056_v26 = vmul.f32 0.001, %v1800_v62  ;;  %v2060_v23 = vmul.f32 0.001, %v1804_v15  ;;  %v1159_v16 = vld [vmem:[#allocation16 + $0x78] sm:$0xff] }
 0x482   :  { %v1141_v53 = vld [vmem:[%s11830_s8] sm:$0xf]  ;;  %2648 = vst [vmem:[#allocation23 + $0xb0] sm:$0xff] %v10544_v12  ;;  %v1411_v49 = vmul.f32 0.999, %v1155_v1  ;;  %v1667_v59 = vld [vmem:[#allocation13 + $0x58] sm:$0xff] }
 0x483   :  { %v1415_v51 = vmul.f32 0.999, %v1159_v16  ;;  %v1671_v61 = vld [vmem:[#allocation13 + $0x78] sm:$0xff]  ;;  %2771 = vst [vmem:[#allocation23 + $0x488] sm:$0xff] %v2313_v47  ;;  %2775 = vst [vmem:[#allocation23 + $0x4a8] sm:$0xff] %v2317_v7  ;;  %v6683_v58 = vpack.c.bf16 %v2317_v7, %v2313_v47  ;;  %v2312_v29 = vadd.f32 %v2056_v26, %v1544_v34  ;;  %v2316_v54 = vadd.f32 %v2060_v23, %v1548_v63  ;;  %v1154_v33 = vld [vmem:[#allocation16 + $0x50] sm:$0xff] }
 0x484   :  { %v1923_v35 = vmul.f32 0.001, %v1667_v59  ;;  %v1158_v50 = vld [vmem:[#allocation16 + $0x70] sm:$0xff]  ;;  %v1927_v40 = vmul.f32 0.001, %v1671_v61  ;;  %v1281_v16 = vld [vmem:[#allocation16 + $0x448] sm:$0xff] }
 0x485   :  { %v1666_v32 = vld [vmem:[#allocation13 + $0x50] sm:$0xff]  ;;  %v1410_v21 = vmul.f32 0.999, %v1154_v33  ;;  %v1414_v28 = vmul.f32 0.999, %v1158_v50  ;;  %6882 = vmatprep.subr.bf16.mxu0 %v6683_v58  ;;  %2770 = vst [vmem:[#allocation23 + $0x480] sm:$0xff] %v2312_v29  ;;  %v6682_v13 = vpack.c.bf16 %v2316_v54, %v2312_v29 }
 0x486   :  { %2774 = vst [vmem:[#allocation23 + $0x4a0] sm:$0xff] %v2316_v54  ;;  %v10553_v62 = vadd.f32 %v1923_v35, %v1411_v49  ;;  %v1670_v15 = vld [vmem:[#allocation13 + $0x70] sm:$0xff]  ;;  %v1922_v1 = vmul.f32 0.001, %v1666_v32  ;;  %v1285_v36 = vld [vmem:[#allocation16 + $0x468] sm:$0xff]  ;;  %v10555_v47 = vadd.f32 %v1927_v40, %v1415_v51  ;;  %v1280_v49 = vld [vmem:[#allocation16 + $0x440] sm:$0xff] }
 0x487   :  { %v1926_v34 = vmul.f32 0.001, %v1670_v15  ;;  %v1537_v63 = vmul.f32 0.999, %v1281_v16  ;;  %v1541_v7 = vmul.f32 0.999, %v1285_v36  ;;  %6883 = vmatpush1.bf16.msra.mxu0 %v6682_v13 }
 0x488   :  { %12234 = vst [vmem:[#allocation68_spill] sm:$0xff] %v10553_v62  ;;  %12235 = vst [vmem:[#allocation67_spill] sm:$0xff] %v10555_v47  ;;  %v10557_v26 = vmul.f32 0.001, %v1141_v53  ;;  %v10560_v23 = vadd.f32 %v1922_v1, %v1410_v21  ;;  %v1793_v59 = vld [vmem:[#allocation13 + $0x448] sm:$0xff]  ;;  %v1284_v36 = vld [vmem:[#allocation16 + $0x460] sm:$0xff] }
 0x489   :  { %2637 = vst [vmem:[#allocation23 + $0x58] sm:$0xff] %v10553_v62  ;;  %v1797_v61 = vld [vmem:[#allocation13 + $0x468] sm:$0xff]  ;;  %2641 = vst [vmem:[#allocation23 + $0x78] sm:$0xff] %v10555_v47  ;;  %v10565_v51 = vadd.f32 %v1926_v34, %v1414_v28  ;;  %v2049_v29 = vmul.f32 0.001, %v1793_v59  ;;  %v1792_v53 = vld [vmem:[#allocation13 + $0x440] sm:$0xff] }
 0x48a   :  { %12236 = vst [vmem:[#allocation72_spill] sm:$0xff] %v10560_v23  ;;  %v2053_v54 = vmul.f32 0.001, %v1797_v61  ;;  %2636 = vst [vmem:[#allocation23 + $0x50] sm:$0xff] %v10560_v23  ;;  %v1536_v35 = vmul.f32 0.999, %v1280_v49 }
 0x48b   :  { %12237 = vst [vmem:[#allocation71_spill] sm:$0xff] %v10565_v51  ;;  %v1540_v33 = vmul.f32 0.999, %v1284_v36  ;;  %v1796_v50 = vld [vmem:[#allocation13 + $0x460] sm:$0xff]  ;;  %v1147_v32 = vld [vmem:[#allocation16 + $0x18] sm:$0xff]  ;;  %2640 = vst [vmem:[#allocation23 + $0x70] sm:$0xff] %v10565_v51  ;;  %v2305_v21 = vadd.f32 %v2049_v29, %v1537_v63 }
 0x48c   :  { %v2309_v13 = vadd.f32 %v2053_v54, %v1541_v7  ;;  %v2048_v15 = vmul.f32 0.001, %v1792_v53  ;;  %v1151_v28 = vld [vmem:[#allocation16 + $0x38] sm:$0xff]  ;;  %v8201_v34 = vld [vmem:[%s11832_s10] sm:$0xf]  ;;  %v1146_v7 = vld [vmem:[#allocation16 + $0x10] sm:$0xff] }
 0x48d   :  { %v1659_v1 = vld [vmem:[#allocation13 + $0x18] sm:$0xff]  ;;  %v2052_v49 = vmul.f32 0.001, %v1796_v50  ;;  %v1403_v36 = vmul.f32 0.999, %v1147_v32  ;;  %2763 = vst [vmem:[#allocation23 + $0x448] sm:$0xff] %v2305_v21 }
 0x48e   :  { %v1663_v16 = vld [vmem:[#allocation13 + $0x38] sm:$0xff]  ;;  %v1407_v58 = vmul.f32 0.999, %v1151_v28  ;;  %2767 = vst [vmem:[#allocation23 + $0x468] sm:$0xff] %v2309_v13  ;;  %v6679_v24 = vpack.c.bf16 %v2309_v13, %v2305_v21  ;;  %v2304_v6 = vadd.f32 %v2048_v15, %v1536_v35  ;;  %v1915_v40 = vmul.f32 0.001, %v1659_v1  ;;  %v10580_v15 = vpop.f32.mrf.mxu0 }
 0x48f   :  { %v12238_v59 = vld [vmem:[#allocation37_spill] sm:$0xff]  ;;  %v1919_v63 = vmul.f32 0.001, %v1663_v16  ;;  %v1150_v29 = vld [vmem:[#allocation16 + $0x30] sm:$0xff]  ;;  %v12239_v54 = vld [vmem:[#allocation38_spill] sm:$0xff]  ;;  %v2308_v0 = vadd.f32 %v2052_v49, %v1540_v33 }
 0x490   :  { %v5696_v61 = vrot.slane %v8201_v34, %v12238_v59  ;;  %v5700_v53 = vrot.slane %v8201_v34, %v12239_v54  ;;  %v1402_v4 = vmul.f32 0.999, %v1146_v7  ;;  %v1406_v42 = vmul.f32 0.999, %v1150_v29  ;;  %v1658_v18 = vld [vmem:[#allocation13 + $0x10] sm:$0xff]  ;;  %6884 = vmatprep.subr.bf16.mxu0 %v6679_v24  ;;  %2762 = vst [vmem:[#allocation23 + $0x440] sm:$0xff] %v2304_v6 }
 0x491   :  { %v1662_v22 = vld [vmem:[#allocation13 + $0x30] sm:$0xff]  ;;  %v10576_v50 = vadd.f32 %v1915_v40, %v1403_v36  ;;  %v10578_v32 = vadd.f32 %v1919_v63, %v1407_v58  ;;  %v1914_v28 = vmul.f32 0.001, %v1658_v18  ;;  %v1273_v35 = vld [vmem:[#allocation16 + $0x408] sm:$0xff]  ;;  %2766 = vst [vmem:[#allocation23 + $0x460] sm:$0xff] %v2308_v0  ;;  %v6678_v1 = vpack.c.bf16 %v2308_v0, %v2304_v6  ;;  %v1272_v58 = vld [vmem:[#allocation16 + $0x400] sm:$0xff]  ;;  %v5862_v6 = vpop.f32.mrf.mxu1  ;;  %v10591_v36 = vpop.f32.mrf.mxu0 }
 0x492   :  { %v1918_v21 = vmul.f32 0.001, %v1662_v22  ;;  %v1277_v13 = vld [vmem:[#allocation16 + $0x428] sm:$0xff]  ;;  %v1529_v16 = vmul.f32 0.999, %v1273_v35  ;;  %v5822_v7 = vadd.f32 %v10388_v44, %v5696_v61  ;;  %v1276_v40 = vld [vmem:[#allocation16 + $0x420] sm:$0xff]  ;;  %v5824_v29 = vadd.f32 %v10400_v9, %v5700_v53 }
 0x493   :  { %12240 = vst [vmem:[#allocation76_spill] sm:$0xff] %v10576_v50  ;;  %12241 = vst [vmem:[#allocation75_spill] sm:$0xff] %v10578_v32  ;;  %v1533_v33 = vmul.f32 0.999, %v1277_v13  ;;  %v1785_v34 = vld [vmem:[#allocation13 + $0x408] sm:$0xff]  ;;  %v10587_v22 = vadd.f32 %v1914_v28, %v1402_v4  ;;  %v1784_v0 = vld [vmem:[#allocation13 + $0x400] sm:$0xff]  ;;  %6885 = vmatpush1.bf16.msra.mxu0 %v6678_v1  ;;  %v5864_v18 = vpop.f32.mrf.mxu1  ;;  %v10598_v20 = vpop.f32.mrf.mxu0 }
 0x494   :  { %v1789_v49 = vld [vmem:[#allocation13 + $0x428] sm:$0xff]  ;;  %2629 = vst [vmem:[#allocation23 + $0x18] sm:$0xff] %v10576_v50  ;;  %2633 = vst [vmem:[#allocation23 + $0x38] sm:$0xff] %v10578_v32  ;;  %v10589_v24 = vadd.f32 %v1918_v21, %v1406_v42  ;;  %v2041_v63 = vmul.f32 0.001, %v1785_v34  ;;  %v5863_v35 = vadd.f32 %v5862_v6, %v5822_v7  ;;  %v1788_v28 = vld [vmem:[#allocation13 + $0x420] sm:$0xff]  ;;  %v5865_v7 = vadd.f32 %v5864_v18, %v5824_v29 }
 0x495   :  { %12242 = vst [vmem:[#allocation79_spill] sm:$0xff] %v10587_v22  ;;  %v2045_v44 = vmul.f32 0.001, %v1789_v49  ;;  %v1528_v61 = vmul.f32 0.999, %v1272_v58  ;;  %2628 = vst [vmem:[#allocation23 + $0x10] sm:$0xff] %v10587_v22  ;;  %v10602_v6 = vadd.f32 %v10557_v26, %v10532_v11  ;;  %v10604_v50 = vpop.f32.mrf.mxu0 }
 0x496   :  { %12243 = vst [vmem:[#allocation78_spill] sm:$0xff] %v10589_v24  ;;  %2632 = vst [vmem:[#allocation23 + $0x30] sm:$0xff] %v10589_v24  ;;  %v1532_v4 = vmul.f32 0.999, %v1276_v40  ;;  %v1267_v21 = vld [vmem:[#allocation16 + $0x3d8] sm:$0xff]  ;;  %v2297_v1 = vadd.f32 %v2041_v63, %v1529_v16  ;;  %v5871_v53 = vmax.f32 %v5863_v35, 0.0  ;;  %v5866_v24 = vpop.f32.mrf.mxu1 }
 0x497   :  { %v1271_v13 = vld [vmem:[#allocation16 + $0x3f8] sm:$0xff]  ;;  %v2301_v34 = vadd.f32 %v2045_v44, %v1533_v33  ;;  %v2040_v49 = vmul.f32 0.001, %v1784_v0  ;;  %v2044_v58 = vmul.f32 0.001, %v1788_v28  ;;  %12244 = vst [vmem:[#allocation83_spill] sm:$0xff] %v10602_v6  ;;  %v10606_v24 = vpop.f32.mrf.mxu0  ;;  %v10635_v47 = vrot.slane %v10602_v6, %v12238_v59 }
 0x498   :  { %v1779_v9 = vld [vmem:[#allocation13 + $0x3d8] sm:$0xff]  ;;  %v1523_v41 = vmul.f32 0.999, %v1267_v21  ;;  %v1266_v40 = vld [vmem:[#allocation16 + $0x3d0] sm:$0xff]  ;;  %2755 = vst [vmem:[#allocation23 + $0x408] sm:$0xff] %v2297_v1  ;;  %v1393_v18 = vld [vmem:[#allocation16 + $0x7c8] sm:$0xff]  ;;  %v5867_v51 = vpop.f32.mrf.mxu1 }
 0x499   :  { %v1783_v42 = vld [vmem:[#allocation13 + $0x3f8] sm:$0xff]  ;;  %v1270_v22 = vld [vmem:[#allocation16 + $0x3f0] sm:$0xff]  ;;  %2759 = vst [vmem:[#allocation23 + $0x428] sm:$0xff] %v2301_v34  ;;  %v6675_v16 = vpack.c.bf16 %v2301_v34, %v2297_v1  ;;  %v2296_v33 = vadd.f32 %v2040_v49, %v1528_v61  ;;  %v2300_v0 = vadd.f32 %v2044_v58, %v1532_v4  ;;  %v1527_v63 = vmul.f32 0.999, %v1271_v13  ;;  %v1397_v21 = vld [vmem:[#allocation16 + $0x7e8] sm:$0xff]  ;;  %v10615_v62 = vpop.f32.mrf.mxu0 }
 0x49a   :  { %v1778_v44 = vld [vmem:[#allocation13 + $0x3d0] sm:$0xff]  ;;  %v5872_v11 = vmax.f32 %v5865_v7, 0.0  ;;  %v2035_v26 = vmul.f32 0.001, %v1779_v9  ;;  %v1905_v32 = vld [vmem:[#allocation13 + $0x7c8] sm:$0xff]  ;;  %v1392_v34 = vld [vmem:[#allocation16 + $0x7c0] sm:$0xff]  ;;  %v10611_v9 = vrot.slane %v10602_v6, %v12215_v57 }
 0x49b   :  { %v1782_v35 = vld [vmem:[#allocation13 + $0x3f0] sm:$0xff]  ;;  %v1909_v23 = vld [vmem:[#allocation13 + $0x7e8] sm:$0xff]  ;;  %6886 = vmatprep.subr.bf16.mxu0 %v6675_v16  ;;  %2754 = vst [vmem:[#allocation23 + $0x400] sm:$0xff] %v2296_v33  ;;  %2758 = vst [vmem:[#allocation23 + $0x420] sm:$0xff] %v2300_v0  ;;  %v6674_v1 = vpack.c.bf16 %v2300_v0, %v2296_v33  ;;  %v2039_v61 = vmul.f32 0.001, %v1783_v42 }
 0x49c   :  { %v8202_v29 = vld [vmem:[#allocation18 + $0x10] sm:$0xff]  ;;  %v1522_v4 = vmul.f32 0.999, %v1266_v40  ;;  %v1526_v13 = vmul.f32 0.999, %v1270_v22  ;;  %v8203_v49 = vld [vmem:[#allocation18 + $0x18] sm:$0xff]  ;;  %v10613_v7 = vadd.f32 %v2035_v26, %v1523_v41 }
 0x49d   :  { %v7281_v28 = vmul.f32 %v8202_v29, %v5871_v53  ;;  %v7282_v58 = vmul.f32 %v8203_v49, %v5872_v11  ;;  %v1396_v51 = vld [vmem:[#allocation16 + $0x7e0] sm:$0xff]  ;;  %6887 = vmatpush1.bf16.msra.mxu0 %v6674_v1  ;;  %v10617_v42 = vadd.f32 %v2039_v61, %v1527_v63  ;;  %v2034_v22 = vmul.f32 0.001, %v1778_v44  ;;  %v1259_v11 = vld [vmem:[#allocation16 + $0x398] sm:$0xff]  ;;  %v10624_v49 = vpop.f32.mrf.mxu0  ;;  %v1770_v57 = vld [vmem:[#allocation13 + $0x390] sm:$0xff]  ;;  %12249 = vst [vmem:[#allocation91_spill] sm:$0xff] %v10635_v47 }
 0x49e   :  { %12245 = vst [vmem:[#allocation82_spill] sm:$0xff] %v10613_v7  ;;  %v1904_v29 = vld [vmem:[#allocation13 + $0x7c0] sm:$0xff]  ;;  %v2038_v40 = vmul.f32 0.001, %v1782_v35  ;;  %v1649_v33 = vmul.f32 0.999, %v1393_v18 }
 0x49f   :  { %v7284_v53 = vadd.f32 %v10432_v43, %v7281_v28  ;;  %v1908_v16 = vld [vmem:[#allocation13 + $0x7e0] sm:$0xff]  ;;  %12246 = vst [vmem:[#allocation86_spill] sm:$0xff] %v10617_v42  ;;  %v10621_v43 = vrot.slane %v10602_v6, %v12216_v2  ;;  %2749 = vst [vmem:[#allocation23 + $0x3d8] sm:$0xff] %v10613_v7  ;;  %v1653_v41 = vmul.f32 0.999, %v1397_v21  ;;  %v1263_v26 = vld [vmem:[#allocation16 + $0x3b8] sm:$0xff]  ;;  %v10629_v44 = vadd.f32 %v2034_v22, %v1522_v4  ;;  %v10637_v17 = vpop.f32.mrf.mxu0 }
 0x4a0   :  { %v2161_v28 = vmul.f32 0.001, %v1905_v32  ;;  %2753 = vst [vmem:[#allocation23 + $0x3f8] sm:$0xff] %v10617_v42  ;;  %v10631_v35 = vadd.f32 %v2038_v40, %v1526_v13  ;;  %v2165_v18 = vmul.f32 0.001, %v1909_v23  ;;  %v1771_v1 = vld [vmem:[#allocation13 + $0x398] sm:$0xff] }
 0x4a1   :  { %v7285_v0 = vadd.f32 %v7284_v53, %v7282_v58  ;;  %12247 = vst [vmem:[#allocation87_spill] sm:$0xff] %v10629_v44  ;;  %v1775_v61 = vld [vmem:[#allocation13 + $0x3b8] sm:$0xff]  ;;  %v1258_v58 = vld [vmem:[#allocation16 + $0x390] sm:$0xff]  ;;  %v1648_v32 = vmul.f32 0.999, %v1392_v34  ;;  %2748 = vst [vmem:[#allocation23 + $0x3d0] sm:$0xff] %v10629_v44  ;;  %v10647_v63 = vpop.f32.mrf.mxu0 }
 0x4a2   :  { %12248 = vst [vmem:[#allocation89_spill] sm:$0xff] %v10631_v35  ;;  %v2417_v21 = vadd.f32 %v2161_v28, %v1649_v33  ;;  %v1652_v53 = vmul.f32 0.999, %v1396_v51  ;;  %v1262_v2 = vld [vmem:[#allocation16 + $0x3b0] sm:$0xff]  ;;  %2752 = vst [vmem:[#allocation23 + $0x3f0] sm:$0xff] %v10631_v35  ;;  %v2421_v4 = vadd.f32 %v2165_v18, %v1653_v41  ;;  %v1385_v51 = vld [vmem:[#allocation16 + $0x788] sm:$0xff]  ;;  %v10645_v28 = vrot.slane %v10602_v6, %v12239_v54 }
 0x4a3   :  { %7286 = vadd.xlane.f32.xlu0 %v7285_v0  ;;  %v2160_v13 = vmul.f32 0.001, %v1904_v29  ;;  %v2164_v22 = vmul.f32 0.001, %v1908_v16  ;;  %v1774_v34 = vld [vmem:[#allocation13 + $0x3b0] sm:$0xff]  ;;  %v1389_v41 = vld [vmem:[#allocation16 + $0x7a8] sm:$0xff]  ;;  %v10651_v18 = vadd.f32 %v10580_v15, %v10611_v9  ;;  %v10661_v15 = vadd.f32 %v10591_v36, %v10621_v43 }
 0x4a4   :  { %2875 = vst [vmem:[#allocation23 + $0x7c8] sm:$0xff] %v2417_v21  ;;  %v1515_v40 = vmul.f32 0.999, %v1259_v11  ;;  %v1519_v33 = vmul.f32 0.999, %v1263_v26  ;;  %12250 = vst [vmem:[#allocation90_spill] sm:$0xff] %v10645_v28  ;;  %v6735_v59 = vpack.c.bf16 %v2421_v4, %v2417_v21  ;;  %v10655_v28 = vpop.f32.mrf.mxu0 }
 0x4a5   :  { %v2027_v0 = vmul.f32 0.001, %v1771_v1  ;;  %2879 = vst [vmem:[#allocation23 + $0x7e8] sm:$0xff] %v2421_v4  ;;  %v2416_v47 = vadd.f32 %v2160_v13, %v1648_v32  ;;  %v2420_v7 = vadd.f32 %v2164_v22, %v1652_v53  ;;  %v2031_v23 = vmul.f32 0.001, %v1775_v61  ;;  %v1897_v29 = vld [vmem:[#allocation13 + $0x788] sm:$0xff] }
 0x4a6   :  { %v1901_v16 = vld [vmem:[#allocation13 + $0x7a8] sm:$0xff]  ;;  %v1514_v26 = vmul.f32 0.999, %v1258_v58  ;;  %v1518_v1 = vmul.f32 0.999, %v1262_v2  ;;  %v1384_v6 = vld [vmem:[#allocation16 + $0x780] sm:$0xff]  ;;  %6888 = vmatprep.subr.bf16.mxu0 %v6735_v59  ;;  %v10666_v59 = vadd.f32 %v10598_v20, %v10611_v9 }
 0x4a7   :  { %v10653_v11 = vadd.f32 %v2027_v0, %v1515_v40  ;;  %v1388_v54 = vld [vmem:[#allocation16 + $0x7a0] sm:$0xff]  ;;  %2874 = vst [vmem:[#allocation23 + $0x7c0] sm:$0xff] %v2416_v47  ;;  %2878 = vst [vmem:[#allocation23 + $0x7e0] sm:$0xff] %v2420_v7  ;;  %v6734_v21 = vpack.c.bf16 %v2420_v7, %v2416_v47  ;;  %v10657_v61 = vadd.f32 %v2031_v23, %v1519_v33  ;;  %v2026_v32 = vmul.f32 0.001, %v1770_v57  ;;  %v10668_v47 = vpop.f32.mrf.mxu0  ;;  %v1251_v23 = vld [vmem:[#allocation16 + $0x358] sm:$0xff] }
 0x4a8   :  { %v2030_v53 = vmul.f32 0.001, %v1774_v34  ;;  %v1896_v4 = vld [vmem:[#allocation13 + $0x780] sm:$0xff]  ;;  %v1641_v2 = vmul.f32 0.999, %v1385_v51  ;;  %v1255_v34 = vld [vmem:[#allocation16 + $0x378] sm:$0xff]  ;;  %v10677_v51 = vadd.f32 %v10604_v50, %v10621_v43 }
 0x4a9   :  { %12251 = vst [vmem:[#allocation39_spill] sm:$0xff] %v10653_v11  ;;  %12252 = vst [vmem:[#allocation40_spill] sm:$0xff] %v10657_v61  ;;  %v1900_v13 = vld [vmem:[#allocation13 + $0x7a0] sm:$0xff]  ;;  %v1645_v58 = vmul.f32 0.999, %v1389_v41  ;;  %6889 = vmatpush2.bf16.msra.mxu0 %v6734_v21  ;;  %v10671_v57 = vadd.f32 %v2026_v32, %v1514_v26  ;;  %v1763_v40 = vld [vmem:[#allocation13 + $0x358] sm:$0xff]  ;;  %v10681_v21 = vadd.f32 %v10606_v24, %v10611_v9  ;;  %v10683_v26 = vpop.f32.mrf.mxu0 }
 0x4aa   :  { %2741 = vst [vmem:[#allocation23 + $0x398] sm:$0xff] %v10653_v11  ;;  %v2153_v22 = vmul.f32 0.001, %v1897_v29  ;;  %2745 = vst [vmem:[#allocation23 + $0x3b8] sm:$0xff] %v10657_v61  ;;  %v10673_v7 = vadd.f32 %v2030_v53, %v1518_v1  ;;  %v2157_v36 = vmul.f32 0.001, %v1901_v16 }
 0x4ab   :  { %12253 = vst [vmem:[#allocation41_spill] sm:$0xff] %v10671_v57  ;;  %v1640_v20 = vmul.f32 0.999, %v1384_v6  ;;  %v1644_v0 = vmul.f32 0.999, %v1388_v54  ;;  %v1767_v41 = vld [vmem:[#allocation13 + $0x378] sm:$0xff]  ;;  %v10689_v54 = vadd.f32 %v10615_v62, %v10621_v43 }
 0x4ac   :  { %12254 = vst [vmem:[#allocation42_spill] sm:$0xff] %v10673_v7  ;;  %v2409_v33 = vadd.f32 %v2153_v22, %v1641_v2  ;;  %v1250_v29 = vld [vmem:[#allocation16 + $0x350] sm:$0xff]  ;;  %2740 = vst [vmem:[#allocation23 + $0x390] sm:$0xff] %v10671_v57  ;;  %v2413_v16 = vadd.f32 %v2157_v36, %v1645_v58  ;;  %v2152_v1 = vmul.f32 0.001, %v1896_v4  ;;  %v10691_v22 = vpop.f32.mrf.mxu0  ;;  %v1377_v4 = vld [vmem:[#allocation16 + $0x748] sm:$0xff]  ;;  %v10695_v36 = vadd.f32 %v10624_v49, %v10611_v9 }
 0x4ad   :  { %2744 = vst [vmem:[#allocation23 + $0x3b0] sm:$0xff] %v10673_v7  ;;  %v2156_v32 = vmul.f32 0.001, %v1900_v13  ;;  %v1254_v50 = vld [vmem:[#allocation16 + $0x370] sm:$0xff]  ;;  %v1507_v6 = vmul.f32 0.999, %v1251_v23  ;;  %v10705_v49 = vadd.f32 %v10637_v17, %v10621_v43 }
 0x4ae   :  { %v1762_v53 = vld [vmem:[#allocation13 + $0x350] sm:$0xff]  ;;  %2867 = vst [vmem:[#allocation23 + $0x788] sm:$0xff] %v2409_v33  ;;  %v1511_v2 = vmul.f32 0.999, %v1255_v34  ;;  %v2019_v24 = vmul.f32 0.001, %v1763_v40  ;;  %v6731_v44 = vpack.c.bf16 %v2413_v16, %v2409_v33  ;;  %v2408_v35 = vadd.f32 %v2152_v1, %v1640_v20  ;;  %v10699_v56 = vpop.f32.mrf.mxu0 }
 0x4af   :  { %2871 = vst [vmem:[#allocation23 + $0x7a8] sm:$0xff] %v2413_v16  ;;  %v2412_v42 = vadd.f32 %v2156_v32, %v1644_v0  ;;  %v2023_v12 = vmul.f32 0.001, %v1767_v41  ;;  %v1766_v58 = vld [vmem:[#allocation13 + $0x370] sm:$0xff]  ;;  %v1381_v13 = vld [vmem:[#allocation16 + $0x768] sm:$0xff]  ;;  %v1376_v16 = vld [vmem:[#allocation16 + $0x740] sm:$0xff] }
 0x4b0   :  { %v10697_v62 = vadd.f32 %v2019_v24, %v1507_v6  ;;  %v1506_v30 = vmul.f32 0.999, %v1250_v29  ;;  %v1510_v23 = vmul.f32 0.999, %v1254_v50  ;;  %v1889_v34 = vld [vmem:[#allocation13 + $0x748] sm:$0xff]  ;;  %6890 = vmatprep.subr.bf16.mxu0 %v6731_v44  ;;  %2866 = vst [vmem:[#allocation23 + $0x780] sm:$0xff] %v2408_v35  ;;  %v10710_v44 = vadd.f32 %v10647_v63, %v10611_v9 }
 0x4b1   :  { %v1893_v40 = vld [vmem:[#allocation13 + $0x768] sm:$0xff]  ;;  %2870 = vst [vmem:[#allocation23 + $0x7a0] sm:$0xff] %v2412_v42  ;;  %v6730_v33 = vpack.c.bf16 %v2412_v42, %v2408_v35  ;;  %v10701_v20 = vadd.f32 %v2023_v12, %v1511_v2  ;;  %v2018_v0 = vmul.f32 0.001, %v1762_v53  ;;  %v2022_v41 = vmul.f32 0.001, %v1766_v58  ;;  %v10712_v42 = vpop.f32.mrf.mxu0 }
 0x4b2   :  { %12255 = vst [vmem:[#allocation43_spill] sm:$0xff] %v10697_v62  ;;  %v1380_v1 = vld [vmem:[#allocation16 + $0x760] sm:$0xff]  ;;  %2733 = vst [vmem:[#allocation23 + $0x358] sm:$0xff] %v10697_v62  ;;  %v1633_v29 = vmul.f32 0.999, %v1377_v4  ;;  %v1243_v2 = vld [vmem:[#allocation16 + $0x318] sm:$0xff]  ;;  %v10721_v24 = vadd.f32 %v10655_v28, %v10621_v43 }
 0x4b3   :  { %12256 = vst [vmem:[#allocation44_spill] sm:$0xff] %v10701_v20  ;;  %v1637_v32 = vmul.f32 0.999, %v1381_v13  ;;  %v2145_v50 = vmul.f32 0.001, %v1889_v34  ;;  %6891 = vmatpush2.bf16.msra.mxu0 %v6730_v33  ;;  %2737 = vst [vmem:[#allocation23 + $0x378] sm:$0xff] %v10701_v20  ;;  %v10715_v12 = vadd.f32 %v2018_v0, %v1506_v30  ;;  %v10717_v35 = vadd.f32 %v2022_v41, %v1510_v23  ;;  %v10723_v33 = vpop.f32.mrf.mxu0 }
 0x4b4   :  { %v2149_v17 = vmul.f32 0.001, %v1893_v40  ;;  %v1888_v53 = vld [vmem:[#allocation13 + $0x740] sm:$0xff]  ;;  %v1632_v63 = vmul.f32 0.999, %v1376_v16  ;;  %v1247_v13 = vld [vmem:[#allocation16 + $0x338] sm:$0xff]  ;;  %v10731_v16 = vadd.f32 %v10668_v47, %v10611_v9 }
 0x4b5   :  { %12257 = vst [vmem:[#allocation45_spill] sm:$0xff] %v10715_v12  ;;  %12258 = vst [vmem:[#allocation46_spill] sm:$0xff] %v10717_v35  ;;  %v1892_v6 = vld [vmem:[#allocation13 + $0x760] sm:$0xff]  ;;  %v2401_v58 = vadd.f32 %v2145_v50, %v1633_v29  ;;  %v1636_v4 = vmul.f32 0.999, %v1380_v1  ;;  %v1755_v34 = vld [vmem:[#allocation13 + $0x318] sm:$0xff]  ;;  %v10733_v46 = vpop.f32.mrf.mxu0 }
 0x4b6   :  { %2732 = vst [vmem:[#allocation23 + $0x350] sm:$0xff] %v10715_v12  ;;  %2736 = vst [vmem:[#allocation23 + $0x370] sm:$0xff] %v10717_v35  ;;  %v2405_v23 = vadd.f32 %v2149_v17, %v1637_v32  ;;  %v2144_v40 = vmul.f32 0.001, %v1888_v53  ;;  %v2148_v0 = vmul.f32 0.001, %v1892_v6  ;;  %v10782_v62 = vadd.f32 %v10733_v46, %v10611_v9 }
 0x4b7   :  { %v1759_v41 = vld [vmem:[#allocation13 + $0x338] sm:$0xff]  ;;  %v1242_v28 = vld [vmem:[#allocation16 + $0x310] sm:$0xff]  ;;  %2859 = vst [vmem:[#allocation23 + $0x748] sm:$0xff] %v2401_v58  ;;  %v1499_v1 = vmul.f32 0.999, %v1243_v2  ;;  %v1369_v2 = vld [vmem:[#allocation16 + $0x708] sm:$0xff]  ;;  %v6138_v37 = vpop.f32.mrf.mxu0 }
 0x4b8   :  { %v1503_v29 = vmul.f32 0.999, %v1247_v13  ;;  %v2011_v50 = vmul.f32 0.001, %v1755_v34  ;;  %2863 = vst [vmem:[#allocation23 + $0x768] sm:$0xff] %v2405_v23  ;;  %v6727_v30 = vpack.c.bf16 %v2405_v23, %v2401_v58  ;;  %v2400_v11 = vadd.f32 %v2144_v40, %v1632_v63  ;;  %v1246_v32 = vld [vmem:[#allocation16 + $0x330] sm:$0xff]  ;;  %v6209_v34 = vpop.f32.mrf.mxu1 }
 0x4b9   :  { %v2404_v61 = vadd.f32 %v2148_v0, %v1636_v4  ;;  %v2015_v27 = vmul.f32 0.001, %v1759_v41  ;;  %v1754_v17 = vld [vmem:[#allocation13 + $0x310] sm:$0xff]  ;;  %v1498_v47 = vmul.f32 0.999, %v1242_v28  ;;  %v1373_v13 = vld [vmem:[#allocation16 + $0x728] sm:$0xff]  ;;  %v10743_v41 = vadd.f32 %v10683_v26, %v10621_v43 }
 0x4ba   :  { %v1758_v53 = vld [vmem:[#allocation13 + $0x330] sm:$0xff]  ;;  %v10737_v39 = vadd.f32 %v2011_v50, %v1499_v1  ;;  %v1502_v55 = vmul.f32 0.999, %v1246_v32  ;;  %6892 = vmatprep.subr.bf16.mxu0 %v6727_v30  ;;  %2858 = vst [vmem:[#allocation23 + $0x740] sm:$0xff] %v2400_v11  ;;  %v2010_v4 = vmul.f32 0.001, %v1754_v17  ;;  %v10747_v28 = vadd.f32 %v10691_v22, %v10611_v9 }
 0x4bb   :  { %2862 = vst [vmem:[#allocation23 + $0x760] sm:$0xff] %v2404_v61  ;;  %v6726_v58 = vpack.c.bf16 %v2404_v61, %v2400_v11  ;;  %v10739_v63 = vadd.f32 %v2015_v27, %v1503_v29  ;;  %v2014_v23 = vmul.f32 0.001, %v1758_v53  ;;  %v1881_v40 = vld [vmem:[#allocation13 + $0x708] sm:$0xff]  ;;  %v1625_v30 = vmul.f32 0.999, %v1369_v2  ;;  %v6211_v27 = vpop.f32.mrf.mxu1  ;;  %v10754_v29 = vpop.f32.mrf.mxu0 }
 0x4bc   :  { %v1885_v0 = vld [vmem:[#allocation13 + $0x728] sm:$0xff]  ;;  %2725 = vst [vmem:[#allocation23 + $0x318] sm:$0xff] %v10737_v39  ;;  %v1629_v1 = vmul.f32 0.999, %v1373_v13  ;;  %v1368_v50 = vld [vmem:[#allocation16 + $0x700] sm:$0xff]  ;;  %v10752_v61 = vadd.f32 %v10699_v56, %v10621_v43  ;;  %v10757_v26 = vadd.f32 %v2010_v4, %v1498_v47  ;;  %v10763_v17 = vadd.f32 %v10712_v42, %v10611_v9  ;;  %v1235_v6 = vld [vmem:[#allocation16 + $0x2d8] sm:$0xff] }
 0x4bd   :  { %v1372_v11 = vld [vmem:[#allocation16 + $0x720] sm:$0xff]  ;;  %6893 = vmatpush2.bf16.msra.mxu0 %v6726_v58  ;;  %2729 = vst [vmem:[#allocation23 + $0x338] sm:$0xff] %v10739_v63  ;;  %v10759_v22 = vadd.f32 %v2014_v23, %v1502_v55  ;;  %v2137_v32 = vmul.f32 0.001, %v1881_v40  ;;  %v2141_v2 = vmul.f32 0.001, %v1885_v0  ;;  %v6213_v57 = vpop.f32.mrf.mxu1  ;;  %v10771_v55 = vadd.f32 %v10723_v33, %v10621_v43  ;;  %v10773_v47 = vpop.f32.mrf.mxu0 }
 0x4be   :  { %v1880_v13 = vld [vmem:[#allocation13 + $0x700] sm:$0xff]  ;;  %2724 = vst [vmem:[#allocation23 + $0x310] sm:$0xff] %v10757_v26  ;;  %v1624_v4 = vmul.f32 0.999, %v1368_v50  ;;  %v1628_v23 = vmul.f32 0.999, %v1372_v11  ;;  %v6210_v40 = vadd.f32 %v6209_v34, %v10651_v18  ;;  %v6212_v0 = vadd.f32 %v6211_v27, %v10661_v15 }
 0x4bf   :  { %v1884_v58 = vld [vmem:[#allocation13 + $0x720] sm:$0xff]  ;;  %12259 = vst [vmem:[#allocation47_spill] sm:$0xff] %v10771_v55  ;;  %2728 = vst [vmem:[#allocation23 + $0x330] sm:$0xff] %v10759_v22  ;;  %v2393_v42 = vadd.f32 %v2137_v32, %v1625_v30  ;;  %v6214_v56 = vadd.f32 %v6213_v57, %v10666_v59  ;;  %v2397_v53 = vadd.f32 %v2141_v2, %v1629_v1  ;;  %v1239_v12 = vld [vmem:[#allocation16 + $0x2f8] sm:$0xff]  ;;  %v6215_v33 = vpop.f32.mrf.mxu1  ;;  %v10784_v20 = vpop.f32.mrf.mxu0  ;;  %v2136_v30 = vmul.f32 0.001, %v1880_v13 }
 0x4c0   :  { %v1747_v35 = vld [vmem:[#allocation13 + $0x2d8] sm:$0xff]  ;;  %12260 = vst [vmem:[#allocation48_spill] sm:$0xff] %v10782_v62  ;;  %v2140_v50 = vmul.f32 0.001, %v1884_v58  ;;  %v1491_v11 = vmul.f32 0.999, %v1235_v6  ;;  %v6216_v18 = vadd.f32 %v6215_v33, %v10677_v51  ;;  %v10788_v15 = vadd.f32 %v6138_v37, %v10621_v43 }
 0x4c1   :  { %2851 = vst [vmem:[#allocation23 + $0x708] sm:$0xff] %v2393_v42  ;;  %v6518_v32 = vmax.f32 %v6214_v56, 0.0  ;;  %2855 = vst [vmem:[#allocation23 + $0x728] sm:$0xff] %v2397_v53  ;;  %v6723_v59 = vpack.c.bf16 %v2397_v53, %v2393_v42  ;;  %v1751_v57 = vld [vmem:[#allocation13 + $0x2f8] sm:$0xff]  ;;  %v1234_v34 = vld [vmem:[#allocation16 + $0x2d0] sm:$0xff]  ;;  %v6219_v1 = vpop.f32.mrf.mxu1  ;;  %v6148_v27 = vpop.f32.mrf.mxu0  ;;  %v2392_v46 = vadd.f32 %v2136_v30, %v1624_v4  ;;  %v6514_v55 = vmax.f32 %v6210_v40, 0.0 }
 0x4c2   :  { %12261 = vst [vmem:[#allocation50_spill] sm:$0xff] %v10788_v15  ;;  %v2396_v2 = vadd.f32 %v2140_v50, %v1628_v23  ;;  %v1495_v7 = vmul.f32 0.999, %v1239_v12  ;;  %v2003_v62 = vmul.f32 0.001, %v1747_v35  ;;  %v6515_v13 = vmax.f32 %v6212_v0, 0.0 }
 0x4c3   :  { %v6519_v58 = vmax.f32 %v6216_v18, 0.0  ;;  %6894 = vmatprep.subr.bf16.mxu0 %v6723_v59  ;;  %v1238_v51 = vld [vmem:[#allocation16 + $0x2f0] sm:$0xff]  ;;  %v6221_v33 = vpop.f32.mrf.mxu1  ;;  %v6150_v53 = vpop.f32.mrf.mxu0  ;;  %2850 = vst [vmem:[#allocation23 + $0x700] sm:$0xff] %v2392_v46  ;;  %v2007_v15 = vmul.f32 0.001, %v1751_v57  ;;  %v10794_v35 = vpack.c.bf16 %v6518_v32, %v6514_v55  ;;  %v10800_v40 = vadd.f32 %v10754_v29, %v10611_v9  ;;  %v1361_v30 = vld [vmem:[#allocation16 + $0x6c8] sm:$0xff] }
 0x4c4   :  { %v1746_v37 = vld [vmem:[#allocation13 + $0x2d0] sm:$0xff]  ;;  %2854 = vst [vmem:[#allocation23 + $0x720] sm:$0xff] %v2396_v2  ;;  %v6722_v42 = vpack.c.bf16 %v2396_v2, %v2392_v46  ;;  %v10792_v4 = vadd.f32 %v2003_v62, %v1491_v11  ;;  %v1490_v12 = vmul.f32 0.999, %v1234_v34  ;;  %v1365_v50 = vld [vmem:[#allocation16 + $0x6e8] sm:$0xff]  ;;  %v6220_v57 = vadd.f32 %v6219_v1, %v10681_v21  ;;  %v1876_v0 = vld [vmem:[#allocation13 + $0x6e0] sm:$0xff] }
 0x4c5   :  { %v1750_v56 = vld [vmem:[#allocation13 + $0x2f0] sm:$0xff]  ;;  %12262 = vst [vmem:[#allocation53_spill] sm:$0xff] %v10794_v35  ;;  %v10796_v23 = vpack.c.bf16 %v6519_v58, %v6515_v13  ;;  %v1873_v18 = vld [vmem:[#allocation13 + $0x6c8] sm:$0xff]  ;;  %v6223_v59 = vpop.f32.mrf.mxu1  ;;  %v6152_v46 = vpop.f32.mrf.mxu0  ;;  %v10804_v62 = vadd.f32 %v2007_v15, %v1495_v7  ;;  %v1494_v55 = vmul.f32 0.999, %v1238_v51  ;;  %v6222_v29 = vadd.f32 %v6221_v33, %v10689_v54  ;;  %v1360_v7 = vld [vmem:[#allocation16 + $0x6c0] sm:$0xff] }
 0x4c6   :  { %6895 = vmatpush2.bf16.msra.mxu0 %v6722_v42  ;;  %2717 = vst [vmem:[#allocation23 + $0x2d8] sm:$0xff] %v10792_v4  ;;  %v2002_v11 = vmul.f32 0.001, %v1746_v37  ;;  %v2006_v32 = vmul.f32 0.001, %v1750_v56  ;;  %v6224_v34 = vadd.f32 %v6223_v59, %v10695_v36  ;;  %v10813_v2 = vadd.f32 %v10773_v47, %v10621_v43  ;;  %v1877_v13 = vld [vmem:[#allocation13 + $0x6e8] sm:$0xff] }
 0x4c7   :  { %12263 = vst [vmem:[#allocation54_spill] sm:$0xff] %v10796_v23  ;;  %6791 = vmatprep.mubr.bf16.mxu1 %v10796_v23  ;;  %v1364_v15 = vld [vmem:[#allocation16 + $0x6e0] sm:$0xff]  ;;  %v6225_v58 = vpop.f32.mrf.mxu1  ;;  %v10816_v51 = vpop.f32.mrf.mxu0  ;;  %2721 = vst [vmem:[#allocation23 + $0x2f8] sm:$0xff] %v10804_v62  ;;  %v1617_v36 = vmul.f32 0.999, %v1361_v30  ;;  %v12264_v56 = vpack.c.bf16 %v10422_v31, %v10417_v3  ;;  %v10829_v33 = vadd.f32 %v10784_v20, %v10611_v9  ;;  %v1231_v6 = vld [vmem:[#allocation16 + $0x2b8] sm:$0xff] }
 0x4c8   :  { %6792 = vmatmul.mubr.bf16.vlgmr.msra.gmra.mxu1 %v10794_v35  ;;  %v10819_v21 = vadd.f32 %v2002_v11, %v1490_v12  ;;  %v10821_v54 = vadd.f32 %v2006_v32, %v1494_v55  ;;  %v1621_v1 = vmul.f32 0.999, %v1365_v50  ;;  %v6526_v37 = vmax.f32 %v6224_v34, 0.0  ;;  %v1872_v59 = vld [vmem:[#allocation13 + $0x6c0] sm:$0xff] }
 0x4c9   :  { %v6226_v47 = vadd.f32 %v6225_v58, %v10705_v49  ;;  %6986 = vmatpush1.bf16.msra.mxu1 %v12264_v56  ;;  %v2129_v42 = vmul.f32 0.001, %v1873_v18  ;;  %v6229_v12 = vpop.f32.mrf.mxu1  ;;  %v12265_v55 = vpack.c.bf16 %v10442_v52, %v10437_v25  ;;  %v10835_v30 = vadd.f32 %v6148_v27, %v10621_v43  ;;  %v10837_v49 = vpop.f32.mrf.mxu0  ;;  %v1227_v25 = vld [vmem:[#allocation16 + $0x298] sm:$0xff] }
 0x4ca   :  { %2716 = vst [vmem:[#allocation23 + $0x2d0] sm:$0xff] %v10819_v21  ;;  %2720 = vst [vmem:[#allocation23 + $0x2f0] sm:$0xff] %v10821_v54  ;;  %v2133_v3 = vmul.f32 0.001, %v1877_v13  ;;  %v1616_v31 = vmul.f32 0.999, %v1360_v7  ;;  %v10842_v32 = vadd.f32 %v6150_v53, %v10611_v9  ;;  %v12267_v13 = vpack.c.bf16 %v10452_v45, %v10445_v48 }
 0x4cb   :  { %6987 = vmatprep.subr.bf16.mxu1 %v12265_v55  ;;  %v1620_v20 = vmul.f32 0.999, %v1364_v15  ;;  %v6522_v50 = vmax.f32 %v6220_v57, 0.0  ;;  %v6523_v18 = vmax.f32 %v6222_v29, 0.0  ;;  %v6527_v11 = vmax.f32 %v6226_v47, 0.0  ;;  %v6231_v52 = vpop.f32.mrf.mxu1  ;;  %v10844_v34 = vpop.f32.mrf.mxu0  ;;  %v1739_v7 = vld [vmem:[#allocation13 + $0x298] sm:$0xff] }
 0x4cc   :  { %v2385_v27 = vadd.f32 %v2129_v42, %v1617_v36  ;;  %v2389_v58 = vadd.f32 %v2133_v3, %v1621_v1  ;;  %v2128_v56 = vmul.f32 0.001, %v1872_v59  ;;  %v2132_v55 = vmul.f32 0.001, %v1876_v0  ;;  %v1743_v15 = vld [vmem:[#allocation13 + $0x2b8] sm:$0xff]  ;;  %v1226_v36 = vld [vmem:[#allocation16 + $0x290] sm:$0xff] }
 0x4cd   :  { %v10846_v35 = vpack.c.bf16 %v6526_v37, %v6522_v50  ;;  %6988 = vmatpush1.bf16.msra.mxu1 %v12267_v13  ;;  %v10851_v57 = vpack.c.bf16 %v6527_v11, %v6523_v18  ;;  %v10854_v53 = vadd.f32 %v6152_v46, %v10621_v43  ;;  %v6233_v1 = vpop.f32.mrf.mxu1  ;;  %v12269_v0 = vpack.c.bf16 %v10474_v38, %v10472_v14  ;;  %v6162_v37 = vpop.f32.mrf.mxu0  ;;  %v1230_v46 = vld [vmem:[#allocation16 + $0x2b0] sm:$0xff] }
 0x4ce   :  { %2843 = vst [vmem:[#allocation23 + $0x6c8] sm:$0xff] %v2385_v27  ;;  %2847 = vst [vmem:[#allocation23 + $0x6e8] sm:$0xff] %v2389_v58  ;;  %v6719_v48 = vpack.c.bf16 %v2389_v58, %v2385_v27  ;;  %v2384_v45 = vadd.f32 %v2128_v56, %v1616_v31  ;;  %v2388_v47 = vadd.f32 %v2132_v55, %v1620_v20  ;;  %v1483_v42 = vmul.f32 0.999, %v1227_v25  ;;  %v1738_v11 = vld [vmem:[#allocation13 + $0x290] sm:$0xff]  ;;  %v1353_v27 = vld [vmem:[#allocation16 + $0x688] sm:$0xff] }
 0x4cf   :  { %12266 = vst [vmem:[#allocation49_spill] sm:$0xff] %v10846_v35  ;;  %12268 = vst [vmem:[#allocation80_spill] sm:$0xff] %v10851_v57  ;;  %6989 = vmatprep.subr.bf16.mxu1 %v12269_v0  ;;  %v6230_v59 = vadd.f32 %v6229_v12, %v10710_v44  ;;  %v6232_v3 = vadd.f32 %v6231_v52, %v10721_v24  ;;  %v6234_v50 = vadd.f32 %v6233_v1, %v10731_v16  ;;  %v1742_v14 = vld [vmem:[#allocation13 + $0x2b0] sm:$0xff]  ;;  %v6235_v38 = vpop.f32.mrf.mxu1  ;;  %v6166_v13 = vpop.f32.mrf.mxu0  ;;  %v1869_v0 = vld [vmem:[#allocation13 + $0x6a8] sm:$0xff] }
 0x4d0   :  { %6801 = vmatprep.mubr.bf16.mxu1 %v10851_v57  ;;  %v1487_v18 = vmul.f32 0.999, %v1231_v6  ;;  %6896 = vmatprep.subr.bf16.mxu0 %v6719_v48  ;;  %2842 = vst [vmem:[#allocation23 + $0x6c0] sm:$0xff] %v2384_v45  ;;  %2846 = vst [vmem:[#allocation23 + $0x6e0] sm:$0xff] %v2388_v47  ;;  %v6718_v31 = vpack.c.bf16 %v2388_v47, %v2384_v45  ;;  %v1995_v20 = vmul.f32 0.001, %v1739_v7 }
 0x4d1   :  { %6802 = vmatmul.mubr.bf16.gmra.mxu1 %v10846_v35  ;;  %v1999_v25 = vmul.f32 0.001, %v1743_v15  ;;  %v1482_v44 = vmul.f32 0.999, %v1226_v36  ;;  %v6534_v12 = vmax.f32 %v6234_v50, 0.0  ;;  %v6236_v24 = vadd.f32 %v6235_v38, %v10743_v41  ;;  %v6239_v58 = vpop.f32.mrf.mxu1  ;;  %v10877_v55 = vpop.f32.mrf.mxu0  ;;  %v1356_v50 = vld [vmem:[#allocation16 + $0x6a0] sm:$0xff] }
 0x4d2   :  { %v12270_v16 = vpack.c.bf16 %v10486_v8, %v10482_v60  ;;  %v10872_v6 = vadd.f32 %v10816_v51, %v10611_v9  ;;  %v1486_v52 = vmul.f32 0.999, %v1230_v46  ;;  %v12271_v56 = vpack.c.bf16 %v10499_v19, %v10497_v10  ;;  %6897 = vmatpush2.bf16.msra.mxu0 %v6718_v31  ;;  %v1357_v10 = vld [vmem:[#allocation16 + $0x6a8] sm:$0xff]  ;;  %v1222_v29 = vld [vmem:[#allocation16 + $0x270] sm:$0xff] }
 0x4d3   :  { %v10879_v7 = vadd.f32 %v1995_v20, %v1483_v42  ;;  %v10881_v41 = vadd.f32 %v1999_v25, %v1487_v18  ;;  %v1994_v60 = vmul.f32 0.001, %v1738_v11  ;;  %v1998_v8 = vmul.f32 0.001, %v1742_v14  ;;  %v1865_v19 = vld [vmem:[#allocation13 + $0x688] sm:$0xff]  ;;  %v6241_v45 = vpop.f32.mrf.mxu1  ;;  %v10889_v47 = vpop.f32.mrf.mxu0  ;;  %v12272_v18 = vld [vmem:[#allocation84_spill] sm:$0xff] }
 0x4d4   :  { %6990 = vmatpush1.bf16.msra.mxu1 %v12270_v16  ;;  %v6531_v15 = vmax.f32 %v6232_v3, 0.0  ;;  %v6535_v36 = vmax.f32 %v6236_v24, 0.0  ;;  %v10885_v51 = vadd.f32 %v10837_v49, %v10621_v43  ;;  %v6530_v48 = vmax.f32 %v6230_v59, 0.0  ;;  %v1352_v3 = vld [vmem:[#allocation16 + $0x680] sm:$0xff]  ;;  %v12284_v35 = vld [vmem:[#allocation60_spill] sm:$0xff] }
 0x4d5   :  { %6991 = vmatprep.subr.bf16.mxu1 %v12271_v56  ;;  %2709 = vst [vmem:[#allocation23 + $0x298] sm:$0xff] %v10879_v7  ;;  %2713 = vst [vmem:[#allocation23 + $0x2b8] sm:$0xff] %v10881_v41  ;;  %v10893_v42 = vadd.f32 %v1994_v60, %v1482_v44  ;;  %v10895_v46 = vadd.f32 %v1998_v8, %v1486_v52  ;;  %v1609_v49 = vmul.f32 0.999, %v1353_v27  ;;  %v1864_v20 = vld [vmem:[#allocation13 + $0x680] sm:$0xff]  ;;  %v1219_v44 = vld [vmem:[#allocation16 + $0x258] sm:$0xff]  ;;  %v6243_v16 = vpop.f32.mrf.mxu1  ;;  %v10917_v56 = vpop.f32.mrf.mxu0 }
 0x4d6   :  { %v12273_v11 = vpack.c.bf16 %v10507_v5, %v12272_v18  ;;  %v10900_v14 = vpack.c.bf16 %v6535_v36, %v6531_v15  ;;  %v10904_v59 = vadd.f32 %v10844_v34, %v10611_v9  ;;  %v10907_v38 = vadd.f32 %v6162_v37, %v10621_v43  ;;  %v1868_v25 = vld [vmem:[#allocation13 + $0x6a0] sm:$0xff]  ;;  %v12276_v5 = vld [vmem:[#allocation51_spill] sm:$0xff]  ;;  %v12277_v52 = vld [vmem:[#allocation52_spill] sm:$0xff] }
 0x4d7   :  { %v10910_v31 = vadd.f32 %v6166_v13, %v10611_v9  ;;  %v10912_v24 = vpack.c.bf16 %v6534_v12, %v6530_v48  ;;  %v12278_v27 = vpack.c.bf16 %v12276_v5, %v12277_v52  ;;  %2708 = vst [vmem:[#allocation23 + $0x290] sm:$0xff] %v10893_v42  ;;  %2712 = vst [vmem:[#allocation23 + $0x2b0] sm:$0xff] %v10895_v46  ;;  %v1613_v34 = vmul.f32 0.999, %v1357_v10  ;;  %v1223_v36 = vld [vmem:[#allocation16 + $0x278] sm:$0xff]  ;;  %v6245_v18 = vpop.f32.mrf.mxu1 }
 0x4d8   :  { %6992 = vmatpush1.bf16.msra.mxu1 %v12273_v11  ;;  %12274 = vst [vmem:[#allocation85_spill] sm:$0xff] %v10900_v14  ;;  %v2121_v37 = vmul.f32 0.001, %v1865_v19  ;;  %v2125_v13 = vmul.f32 0.001, %v1869_v0  ;;  %v6240_v60 = vadd.f32 %v6239_v58, %v10747_v28  ;;  %v6242_v8 = vadd.f32 %v6241_v45, %v10752_v61  ;;  %6811 = vmatprep.mubr.bf16.mxu1 %v10900_v14  ;;  %v1731_v48 = vld [vmem:[#allocation13 + $0x258] sm:$0xff]  ;;  %v10926_v11 = vpop.f32.mrf.mxu0 }
 0x4d9   :  { %12275 = vst [vmem:[#allocation88_spill] sm:$0xff] %v10912_v24  ;;  %6993 = vmatprep.subr.bf16.mxu1 %v12278_v27  ;;  %v6244_v12 = vadd.f32 %v6243_v16, %v10763_v17  ;;  %v1608_v15 = vmul.f32 0.999, %v1352_v3  ;;  %6812 = vmatmul.mubr.bf16.gmra.mxu1 %v10912_v24  ;;  %v1612_v19 = vmul.f32 0.999, %v1356_v50  ;;  %v1735_v52 = vld [vmem:[#allocation13 + $0x278] sm:$0xff]  ;;  %v6249_v14 = vpop.f32.mrf.mxu1 }
 0x4da   :  { %v2377_v5 = vadd.f32 %v2121_v37, %v1609_v49  ;;  %v2381_v10 = vadd.f32 %v2125_v13, %v1613_v34  ;;  %v2120_v0 = vmul.f32 0.001, %v1864_v20  ;;  %v1218_v28 = vld [vmem:[#allocation16 + $0x250] sm:$0xff]  ;;  %v2124_v3 = vmul.f32 0.001, %v1868_v25  ;;  %v10935_v49 = vpop.f32.mrf.mxu0 }
 0x4db   :  { %v6542_v58 = vmax.f32 %v6244_v12, 0.0  ;;  %v12279_v61 = vld [vmem:[#allocation47_spill] sm:$0xff]  ;;  %v12281_v16 = vld [vmem:[#allocation56_spill] sm:$0xff]  ;;  %v1475_v1 = vmul.f32 0.999, %v1219_v44  ;;  %v6251_v23 = vpop.f32.mrf.mxu1 }
 0x4dc   :  { %v6246_v45 = vadd.f32 %v6245_v18, %v12279_v61  ;;  %v12280_v17 = vld [vmem:[#allocation55_spill] sm:$0xff]  ;;  %2835 = vst [vmem:[#allocation23 + $0x688] sm:$0xff] %v2377_v5  ;;  %2839 = vst [vmem:[#allocation23 + $0x6a8] sm:$0xff] %v2381_v10  ;;  %v6715_v50 = vpack.c.bf16 %v2381_v10, %v2377_v5  ;;  %v2376_v20 = vadd.f32 %v2120_v0, %v1608_v15  ;;  %v1479_v34 = vmul.f32 0.999, %v1223_v36  ;;  %v12287_v5 = vld [vmem:[#allocation48_spill] sm:$0xff] }
 0x4dd   :  { %v12282_v27 = vpack.c.bf16 %v12280_v17, %v12281_v16  ;;  %v12283_v24 = vld [vmem:[#allocation59_spill] sm:$0xff]  ;;  %v1987_v37 = vmul.f32 0.001, %v1731_v48  ;;  %v6538_v18 = vmax.f32 %v6240_v60, 0.0  ;;  %v6539_v61 = vmax.f32 %v6242_v8, 0.0  ;;  %v12289_v10 = vld [vmem:[#allocation64_spill] sm:$0xff] }
 0x4de   :  { %v12285_v57 = vpack.c.bf16 %v12283_v24, %v12284_v35  ;;  %v1730_v13 = vld [vmem:[#allocation13 + $0x250] sm:$0xff]  ;;  %v6543_v25 = vmax.f32 %v6246_v45, 0.0  ;;  %v2380_v44 = vadd.f32 %v2124_v3, %v1612_v19  ;;  %v1345_v17 = vld [vmem:[#allocation16 + $0x648] sm:$0xff]  ;;  %v10937_v35 = vpop.f32.mrf.mxu0  ;;  %6898 = vmatprep.subr.bf16.mxu0 %v6715_v50  ;;  %2834 = vst [vmem:[#allocation23 + $0x680] sm:$0xff] %v2376_v20  ;;  %v1474_v15 = vmul.f32 0.999, %v1218_v28 }
 0x4df   :  { %6994 = vmatpush1.bf16.msra.mxu1 %v12282_v27  ;;  %v1734_v12 = vld [vmem:[#allocation13 + $0x270] sm:$0xff]  ;;  %v1349_v16 = vld [vmem:[#allocation16 + $0x668] sm:$0xff]  ;;  %v10939_v24 = vadd.f32 %v1987_v37, %v1475_v1  ;;  %v1478_v36 = vmul.f32 0.999, %v1222_v29  ;;  %v10941_v48 = vpack.c.bf16 %v6542_v58, %v6538_v18  ;;  %v10944_v60 = vadd.f32 %v6249_v14, %v12287_v5  ;;  %v1344_v50 = vld [vmem:[#allocation16 + $0x640] sm:$0xff] }
 0x4e0   :  { %6995 = vmatprep.subr.bf16.mxu1 %v12285_v57  ;;  %v1857_v27 = vld [vmem:[#allocation13 + $0x648] sm:$0xff]  ;;  %v1991_v57 = vmul.f32 0.001, %v1735_v52  ;;  %v10949_v0 = vpack.c.bf16 %v6543_v25, %v6539_v61  ;;  %2838 = vst [vmem:[#allocation23 + $0x6a0] sm:$0xff] %v2380_v44  ;;  %v6714_v45 = vpack.c.bf16 %v2380_v44, %v2376_v20  ;;  %v6253_v52 = vpop.f32.mrf.mxu1  ;;  %v12293_v37 = vld [vmem:[#allocation68_spill] sm:$0xff]  ;;  %v10954_v29 = vpop.f32.mrf.mxu0 }
 0x4e1   :  { %12286 = vst [vmem:[#allocation58_spill] sm:$0xff] %v10941_v48  ;;  %v12288_v8 = vld [vmem:[#allocation63_spill] sm:$0xff]  ;;  %12295 = vst [vmem:[#allocation62_spill] sm:$0xff] %v10954_v29  ;;  %v1986_v14 = vmul.f32 0.001, %v1730_v13  ;;  %v12296_v61 = vld [vmem:[#allocation50_spill] sm:$0xff]  ;;  %v6254_v20 = vadd.f32 %v6253_v52, %v10800_v40 }
 0x4e2   :  { %v12290_v19 = vpack.c.bf16 %v12288_v8, %v12289_v10  ;;  %12291 = vst [vmem:[#allocation57_spill] sm:$0xff] %v10949_v0  ;;  %v1861_v3 = vld [vmem:[#allocation13 + $0x668] sm:$0xff]  ;;  %v10956_v58 = vadd.f32 %v1991_v57, %v1479_v34  ;;  %2701 = vst [vmem:[#allocation23 + $0x258] sm:$0xff] %v10939_v24  ;;  %v1990_v18 = vmul.f32 0.001, %v1734_v12  ;;  %v6252_v25 = vadd.f32 %v6251_v23, %v12296_v61  ;;  %v1348_v10 = vld [vmem:[#allocation16 + $0x660] sm:$0xff]  ;;  %v10967_v13 = vpop.f32.mrf.mxu0 }
 0x4e3   :  { %v12292_v1 = vld [vmem:[#allocation67_spill] sm:$0xff]  ;;  %v1601_v5 = vmul.f32 0.999, %v1345_v17  ;;  %6821 = vmatprep.mubr.bf16.mxu1 %v10949_v0  ;;  %6899 = vmatpush2.bf16.msra.mxu0 %v6714_v45  ;;  %v1605_v44 = vmul.f32 0.999, %v1349_v16  ;;  %v10965_v34 = vadd.f32 %v10877_v55, %v10621_v43  ;;  %12297 = vst [vmem:[#allocation61_spill] sm:$0xff] %v10967_v13  ;;  %v10970_v23 = vadd.f32 %v1986_v14, %v1474_v15 }
 0x4e4   :  { %6996 = vmatpush1.bf16.msra.mxu1 %v12290_v19  ;;  %v12294_v28 = vpack.c.bf16 %v12292_v1, %v12293_v37  ;;  %v2113_v8 = vmul.f32 0.001, %v1857_v27  ;;  %v1856_v19 = vld [vmem:[#allocation13 + $0x640] sm:$0xff]  ;;  %v6255_v1 = vpop.f32.mrf.mxu1  ;;  %2705 = vst [vmem:[#allocation23 + $0x278] sm:$0xff] %v10956_v58  ;;  %v10972_v40 = vadd.f32 %v1990_v18, %v1478_v36  ;;  %v2117_v12 = vmul.f32 0.001, %v1861_v3  ;;  %v10983_v3 = vpop.f32.mrf.mxu0 }
 0x4e5   :  { %6822 = vmatmul.mubr.bf16.gmra.mxu1 %v10941_v48  ;;  %v1860_v17 = vld [vmem:[#allocation13 + $0x660] sm:$0xff]  ;;  %v6550_v16 = vmax.f32 %v6254_v20, 0.0  ;;  %v6256_v27 = vadd.f32 %v6255_v1, %v10813_v2  ;;  %v12298_v57 = vld [vmem:[#allocation71_spill] sm:$0xff]  ;;  %v12299_v45 = vld [vmem:[#allocation72_spill] sm:$0xff]  ;;  %v1600_v55 = vmul.f32 0.999, %v1344_v50 }
 0x4e6   :  { %6997 = vmatprep.subr.bf16.mxu1 %v12294_v28  ;;  %v12300_v52 = vpack.c.bf16 %v12298_v57, %v12299_v45  ;;  %v2369_v37 = vadd.f32 %v2113_v8, %v1601_v5  ;;  %v1211_v28 = vld [vmem:[#allocation16 + $0x218] sm:$0xff]  ;;  %v6259_v48 = vpop.f32.mrf.mxu1  ;;  %v12301_v0 = vld [vmem:[#allocation75_spill] sm:$0xff]  ;;  %12304 = vst [vmem:[#allocation66_spill] sm:$0xff] %v10983_v3  ;;  %2700 = vst [vmem:[#allocation23 + $0x250] sm:$0xff] %v10970_v23  ;;  %v2373_v2 = vadd.f32 %v2117_v12, %v1605_v44  ;;  %v10988_v45 = vpop.f32.mrf.mxu0 }
 0x4e7   :  { %v1215_v61 = vld [vmem:[#allocation16 + $0x238] sm:$0xff]  ;;  %2704 = vst [vmem:[#allocation23 + $0x270] sm:$0xff] %v10972_v40  ;;  %v1604_v14 = vmul.f32 0.999, %v1348_v10  ;;  %v2112_v18 = vmul.f32 0.001, %v1856_v19 }
 0x4e8   :  { %6998 = vmatpush1.bf16.msra.mxu1 %v12300_v52  ;;  %v12302_v13 = vld [vmem:[#allocation76_spill] sm:$0xff]  ;;  %v6546_v20 = vmax.f32 %v10944_v60, 0.0  ;;  %v6547_v8 = vmax.f32 %v6252_v25, 0.0  ;;  %v6551_v1 = vmax.f32 %v6256_v27, 0.0  ;;  %2827 = vst [vmem:[#allocation23 + $0x648] sm:$0xff] %v2369_v37  ;;  %v6261_v57 = vpop.f32.mrf.mxu1  ;;  %12305 = vst [vmem:[#allocation65_spill] sm:$0xff] %v10988_v45  ;;  %v6711_v52 = vpack.c.bf16 %v2373_v2, %v2369_v37 }
 0x4e9   :  { %v12303_v15 = vpack.c.bf16 %v12301_v0, %v12302_v13  ;;  %v1723_v50 = vld [vmem:[#allocation13 + $0x218] sm:$0xff]  ;;  %v2116_v0 = vmul.f32 0.001, %v1860_v17  ;;  %v1210_v13 = vld [vmem:[#allocation16 + $0x210] sm:$0xff]  ;;  %2831 = vst [vmem:[#allocation23 + $0x668] sm:$0xff] %v2373_v2  ;;  %v12307_v12 = vld [vmem:[#allocation78_spill] sm:$0xff]  ;;  %v10999_v17 = vadd.f32 %v10889_v47, %v10611_v9  ;;  %v6262_v9 = vadd.f32 %v6261_v57, %v10835_v30 }
 0x4ea   :  { %v1727_v5 = vld [vmem:[#allocation13 + $0x238] sm:$0xff]  ;;  %v1467_v36 = vmul.f32 0.999, %v1211_v28  ;;  %v1471_v3 = vmul.f32 0.999, %v1215_v61  ;;  %v1214_v44 = vld [vmem:[#allocation16 + $0x230] sm:$0xff]  ;;  %v10990_v19 = vpack.c.bf16 %v6550_v16, %v6546_v20  ;;  %v10995_v25 = vpack.c.bf16 %v6551_v1, %v6547_v8  ;;  %v6263_v61 = vpop.f32.mrf.mxu1  ;;  %6900 = vmatprep.subr.bf16.mxu0 %v6711_v52 }
 0x4eb   :  { %6999 = vmatprep.subr.bf16.mxu1 %v12303_v15  ;;  %v2368_v15 = vadd.f32 %v2112_v18, %v1600_v55  ;;  %v1722_v10 = vld [vmem:[#allocation13 + $0x210] sm:$0xff]  ;;  %v2372_v27 = vadd.f32 %v2116_v0, %v1604_v14  ;;  %v1337_v37 = vld [vmem:[#allocation16 + $0x608] sm:$0xff]  ;;  %v6260_v28 = vadd.f32 %v6259_v48, %v10829_v33  ;;  %v1979_v20 = vmul.f32 0.001, %v1723_v50  ;;  %v1336_v57 = vld [vmem:[#allocation16 + $0x600] sm:$0xff] }
 0x4ec   :  { %12306 = vst [vmem:[#allocation70_spill] sm:$0xff] %v10990_v19  ;;  %v12308_v29 = vld [vmem:[#allocation79_spill] sm:$0xff]  ;;  %12310 = vst [vmem:[#allocation69_spill] sm:$0xff] %v10995_v25  ;;  %v12311_v2 = vld [vmem:[#allocation86_spill] sm:$0xff]  ;;  %v1983_v8 = vmul.f32 0.001, %v1727_v5  ;;  %v6264_v47 = vadd.f32 %v6263_v61, %v10842_v32  ;;  %6831 = vmatprep.mubr.bf16.mxu1 %v10995_v25  ;;  %v6265_v0 = vpop.f32.mrf.mxu1 }
 0x4ed   :  { %v12309_v60 = vpack.c.bf16 %v12307_v12, %v12308_v29  ;;  %v1726_v45 = vld [vmem:[#allocation13 + $0x230] sm:$0xff]  ;;  %v1341_v55 = vld [vmem:[#allocation16 + $0x628] sm:$0xff]  ;;  %2826 = vst [vmem:[#allocation23 + $0x640] sm:$0xff] %v2368_v15  ;;  %v11005_v29 = vpop.f32.mrf.mxu0  ;;  %v1466_v1 = vmul.f32 0.999, %v1210_v13  ;;  %2830 = vst [vmem:[#allocation23 + $0x660] sm:$0xff] %v2372_v27  ;;  %v6710_v33 = vpack.c.bf16 %v2372_v27, %v2368_v15  ;;  %6832 = vmatmul.mubr.bf16.gmra.mxu1 %v10990_v19 }
 0x4ee   :  { %v12312_v16 = vld [vmem:[#allocation82_spill] sm:$0xff]  ;;  %v1470_v48 = vmul.f32 0.999, %v1214_v44  ;;  %v11011_v52 = vadd.f32 %v1979_v20, %v1467_v36  ;;  %v11013_v12 = vadd.f32 %v1983_v8, %v1471_v3  ;;  %v1978_v50 = vmul.f32 0.001, %v1722_v10  ;;  %v12314_v61 = vld [vmem:[#allocation89_spill] sm:$0xff] }
 0x4ef   :  { %7000 = vmatpush1.bf16.msra.mxu1 %v12309_v60  ;;  %v12313_v18 = vpack.c.bf16 %v12311_v2, %v12312_v16  ;;  %v1849_v14 = vld [vmem:[#allocation13 + $0x608] sm:$0xff]  ;;  %v1982_v5 = vmul.f32 0.001, %v1726_v45  ;;  %v11015_v13 = vpop.f32.mrf.mxu0  ;;  %v6558_v32 = vmax.f32 %v6264_v47, 0.0  ;;  %v6266_v60 = vadd.f32 %v6265_v0, %v10854_v53  ;;  %6901 = vmatpush2.bf16.msra.mxu0 %v6710_v33  ;;  %v1340_v36 = vld [vmem:[#allocation16 + $0x620] sm:$0xff]  ;;  %v6269_v16 = vpop.f32.mrf.mxu1  ;;  %v12317_v3 = vld [vmem:[#allocation40_spill] sm:$0xff] }
 0x4f0   :  { %v1853_v30 = vld [vmem:[#allocation13 + $0x628] sm:$0xff]  ;;  %v1593_v27 = vmul.f32 0.999, %v1337_v37  ;;  %v1597_v2 = vmul.f32 0.999, %v1341_v55  ;;  %2693 = vst [vmem:[#allocation23 + $0x218] sm:$0xff] %v11011_v52  ;;  %v11028_v53 = vadd.f32 %v1978_v50, %v1466_v1 }
 0x4f1   :  { %7001 = vmatprep.subr.bf16.mxu1 %v12313_v18  ;;  %v12315_v15 = vld [vmem:[#allocation87_spill] sm:$0xff]  ;;  %2697 = vst [vmem:[#allocation23 + $0x238] sm:$0xff] %v11013_v12  ;;  %v11030_v20 = vadd.f32 %v1982_v5, %v1470_v48  ;;  %v2105_v8 = vmul.f32 0.001, %v1849_v14  ;;  %v1848_v37 = vld [vmem:[#allocation13 + $0x600] sm:$0xff]  ;;  %v11032_v47 = vpop.f32.mrf.mxu0  ;;  %v6554_v33 = vmax.f32 %v6260_v28, 0.0 }
 0x4f2   :  { %v12316_v44 = vpack.c.bf16 %v12314_v61, %v12315_v15  ;;  %v12318_v18 = vld [vmem:[#allocation39_spill] sm:$0xff]  ;;  %v1852_v55 = vld [vmem:[#allocation13 + $0x620] sm:$0xff]  ;;  %v6555_v0 = vmax.f32 %v6262_v9, 0.0  ;;  %v6559_v61 = vmax.f32 %v6266_v60, 0.0  ;;  %v2109_v15 = vmul.f32 0.001, %v1853_v30 }
 0x4f3   :  { %v12319_v10 = vpack.c.bf16 %v12317_v3, %v12318_v18  ;;  %v6271_v3 = vpop.f32.mrf.mxu1  ;;  %v11036_v18 = vadd.f32 %v10917_v56, %v10621_v43  ;;  %2692 = vst [vmem:[#allocation23 + $0x210] sm:$0xff] %v11028_v53  ;;  %2696 = vst [vmem:[#allocation23 + $0x230] sm:$0xff] %v11030_v20  ;;  %v2361_v1 = vadd.f32 %v2105_v8, %v1593_v27  ;;  %v1592_v48 = vmul.f32 0.999, %v1336_v57  ;;  %v11040_v50 = vpop.f32.mrf.mxu0  ;;  %v1335_v5 = vld [vmem:[#allocation16 + $0x5f8] sm:$0xff]  ;;  %v12323_v60 = vld [vmem:[#allocation42_spill] sm:$0xff] }
 0x4f4   :  { %7002 = vmatpush2.bf16.msra.mxu1 %v12316_v44  ;;  %v1331_v44 = vld [vmem:[#allocation16 + $0x5d8] sm:$0xff]  ;;  %v1596_v14 = vmul.f32 0.999, %v1340_v36  ;;  %12320 = vst [vmem:[#allocation74_spill] sm:$0xff] %v11040_v50  ;;  %v11042_v9 = vpack.c.bf16 %v6558_v32, %v6554_v33  ;;  %v11044_v30 = vpack.c.bf16 %v6559_v61, %v6555_v0  ;;  %v2365_v56 = vadd.f32 %v2109_v15, %v1597_v2  ;;  %v1330_v27 = vld [vmem:[#allocation16 + $0x5d0] sm:$0xff] }
 0x4f5   :  { %7003 = vmatprep.subr.bf16.mxu1 %v12319_v10  ;;  %v1843_v28 = vld [vmem:[#allocation13 + $0x5d8] sm:$0xff]  ;;  %v1334_v57 = vld [vmem:[#allocation16 + $0x5f0] sm:$0xff]  ;;  %v6270_v36 = vadd.f32 %v6269_v16, %v10872_v6  ;;  %v6273_v8 = vpop.f32.mrf.mxu1  ;;  %2819 = vst [vmem:[#allocation23 + $0x608] sm:$0xff] %v2361_v1  ;;  %v2104_v33 = vmul.f32 0.001, %v1848_v37 }
 0x4f6   :  { %12321 = vst [vmem:[#allocation73_spill] sm:$0xff] %v11042_v9  ;;  %12322 = vst [vmem:[#allocation77_spill] sm:$0xff] %v11044_v30  ;;  %v12324_v10 = vld [vmem:[#allocation41_spill] sm:$0xff]  ;;  %v12326_v25 = vld [vmem:[#allocation44_spill] sm:$0xff]  ;;  %v2108_v0 = vmul.f32 0.001, %v1852_v55  ;;  %v6274_v2 = vadd.f32 %v6273_v8, %v10904_v59  ;;  %6841 = vmatprep.mubr.bf16.mxu1 %v11044_v30  ;;  %v6707_v15 = vpack.c.bf16 %v2365_v56, %v2361_v1 }
 0x4f7   :  { %v12325_v45 = vpack.c.bf16 %v12323_v60, %v12324_v10  ;;  %v1847_v19 = vld [vmem:[#allocation13 + $0x5f8] sm:$0xff]  ;;  %v12327_v50 = vld [vmem:[#allocation43_spill] sm:$0xff]  ;;  %v1587_v61 = vmul.f32 0.999, %v1331_v44  ;;  %v11055_v60 = vpop.f32.mrf.mxu0  ;;  %2823 = vst [vmem:[#allocation23 + $0x628] sm:$0xff] %v2365_v56  ;;  %v6275_v10 = vpop.f32.mrf.mxu1  ;;  %6842 = vmatmul.mubr.bf16.gmra.mxu1 %v11042_v9 }
 0x4f8   :  { %v12328_v32 = vpack.c.bf16 %v12326_v25, %v12327_v50  ;;  %v1591_v6 = vmul.f32 0.999, %v1335_v5  ;;  %v1842_v16 = vld [vmem:[#allocation13 + $0x5d0] sm:$0xff]  ;;  %v2360_v25 = vadd.f32 %v2104_v33, %v1592_v48  ;;  %v2364_v50 = vadd.f32 %v2108_v0, %v1596_v14  ;;  %v1323_v43 = vld [vmem:[#allocation16 + $0x598] sm:$0xff]  ;;  %6902 = vmatprep.subr.bf16.mxu0 %v6707_v15 }
 0x4f9   :  { %7004 = vmatpush2.bf16.msra.mxu1 %v12325_v45  ;;  %v6272_v45 = vadd.f32 %v6271_v3, %v10885_v51  ;;  %v2099_v37 = vmul.f32 0.001, %v1843_v28  ;;  %v2103_v55 = vmul.f32 0.001, %v1847_v19  ;;  %v1846_v44 = vld [vmem:[#allocation13 + $0x5f0] sm:$0xff]  ;;  %v6566_v51 = vmax.f32 %v6274_v2, 0.0  ;;  %v6279_v9 = vpop.f32.mrf.mxu1 }
 0x4fa   :  { %7005 = vmatprep.subr.bf16.mxu1 %v12328_v32  ;;  %v11061_v32 = vpop.f32.mrf.mxu0  ;;  %v6276_v59 = vadd.f32 %v6275_v10, %v10907_v38  ;;  %v12329_v3 = vld [vmem:[#allocation46_spill] sm:$0xff]  ;;  %v12330_v8 = vld [vmem:[#allocation45_spill] sm:$0xff]  ;;  %v1586_v1 = vmul.f32 0.999, %v1330_v27  ;;  %v1590_v5 = vmul.f32 0.999, %v1334_v57  ;;  %v12332_v48 = vpack.c.bf16 %v10739_v63, %v10737_v39 }
 0x4fb   :  { %v12331_v30 = vpack.c.bf16 %v12329_v3, %v12330_v8  ;;  %v1327_v56 = vld [vmem:[#allocation16 + $0x5b8] sm:$0xff]  ;;  %2818 = vst [vmem:[#allocation23 + $0x600] sm:$0xff] %v2360_v25  ;;  %2822 = vst [vmem:[#allocation23 + $0x620] sm:$0xff] %v2364_v50  ;;  %v6706_v19 = vpack.c.bf16 %v2364_v50, %v2360_v25  ;;  %v2355_v14 = vadd.f32 %v2099_v37, %v1587_v61  ;;  %v2098_v33 = vmul.f32 0.001, %v1842_v16  ;;  %v1322_v10 = vld [vmem:[#allocation16 + $0x590] sm:$0xff]  ;;  %v6281_v3 = vpop.f32.mrf.mxu1 }
 0x4fc   :  { %v2359_v28 = vadd.f32 %v2103_v55, %v1591_v6  ;;  %v1835_v38 = vld [vmem:[#allocation13 + $0x598] sm:$0xff]  ;;  %v11070_v2 = vpop.f32.mrf.mxu0  ;;  %v6563_v15 = vmax.f32 %v6272_v45, 0.0  ;;  %v6567_v27 = vmax.f32 %v6276_v59, 0.0  ;;  %v2102_v57 = vmul.f32 0.001, %v1846_v44  ;;  %v1326_v6 = vld [vmem:[#allocation16 + $0x5b0] sm:$0xff] }
 0x4fd   :  { %7006 = vmatpush2.bf16.msra.mxu1 %v12331_v30  ;;  %v1839_v0 = vld [vmem:[#allocation13 + $0x5b8] sm:$0xff]  ;;  %v6562_v30 = vmax.f32 %v6270_v36, 0.0  ;;  %6903 = vmatpush2.bf16.msra.mxu0 %v6706_v19  ;;  %2813 = vst [vmem:[#allocation23 + $0x5d8] sm:$0xff] %v2355_v14  ;;  %v11072_v63 = vadd.f32 %v2098_v33, %v1586_v1  ;;  %v1579_v25 = vmul.f32 0.999, %v1323_v43  ;;  %v1834_v16 = vld [vmem:[#allocation13 + $0x590] sm:$0xff]  ;;  %v12333_v36 = vpack.c.bf16 %v10759_v22, %v10757_v26  ;;  %v6283_v1 = vpop.f32.mrf.mxu1 }
 0x4fe   :  { %7007 = vmatprep.subr.bf16.mxu1 %v12332_v48  ;;  %2817 = vst [vmem:[#allocation23 + $0x5f8] sm:$0xff] %v2359_v28  ;;  %v6705_v39 = vpack.c.bf16 %v2359_v28, %v2355_v14  ;;  %v1583_v61 = vmul.f32 0.999, %v1327_v56  ;;  %v11076_v37 = vpack.c.bf16 %v6567_v27, %v6563_v15  ;;  %v6648_v45 = vpack.c.bf16 %v10972_v40, %v10970_v23  ;;  %v1838_v44 = vld [vmem:[#allocation13 + $0x5b0] sm:$0xff]  ;;  %v1315_v59 = vld [vmem:[#allocation16 + $0x558] sm:$0xff]  ;;  %v11090_v48 = vpop.f32.mrf.mxu0 }
 0x4ff   :  { %v11074_v50 = vpack.c.bf16 %v6566_v51, %v6562_v30  ;;  %v11083_v55 = vadd.f32 %v2102_v57, %v1590_v5  ;;  %v1319_v8 = vld [vmem:[#allocation16 + $0x578] sm:$0xff]  ;;  %v6280_v43 = vadd.f32 %v6279_v9, %v10910_v31  ;;  %v12334_v51 = vpack.c.bf16 %v10804_v62, %v10792_v4  ;;  %2812 = vst [vmem:[#allocation23 + $0x5d0] sm:$0xff] %v11072_v63  ;;  %v6285_v9 = vpop.f32.mrf.mxu1 }
 0x500   :  { %7098 = vmatprep.subr.bf16.mxu0 %v6705_v39  ;;  %v2091_v26 = vmul.f32 0.001, %v1835_v38  ;;  %v2095_v22 = vmul.f32 0.001, %v1839_v0  ;;  %v1578_v56 = vmul.f32 0.999, %v1322_v10  ;;  %v6282_v5 = vadd.f32 %v6281_v3, %v10965_v34  ;;  %6851 = vmatprep.mubr.bf16.mxu1 %v11076_v37 }
 0x501   :  { %7008 = vmatpush2.bf16.msra.mxu1 %v12333_v36  ;;  %v6284_v19 = vadd.f32 %v6283_v1, %v10999_v17  ;;  %v6645_v31 = vpack.c.bf16 %v11013_v12, %v11011_v52  ;;  %2816 = vst [vmem:[#allocation23 + $0x5f0] sm:$0xff] %v11083_v55  ;;  %v1582_v4 = vmul.f32 0.999, %v1326_v6  ;;  %v1827_v62 = vld [vmem:[#allocation13 + $0x558] sm:$0xff]  ;;  %v2090_v33 = vmul.f32 0.001, %v1834_v16  ;;  %v6322_v39 = vpop.f32.mrf.mxu1 }
 0x502   :  { %7009 = vmatprep.subr.bf16.mxu1 %v12334_v51  ;;  %6852 = vmatmul.mubr.bf16.gmra.mxu1 %v11074_v50  ;;  %v11099_v14 = vadd.f32 %v2091_v26, %v1579_v25  ;;  %v11101_v28 = vadd.f32 %v2095_v22, %v1583_v61  ;;  %v2094_v34 = vmul.f32 0.001, %v1838_v44  ;;  %v1831_v38 = vld [vmem:[#allocation13 + $0x578] sm:$0xff]  ;;  %v1314_v17 = vld [vmem:[#allocation16 + $0x550] sm:$0xff]  ;;  %v6286_v30 = vadd.f32 %v6285_v9, %v11036_v18 }
 0x503   :  { %v6574_v0 = vmax.f32 %v6284_v19, 0.0  ;;  %v12335_v15 = vpack.c.bf16 %v10821_v54, %v10819_v21  ;;  %v1571_v27 = vmul.f32 0.999, %v1315_v59  ;;  %v1575_v57 = vmul.f32 0.999, %v1319_v8  ;;  %v1318_v10 = vld [vmem:[#allocation16 + $0x570] sm:$0xff]  ;;  %v11116_v54 = vpop.f32.mrf.mxu0 }
 0x504   :  { %v6570_v3 = vmax.f32 %v6280_v43, 0.0  ;;  %v12336_v25 = vpack.c.bf16 %v10881_v41, %v10879_v7  ;;  %2805 = vst [vmem:[#allocation23 + $0x598] sm:$0xff] %v11099_v14  ;;  %2809 = vst [vmem:[#allocation23 + $0x5b8] sm:$0xff] %v11101_v28  ;;  %v11112_v61 = vadd.f32 %v2090_v33, %v1578_v56  ;;  %v11114_v18 = vadd.f32 %v2094_v34, %v1582_v4  ;;  %v1826_v21 = vld [vmem:[#allocation13 + $0x550] sm:$0xff]  ;;  %v1307_v7 = vld [vmem:[#allocation16 + $0x518] sm:$0xff]  ;;  %v6324_v41 = vpop.f32.mrf.mxu1 }
 0x505   :  { %7010 = vmatpush2.bf16.msra.mxu1 %v12335_v15  ;;  %v2083_v6 = vmul.f32 0.001, %v1827_v62  ;;  %v6571_v16 = vmax.f32 %v6282_v5, 0.0  ;;  %v6575_v36 = vmax.f32 %v6286_v30, 0.0  ;;  %v12337_v44 = vld [vmem:[#allocation91_spill] sm:$0xff]  ;;  %v6644_v1 = vpack.c.bf16 %v11030_v20, %v11028_v53  ;;  %v12338_v19 = vld [vmem:[#allocation90_spill] sm:$0xff] }
 0x506   :  { %7011 = vmatprep.subr.bf16.mxu1 %v12336_v25  ;;  %v6323_v59 = vadd.f32 %v6322_v39, %v12337_v44  ;;  %v2087_v8 = vmul.f32 0.001, %v1831_v38  ;;  %v1830_v43 = vld [vmem:[#allocation13 + $0x570] sm:$0xff]  ;;  %2804 = vst [vmem:[#allocation23 + $0x590] sm:$0xff] %v11112_v61  ;;  %2808 = vst [vmem:[#allocation23 + $0x5b0] sm:$0xff] %v11114_v18  ;;  %v11125_v56 = vpack.c.bf16 %v6574_v0, %v6570_v3  ;;  %v1311_v33 = vld [vmem:[#allocation16 + $0x538] sm:$0xff] }
 0x507   :  { %v11123_v51 = vadd.f32 %v2083_v6, %v1571_v27  ;;  %v1570_v26 = vmul.f32 0.999, %v1314_v17  ;;  %v1574_v22 = vmul.f32 0.999, %v1318_v10  ;;  %v11127_v5 = vpack.c.bf16 %v6575_v36, %v6571_v16  ;;  %v1819_v34 = vld [vmem:[#allocation13 + $0x518] sm:$0xff]  ;;  %v6326_v17 = vpop.f32.mrf.mxu1  ;;  %v11142_v10 = vpop.f32.mrf.mxu0  ;;  %v1310_v3 = vld [vmem:[#allocation16 + $0x530] sm:$0xff] }
 0x508   :  { %v6325_v4 = vadd.f32 %v6324_v41, %v12338_v19  ;;  %v12339_v62 = vpack.c.bf16 %v10895_v46, %v10893_v42  ;;  %v11133_v9 = vadd.f32 %v2087_v8, %v1575_v57  ;;  %v1823_v38 = vld [vmem:[#allocation13 + $0x538] sm:$0xff]  ;;  %v11136_v30 = vadd.f32 %v10926_v11, %v6323_v59  ;;  %v12341_v59 = vld [vmem:[#allocation54_spill] sm:$0xff]  ;;  %v1822_v41 = vld [vmem:[#allocation13 + $0x530] sm:$0xff] }
 0x509   :  { %v12340_v0 = vpack.c.bf16 %v10956_v58, %v10939_v24  ;;  %2797 = vst [vmem:[#allocation23 + $0x558] sm:$0xff] %v11123_v51  ;;  %v2082_v15 = vmul.f32 0.001, %v1826_v21  ;;  %v2086_v27 = vmul.f32 0.001, %v1830_v43  ;;  %v6327_v57 = vadd.f32 %v6326_v17, %v12337_v44  ;;  %6861 = vmatprep.mubr.bf16.mxu1 %v11127_v5  ;;  %v1306_v58 = vld [vmem:[#allocation16 + $0x510] sm:$0xff]  ;;  %v6328_v39 = vpop.f32.mrf.mxu1 }
 0x50a   :  { %7012 = vmatpush2.bf16.msra.mxu1 %v12339_v62  ;;  %v1563_v42 = vmul.f32 0.999, %v1307_v7  ;;  %v11145_v46 = vadd.f32 %v10935_v49, %v6325_v4  ;;  %v6704_v11 = vpack.c.bf16 %v11083_v55, %v11072_v63  ;;  %v6701_v24 = vpack.c.bf16 %v11101_v28, %v11099_v14  ;;  %2801 = vst [vmem:[#allocation23 + $0x578] sm:$0xff] %v11133_v9  ;;  %v1818_v7 = vld [vmem:[#allocation13 + $0x510] sm:$0xff]  ;;  %v12342_v62 = vld [vmem:[#allocation62_spill] sm:$0xff]  ;;  %v1303_v52 = vld [vmem:[#allocation16 + $0x4f8] sm:$0xff] }
 0x50b   :  { %7013 = vmatprep.subr.bf16.mxu1 %v12340_v0  ;;  %6862 = vmatmul.mubr.bf16.gmra.mxu1 %v11125_v56  ;;  %v11155_v25 = vadd.f32 %v2082_v15, %v1570_v26  ;;  %v11157_v49 = vadd.f32 %v2086_v27, %v1574_v22  ;;  %v1567_v6 = vmul.f32 0.999, %v1311_v33  ;;  %v2075_v21 = vmul.f32 0.001, %v1819_v34  ;;  %v6332_v22 = vpop.f32.mrf.mxu1  ;;  %v1802_v14 = vld [vmem:[#allocation13 + $0x490] sm:$0xff] }
 0x50c   :  { %v6440_v16 = vadd.f32 %v10937_v35, %v6327_v57  ;;  %v6329_v36 = vadd.f32 %v6328_v39, %v12338_v19  ;;  %7017 = vmatprep.mubr.bf16.mxu1 %v12341_v59  ;;  %v6700_v8 = vpack.c.bf16 %v11114_v18, %v11112_v61  ;;  %v2079_v43 = vmul.f32 0.001, %v1823_v38  ;;  %v1815_v39 = vld [vmem:[#allocation13 + $0x4f8] sm:$0xff]  ;;  %v1806_v28 = vld [vmem:[#allocation13 + $0x4b0] sm:$0xff] }
 0x50d   :  { %v6516_v26 = vmax.f32 %v11136_v30, 0.0  ;;  %2796 = vst [vmem:[#allocation23 + $0x550] sm:$0xff] %v11155_v25  ;;  %2800 = vst [vmem:[#allocation23 + $0x570] sm:$0xff] %v11157_v49  ;;  %v11173_v35 = vadd.f32 %v2075_v21, %v1563_v42  ;;  %v1562_v23 = vmul.f32 0.999, %v1306_v58  ;;  %v6333_v34 = vadd.f32 %v6332_v22, %v12337_v44  ;;  %v1299_v30 = vld [vmem:[#allocation16 + $0x4d8] sm:$0xff] }
 0x50e   :  { %7014 = vmatpush2.bf16.msra.mxu1 %v6648_v45  ;;  %v1566_v40 = vmul.f32 0.999, %v1310_v3  ;;  %v11175_v45 = vpop.f32.mrf.mxu0  ;;  %v6520_v4 = vmax.f32 %v6440_v16, 0.0  ;;  %v6442_v33 = vadd.f32 %v12342_v62, %v6329_v36  ;;  %v11179_v38 = vadd.f32 %v2079_v43, %v1567_v6  ;;  %v12343_v42 = vld [vmem:[#allocation61_spill] sm:$0xff]  ;;  %v1298_v6 = vld [vmem:[#allocation16 + $0x4d0] sm:$0xff] }
 0x50f   :  { %7015 = vmatprep.subr.bf16.mxu1 %v6645_v31  ;;  %v6517_v12 = vmax.f32 %v11145_v46, 0.0  ;;  %v6334_v31 = vpop.f32.mrf.mxu1  ;;  %v6697_v17 = vpack.c.bf16 %v11133_v9, %v11123_v51  ;;  %2789 = vst [vmem:[#allocation23 + $0x518] sm:$0xff] %v11173_v35  ;;  %v2074_v0 = vmul.f32 0.001, %v1818_v7  ;;  %v2078_v15 = vmul.f32 0.001, %v1822_v41 }
 0x510   :  { %v6521_v27 = vmax.f32 %v6442_v33, 0.0  ;;  %v11186_v57 = vadd.f32 %v12343_v42, %v6333_v34  ;;  %v6335_v58 = vadd.f32 %v6334_v31, %v12338_v19  ;;  %2793 = vst [vmem:[#allocation23 + $0x538] sm:$0xff] %v11179_v38  ;;  %v1811_v3 = vld [vmem:[#allocation13 + $0x4d8] sm:$0xff]  ;;  %v11199_v59 = vpop.f32.mrf.mxu0  ;;  %v1555_v43 = vmul.f32 0.999, %v1299_v30  ;;  %v1302_v41 = vld [vmem:[#allocation16 + $0x4f0] sm:$0xff] }
 0x511   :  { %v6336_v21 = vpop.f32.mrf.mxu1  ;;  %v11195_v16 = vadd.f32 %v2074_v0, %v1562_v23  ;;  %v11197_v36 = vadd.f32 %v2078_v15, %v1566_v40  ;;  %v1559_v7 = vmul.f32 0.999, %v1303_v52  ;;  %v11201_v53 = vpack.c.bf16 %v6520_v4, %v6516_v26  ;;  %v1810_v62 = vld [vmem:[#allocation13 + $0x4d0] sm:$0xff]  ;;  %v12344_v23 = vld [vmem:[#allocation53_spill] sm:$0xff]  ;;  %v12345_v52 = vld [vmem:[#allocation66_spill] sm:$0xff] }
 0x512   :  { %7016 = vmatpush2.bf16.msra.mxu1 %v6644_v1  ;;  %v6524_v20 = vmax.f32 %v11186_v57, 0.0  ;;  %v6337_v1 = vadd.f32 %v6336_v21, %v12337_v44  ;;  %v11205_v22 = vpack.c.bf16 %v6521_v27, %v6517_v12  ;;  %v1814_v33 = vld [vmem:[#allocation13 + $0x4f0] sm:$0xff]  ;;  %v2067_v26 = vmul.f32 0.001, %v1811_v3  ;;  %v12346_v0 = vld [vmem:[#allocation65_spill] sm:$0xff] }
 0x513   :  { %v6338_v34 = vpop.f32.mrf.mxu1  ;;  %2788 = vst [vmem:[#allocation23 + $0x510] sm:$0xff] %v11195_v16  ;;  %2792 = vst [vmem:[#allocation23 + $0x530] sm:$0xff] %v11197_v36  ;;  %v2071_v4 = vmul.f32 0.001, %v1815_v39  ;;  %v1554_v30 = vmul.f32 0.999, %v1298_v6  ;;  %v6448_v31 = vadd.f32 %v12345_v52, %v6335_v58  ;;  %v11222_v6 = vpop.f32.mrf.mxu0 }
 0x514   :  { %v6450_v12 = vadd.f32 %v12346_v0, %v6337_v1  ;;  %v6339_v15 = vadd.f32 %v6338_v34, %v12338_v19  ;;  %6904 = vmatprep.mubr.bf16.mxu0 %v11205_v22  ;;  %v12347_v27 = vld [vmem:[#allocation80_spill] sm:$0xff]  ;;  %v1558_v42 = vmul.f32 0.999, %v1302_v41  ;;  %v11218_v46 = vadd.f32 %v2067_v26, %v1555_v43 }
 0x515   :  { %7018 = vmatmul.mubr.bf16.vlgmr.msra.gmra.mxu1 %v12344_v23  ;;  %v1291_v21 = vld [vmem:[#allocation16 + $0x498] sm:$0xff]  ;;  %v6342_v40 = vpop.f32.mrf.mxu1  ;;  %6905 = vmatmul.mubr.bf16.vlgmr.msra.gmra.mxu0 %v11201_v53  ;;  %v11220_v3 = vadd.f32 %v2071_v4, %v1559_v7  ;;  %v2066_v39 = vmul.f32 0.001, %v1810_v62  ;;  %v2070_v58 = vmul.f32 0.001, %v1814_v33  ;;  %v6692_v41 = vpack.c.bf16 %v11197_v36, %v11195_v16  ;;  %v1290_v7 = vld [vmem:[#allocation16 + $0x490] sm:$0xff] }
 0x516   :  { %7027 = vmatprep.mubr.bf16.mxu1 %v12347_v27  ;;  %v1295_v23 = vld [vmem:[#allocation16 + $0x4b8] sm:$0xff]  ;;  %v6528_v1 = vmax.f32 %v6450_v12, 0.0  ;;  %v6452_v34 = vadd.f32 %v11005_v29, %v6339_v15  ;;  %v6343_v52 = vadd.f32 %v6342_v40, %v12337_v44  ;;  %7099 = vmatpush1.bf16.msra.mxu0 %v6704_v11  ;;  %2781 = vst [vmem:[#allocation23 + $0x4d8] sm:$0xff] %v11218_v46  ;;  %v1547_v63 = vmul.f32 0.999, %v1291_v21  ;;  %v1294_v12 = vld [vmem:[#allocation16 + $0x4b0] sm:$0xff] }
 0x517   :  { %v1803_v43 = vld [vmem:[#allocation13 + $0x498] sm:$0xff]  ;;  %v6344_v4 = vpop.f32.mrf.mxu1  ;;  %7100 = vmatprep.subr.bf16.mxu0 %v6701_v24  ;;  %2785 = vst [vmem:[#allocation23 + $0x4f8] sm:$0xff] %v11220_v3  ;;  %v11236_v29 = vadd.f32 %v2066_v39, %v1554_v30  ;;  %v11238_v62 = vadd.f32 %v2070_v58, %v1558_v42  ;;  %v1551_v55 = vmul.f32 0.999, %v1295_v23  ;;  %v6525_v11 = vmax.f32 %v6448_v31, 0.0  ;;  %v11248_v30 = vpop.f32.mrf.mxu0 }
 0x518   :  { %v1807_v26 = vld [vmem:[#allocation13 + $0x4b8] sm:$0xff]  ;;  %v6529_v33 = vmax.f32 %v6452_v34, 0.0  ;;  %v6345_v40 = vadd.f32 %v6344_v4, %v12338_v19  ;;  %v6689_v0 = vpack.c.bf16 %v11220_v3, %v11218_v46  ;;  %v11244_v24 = vadd.f32 %v11015_v13, %v6343_v52 }
 0x519   :  { %v6346_v15 = vpop.f32.mrf.mxu1  ;;  %2780 = vst [vmem:[#allocation23 + $0x4d0] sm:$0xff] %v11236_v29  ;;  %2784 = vst [vmem:[#allocation23 + $0x4f0] sm:$0xff] %v11238_v62  ;;  %v2059_v31 = vmul.f32 0.001, %v1803_v43  ;;  %v2063_v27 = vmul.f32 0.001, %v1807_v26  ;;  %v11261_v39 = vpack.c.bf16 %v6528_v1, %v6524_v20  ;;  %v6688_v1 = vpack.c.bf16 %v11238_v62, %v11236_v29 }
 0x51a   :  { %v1546_v42 = vmul.f32 0.999, %v1290_v7  ;;  %v11251_v21 = vadd.f32 %v11032_v47, %v6345_v40  ;;  %v6347_v23 = vadd.f32 %v6346_v15, %v12337_v44  ;;  %7101 = vmatpush1.bf16.msra.mxu0 %v6700_v8  ;;  %v11257_v13 = vpack.c.bf16 %v6529_v33, %v6525_v11  ;;  %v1283_v58 = vld [vmem:[#allocation16 + $0x458] sm:$0xff]  ;;  %v12349_v8 = vld [vmem:[#allocation74_spill] sm:$0xff]  ;;  %v11283_v11 = vpop.f32.mrf.mxu0 }
 0x51b   :  { %v1287_v34 = vld [vmem:[#allocation16 + $0x478] sm:$0xff]  ;;  %v6348_v52 = vpop.f32.mrf.mxu1  ;;  %7102 = vmatprep.subr.bf16.mxu0 %v6697_v17  ;;  %v11267_v47 = vadd.f32 %v2059_v31, %v1547_v63  ;;  %v11269_v26 = vadd.f32 %v2063_v27, %v1551_v55  ;;  %v1550_v61 = vmul.f32 0.999, %v1294_v12  ;;  %v2058_v18 = vmul.f32 0.001, %v1802_v14  ;;  %v1282_v12 = vld [vmem:[#allocation16 + $0x450] sm:$0xff] }
 0x51c   :  { %v12348_v43 = vld [vmem:[#allocation49_spill] sm:$0xff]  ;;  %v6460_v7 = vadd.f32 %v12349_v8, %v6347_v23  ;;  %v6349_v57 = vadd.f32 %v6348_v52, %v12338_v19  ;;  %6914 = vmatprep.mubr.bf16.mxu0 %v11257_v13  ;;  %v2062_v4 = vmul.f32 0.001, %v1806_v28  ;;  %v6532_v17 = vmax.f32 %v11244_v24, 0.0  ;;  %v1286_v27 = vld [vmem:[#allocation16 + $0x470] sm:$0xff] }
 0x51d   :  { %7028 = vmatmul.mubr.bf16.gmra.mxu1 %v12348_v43  ;;  %v12350_v20 = vld [vmem:[#allocation85_spill] sm:$0xff]  ;;  %v6352_v63 = vpop.f32.mrf.mxu1  ;;  %6915 = vmatmul.mubr.bf16.gmra.mxu0 %v11261_v39  ;;  %2773 = vst [vmem:[#allocation23 + $0x498] sm:$0xff] %v11267_v47  ;;  %2777 = vst [vmem:[#allocation23 + $0x4b8] sm:$0xff] %v11269_v26  ;;  %v11281_v55 = vadd.f32 %v2058_v18, %v1546_v42  ;;  %v1539_v33 = vmul.f32 0.999, %v1283_v58  ;;  %v12351_v24 = vpack.c.bf16 %v11157_v49, %v11155_v25  ;;  %v1798_v18 = vld [vmem:[#allocation13 + $0x470] sm:$0xff] }
 0x51e   :  { %7037 = vmatprep.mubr.bf16.mxu1 %v12350_v20  ;;  %v1795_v51 = vld [vmem:[#allocation13 + $0x458] sm:$0xff]  ;;  %v1543_v40 = vmul.f32 0.999, %v1287_v34  ;;  %v6536_v14 = vmax.f32 %v6460_v7, 0.0  ;;  %v6462_v28 = vadd.f32 %v11055_v60, %v6349_v57  ;;  %v6353_v15 = vadd.f32 %v6352_v63, %v12337_v44 }
 0x51f   :  { %v1799_v9 = vld [vmem:[#allocation13 + $0x478] sm:$0xff]  ;;  %7103 = vmatpush1.bf16.msra.mxu0 %v12351_v24  ;;  %v11290_v31 = vadd.f32 %v2062_v4, %v1550_v61  ;;  %v6533_v42 = vmax.f32 %v11251_v21, 0.0  ;;  %v6354_v23 = vpop.f32.mrf.mxu1  ;;  %v12352_v58 = vpack.c.bf16 %v11179_v38, %v11173_v35  ;;  %v6685_v34 = vpack.c.bf16 %v11269_v26, %v11267_v47  ;;  %2772 = vst [vmem:[#allocation23 + $0x490] sm:$0xff] %v11281_v55  ;;  %v1794_v61 = vld [vmem:[#allocation13 + $0x450] sm:$0xff]  ;;  %v11306_v47 = vpop.f32.mrf.mxu0 }
 0x520   :  { %v2051_v60 = vmul.f32 0.001, %v1795_v51  ;;  %v2055_v52 = vmul.f32 0.001, %v1799_v9  ;;  %v6537_v43 = vmax.f32 %v6462_v28, 0.0  ;;  %v11300_v25 = vadd.f32 %v11061_v32, %v6353_v15  ;;  %v1275_v35 = vld [vmem:[#allocation16 + $0x418] sm:$0xff] }
 0x521   :  { %7104 = vmatprep.subr.bf16.mxu0 %v12352_v58  ;;  %v6355_v49 = vadd.f32 %v6354_v23, %v12338_v19  ;;  %2776 = vst [vmem:[#allocation23 + $0x4b0] sm:$0xff] %v11290_v31  ;;  %v1538_v21 = vmul.f32 0.999, %v1282_v12  ;;  %v6356_v38 = vpop.f32.mrf.mxu1  ;;  %v11304_v8 = vpack.c.bf16 %v6536_v14, %v6532_v17  ;;  %v1542_v57 = vmul.f32 0.999, %v1286_v27  ;;  %v1279_v32 = vld [vmem:[#allocation16 + $0x438] sm:$0xff] }
 0x522   :  { %v11308_v26 = vadd.f32 %v2051_v60, %v1539_v33  ;;  %v11310_v7 = vadd.f32 %v2055_v52, %v1543_v40  ;;  %v6540_v20 = vmax.f32 %v11300_v25, 0.0  ;;  %v6357_v51 = vadd.f32 %v6356_v38, %v12337_v44  ;;  %v1787_v17 = vld [vmem:[#allocation13 + $0x418] sm:$0xff]  ;;  %v1790_v25 = vld [vmem:[#allocation13 + $0x430] sm:$0xff] }
 0x523   :  { %v11314_v4 = vadd.f32 %v11070_v2, %v6355_v49  ;;  %7105 = vmatpush1.bf16.msra.mxu0 %v6692_v41  ;;  %v11320_v9 = vpack.c.bf16 %v6537_v43, %v6533_v42  ;;  %v1791_v63 = vld [vmem:[#allocation13 + $0x438] sm:$0xff]  ;;  %v6358_v33 = vpop.f32.mrf.mxu1  ;;  %v6684_v2 = vpack.c.bf16 %v11290_v31, %v11281_v55  ;;  %v2050_v16 = vmul.f32 0.001, %v1794_v61  ;;  %v1278_v55 = vld [vmem:[#allocation16 + $0x430] sm:$0xff] }
 0x524   :  { %v12353_v40 = vld [vmem:[#allocation88_spill] sm:$0xff]  ;;  %7106 = vmatprep.subr.bf16.mxu0 %v6689_v0  ;;  %2765 = vst [vmem:[#allocation23 + $0x458] sm:$0xff] %v11308_v26  ;;  %2769 = vst [vmem:[#allocation23 + $0x478] sm:$0xff] %v11310_v7  ;;  %v2054_v36 = vmul.f32 0.001, %v1798_v18  ;;  %v6470_v12 = vadd.f32 %v11090_v48, %v6357_v51  ;;  %v6359_v14 = vadd.f32 %v6358_v33, %v12338_v19  ;;  %v12354_v28 = vld [vmem:[#allocation57_spill] sm:$0xff]  ;;  %v11341_v48 = vpop.f32.mrf.mxu0 }
 0x525   :  { %7038 = vmatmul.mubr.bf16.gmra.mxu1 %v12353_v40  ;;  %v1531_v41 = vmul.f32 0.999, %v1275_v35  ;;  %6924 = vmatprep.mubr.bf16.mxu0 %v11320_v9  ;;  %v6681_v46 = vpack.c.bf16 %v11310_v7, %v11308_v26  ;;  %v1535_v3 = vmul.f32 0.999, %v1279_v32  ;;  %v1274_v0 = vld [vmem:[#allocation16 + $0x410] sm:$0xff]  ;;  %v6362_v15 = vpop.f32.mrf.mxu1  ;;  %v11337_v24 = vadd.f32 %v2050_v16, %v1538_v21  ;;  %v1395_v49 = vld [vmem:[#allocation16 + $0x7d8] sm:$0xff] }
 0x526   :  { %7047 = vmatprep.mubr.bf16.mxu1 %v12354_v28  ;;  %6925 = vmatmul.mubr.bf16.gmra.mxu0 %v11304_v8  ;;  %v11339_v31 = vadd.f32 %v2054_v36, %v1542_v57  ;;  %v2043_v27 = vmul.f32 0.001, %v1787_v17  ;;  %v2047_v42 = vmul.f32 0.001, %v1791_v63  ;;  %v6541_v23 = vmax.f32 %v11314_v4, 0.0  ;;  %v1786_v43 = vld [vmem:[#allocation13 + $0x410] sm:$0xff]  ;;  %v11359_v4 = vpop.f32.mrf.mxu0 }
 0x527   :  { %v6544_v58 = vmax.f32 %v6470_v12, 0.0  ;;  %v6472_v60 = vadd.f32 %v11116_v54, %v6359_v14  ;;  %v6363_v52 = vadd.f32 %v6362_v15, %v12337_v44  ;;  %7107 = vmatpush1.bf16.msra.mxu0 %v6688_v1  ;;  %v6364_v21 = vpop.f32.mrf.mxu1  ;;  %2764 = vst [vmem:[#allocation23 + $0x450] sm:$0xff] %v11337_v24  ;;  %v1530_v35 = vmul.f32 0.999, %v1274_v0  ;;  %v1399_v1 = vld [vmem:[#allocation16 + $0x7f8] sm:$0xff]  ;;  %v1394_v36 = vld [vmem:[#allocation16 + $0x7d0] sm:$0xff] }
 0x528   :  { %7108 = vmatprep.subr.bf16.mxu0 %v6685_v34  ;;  %2768 = vst [vmem:[#allocation23 + $0x470] sm:$0xff] %v11339_v31  ;;  %v2299_v61 = vadd.f32 %v2043_v27, %v1531_v41  ;;  %v2303_v18 = vadd.f32 %v2047_v42, %v1535_v3  ;;  %v1534_v38 = vmul.f32 0.999, %v1278_v55  ;;  %v6365_v29 = vadd.f32 %v6364_v21, %v12338_v19  ;;  %v1907_v7 = vld [vmem:[#allocation13 + $0x7d8] sm:$0xff]  ;;  %v1398_v41 = vld [vmem:[#allocation16 + $0x7f0] sm:$0xff]  ;;  %v12355_v12 = vld [vmem:[#allocation58_spill] sm:$0xff] }
 0x529   :  { %v6545_v54 = vmax.f32 %v6472_v60, 0.0  ;;  %v11352_v26 = vadd.f32 %v11142_v10, %v6363_v52  ;;  %v6680_v62 = vpack.c.bf16 %v11339_v31, %v11337_v24  ;;  %v1911_v34 = vld [vmem:[#allocation13 + $0x7f8] sm:$0xff]  ;;  %v6366_v57 = vpop.f32.mrf.mxu1  ;;  %v11357_v32 = vpack.c.bf16 %v6544_v58, %v6540_v20  ;;  %v1906_v24 = vld [vmem:[#allocation13 + $0x7d0] sm:$0xff] }
 0x52a   :  { %2757 = vst [vmem:[#allocation23 + $0x418] sm:$0xff] %v2299_v61  ;;  %2761 = vst [vmem:[#allocation23 + $0x438] sm:$0xff] %v2303_v18  ;;  %v2042_v51 = vmul.f32 0.001, %v1786_v43  ;;  %v2046_v17 = vmul.f32 0.001, %v1790_v25  ;;  %v11362_v10 = vadd.f32 %v11175_v45, %v6365_v29  ;;  %v6367_v33 = vadd.f32 %v6366_v57, %v12337_v44 }
 0x52b   :  { %v1651_v63 = vmul.f32 0.999, %v1395_v49  ;;  %7109 = vmatpush1.bf16.msra.mxu0 %v6684_v2  ;;  %v11365_v40 = vpack.c.bf16 %v6545_v54, %v6541_v23  ;;  %v6677_v16 = vpack.c.bf16 %v2303_v18, %v2299_v61  ;;  %v6368_v20 = vpop.f32.mrf.mxu1  ;;  %v1655_v3 = vmul.f32 0.999, %v1399_v1  ;;  %v12356_v2 = vld [vmem:[#allocation69_spill] sm:$0xff]  ;;  %v1910_v31 = vld [vmem:[#allocation13 + $0x7f0] sm:$0xff]  ;;  %v11377_v23 = vpop.f32.mrf.mxu0 }
 0x52c   :  { %7110 = vmatprep.subr.bf16.mxu0 %v6681_v46  ;;  %v2298_v14 = vadd.f32 %v2042_v51, %v1530_v35  ;;  %v2302_v28 = vadd.f32 %v2046_v17, %v1534_v38  ;;  %v2163_v0 = vmul.f32 0.001, %v1907_v7  ;;  %v6480_v55 = vadd.f32 %v11199_v59, %v6367_v33  ;;  %v11372_v27 = vld [vmem:[#allocation18 + $0x8] sm:$0xff]  ;;  %v1387_v43 = vld [vmem:[#allocation16 + $0x798] sm:$0xff] }
 0x52d   :  { %7048 = vmatmul.mubr.bf16.gmra.mxu1 %v12355_v12  ;;  %v6369_v45 = vadd.f32 %v6368_v20, %v12338_v19  ;;  %6934 = vmatprep.mubr.bf16.mxu0 %v11365_v40  ;;  %v2167_v15 = vmul.f32 0.001, %v1911_v34  ;;  %v7290_v46 = vpack.c.bf16 %v11372_v27, %v11372_v27  ;;  %v6372_v42 = vpop.f32.mrf.mxu1  ;;  %v1650_v60 = vmul.f32 0.999, %v1394_v36  ;;  %v1391_v18 = vld [vmem:[#allocation16 + $0x7b8] sm:$0xff]  ;;  %v1386_v17 = vld [vmem:[#allocation16 + $0x790] sm:$0xff] }
 0x52e   :  { %7057 = vmatprep.mubr.bf16.mxu1 %v12356_v2  ;;  %6935 = vmatmul.mubr.bf16.gmra.mxu0 %v11357_v32  ;;  %2756 = vst [vmem:[#allocation23 + $0x410] sm:$0xff] %v2298_v14  ;;  %2760 = vst [vmem:[#allocation23 + $0x430] sm:$0xff] %v2302_v28  ;;  %v6676_v59 = vpack.c.bf16 %v2302_v28, %v2298_v14  ;;  %v2419_v58 = vadd.f32 %v2163_v0, %v1651_v63  ;;  %v1654_v52 = vmul.f32 0.999, %v1398_v41  ;;  %v1903_v51 = vld [vmem:[#allocation13 + $0x7b8] sm:$0xff]  ;;  %v1390_v41 = vld [vmem:[#allocation16 + $0x7b0] sm:$0xff] }
 0x52f   :  { %v6552_v25 = vmax.f32 %v6480_v55, 0.0  ;;  %v6482_v49 = vadd.f32 %v11222_v6, %v6369_v45  ;;  %v6373_v21 = vadd.f32 %v6372_v42, %v12337_v44  ;;  %7111 = vmatpush1.bf16.msra.mxu0 %v6680_v62  ;;  %v2423_v61 = vadd.f32 %v2167_v15, %v1655_v3  ;;  %v6374_v54 = vpop.f32.mrf.mxu1  ;;  %v1899_v62 = vld [vmem:[#allocation13 + $0x798] sm:$0xff]  ;;  %v1898_v28 = vld [vmem:[#allocation13 + $0x790] sm:$0xff]  ;;  %v12357_v45 = vld [vmem:[#allocation70_spill] sm:$0xff] }
 0x530   :  { %v6548_v35 = vmax.f32 %v11352_v26, 0.0  ;;  %v6549_v38 = vmax.f32 %v11362_v10, 0.0  ;;  %7112 = vmatprep.subr.bf16.mxu0 %v6677_v16  ;;  %2877 = vst [vmem:[#allocation23 + $0x7d8] sm:$0xff] %v2419_v58  ;;  %v2162_v29 = vmul.f32 0.001, %v1906_v24  ;;  %v6375_v6 = vadd.f32 %v6374_v54, %v12338_v19  ;;  %v11387_v26 = vpop.f32.mrf.mxu0  ;;  %v1902_v3 = vld [vmem:[#allocation13 + $0x7b0] sm:$0xff] }
 0x531   :  { %v2166_v1 = vmul.f32 0.001, %v1910_v31  ;;  %v6553_v7 = vmax.f32 %v6482_v49, 0.0  ;;  %v11384_v34 = vadd.f32 %v11248_v30, %v6373_v21  ;;  %2881 = vst [vmem:[#allocation23 + $0x7f8] sm:$0xff] %v2423_v61  ;;  %v1643_v57 = vmul.f32 0.999, %v1387_v43  ;;  %v6376_v63 = vpop.f32.mrf.mxu1 }
 0x532   :  { %v6737_v10 = vpack.c.bf16 %v2423_v61, %v2419_v58  ;;  %v2418_v33 = vadd.f32 %v2162_v29, %v1650_v60  ;;  %v1647_v36 = vmul.f32 0.999, %v1391_v18  ;;  %v11389_v20 = vpack.c.bf16 %v6552_v25, %v6548_v35  ;;  %v1379_v0 = vld [vmem:[#allocation16 + $0x758] sm:$0xff]  ;;  %v11402_v49 = vpop.f32.mrf.mxu0 }
 0x533   :  { %v2422_v16 = vadd.f32 %v2166_v1, %v1654_v52  ;;  %v6556_v30 = vmax.f32 %v11384_v34, 0.0  ;;  %v6377_v12 = vadd.f32 %v6376_v63, %v12337_v44  ;;  %7113 = vmatpush1.bf16.msra.mxu0 %v6676_v59  ;;  %v11393_v14 = vpack.c.bf16 %v6553_v7, %v6549_v38  ;;  %v6378_v55 = vpop.f32.mrf.mxu1  ;;  %v12358_v60 = vld [vmem:[#allocation77_spill] sm:$0xff] }
 0x534   :  { %7114 = vmatprep.subr.bf16.mxu0 %v6737_v10  ;;  %2876 = vst [vmem:[#allocation23 + $0x7d0] sm:$0xff] %v2418_v33  ;;  %v2155_v15 = vmul.f32 0.001, %v1899_v62  ;;  %v2159_v24 = vmul.f32 0.001, %v1903_v51  ;;  %v6488_v42 = vadd.f32 %v11283_v11, %v6375_v6  ;;  %v6379_v59 = vadd.f32 %v6378_v55, %v12338_v19  ;;  %v1383_v43 = vld [vmem:[#allocation16 + $0x778] sm:$0xff] }
 0x535   :  { %7058 = vmatmul.mubr.bf16.gmra.mxu1 %v12357_v45  ;;  %2880 = vst [vmem:[#allocation23 + $0x7f0] sm:$0xff] %v2422_v16  ;;  %v6736_v2 = vpack.c.bf16 %v2422_v16, %v2418_v33  ;;  %v1642_v31 = vmul.f32 0.999, %v1386_v17  ;;  %v6490_v58 = vadd.f32 %v11306_v47, %v6377_v12  ;;  %6944 = vmatprep.mubr.bf16.mxu0 %v11393_v14  ;;  %v1646_v52 = vmul.f32 0.999, %v1390_v41  ;;  %v6382_v25 = vpop.f32.mrf.mxu1  ;;  %v1891_v29 = vld [vmem:[#allocation13 + $0x758] sm:$0xff]  ;;  %v6505_v41 = vpop.f32.mrf.mxu0 }
 0x536   :  { %7067 = vmatprep.mubr.bf16.mxu1 %v12358_v60  ;;  %6945 = vmatmul.mubr.bf16.gmra.mxu0 %v11389_v20  ;;  %v2411_v21 = vadd.f32 %v2155_v15, %v1643_v57  ;;  %v2415_v61 = vadd.f32 %v2159_v24, %v1647_v36  ;;  %v2154_v18 = vmul.f32 0.001, %v1898_v28  ;;  %v2158_v35 = vmul.f32 0.001, %v1902_v3  ;;  %v1895_v1 = vld [vmem:[#allocation13 + $0x778] sm:$0xff]  ;;  %v1378_v57 = vld [vmem:[#allocation16 + $0x750] sm:$0xff] }
 0x537   :  { %v6560_v11 = vmax.f32 %v6490_v58, 0.0  ;;  %v6492_v47 = vadd.f32 %v11341_v48, %v6379_v59  ;;  %v6383_v38 = vadd.f32 %v6382_v25, %v12337_v44  ;;  %7115 = vmatpush2.bf16.msra.mxu0 %v6736_v2  ;;  %v1635_v54 = vmul.f32 0.999, %v1379_v0  ;;  %v6384_v7 = vpop.f32.mrf.mxu1  ;;  %v1382_v33 = vld [vmem:[#allocation16 + $0x770] sm:$0xff]  ;;  %v1371_v24 = vld [vmem:[#allocation16 + $0x718] sm:$0xff] }
 0x538   :  { %2869 = vst [vmem:[#allocation23 + $0x798] sm:$0xff] %v2411_v21  ;;  %2873 = vst [vmem:[#allocation23 + $0x7b8] sm:$0xff] %v2415_v61  ;;  %v6733_v34 = vpack.c.bf16 %v2415_v61, %v2411_v21  ;;  %v2410_v6 = vadd.f32 %v2154_v18, %v1642_v31  ;;  %v2414_v62 = vadd.f32 %v2158_v35, %v1646_v52  ;;  %v1639_v51 = vmul.f32 0.999, %v1383_v43  ;;  %v1890_v0 = vld [vmem:[#allocation13 + $0x750] sm:$0xff]  ;;  %v1883_v61 = vld [vmem:[#allocation13 + $0x718] sm:$0xff] }
 0x539   :  { %v6557_v17 = vmax.f32 %v6488_v42, 0.0  ;;  %v6561_v63 = vmax.f32 %v6492_v47, 0.0  ;;  %v6496_v10 = vadd.f32 %v11359_v4, %v6383_v38  ;;  %v6385_v48 = vadd.f32 %v6384_v7, %v12338_v19  ;;  %v6386_v36 = vpop.f32.mrf.mxu1  ;;  %v1894_v15 = vld [vmem:[#allocation13 + $0x770] sm:$0xff]  ;;  %v12359_v42 = vld [vmem:[#allocation73_spill] sm:$0xff] }
 0x53a   :  { %v11408_v16 = vpack.c.bf16 %v6560_v11, %v6556_v30  ;;  %7116 = vmatprep.subr.bf16.mxu0 %v6733_v34  ;;  %2868 = vst [vmem:[#allocation23 + $0x790] sm:$0xff] %v2410_v6  ;;  %2872 = vst [vmem:[#allocation23 + $0x7b0] sm:$0xff] %v2414_v62  ;;  %v6732_v12 = vpack.c.bf16 %v2414_v62, %v2410_v6  ;;  %v2147_v28 = vmul.f32 0.001, %v1891_v29  ;;  %v2151_v3 = vmul.f32 0.001, %v1895_v1  ;;  %v6507_v11 = vpop.f32.mrf.mxu0 }
 0x53b   :  { %v6564_v55 = vmax.f32 %v6496_v10, 0.0  ;;  %v11411_v45 = vadd.f32 %v11377_v23, %v6385_v48  ;;  %v6387_v4 = vadd.f32 %v6386_v36, %v12337_v44  ;;  %v1634_v2 = vmul.f32 0.999, %v1378_v57  ;;  %v1375_v30 = vld [vmem:[#allocation16 + $0x738] sm:$0xff]  ;;  %v6388_v31 = vpop.f32.mrf.mxu1  ;;  %v1370_v35 = vld [vmem:[#allocation16 + $0x710] sm:$0xff] }
 0x53c   :  { %7117 = vmatpush2.bf16.msra.mxu0 %v6732_v12  ;;  %v11415_v58 = vpack.c.bf16 %v6561_v63, %v6557_v17  ;;  %v2403_v59 = vadd.f32 %v2147_v28, %v1635_v54  ;;  %v2407_v60 = vadd.f32 %v2151_v3, %v1639_v51  ;;  %v1638_v52 = vmul.f32 0.999, %v1382_v33  ;;  %v1887_v18 = vld [vmem:[#allocation13 + $0x738] sm:$0xff]  ;;  %v1374_v6 = vld [vmem:[#allocation16 + $0x730] sm:$0xff]  ;;  %v6509_v3 = vpop.f32.mrf.mxu0 }
 0x53d   :  { %7068 = vmatmul.mubr.bf16.gmra.mxu1 %v12359_v42  ;;  %v6565_v43 = vmax.f32 %v11411_v45, 0.0  ;;  %v6500_v23 = vadd.f32 %v11387_v26, %v6387_v4  ;;  %v6389_v25 = vadd.f32 %v6388_v31, %v12338_v19  ;;  %v2146_v21 = vmul.f32 0.001, %v1890_v0  ;;  %v6392_v47 = vpop.f32.mrf.mxu1  ;;  %v1882_v62 = vld [vmem:[#allocation13 + $0x710] sm:$0xff]  ;;  %v1363_v28 = vld [vmem:[#allocation16 + $0x6d8] sm:$0xff] }
 0x53e   :  { %7077 = vmatprep.mubr.bf16.mxu1 %v11076_v37  ;;  %6954 = vmatprep.mubr.bf16.mxu0 %v11415_v58  ;;  %2861 = vst [vmem:[#allocation23 + $0x758] sm:$0xff] %v2403_v59  ;;  %2865 = vst [vmem:[#allocation23 + $0x778] sm:$0xff] %v2407_v60  ;;  %v6729_v38 = vpack.c.bf16 %v2407_v60, %v2403_v59  ;;  %v2150_v54 = vmul.f32 0.001, %v1894_v15  ;;  %v1627_v29 = vmul.f32 0.999, %v1371_v24 }
 0x53f   :  { %v1631_v1 = vmul.f32 0.999, %v1375_v30  ;;  %v6568_v7 = vmax.f32 %v6500_v23, 0.0  ;;  %v6502_v26 = vadd.f32 %v11402_v49, %v6389_v25  ;;  %v6393_v34 = vadd.f32 %v6392_v47, %v12337_v44  ;;  %6955 = vmatmul.mubr.bf16.gmra.mxu0 %v11408_v16  ;;  %v6394_v57 = vpop.f32.mrf.mxu1  ;;  %v1886_v12 = vld [vmem:[#allocation13 + $0x730] sm:$0xff]  ;;  %v1367_v24 = vld [vmem:[#allocation16 + $0x6f8] sm:$0xff] }
 0x540   :  { %v2402_v37 = vadd.f32 %v2146_v21, %v1634_v2  ;;  %7118 = vmatprep.subr.bf16.mxu0 %v6729_v38  ;;  %v2406_v51 = vadd.f32 %v2150_v54, %v1638_v52  ;;  %v2139_v17 = vmul.f32 0.001, %v1883_v61  ;;  %v2143_v63 = vmul.f32 0.001, %v1887_v18  ;;  %v1875_v30 = vld [vmem:[#allocation13 + $0x6d8] sm:$0xff]  ;;  %v1362_v60 = vld [vmem:[#allocation16 + $0x6d0] sm:$0xff] }
 0x541   :  { %v1626_v10 = vmul.f32 0.999, %v1370_v35  ;;  %v11425_v48 = vpack.c.bf16 %v6568_v7, %v6564_v55  ;;  %v6569_v33 = vmax.f32 %v6502_v26, 0.0  ;;  %v11427_v36 = vadd.f32 %v6505_v41, %v6393_v34  ;;  %v6396_v45 = vpop.f32.mrf.mxu1  ;;  %v1879_v59 = vld [vmem:[#allocation13 + $0x6f8] sm:$0xff]  ;;  %v1366_v52 = vld [vmem:[#allocation16 + $0x6f0] sm:$0xff]  ;;  %v6511_v26 = vpop.f32.mrf.mxu0 }
 0x542   :  { %2860 = vst [vmem:[#allocation23 + $0x750] sm:$0xff] %v2402_v37  ;;  %v6395_v49 = vadd.f32 %v6394_v57, %v12338_v19  ;;  %2864 = vst [vmem:[#allocation23 + $0x770] sm:$0xff] %v2406_v51  ;;  %v6728_v0 = vpack.c.bf16 %v2406_v51, %v2402_v37  ;;  %v2395_v4 = vadd.f32 %v2139_v17, %v1627_v29  ;;  %v1630_v15 = vmul.f32 0.999, %v1374_v6  ;;  %v1874_v35 = vld [vmem:[#allocation13 + $0x6d0] sm:$0xff]  ;;  %v1355_v29 = vld [vmem:[#allocation16 + $0x698] sm:$0xff] }
 0x543   :  { %v2399_v2 = vadd.f32 %v2143_v63, %v1631_v1  ;;  %v6572_v55 = vmax.f32 %v11427_v36, 0.0  ;;  %v6397_v41 = vadd.f32 %v6396_v45, %v12337_v44  ;;  %v2138_v42 = vmul.f32 0.001, %v1882_v62  ;;  %v6398_v21 = vpop.f32.mrf.mxu1  ;;  %v1359_v1 = vld [vmem:[#allocation16 + $0x6b8] sm:$0xff]  ;;  %v1354_v62 = vld [vmem:[#allocation16 + $0x690] sm:$0xff] }
 0x544   :  { %v11431_v31 = vadd.f32 %v6507_v11, %v6395_v49  ;;  %7119 = vmatpush2.bf16.msra.mxu0 %v6728_v0  ;;  %2853 = vst [vmem:[#allocation23 + $0x718] sm:$0xff] %v2395_v4  ;;  %v2142_v25 = vmul.f32 0.001, %v1886_v12  ;;  %v11435_v61 = vpack.c.bf16 %v6569_v33, %v6565_v43  ;;  %v1619_v18 = vmul.f32 0.999, %v1363_v28  ;;  %v1878_v11 = vld [vmem:[#allocation13 + $0x6f0] sm:$0xff] }
 0x545   :  { %2857 = vst [vmem:[#allocation23 + $0x738] sm:$0xff] %v2399_v2  ;;  %v6725_v23 = vpack.c.bf16 %v2399_v2, %v2395_v4  ;;  %7078 = vmatmul.mubr.bf16.gmra.mxu1 %v11074_v50  ;;  %v6510_v44 = vadd.f32 %v6509_v3, %v6397_v41  ;;  %v2394_v38 = vadd.f32 %v2138_v42, %v1626_v10  ;;  %v1867_v7 = vld [vmem:[#allocation13 + $0x698] sm:$0xff]  ;;  %v1623_v50 = vmul.f32 0.999, %v1367_v24  ;;  %v1358_v51 = vld [vmem:[#allocation16 + $0x6b0] sm:$0xff] }
 0x546   :  { %v6573_v47 = vmax.f32 %v11431_v31, 0.0  ;;  %v6399_v54 = vadd.f32 %v6398_v21, %v12338_v19  ;;  %7087 = vmatprep.mubr.bf16.mxu1 %v11127_v5  ;;  %v2398_v34 = vadd.f32 %v2142_v25, %v1630_v15  ;;  %6964 = vmatprep.mubr.bf16.mxu0 %v11435_v61  ;;  %v2131_v43 = vmul.f32 0.001, %v1875_v30  ;;  %v1871_v6 = vld [vmem:[#allocation13 + $0x6b8] sm:$0xff]  ;;  %v1866_v63 = vld [vmem:[#allocation13 + $0x690] sm:$0xff] }
 0x547   :  { %7120 = vmatprep.subr.bf16.mxu0 %v6725_v23  ;;  %v2135_v37 = vmul.f32 0.001, %v1879_v59  ;;  %v6576_v57 = vmax.f32 %v6510_v44, 0.0  ;;  %2852 = vst [vmem:[#allocation23 + $0x710] sm:$0xff] %v2394_v38  ;;  %6965 = vmatmul.mubr.bf16.gmra.mxu0 %v11425_v48  ;;  %v1618_v5 = vmul.f32 0.999, %v1362_v60 }
 0x548   :  { %v6512_v17 = vadd.f32 %v6511_v26, %v6399_v54  ;;  %v1622_v19 = vmul.f32 0.999, %v1366_v52  ;;  %2856 = vst [vmem:[#allocation23 + $0x730] sm:$0xff] %v2398_v34  ;;  %v6724_v10 = vpack.c.bf16 %v2398_v34, %v2394_v38  ;;  %v2387_v33 = vadd.f32 %v2131_v43, %v1619_v18  ;;  %v1870_v12 = vld [vmem:[#allocation13 + $0x6b0] sm:$0xff]  ;;  %v1347_v28 = vld [vmem:[#allocation16 + $0x658] sm:$0xff] }
 0x549   :  { %v2391_v36 = vadd.f32 %v2135_v37, %v1623_v50  ;;  %v2130_v49 = vmul.f32 0.001, %v1874_v35  ;;  %v1351_v3 = vld [vmem:[#allocation16 + $0x678] sm:$0xff]  ;;  %v11442_v0 = vpack.c.bf16 %v6576_v57, %v6572_v55  ;;  %v2134_v4 = vmul.f32 0.001, %v1878_v11  ;;  %v1346_v59 = vld [vmem:[#allocation16 + $0x650] sm:$0xff] }
 0x54a   :  { %v6577_v45 = vmax.f32 %v6512_v17, 0.0  ;;  %v1611_v2 = vmul.f32 0.999, %v1355_v29  ;;  %v1859_v15 = vld [vmem:[#allocation13 + $0x658] sm:$0xff]  ;;  %7121 = vmatpush2.bf16.msra.mxu0 %v6724_v10  ;;  %2845 = vst [vmem:[#allocation23 + $0x6d8] sm:$0xff] %v2387_v33  ;;  %v1350_v60 = vld [vmem:[#allocation16 + $0x670] sm:$0xff] }
 0x54b   :  { %v1863_v24 = vld [vmem:[#allocation13 + $0x678] sm:$0xff]  ;;  %2849 = vst [vmem:[#allocation23 + $0x6f8] sm:$0xff] %v2391_v36  ;;  %v6721_v30 = vpack.c.bf16 %v2391_v36, %v2387_v33  ;;  %v2386_v31 = vadd.f32 %v2130_v49, %v1618_v5  ;;  %v1615_v41 = vmul.f32 0.999, %v1359_v1  ;;  %v2123_v42 = vmul.f32 0.001, %v1867_v7 }
 0x54c   :  { %v1858_v52 = vld [vmem:[#allocation13 + $0x650] sm:$0xff]  ;;  %v2390_v23 = vadd.f32 %v2134_v4, %v1622_v19  ;;  %v2127_v25 = vmul.f32 0.001, %v1871_v6  ;;  %v1610_v21 = vmul.f32 0.999, %v1354_v62  ;;  %v11445_v44 = vpack.c.bf16 %v6577_v45, %v6573_v47  ;;  %v1339_v54 = vld [vmem:[#allocation16 + $0x618] sm:$0xff] }
 0x54d   :  { %v1614_v55 = vmul.f32 0.999, %v1358_v51  ;;  %7122 = vmatprep.subr.bf16.mxu0 %v6721_v30  ;;  %2844 = vst [vmem:[#allocation23 + $0x6d0] sm:$0xff] %v2386_v31  ;;  %v2379_v18 = vadd.f32 %v2123_v42, %v1611_v2  ;;  %v2122_v35 = vmul.f32 0.001, %v1866_v63  ;;  %7088 = vmatmul.mubr.bf16.gmra.mxu1 %v11125_v56  ;;  %v1862_v38 = vld [vmem:[#allocation13 + $0x670] sm:$0xff] }
 0x54e   :  { %v2126_v11 = vmul.f32 0.001, %v1870_v12  ;;  %2848 = vst [vmem:[#allocation23 + $0x6f0] sm:$0xff] %v2390_v23  ;;  %v6720_v29 = vpack.c.bf16 %v2390_v23, %v2386_v31  ;;  %v2383_v1 = vadd.f32 %v2127_v25, %v1615_v41  ;;  %7357 = vmatprep.mubr.bf16.mxu1 %v7290_v46  ;;  %v1603_v7 = vmul.f32 0.999, %v1347_v28  ;;  %v1343_v34 = vld [vmem:[#allocation16 + $0x638] sm:$0xff]  ;;  %6974 = vmatprep.mubr.bf16.mxu0 %v11445_v44 }
 0x54f   :  { %v1607_v26 = vmul.f32 0.999, %v1351_v3  ;;  %v1851_v50 = vld [vmem:[#allocation13 + $0x618] sm:$0xff]  ;;  %2837 = vst [vmem:[#allocation23 + $0x698] sm:$0xff] %v2379_v18  ;;  %v2378_v43 = vadd.f32 %v2122_v35, %v1610_v21  ;;  %v2115_v56 = vmul.f32 0.001, %v1859_v15  ;;  %6975 = vmatmul.mubr.bf16.gmra.mxu0 %v11442_v0 }
 0x550   :  { %v2382_v37 = vadd.f32 %v2126_v11, %v1614_v55  ;;  %v2119_v47 = vmul.f32 0.001, %v1863_v24  ;;  %v1855_v6 = vld [vmem:[#allocation13 + $0x638] sm:$0xff]  ;;  %v1338_v62 = vld [vmem:[#allocation16 + $0x610] sm:$0xff]  ;;  %7123 = vmatpush2.bf16.msra.mxu0 %v6720_v29  ;;  %2841 = vst [vmem:[#allocation23 + $0x6b8] sm:$0xff] %v2383_v1  ;;  %v6717_v51 = vpack.c.bf16 %v2383_v1, %v2379_v18  ;;  %7130 = vmatprep.mubr.bf16.mxu0 %v11205_v22 }
 0x551   :  { %v1602_v57 = vmul.f32 0.999, %v1346_v59  ;;  %v1606_v17 = vmul.f32 0.999, %v1350_v60  ;;  %v2114_v27 = vmul.f32 0.001, %v1858_v52  ;;  %v2371_v5 = vadd.f32 %v2115_v56, %v1603_v7 }
 0x552   :  { %2836 = vst [vmem:[#allocation23 + $0x690] sm:$0xff] %v2378_v43  ;;  %2840 = vst [vmem:[#allocation23 + $0x6b0] sm:$0xff] %v2382_v37  ;;  %v6716_v46 = vpack.c.bf16 %v2382_v37, %v2378_v43  ;;  %v2375_v19 = vadd.f32 %v2119_v47, %v1607_v26  ;;  %v2118_v63 = vmul.f32 0.001, %v1862_v38  ;;  %v1342_v10 = vld [vmem:[#allocation16 + $0x630] sm:$0xff]  ;;  %7124 = vmatprep.subr.bf16.mxu0 %v6717_v51 }
 0x553   :  { %v1850_v33 = vld [vmem:[#allocation13 + $0x610] sm:$0xff]  ;;  %v2370_v49 = vadd.f32 %v2114_v27, %v1602_v57  ;;  %v1595_v12 = vmul.f32 0.999, %v1339_v54  ;;  %v1599_v28 = vmul.f32 0.999, %v1343_v34  ;;  %2829 = vst [vmem:[#allocation23 + $0x658] sm:$0xff] %v2371_v5 }
 0x554   :  { %v1854_v36 = vld [vmem:[#allocation13 + $0x630] sm:$0xff]  ;;  %v2107_v3 = vmul.f32 0.001, %v1851_v50  ;;  %2833 = vst [vmem:[#allocation23 + $0x678] sm:$0xff] %v2375_v19  ;;  %v6713_v45 = vpack.c.bf16 %v2375_v19, %v2371_v5  ;;  %v2374_v4 = vadd.f32 %v2118_v63, %v1606_v17  ;;  %v2111_v2 = vmul.f32 0.001, %v1855_v6  ;;  %7125 = vmatpush2.bf16.msra.mxu0 %v6716_v46 }
 0x555   :  { %v1594_v15 = vmul.f32 0.999, %v1338_v62  ;;  %2828 = vst [vmem:[#allocation23 + $0x650] sm:$0xff] %v2370_v49  ;;  %v1598_v30 = vmul.f32 0.999, %v1342_v10  ;;  %v12360_v17 = vld [vmem:[#allocation35_spill] sm:$0xff] }
 0x556   :  { %v2363_v24 = vadd.f32 %v2107_v3, %v1595_v12  ;;  %v2106_v31 = vmul.f32 0.001, %v1850_v33  ;;  %v2110_v41 = vmul.f32 0.001, %v1854_v36  ;;  %7126 = vmatprep.subr.bf16.mxu0 %v6713_v45  ;;  %2832 = vst [vmem:[#allocation23 + $0x670] sm:$0xff] %v2374_v4  ;;  %v6712_v42 = vpack.c.bf16 %v2374_v4, %v2370_v49  ;;  %v12361_v46 = vld [vmem:[#allocation36_spill] sm:$0xff] }
 0x557   :  { %v2367_v59 = vadd.f32 %v2111_v2, %v1599_v28  ;;  %v2424_v34 = vld [vmem:[%s11836_s14] sm:$0xf] }
 0x558   :  { %2821 = vst [vmem:[#allocation23 + $0x618] sm:$0xff] %v2363_v24  ;;  %v2362_v22 = vadd.f32 %v2106_v31, %v1594_v15  ;;  %v2366_v60 = vadd.f32 %v2110_v41, %v1598_v30  ;;  %7127 = vmatpush2.bf16.msra.mxu0 %v6712_v42  ;;  %v2426_v50 = vld [vmem:[%s11832_s10] sm:$0xf]  ;;  %v2425_v56 = vmul.f32 0.999, %v2424_v34  ;;  %s8542_s10 = smov [#allocation18]  }
 0x559   :  { %2825 = vst [vmem:[#allocation23 + $0x638] sm:$0xff] %v2367_v59  ;;  %v6709_v52 = vpack.c.bf16 %v2367_v59, %v2363_v24  ;;  %v2427_v47 = vmul.f32 0.001, %v2426_v50  ;;  %s7455_s14 = sshll.u32 %s8542_s10, 4  ;;  %s7456_s14 = int_to_ptr.vmem [resolvable:$true] %s7455_s14 }
 0x55a   :  { %2820 = vst [vmem:[#allocation23 + $0x610] sm:$0xff] %v2362_v22  ;;  %2824 = vst [vmem:[#allocation23 + $0x630] sm:$0xff] %v2366_v60  ;;  %v6708_v23 = vpack.c.bf16 %v2366_v60, %v2362_v22  ;;  %s8388_s4 = scalar_lea.vmem %s7456_s14, 512  ;;  %p8393_p4 = scmp.lt.s32.totalorder %s7456_s14, %s7456_s14 }
 0x55b   :  { %7128 = vmatprep.subr.bf16.mxu0 %v6709_v52  ;;  %v11516_v51 = vadd.f32 %v2427_v47, %v2425_v56  ;;  %p8389_p3 = scmp.ne.s32.totalorder %s7456_s14, %s8388_s4  ;;  %p8394_p5 = scmp.lt.s32.totalorder %s8388_s4, %s8388_s4 }
 0x55c   :  { %7129 = vmatpush2.bf16.msra.mxu0 %v6708_v23 }
 0x55d   :  { %v11522_v27 = vrot.slane %v11516_v51, %v12360_v17  ;;  %v11526_v5 = vrot.slane %v11516_v51, %v12361_v46  ;;  %p8395_p6 = por %p8394_p5, %p8393_p4 }
 0x55f   :  { %7131 = vmatmul.mubr.bf16.vlgmr.msra.gmra.mxu0 %v11201_v53  ;;  %p8396_p7 = pnand %p8395_p6, %p8389_p3 }
 0x560   :  { %7140 = vmatprep.mubr.bf16.mxu0 %v11257_v13  ;;  %v8205_v13 = vld [vmem:[#allocation18 + $0x18] sm:$0xff] }
 0x567   :  { %7141 = vmatmul.mubr.bf16.gmra.mxu0 %v11261_v39  ;;  %v7292_v39 = vpack.c.bf16 %v8205_v13, %v8205_v13 }
 0x568   :  { %7150 = vmatprep.mubr.bf16.mxu0 %v11320_v9 }
 0x56f   :  { %7151 = vmatmul.mubr.bf16.gmra.mxu0 %v11304_v8 }
 0x570   :  { %7160 = vmatprep.mubr.bf16.mxu0 %v11365_v40 }
 0x577   :  { %7161 = vmatmul.mubr.bf16.gmra.mxu0 %v11357_v32 }
 0x578   :  { %7170 = vmatprep.mubr.bf16.mxu0 %v11393_v14 }
 0x57f   :  { %7171 = vmatmul.mubr.bf16.gmra.mxu0 %v11389_v20 }
 0x580   :  { %7180 = vmatprep.mubr.bf16.mxu0 %v11415_v58 }
 0x587   :  { %7181 = vmatmul.mubr.bf16.gmra.mxu0 %v11408_v16 }
 0x588   :  { %7190 = vmatprep.mubr.bf16.mxu0 %v11435_v61  ;;  %v6793_v53 = vpop.f32.mrf.mxu1 }
 0x589   :  { %v6794_v63 = vadd.f32 %v6793_v53, %v11522_v27 }
 0x58a   :  { %v6795_v8 = vpop.f32.mrf.mxu1 }
 0x58b   :  { %v6796_v33 = vadd.f32 %v6795_v8, %v11526_v5 }
 0x58c   :  { %v6797_v9 = vpop.f32.mrf.mxu1 }
 0x58d   :  { %v6798_v28 = vadd.f32 %v6797_v9, %v11522_v27 }
 0x58e   :  { %v6799_v32 = vpop.f32.mrf.mxu1 }
 0x58f   :  { %7191 = vmatmul.mubr.bf16.gmra.mxu0 %v11425_v48  ;;  %v6800_v4 = vadd.f32 %v6799_v32, %v11526_v5 }
 0x590   :  { %7200 = vmatprep.mubr.bf16.mxu0 %v11445_v44 }
 0x591   :  { %v6803_v40 = vpop.f32.mrf.mxu1 }
 0x592   :  { %v6804_v30 = vadd.f32 %v6803_v40, %v11522_v27 }
 0x593   :  { %v6805_v20 = vpop.f32.mrf.mxu1 }
 0x594   :  { %v6806_v59 = vadd.f32 %v6805_v20, %v11526_v5 }
 0x595   :  { %v6807_v14 = vpop.f32.mrf.mxu1 }
 0x596   :  { %v6808_v8 = vadd.f32 %v6807_v14, %v11522_v27 }
 0x597   :  { %7201 = vmatmul.mubr.bf16.gmra.mxu0 %v11442_v0  ;;  %v6809_v58 = vpop.f32.mrf.mxu1 }
 0x598   :  { %7397 = vmatprep.mubr.bf16.mxu0 %v7292_v39  ;;  %v6810_v34 = vadd.f32 %v6809_v58, %v11526_v5 }
 0x599   :  { %v11468_v16 = vpop.f32.mrf.mxu1 }
 0x59a   :  { %v6814_v47 = vadd.f32 %v11468_v16, %v11522_v27 }
 0x59b   :  { %v11470_v61 = vpop.f32.mrf.mxu1 }
 0x59d   :  { %v11472_v48 = vpop.f32.mrf.mxu1 }
 0x59f   :  { %v11474_v25 = vpop.f32.mrf.mxu1 }
 0x5a5   :  { %v11476_v21 = vpop.f32.mrf.mxu1 }
 0x5a7   :  { %v11478_v55 = vpop.f32.mrf.mxu1 }
 0x5a9   :  { %v11480_v0 = vpop.f32.mrf.mxu1 }
 0x5ab   :  { %v11482_v18 = vpop.f32.mrf.mxu1 }
 0x5ad   :  { %v11484_v35 = vpop.f32.mrf.mxu1 }
 0x5af   :  { %v11486_v11 = vpop.f32.mrf.mxu1 }
 0x5b1   :  { %v11488_v44 = vpop.f32.mrf.mxu1 }
 0x5b3   :  { %v11490_v38 = vpop.f32.mrf.mxu1 }
 0x5b7   :  { %v11492_v54 = vpop.f32.mrf.mxu1 }
 0x5b9   :  { %v11494_v29 = vpop.f32.mrf.mxu1 }
 0x5bb   :  { %v11496_v1 = vpop.f32.mrf.mxu1 }
 0x5bd   :  { %v11498_v7 = vpop.f32.mrf.mxu1 }
 0x5c2   :  { %v11500_v26 = vpop.f32.mrf.mxu1 }
 0x5c4   :  { %v11508_v43 = vpop.f32.mrf.mxu1 }
 0x5c6   :  { %v11510_v37 = vpop.f32.mrf.mxu1 }
 0x5c8   :  { %v11512_v6 = vpop.f32.mrf.mxu1 }
 0x5cb   :  { %v11514_v62 = vpop.f32.mrf.mxu1 }
 0x5cd   :  { %v11518_v57 = vpop.f32.mrf.mxu1 }
 0x5cf   :  { %v11528_v19 = vpop.f32.mrf.mxu1 }
 0x5d1   :  { %v11532_v49 = vpop.f32.mrf.mxu1 }
 0x5d5   :  { %v6906_v10 = vpop.f32.mrf.mxu0  ;;  %v11536_v15 = vpop.f32.mrf.mxu1 }
 0x5d6   :  { %v6907_v36 = vadd.f32 %v6906_v10, %v6794_v63  ;;  %v6816_v10 = vadd.f32 %v11470_v61, %v11526_v5 }
 0x5d7   :  { %v6908_v12 = vpop.f32.mrf.mxu0  ;;  %v11542_v13 = vpop.f32.mrf.mxu1 }
 0x5d8   :  { %v6909_v3 = vadd.f32 %v6908_v12, %v6796_v33  ;;  %v7211_v31 = vmax.f32 %v6907_v36, 0.0 }
 0x5d9   :  { %v6910_v45 = vpop.f32.mrf.mxu0  ;;  %v11548_v56 = vpop.f32.mrf.mxu1 }
 0x5da   :  { %v6911_v2 = vadd.f32 %v6910_v45, %v6798_v28  ;;  %v7212_v60 = vmax.f32 %v6909_v3, 0.0  ;;  %v6818_v45 = vadd.f32 %v11472_v48, %v11522_v27 }
 0x5db   :  { %v6912_v24 = vpop.f32.mrf.mxu0  ;;  %v11556_v58 = vpop.f32.mrf.mxu1 }
 0x5dc   :  { %v7215_v41 = vmax.f32 %v6911_v2, 0.0  ;;  %v6913_v42 = vadd.f32 %v6912_v24, %v6800_v4  ;;  %v6820_v24 = vadd.f32 %v11474_v25, %v11526_v5  ;;  %v6828_v25 = vadd.f32 %v11480_v0, %v11522_v27 }
 0x5dd   :  { %v6916_v22 = vpop.f32.mrf.mxu0 }
 0x5de   :  { %v11540_v52 = vpack.c.bf16 %v7215_v41, %v7211_v31  ;;  %v7216_v23 = vmax.f32 %v6913_v42, 0.0  ;;  %v6917_v53 = vadd.f32 %v6916_v22, %v6804_v30  ;;  %v11564_v30 = vpop.f32.mrf.mxu1  ;;  %v6824_v41 = vadd.f32 %v11476_v21, %v11522_v27 }
 0x5df   :  { %v6918_v39 = vpop.f32.mrf.mxu0 }
 0x5e0   :  { %12362 = vst [vmem:[#allocation81_spill] sm:$0xff] %v11540_v52  ;;  %v11545_v9 = vpack.c.bf16 %v7216_v23, %v7212_v60  ;;  %v6919_v32 = vadd.f32 %v6918_v39, %v6806_v59  ;;  %v7219_v17 = vmax.f32 %v6917_v53, 0.0  ;;  %v6870_v52 = vadd.f32 %v11532_v49, %v11526_v5 }
 0x5e1   :  { %v6920_v40 = vpop.f32.mrf.mxu0  ;;  %v6858_v49 = vadd.f32 %v11510_v37, %v11522_v27  ;;  %v6846_v37 = vadd.f32 %v11494_v29, %v11526_v5 }
 0x5e2   :  { %12363 = vst [vmem:[#allocation84_spill] sm:$0xff] %v11545_v9  ;;  %v6921_v50 = vadd.f32 %v6920_v40, %v6808_v8  ;;  %v7220_v33 = vmax.f32 %v6919_v32, 0.0  ;;  %v11570_v8 = vpop.f32.mrf.mxu1 }
 0x5e3   :  { %v6922_v20 = vpop.f32.mrf.mxu0 }
 0x5e4   :  { %v7223_v46 = vmax.f32 %v6921_v50, 0.0  ;;  %v6923_v63 = vadd.f32 %v6922_v20, %v6810_v34  ;;  %v11578_v50 = vpop.f32.mrf.mxu1 }
 0x5e6   :  { %v6926_v14 = vpop.f32.mrf.mxu0  ;;  %v11554_v36 = vpack.c.bf16 %v7223_v46, %v7219_v17  ;;  %v7224_v12 = vmax.f32 %v6923_v63, 0.0 }
 0x5e7   :  { %v6927_v28 = vadd.f32 %v6926_v14, %v6814_v47 }
 0x5e8   :  { %12364 = vst [vmem:[#allocation51_spill] sm:$0xff] %v11554_v36  ;;  %v6928_v3 = vpop.f32.mrf.mxu0  ;;  %v11560_v4 = vpack.c.bf16 %v7224_v12, %v7220_v33 }
 0x5e9   :  { %v6929_v16 = vadd.f32 %v6928_v3, %v6816_v10  ;;  %v7227_v42 = vmax.f32 %v6927_v28, 0.0  ;;  %v11586_v10 = vpop.f32.mrf.mxu1 }
 0x5ea   :  { %12365 = vst [vmem:[#allocation52_spill] sm:$0xff] %v11560_v4  ;;  %v6930_v2 = vpop.f32.mrf.mxu0 }
 0x5eb   :  { %v6931_v61 = vadd.f32 %v6930_v2, %v6818_v45  ;;  %v7228_v23 = vmax.f32 %v6929_v16, 0.0  ;;  %v11592_v0 = vpop.f32.mrf.mxu1 }
 0x5ec   :  { %v6932_v31 = vpop.f32.mrf.mxu0 }
 0x5ed   :  { %v7231_v59 = vmax.f32 %v6931_v61, 0.0  ;;  %v6933_v22 = vadd.f32 %v6932_v31, %v6820_v24  ;;  %v11598_v3 = vpop.f32.mrf.mxu1 }
 0x5ee   :  { %v6936_v60 = vpop.f32.mrf.mxu0 }
 0x5ef   :  { %v11568_v48 = vpack.c.bf16 %v7231_v59, %v7227_v42  ;;  %v7232_v53 = vmax.f32 %v6933_v22, 0.0  ;;  %v6937_v39 = vadd.f32 %v6936_v60, %v6824_v41  ;;  %v11602_v2 = vpop.f32.mrf.mxu1 }
 0x5f0   :  { %v11572_v32 = vpop.f32.mrf.mxu0 }
 0x5f1   :  { %12366 = vst [vmem:[#allocation47_spill] sm:$0xff] %v11568_v48  ;;  %v11576_v40 = vpack.c.bf16 %v7232_v53, %v7228_v23  ;;  %v7235_v47 = vmax.f32 %v6937_v39, 0.0  ;;  %v11604_v31 = vpop.f32.mrf.mxu1  ;;  %v6860_v39 = vadd.f32 %v11512_v6, %v11526_v5 }
 0x5f2   :  { %v6940_v34 = vpop.f32.mrf.mxu0  ;;  %12369 = vst [vmem:[#allocation59_spill] sm:$0xff] %v11604_v31 }
 0x5f3   :  { %12367 = vst [vmem:[#allocation55_spill] sm:$0xff] %v11576_v40  ;;  %v6941_v21 = vadd.f32 %v6940_v34, %v6828_v25  ;;  %v11606_v59 = vpop.f32.mrf.mxu1  ;;  %v6866_v25 = vadd.f32 %v11518_v57, %v11526_v5  ;;  %v6868_v34 = vadd.f32 %v11528_v19, %v11522_v27 }
 0x5f4   :  { %v11580_v20 = vpop.f32.mrf.mxu0  ;;  %12370 = vst [vmem:[#allocation60_spill] sm:$0xff] %v11606_v59 }
 0x5f5   :  { %v7239_v17 = vmax.f32 %v6941_v21, 0.0  ;;  %v11608_v60 = vpop.f32.mrf.mxu1  ;;  %v6856_v21 = vadd.f32 %v11508_v43, %v11526_v5  ;;  %v12373_v43 = vld [vmem:[#allocation37_spill] sm:$0xff] }
 0x5f6   :  { %v11582_v46 = vpop.f32.mrf.mxu0  ;;  %12371 = vst [vmem:[#allocation48_spill] sm:$0xff] %v11608_v60  ;;  %v11628_v59 = vrot.slane %v11516_v51, %v12373_v43 }
 0x5f7   :  { %v11584_v63 = vpack.c.bf16 %v7239_v17, %v7235_v47  ;;  %v6864_v47 = vadd.f32 %v11514_v62, %v11522_v27  ;;  %v11620_v17 = vpop.f32.mrf.mxu1 }
 0x5f8   :  { %v11588_v14 = vpop.f32.mrf.mxu0  ;;  %12372 = vst [vmem:[#allocation63_spill] sm:$0xff] %v11620_v17  ;;  %v7024_v29 = vadd.f32 %v11548_v56, %v11628_v59 }
 0x5f9   :  { %12368 = vst [vmem:[#allocation56_spill] sm:$0xff] %v11584_v63  ;;  %v11624_v19 = vpop.f32.mrf.mxu1 }
 0x5fa   :  { %v11590_v33 = vpop.f32.mrf.mxu0 }
 0x5fc   :  { %v11594_v12 = vpop.f32.mrf.mxu0 }
 0x5ff   :  { %v11596_v28 = vpop.f32.mrf.mxu0 }
 0x601   :  { %v6958_v45 = vpop.f32.mrf.mxu0 }
 0x603   :  { %v11600_v16 = vpop.f32.mrf.mxu0 }
 0x605   :  { %v6962_v24 = vpop.f32.mrf.mxu0 }
 0x607   :  { %v6966_v61 = vpop.f32.mrf.mxu0 }
 0x609   :  { %v6968_v41 = vpop.f32.mrf.mxu0 }
 0x60a   :  { %v6969_v48 = vadd.f32 %v6968_v41, %v6856_v21 }
 0x60b   :  { %v6970_v42 = vpop.f32.mrf.mxu0 }
 0x60c   :  { %v7260_v41 = vmax.f32 %v6969_v48, 0.0 }
 0x60d   :  { %v6972_v22 = vpop.f32.mrf.mxu0 }
 0x60e   :  { %v6973_v9 = vadd.f32 %v6972_v22, %v6860_v39  ;;  %v11640_v39 = vpop.f32.mrf.mxu1 }
 0x60f   :  { %v6976_v23 = vpop.f32.mrf.mxu0 }
 0x610   :  { %v6977_v4 = vadd.f32 %v6976_v23, %v6864_v47  ;;  %v7264_v62 = vmax.f32 %v6973_v9, 0.0  ;;  %v12374_v23 = vld [vmem:[#allocation38_spill] sm:$0xff]  ;;  %v6971_v9 = vadd.f32 %v6970_v42, %v6858_v49  ;;  %v11648_v42 = vpop.f32.mrf.mxu1  ;;  %v7030_v49 = vadd.f32 %v11564_v30, %v11628_v59 }
 0x611   :  { %v6978_v53 = vpop.f32.mrf.mxu0 }
 0x612   :  { %v6979_v6 = vadd.f32 %v6978_v53, %v6866_v25  ;;  %v7267_v22 = vmax.f32 %v6977_v4, 0.0  ;;  %v6854_v53 = vadd.f32 %v11500_v26, %v11522_v27  ;;  %v7020_v4 = vadd.f32 %v11536_v15, %v11628_v59 }
 0x613   :  { %v6980_v60 = vpop.f32.mrf.mxu0  ;;  %v7318_v25 = vpack.c.bf16 %v7264_v62, %v7260_v41  ;;  %v6959_v26 = vadd.f32 %v6958_v45, %v6846_v37 }
 0x614   :  { %v6981_v36 = vadd.f32 %v6980_v60, %v6868_v34  ;;  %v7268_v17 = vmax.f32 %v6979_v6, 0.0  ;;  %v6850_v60 = vadd.f32 %v11498_v7, %v11526_v5  ;;  %v6967_v34 = vadd.f32 %v6966_v61, %v6854_v53 }
 0x615   :  { %v6982_v57 = vpop.f32.mrf.mxu0  ;;  %v6836_v61 = vadd.f32 %v11486_v11, %v11526_v5  ;;  %v7252_v56 = vmax.f32 %v6959_v26, 0.0  ;;  %v11664_v11 = vpop.f32.mrf.mxu1  ;;  %v6838_v26 = vadd.f32 %v11488_v44, %v11522_v27 }
 0x616   :  { %v6983_v40 = vadd.f32 %v6982_v57, %v6870_v52  ;;  %v7271_v63 = vmax.f32 %v6981_v36, 0.0  ;;  %v11636_v52 = vrot.slane %v11516_v51, %v12374_v23  ;;  %v6963_v7 = vadd.f32 %v6962_v24, %v6850_v60 }
 0x617   :  { %v7259_v45 = vmax.f32 %v6967_v34, 0.0  ;;  %v6844_v57 = vadd.f32 %v11492_v54, %v11522_v27  ;;  %v6949_v53 = vadd.f32 %v11588_v14, %v6836_v61  ;;  %v7034_v34 = vadd.f32 %v11578_v50, %v11628_v59 }
 0x618   :  { %v7272_v31 = vmax.f32 %v6983_v40, 0.0  ;;  %v7321_v40 = vpack.c.bf16 %v7271_v63, %v7267_v22  ;;  %v7022_v48 = vadd.f32 %v11542_v13, %v11636_v52  ;;  %v7263_v63 = vmax.f32 %v6971_v9, 0.0 }
 0x619   :  { %v7256_v15 = vmax.f32 %v6963_v7, 0.0  ;;  %v6848_v13 = vadd.f32 %v11496_v1, %v11522_v27  ;;  %v7026_v43 = vadd.f32 %v11556_v58, %v11636_v52  ;;  %v7032_v58 = vadd.f32 %v11570_v8, %v11636_v52 }
 0x61a   :  { %v7322_v36 = vpack.c.bf16 %v7272_v31, %v7268_v17  ;;  %v6840_v17 = vadd.f32 %v11490_v38, %v11526_v5  ;;  %v7317_v1 = vpack.c.bf16 %v7263_v63, %v7259_v45  ;;  %v6957_v9 = vadd.f32 %v11596_v28, %v6844_v57 }
 0x61b   :  { %v6961_v22 = vadd.f32 %v11600_v16, %v6848_v13  ;;  %v7314_v23 = vpack.c.bf16 %v7256_v15, %v7252_v56  ;;  %v6826_v28 = vadd.f32 %v11478_v55, %v11526_v5  ;;  %v7036_v50 = vadd.f32 %v11586_v10, %v11636_v52 }
 0x61c   :  { %7325 = vmatprep.subr.bf16.mxu1 %v7322_v36  ;;  %v6953_v38 = vadd.f32 %v11594_v12, %v6840_v17 }
 0x61d   :  { %7326 = vmatpush1.bf16.xpose.msra.mxu1 %v7321_v40  ;;  %v7255_v7 = vmax.f32 %v6961_v22, 0.0  ;;  %v6939_v10 = vadd.f32 %v11572_v32, %v6826_v28 }
 0x61e   :  { %7327 = vmatprep.subr.bf16.mxu1 %v7318_v25  ;;  %v7248_v8 = vmax.f32 %v6953_v38, 0.0  ;;  %v7044_v38 = vadd.f32 %v11602_v2, %v11628_v59 }
 0x61f   :  { %v7132_v21 = vpop.f32.mrf.mxu0 }
 0x620   :  { %v7133_v31 = vadd.f32 %v7132_v21, %v7020_v4  ;;  %v11674_v4 = vpop.f32.mrf.mxu1 }
 0x621   :  { %v7134_v47 = vpop.f32.mrf.mxu0 }
 0x622   :  { %v7135_v24 = vadd.f32 %v7134_v47, %v7022_v48  ;;  %v7213_v41 = vmax.f32 %v7133_v31, 0.0  ;;  %v6830_v48 = vadd.f32 %v11482_v18, %v11526_v5  ;;  %v7251_v31 = vmax.f32 %v6957_v9, 0.0  ;;  %v11694_v5 = vpop.f32.mrf.mxu1 }
 0x623   :  { %v7136_v6 = vpop.f32.mrf.mxu0  ;;  %v6834_v47 = vadd.f32 %v11484_v35, %v11522_v27  ;;  %v6951_v18 = vadd.f32 %v11590_v33, %v6838_v26  ;;  %v7042_v27 = vadd.f32 %v11598_v3, %v11636_v52  ;;  %v12377_v26 = vld [vmem:[#allocation63_spill] sm:$0xff] }
 0x624   :  { %v7137_v62 = vadd.f32 %v7136_v6, %v7024_v29  ;;  %v7214_v40 = vmax.f32 %v7135_v24, 0.0  ;;  %v7244_v29 = vmax.f32 %v6949_v53, 0.0  ;;  %v7040_v24 = vadd.f32 %v11592_v0, %v11628_v59 }
 0x625   :  { %v7138_v60 = vpop.f32.mrf.mxu0  ;;  %7328 = vmatpush1.bf16.xpose.msra.mxu1 %v7317_v1  ;;  %v6943_v55 = vadd.f32 %v11580_v20, %v6830_v48  ;;  %v7313_v44 = vpack.c.bf16 %v7255_v7, %v7251_v31  ;;  %v6947_v6 = vadd.f32 %v11582_v46, %v6834_v47  ;;  %v7247_v56 = vmax.f32 %v6951_v18, 0.0 }
 0x626   :  { %v7217_v36 = vmax.f32 %v7137_v62, 0.0  ;;  %v7139_v54 = vadd.f32 %v7138_v60, %v7026_v43  ;;  %7329 = vmatprep.subr.bf16.mxu1 %v7314_v23  ;;  %v7310_v17 = vpack.c.bf16 %v7248_v8, %v7244_v29  ;;  %v11702_v62 = vpop.f32.mrf.mxu1  ;;  %v12375_v60 = vld [vmem:[#allocation59_spill] sm:$0xff]  ;;  %v7054_v31 = vadd.f32 %v12377_v26, %v11628_v59 }
 0x627   :  { %v7142_v30 = vpop.f32.mrf.mxu0  ;;  %v7240_v3 = vmax.f32 %v6943_v55, 0.0  ;;  %v7243_v46 = vmax.f32 %v6947_v6, 0.0  ;;  %v7046_v23 = vadd.f32 %v12375_v60, %v11636_v52 }
 0x628   :  { %v11672_v37 = vpack.c.bf16 %v7217_v36, %v7213_v41  ;;  %v7218_v12 = vmax.f32 %v7139_v54, 0.0  ;;  %v7143_v16 = vadd.f32 %v7142_v30, %v7030_v49  ;;  %v7236_v41 = vmax.f32 %v6939_v10, 0.0  ;;  %v12376_v54 = vld [vmem:[#allocation60_spill] sm:$0xff]  ;;  %v11712_v9 = vpop.f32.mrf.mxu1 }
 0x629   :  { %v7144_v25 = vpop.f32.mrf.mxu0  ;;  %v7309_v53 = vpack.c.bf16 %v7247_v56, %v7243_v46  ;;  %v12383_v46 = vld [vmem:[#allocation84_spill] sm:$0xff] }
 0x62a   :  { %v11678_v21 = vpack.c.bf16 %v7218_v12, %v7214_v40  ;;  %v7145_v14 = vadd.f32 %v7144_v25, %v7032_v58  ;;  %v7221_v13 = vmax.f32 %v7143_v16, 0.0  ;;  %v7050_v58 = vadd.f32 %v12376_v54, %v11628_v59  ;;  %v7075_v28 = vpop.f32.mrf.mxu1 }
 0x62b   :  { %v7146_v63 = vpop.f32.mrf.mxu0  ;;  %v7306_v40 = vpack.c.bf16 %v7240_v3, %v7236_v41 }
 0x62c   :  { %v7147_v15 = vadd.f32 %v7146_v63, %v7034_v34  ;;  %v7222_v20 = vmax.f32 %v7145_v14, 0.0  ;;  %v7079_v29 = vpop.f32.mrf.mxu1 }
 0x62d   :  { %v7148_v61 = vpop.f32.mrf.mxu0  ;;  %7330 = vmatpush1.bf16.xpose.msra.mxu1 %v7313_v44  ;;  %v12378_v44 = vld [vmem:[#allocation56_spill] sm:$0xff] }
 0x62e   :  { %v7225_v45 = vmax.f32 %v7147_v15, 0.0  ;;  %v7149_v35 = vadd.f32 %v7148_v61, %v7036_v50  ;;  %7331 = vmatprep.subr.bf16.mxu1 %v7310_v17  ;;  %v12379_v17 = vld [vmem:[#allocation55_spill] sm:$0xff] }
 0x62f   :  { %v7152_v0 = vpop.f32.mrf.mxu0 }
 0x630   :  { %v11700_v57 = vpack.c.bf16 %v7225_v45, %v7221_v13  ;;  %v7226_v33 = vmax.f32 %v7149_v35, 0.0  ;;  %v7153_v43 = vadd.f32 %v7152_v0, %v7040_v24  ;;  %v7081_v13 = vpop.f32.mrf.mxu1  ;;  %v12380_v0 = vld [vmem:[#allocation47_spill] sm:$0xff] }
 0x631   :  { %v7154_v49 = vpop.f32.mrf.mxu0 }
 0x632   :  { %v11706_v22 = vpack.c.bf16 %v7226_v33, %v7222_v20  ;;  %v7155_v32 = vadd.f32 %v7154_v49, %v7042_v27  ;;  %v7229_v2 = vmax.f32 %v7153_v43, 0.0  ;;  %v7083_v27 = vpop.f32.mrf.mxu1  ;;  %v12381_v20 = vld [vmem:[#allocation52_spill] sm:$0xff] }
 0x633   :  { %v7156_v1 = vpop.f32.mrf.mxu0 }
 0x634   :  { %v7157_v36 = vadd.f32 %v7156_v1, %v7044_v38  ;;  %v7230_v25 = vmax.f32 %v7155_v32, 0.0  ;;  %v7085_v33 = vpop.f32.mrf.mxu1  ;;  %v12382_v32 = vld [vmem:[#allocation51_spill] sm:$0xff] }
 0x635   :  { %v7158_v30 = vpop.f32.mrf.mxu0  ;;  %7332 = vmatpush1.bf16.xpose.msra.mxu1 %v7309_v53 }
 0x636   :  { %v7233_v12 = vmax.f32 %v7157_v36, 0.0  ;;  %v7159_v16 = vadd.f32 %v7158_v30, %v7046_v23  ;;  %7333 = vmatprep.subr.bf16.mxu1 %v7306_v40  ;;  %v7089_v49 = vpop.f32.mrf.mxu1  ;;  %v7086_v40 = vadd.f32 %v7085_v33, %v11636_v52 }
 0x637   :  { %v7162_v7 = vpop.f32.mrf.mxu0 }
 0x638   :  { %v11714_v34 = vpack.c.bf16 %v7233_v12, %v7229_v2  ;;  %v7234_v8 = vmax.f32 %v7159_v16, 0.0  ;;  %v7163_v14 = vadd.f32 %v7162_v7, %v7050_v58  ;;  %v7091_v1 = vpop.f32.mrf.mxu1  ;;  %v12384_v58 = vld [vmem:[#allocation81_spill] sm:$0xff]  ;;  %v8206_v16 = vld [vmem:[#allocation18] sm:$0xff] }
 0x639   :  { %v11716_v48 = vpop.f32.mrf.mxu0  ;;  %v7092_v2 = vadd.f32 %v7091_v1, %v11636_v52  ;;  %v7289_v7 = vpack.c.bf16 %v8206_v16, %v8206_v16 }
 0x63a   :  { %v11720_v63 = vpack.c.bf16 %v7234_v8, %v7230_v25  ;;  %v7237_v24 = vmax.f32 %v7163_v14, 0.0  ;;  %v7093_v41 = vpop.f32.mrf.mxu1  ;;  %v7082_v25 = vadd.f32 %v7081_v13, %v11636_v52  ;;  %v7090_v8 = vadd.f32 %v7089_v49, %v11628_v59 }
 0x63b   :  { %v7166_v47 = vpop.f32.mrf.mxu0  ;;  %v7094_v12 = vadd.f32 %v7093_v41, %v11628_v59  ;;  %v7076_v49 = vadd.f32 %v7075_v28, %v11636_v52  ;;  %v7074_v28 = vadd.f32 %v11712_v9, %v11628_v59 }
 0x63c   :  { %v7167_v50 = vadd.f32 %v7166_v47, %v7054_v31  ;;  %v7095_v53 = vpop.f32.mrf.mxu1 }
 0x63d   :  { %v11722_v15 = vpop.f32.mrf.mxu0  ;;  %7334 = vmatpush1.bf16.xpose.msra.mxu1 %v12378_v44  ;;  %v7096_v26 = vadd.f32 %v7095_v53, %v11636_v52 }
 0x63e   :  { %v7241_v55 = vmax.f32 %v7167_v50, 0.0  ;;  %7335 = vmatprep.subr.bf16.mxu1 %v12379_v17 }
 0x63f   :  { %v11724_v18 = vpop.f32.mrf.mxu0 }
 0x640   :  { %v11727_v61 = vpack.c.bf16 %v7241_v55, %v7237_v24 }
 0x641   :  { %v11730_v45 = vpop.f32.mrf.mxu0 }
 0x643   :  { %v11732_v35 = vpop.f32.mrf.mxu0 }
 0x645   :  { %v11734_v10 = vpop.f32.mrf.mxu0  ;;  %7336 = vmatpush1.bf16.xpose.msra.mxu1 %v12380_v0 }
 0x646   :  { %7337 = vmatprep.subr.bf16.mxu1 %v12381_v20 }
 0x647   :  { %v11736_v6 = vpop.f32.mrf.mxu0 }
 0x649   :  { %v7184_v43 = vpop.f32.mrf.mxu0 }
 0x64b   :  { %v7186_v56 = vpop.f32.mrf.mxu0 }
 0x64d   :  { %v7188_v38 = vpop.f32.mrf.mxu0  ;;  %7338 = vmatpush1.bf16.xpose.msra.mxu1 %v12382_v32 }
 0x64e   :  { %7339 = vmatprep.subr.bf16.mxu1 %v12383_v46  ;;  %v7084_v46 = vadd.f32 %v7083_v27, %v11628_v59 }
 0x64f   :  { %v7192_v3 = vpop.f32.mrf.mxu0 }
 0x651   :  { %v7194_v60 = vpop.f32.mrf.mxu0 }
 0x652   :  { %v7195_v44 = vadd.f32 %v7194_v60, %v7082_v25  ;;  %v7072_v60 = vadd.f32 %v11702_v62, %v11636_v52  ;;  %v7070_v62 = vadd.f32 %v11694_v5, %v11628_v59 }
 0x653   :  { %v7196_v23 = vpop.f32.mrf.mxu0 }
 0x654   :  { %v7262_v1 = vmax.f32 %v7195_v44, 0.0 }
 0x655   :  { %v7198_v36 = vpop.f32.mrf.mxu0  ;;  %7340 = vmatpush1.bf16.xpose.msra.mxu1 %v12384_v58  ;;  %v7197_v58 = vadd.f32 %v7196_v23, %v7084_v46 }
 0x656   :  { %v7199_v31 = vadd.f32 %v7198_v36, %v7086_v40  ;;  %v7080_v36 = vadd.f32 %v7079_v29, %v11628_v59  ;;  %v7066_v29 = vadd.f32 %v11674_v4, %v11636_v52 }
 0x657   :  { %v7202_v54 = vpop.f32.mrf.mxu0  ;;  %v7265_v27 = vmax.f32 %v7197_v58, 0.0 }
 0x658   :  { %v7203_v24 = vadd.f32 %v7202_v54, %v7090_v8  ;;  %v7266_v20 = vmax.f32 %v7199_v31, 0.0  ;;  %v7189_v54 = vadd.f32 %v7188_v38, %v7076_v49  ;;  %v7193_v40 = vadd.f32 %v7192_v3, %v7080_v36 }
 0x659   :  { %v7204_v30 = vpop.f32.mrf.mxu0  ;;  %v7187_v38 = vadd.f32 %v7186_v56, %v7074_v28  ;;  %v7062_v3 = vadd.f32 %v11648_v42, %v11636_v52  ;;  %v7183_v8 = vadd.f32 %v11736_v6, %v7070_v62  ;;  %v7056_v56 = vadd.f32 %v11624_v19, %v11636_v52 }
 0x65a   :  { %v7205_v47 = vadd.f32 %v7204_v30, %v7092_v2  ;;  %v7269_v13 = vmax.f32 %v7203_v24, 0.0  ;;  %v7320_v30 = vpack.c.bf16 %v7266_v20, %v7262_v1  ;;  %v7185_v2 = vadd.f32 %v7184_v43, %v7072_v60 }
 0x65b   :  { %v7206_v14 = vpop.f32.mrf.mxu0  ;;  %v7261_v16 = vmax.f32 %v7193_v40, 0.0  ;;  %v7179_v43 = vadd.f32 %v11734_v10, %v7066_v29  ;;  %v7175_v9 = vadd.f32 %v11730_v45, %v7062_v3  ;;  %v7253_v5 = vmax.f32 %v7183_v8, 0.0 }
 0x65c   :  { %v7207_v50 = vadd.f32 %v7206_v14, %v7094_v12  ;;  %7358 = vmatmul.mubr.bf16.vlgmr.msra.gmra.mxu1 %v7289_v7  ;;  %v7270_v33 = vmax.f32 %v7205_v47, 0.0  ;;  %v7258_v12 = vmax.f32 %v7189_v54, 0.0  ;;  %v7254_v23 = vmax.f32 %v7185_v2, 0.0  ;;  %v12385_v47 = vld [vmem:[#allocation48_spill] sm:$0xff] }
 0x65d   :  { %v7208_v55 = vpop.f32.mrf.mxu0  ;;  %v7319_v7 = vpack.c.bf16 %v7265_v27, %v7261_v16  ;;  %v7257_v14 = vmax.f32 %v7187_v38, 0.0  ;;  %v7250_v4 = vmax.f32 %v7179_v43, 0.0  ;;  %v7246_v31 = vmax.f32 %v7175_v9, 0.0 }
 0x65e   :  { %v7209_v17 = vadd.f32 %v7208_v55, %v7096_v26  ;;  %v7273_v0 = vmax.f32 %v7207_v50, 0.0  ;;  %v7316_v25 = vpack.c.bf16 %v7258_v12, %v7254_v23  ;;  %v7064_v26 = vadd.f32 %v11664_v11, %v11628_v59 }
 0x65f   :  { %v7060_v42 = vadd.f32 %v11640_v39, %v11628_v59  ;;  %v7315_v6 = vpack.c.bf16 %v7257_v14, %v7253_v5  ;;  %v7052_v45 = vadd.f32 %v12385_v47, %v11636_v52  ;;  %v7169_v50 = vadd.f32 %v11722_v15, %v7056_v56  ;;  %v8207_v52 = vld [vmem:[#allocation18 + $0x10] sm:$0xff] }
 0x660   :  { %v7274_v32 = vmax.f32 %v7209_v17, 0.0  ;;  %v7323_v53 = vpack.c.bf16 %v7273_v0, %v7269_v13  ;;  %v7177_v10 = vadd.f32 %v11732_v35, %v7064_v26  ;;  %v7312_v24 = vpack.c.bf16 %v7250_v4, %v7246_v31 }
 0x661   :  { %v7173_v55 = vadd.f32 %v11724_v18, %v7060_v42  ;;  %v7165_v11 = vadd.f32 %v11716_v48, %v7052_v45  ;;  %v7242_v44 = vmax.f32 %v7169_v50, 0.0  ;;  %v7291_v48 = vpack.c.bf16 %v8207_v52, %v8207_v52 }
 0x662   :  { %v7324_v41 = vpack.c.bf16 %v7274_v32, %v7270_v33  ;;  %v7249_v19 = vmax.f32 %v7177_v10, 0.0 }
 0x663   :  { %v7245_v17 = vmax.f32 %v7173_v55, 0.0  ;;  %v7238_v0 = vmax.f32 %v7165_v11, 0.0 }
 0x664   :  { %7365 = vmatprep.subr.bf16.mxu0 %v7324_v41 }
 0x665   :  { %7366 = vmatpush1.bf16.xpose.msra.mxu0 %v7323_v53  ;;  %v7311_v59 = vpack.c.bf16 %v7249_v19, %v7245_v17  ;;  %v7308_v39 = vpack.c.bf16 %v7242_v44, %v7238_v0  ;;  %v12387_v53 = vld [vmem:[#allocation83_spill] sm:$0xff] }
 0x666   :  { %7367 = vmatprep.subr.bf16.mxu0 %v7320_v30 }
 0x66d   :  { %7368 = vmatpush1.bf16.xpose.msra.mxu0 %v7319_v7 }
 0x66e   :  { %7369 = vmatprep.subr.bf16.mxu0 %v7316_v25 }
 0x675   :  { %7370 = vmatpush1.bf16.xpose.msra.mxu0 %v7315_v6 }
 0x676   :  { %7371 = vmatprep.subr.bf16.mxu0 %v7312_v24 }
 0x67d   :  { %7372 = vmatpush1.bf16.xpose.msra.mxu0 %v7311_v59 }
 0x67e   :  { %7373 = vmatprep.subr.bf16.mxu0 %v7308_v39 }
 0x685   :  { %7374 = vmatpush1.bf16.xpose.msra.mxu0 %v11727_v61  ;;  %v12386_v61 = vlaneseq }
 0x686   :  { %7375 = vmatprep.subr.bf16.mxu0 %v11720_v63 }
 0x687   :  { %v7407_v33 = vand.u32 127, %v12386_v61  ;;  %vm2623_vm1 = vcmp.lt.s32.totalorder %v12386_v61, 512 }
 0x688   :  { %2625 = vst.msk [vmem:[#allocation21] sm:$0xf] %vm2623_vm1, %v12387_v53  ;;  %2882 = vst.msk [vmem:[#allocation24] sm:$0xf] %vm2623_vm1, %v11516_v51 }
 0x689   :  { %vm7408_vm0 = vcmp.lt.s32.totalorder %v7407_v33, 64 }
 0x68d   :  { %7376 = vmatpush1.bf16.xpose.msra.mxu0 %v11714_v34 }
 0x68e   :  { %7377 = vmatprep.subr.bf16.mxu0 %v11706_v22 }
 0x695   :  { %7378 = vmatpush1.bf16.xpose.msra.mxu0 %v11700_v57 }
 0x696   :  { %7379 = vmatprep.subr.bf16.mxu0 %v11678_v21  ;;  %v7287_v21 = vpop.xlane.xlu0 %7286 }
 0x69d   :  { %7380 = vmatpush1.bf16.xpose.msra.mxu0 %v11672_v37  ;;  %v11785_v37 = vmul.f32 14.285714, %v7287_v21 }
 0x6a4   :  { %7398 = vmatmul.mubr.bf16.vlgmr.msra.gmra.mxu0 %v7291_v48 }
 0x71c   :  { %v7359_v15 = vpop.f32.mrf.mxu1 }
 0x71e   :  { %v7361_v18 = vpop.f32.mrf.mxu1 }
 0x720   :  { %v7362_v35 = vpop.f32.mrf.mxu1 }
 0x722   :  { %v7363_v20 = vpop.f32.mrf.mxu1 }
 0x764   :  { %v7399_v63 = vpop.f32.mrf.mxu0 }
 0x765   :  { %v7400_v32 = vadd.f32 %v7399_v63, %v7359_v15 }
 0x766   :  { %v7401_v34 = vpop.f32.mrf.mxu0 }
 0x767   :  { %v7405_v22 = vmul.f32 14.285714, %v7400_v32 }
 0x768   :  { %v7402_v46 = vpop.f32.mrf.mxu0 }
 0x769   :  { %v7409_v57 = vsel %vm7408_vm0, %v7405_v22, -1e+30 }
 0x76a   :  { %v7403_v13 = vpop.f32.mrf.mxu0  ;;  %7410 = vmax.xlane.f32.xlu0 %v7409_v57 }
 0x7f3   :  { %v7411_v49 = vpop.xlane.xlu0 %7410 }
 0x7f4   :  { %v11788_v1 = vmax.f32 %v11785_v37, %v7411_v49 }
 0x7f6   :  { %v7416_v41 = vsub.f32 %v7409_v57, %v11788_v1 }
 0x7f8   :  { %v7417_v36 = vmul.f32 1.442695, %v7416_v41 }
 0x7fa   :  { %8192 = vpow2.f32 %v7417_v36 }
 0x807   :  { %v8193_v58 = vpop.eup %8192 }
 0x808   :  { %7419 = vadd.xlane.f32.xlu1 %v8193_v58 }
 0x809   :  { %8399 = shalt.err (!%p8396_p7)
}
 0x80a   :  { %7458 = dma.vmem_to_hbm [thread:$0]  %s7456_s14, 512, %s11838_s16, [#allocation19]  }
 0x80b   :  { %s8408_s6 = scalar_lea.vmem %s7478_s13, 64  ;;  %p8413_p9 = scmp.lt.s32.totalorder %s7478_s13, %s7478_s13 }
 0x80c   :  { %p8409_p8 = scmp.ne.s32.totalorder %s7478_s13, %s8408_s6  ;;  %p8414_p10 = scmp.lt.s32.totalorder %s8408_s6, %s8408_s6 }
 0x80e   :  { %p8415_p11 = por %p8414_p10, %p8413_p9 }
 0x810   :  { %p8416_p12 = pnand %p8415_p11, %p8409_p8 }
 0x812   :  { %8419 = shalt.err (!%p8416_p12)
}
 0x813   :  { %7480 = dma.vmem_to_hbm [thread:$0]  %s7478_s13, 64, %s11840_s18, [#allocation22]  }
 0x814   :  { %s8544_s22 = smov [#allocation20]  }
 0x815   :  { %s7464_s25 = sshll.u32 %s8544_s22, 4  ;;  %s7465_s25 = int_to_ptr.vmem [resolvable:$true] %s7464_s25 }
 0x816   :  { %s8428_s3 = scalar_lea.vmem %s7465_s25, 24576  ;;  %p8433_p0 = scmp.lt.s32.totalorder %s7465_s25, %s7465_s25 }
 0x817   :  { %p8429_p13 = scmp.ne.s32.totalorder %s7465_s25, %s8428_s3  ;;  %p8434_p1 = scmp.lt.s32.totalorder %s8428_s3, %s8428_s3 }
 0x819   :  { %p8435_p2 = por %p8434_p1, %p8433_p0 }
 0x81b   :  { %p8436_p3 = pnand %p8435_p2, %p8429_p13 }
 0x81d   :  { %8439 = shalt.err (!%p8436_p3)
}
 0x81e   :  { %7470 = dma.vmem_to_hbm [thread:$0]  %s7465_s25, 24576, %s11839_s17, [#allocation19], %s11995_s27, %s11995_s27, %s8532_s2  }
 0x81f   :  { %s8545_s11 = smov [#allocation23]   ;;  %s8546_s18 = smov [#allocation24]  }
 0x820   :  { %s7486_s12 = sshll.u32 %s8545_s11, 4  ;;  %s7499_s26 = sshll.u32 %s8546_s18, 4  ;;  %s7487_s12 = int_to_ptr.vmem [resolvable:$true] %s7486_s12  ;;  %s7500_s26 = int_to_ptr.vmem [resolvable:$true] %s7499_s26 }
 0x821   :  { %s8448_s8 = scalar_lea.vmem %s7487_s12, 32768  ;;  %p8453_p5 = scmp.lt.s32.totalorder %s7487_s12, %s7487_s12 }
 0x822   :  { %p8449_p4 = scmp.ne.s32.totalorder %s7487_s12, %s8448_s8  ;;  %p8454_p6 = scmp.lt.s32.totalorder %s8448_s8, %s8448_s8 }
 0x824   :  { %p8455_p7 = por %p8454_p6, %p8453_p5 }
 0x826   :  { %p8456_p8 = pnand %p8455_p7, %p8449_p4 }
 0x828   :  { %8459 = shalt.err (!%p8456_p8)
}
 0x829   :  { %7492 = dma.vmem_to_hbm [thread:$0]  %s7487_s12, 32768, %s11841_s19, [#allocation22], %s11995_s27, %s11995_s27, %s8532_s2  }
 0x82a   :  { %s8468_s17 = scalar_lea.vmem %s7500_s26, 64  ;;  %p8473_p10 = scmp.lt.s32.totalorder %s7500_s26, %s7500_s26 }
 0x82b   :  { %p8469_p9 = scmp.ne.s32.totalorder %s7500_s26, %s8468_s17  ;;  %p8474_p11 = scmp.lt.s32.totalorder %s8468_s17, %s8468_s17 }
 0x82d   :  { %p8475_p12 = por %p8474_p11, %p8473_p10 }
 0x82f   :  { %p8476_p13 = pnand %p8475_p12, %p8469_p9 }
 0x831   :  { %8479 = shalt.err (!%p8476_p13)
}
 0x832   :  { %7502 = dma.vmem_to_hbm [thread:$0]  %s7500_s26, 64, %s11842_s20, [#allocation25]   ;;  %v7413_v51 = vsub.f32 %v11785_v37, %v11788_v1  ;;  %vm7437_vm2 = vcmask 0  }
 0x833   :  { %s8547_s19 = smov [#allocation17]  }
 0x834   :  { %v7414_v60 = vmul.f32 1.442695, %v7413_v51  ;;  %s7445_s20 = sshll.u32 %s8547_s19, 4  ;;  %s7446_s20 = int_to_ptr.vmem [resolvable:$true] %s7445_s20 }
 0x835   :  { %s8488_s2 = scalar_lea.vmem %s7446_s20, 16  ;;  %s8492_s27 = scalar_lea.vmem %s7446_s20, 32 }
 0x836   :  { %8194 = vpow2.f32 %v7414_v60  ;;  %p8489_p0 = scmp.ne.s32.totalorder %s7446_s20, %s8488_s2  ;;  %p8493_p1 = scmp.lt.s32.totalorder %s7446_s20, %s7446_s20 }
 0x837   :  { %p8494_p2 = scmp.lt.s32.totalorder %s8492_s27, %s8488_s2 }
 0x839   :  { %p8495_p3 = por %p8494_p2, %p8493_p1 }
 0x83b   :  { %p8496_p4 = pnand %p8495_p3, %p8489_p0 }
 0x843   :  { %v8195_v54 = vpop.eup %8194 }
 0x891   :  { %v7420_v30 = vpop.xlane.xlu1 %7419 }
 0x892   :  { %v7421_v40 = vadd.f32 %v8195_v54, %v7420_v30 }
 0x894   :  { %8196 = vlog2.f32 %v7421_v40 }
 0x8a1   :  { %v8197_v2 = vpop.eup %8196 }
 0x8a2   :  { %v7423_v27 = vmul.f32 0.6931472, %v8197_v2 }
 0x8a4   :  { %v7424_v12 = vadd.f32 %v7423_v27, %v11788_v1 }
 0x8a6   :  { %v7425_v28 = vsub.f32 %v7424_v12, %v11785_v37 }
 0x8a8   :  { %v7430_v16 = vrot.slane %v7425_v28, 4 }
 0x8aa   :  { %v7431_v29 = vadd.f32 %v7430_v16, %v7425_v28 }
 0x8ac   :  { %v7432_v23 = vrot.slane %v7431_v29, 2 }
 0x8ae   :  { %v7433_v62 = vadd.f32 %v7432_v23, %v7431_v29 }
 0x8b0   :  { %v7434_v38 = vrot.slane %v7433_v62, 1 }
 0x8b2   :  { %v7435_v7 = vadd.f32 %v7434_v38, %v7433_v62 }
 0x8b4   :  { %v7436_v3 = vmul.f32 0.125, %v7435_v7 }
 0x8b6   :  { %7438 = vst.msk [vmem:[#allocation17] sm:$0x1] %vm7437_vm2, %v7436_v3 }
 0x8b7   :  { %8499 = shalt.err (!%p8496_p4)
}
 0x8b8   :  { %7448 = dma.vmem_to_hbm [thread:$0]  %s7446_s20, 16, %s11837_s15, [#allocation4]  }
 0x8b9   :  { %8518 = dma.done.wait [#allocation4], 16  }
 0x8ba   :  { %8519 = vsyncadd [#allocation4], 4294967280 }
 0x8bb   :  { %8520 = dma.done.wait [#allocation19], 25088  }
 0x8bc   :  { %8521 = vsyncadd [#allocation19], 4294942208 }
 0x8bd   :  { %8522 = dma.done.wait [#allocation22], 32832  }
 0x8be   :  { %8523 = vsyncadd [#allocation22], 4294934464 }
 0x8bf   :  { %8524 = dma.done.wait [#allocation25], 64  }
 0x8c0   :  { %8525 = vsyncadd [#allocation25], 4294967232 }
 0x8c1   :  { %7521 = vsyncpa [#allocation3], 1 }
 0x8c2   :  { %7522 = vsyncpa [#allocation6], 1 }
 0x8c3   :  { %7523 = vsyncpa [#allocation9], 1 }
 0x8c4   :  { %7524 = vsyncpa [#allocation12], 1 }
 0x8c5   :  { %7525 = vsyncpa [#allocation15], 1 }
 0x8c6   :  { %7526 = vsyncpa [#allocation4], 1 }
 0x8c7   :  { %7527 = vsyncpa [#allocation19], 1 }
 0x8c8   :  { %7528 = vsyncpa [#allocation22], 1 }
 0x8c9   :  { %7529 = vsyncpa [#allocation25], 1 }

</bundles_post_ra>
